<compile_context>
chip_gen: v5e
topology: v5e:2x2
jax: 0.10.0
libtpu: 0.0.40
codegen_flags: <defaults>
</compile_context>

<pallas_src>
import functools

import jax
import jax.numpy as jnp
from jax.experimental import pallas as pl
from jax.experimental.pallas import tpu as pltpu


# ----------------------------------------------------------------------------
# Fused forward kernel (one grid step == one image)
# ----------------------------------------------------------------------------
def _fused_forward_kernel(x_ref, w1_ref, b1_ref, w2_ref, b2_ref,
                          wd_ref, bd_ref, ws_ref, bs_ref, wdm_ref, bdm_ref,
                          seg_ref, dom_ref,
                          xpad_ref, dpad_ref, patch_ref,
                          *, H, W, Cin, C1, C2):
    HW = H * W
    Hs, Ws = H // 2, W // 2
    HWs = Hs * Ws
    Cdec = C1 + C2
    Hp, Wp = H + 2, W + 2

    # ---- zero only the 1-px halo border strips (interior is overwritten) ----
    for ref, C in ((xpad_ref, Cin), (dpad_ref, Cdec)):
        ref[0:1, :, :] = jnp.zeros((1, Wp, C), jnp.float32)
        ref[Hp - 1:Hp, :, :] = jnp.zeros((1, Wp, C), jnp.float32)
        ref[:, 0:1, :] = jnp.zeros((Hp, 1, C), jnp.float32)
        ref[:, Wp - 1:Wp, :] = jnp.zeros((Hp, 1, C), jnp.float32)

    # ----------------- encoder conv1: 3x3, stride 1, pad 1, ReLU ------------
    xpad_ref[1:H + 1, 1:W + 1, :] = x_ref[0]
    xp = xpad_ref[...]
    for t in range(9):
        dy, dx = divmod(t, 3)
        patch_ref[:, t * Cin:(t + 1) * Cin] = (
            xp[dy:dy + H, dx:dx + W, :].reshape(HW, Cin))
    f1 = jnp.dot(patch_ref[:, :9 * Cin], w1_ref[...],
                 preferred_element_type=jnp.float32)
    f1 = jnp.maximum(f1 + b1_ref[...], 0.0)                      # (HW, C1)

    # f1 goes into the padded decoder scratch (channels [C2:]) right away;
    # conv2 reads its padded input from there (channel-offset write also
    # implements half of concat([f2_up, f1], -1) without a concat).
    dpad_ref[1:H + 1, 1:W + 1, C2:Cdec] = f1.reshape(H, W, C1)

    # ----------- encoder conv2: 3x3, stride 2, pad 1, ReLU ------------------
    # Strided gather via static phase slices (no iota, no selection matmuls):
    # padded row 2*oy+dy lives at block dy//2 with parity dy%2 of the
    # (Hs+1, 2)-grouped row axis; same decomposition for columns.  All
    # reshapes keep the minor (channel) dim, so they lower cheaply.
    fp1 = dpad_ref[:, :, C2:Cdec]                      # (Hp, Wp, C1) padded f1
    fpA = fp1.reshape(Hs + 1, 2 * Wp, C1)              # row pairs on axis 1
    for dy in range(3):
        ay, ry = dy // 2, dy % 2
        rows = fpA[ay:ay + Hs, ry * Wp:(ry + 1) * Wp, :]          # (Hs, Wp, C1)
        pair = rows.reshape(Hs * (Ws + 1), 2, C1)                 # col pairs
        cols = [pair[:, r:r + 1, :].reshape(Hs, Ws + 1, C1) for r in range(2)]
        for dx in range(3):
            ax, rx = dx // 2, dx % 2
            slab = cols[rx][:, ax:ax + Ws, :]                     # (Hs, Ws, C1)
            t = dy * 3 + dx
            patch_ref[:HWs, t * C1:(t + 1) * C1] = slab.reshape(HWs, C1)
    f2 = jnp.dot(patch_ref[:HWs, :9 * C1], w2_ref[...],
                 preferred_element_type=jnp.float32)
    f2 = jnp.maximum(f2 + b2_ref[...], 0.0)                       # (HWs, C2)

    # --------- domain head: GRL (identity fwd) -> GAP -> linear -------------
    # TODO(synk): GRL gradient negation is a jax.custom_vjp around the wrapper
    # (backward-only); it is not expressible as forward kernel work.
    pooled = jnp.mean(f2, axis=0, keepdims=True)                  # (1, C2)
    dom_ref[0] = (jnp.dot(pooled, wdm_ref[...],
                          preferred_element_type=jnp.float32) + bdm_ref[...])

    # ----- decoder: nearest 2x upsample of f2 ++ f1 -> 3x3 conv + ReLU ------
    # Upsample via broadcast + minor-dim-preserving reshapes (pure layout).
    f2_hw = f2.reshape(Hs, Ws, C2)                                # (Hs, Ws, C2)
    wide = jnp.broadcast_to(f2_hw[:, :, None, :],
                            (Hs, Ws, 2, C2)).reshape(Hs, W, C2)
    up = jnp.broadcast_to(wide[:, None, :, :],
                          (Hs, 2, W, C2)).reshape(H, W, C2)
    dpad_ref[1:H + 1, 1:W + 1, 0:C2] = up        # finish concat([f2_up, f1])
    dp = dpad_ref[...]
    for t in range(9):
        dy, dx = divmod(t, 3)
        patch_ref[:, t * Cdec:(t + 1) * Cdec] = (
            dp[dy:dy + H, dx:dx + W, :].reshape(HW, Cdec))
    dec = jnp.dot(patch_ref[...], wd_ref[...],
                  preferred_element_type=jnp.float32)
    dec = jnp.maximum(dec + bd_ref[...], 0.0)                     # (HW, Cd)

    # -------- segmentation head (1x1 conv), lane-dense (NCLS, HW) output ----
    seg = jnp.dot(dec, ws_ref[...],
                  preferred_element_type=jnp.float32) + bs_ref[...]
    seg_ref[0] = jnp.transpose(seg, (1, 0))                       # (NCLS, HW)


def _fused_forward(x_nhwc, params):
    N, H, W, Cin = x_nhwc.shape
    assert H % 2 == 0 and W % 2 == 0, "even spatial dims required"
    C1 = params["enc1_w"].shape[-1]
    C2 = params["enc2_w"].shape[-1]
    Cd = params["dec_w"].shape[-1]
    NCLS = params["seg_w"].shape[-1]
    NDOM = params["dom_w"].shape[-1]
    Cdec = C1 + C2
    HW = H * W

    # flatten conv weights to im2col layout (tap-major, then in-channel)
    w1 = params["enc1_w"].reshape(9 * Cin, C1)
    w2 = params["enc2_w"].reshape(9 * C1, C2)
    wd = params["dec_w"].reshape(9 * Cdec, Cd)
    ws = params["seg_w"]
    wdm = params["dom_w"]
    b1 = params["enc1_b"].reshape(1, C1)
    b2 = params["enc2_b"].reshape(1, C2)
    bd = params["dec_b"].reshape(1, Cd)
    bs = params["seg_b"].reshape(1, NCLS)
    bdm = params["dom_b"].reshape(1, NDOM)

    kernel = functools.partial(_fused_forward_kernel,
                               H=H, W=W, Cin=Cin, C1=C1, C2=C2)
    rep2 = lambda n: (0, 0)

    seg_cls_hw, dom3 = pl.pallas_call(
        kernel,
        out_shape=(jax.ShapeDtypeStruct((N, NCLS, HW), jnp.float32),
                   jax.ShapeDtypeStruct((N, 1, NDOM), jnp.float32)),
        grid=(N,),
        in_specs=[
            pl.BlockSpec((1, H, W, Cin), lambda n: (n, 0, 0, 0)),
            pl.BlockSpec((9 * Cin, C1), rep2),
            pl.BlockSpec((1, C1), rep2),
            pl.BlockSpec((9 * C1, C2), rep2),
            pl.BlockSpec((1, C2), rep2),
            pl.BlockSpec((9 * Cdec, Cd), rep2),
            pl.BlockSpec((1, Cd), rep2),
            pl.BlockSpec((Cd, NCLS), rep2),
            pl.BlockSpec((1, NCLS), rep2),
            pl.BlockSpec((C2, NDOM), rep2),
            pl.BlockSpec((1, NDOM), rep2),
        ],
        out_specs=(
            pl.BlockSpec((1, NCLS, HW), lambda n: (n, 0, 0)),   # lane-dense HW
            pl.BlockSpec((1, 1, NDOM), lambda n: (n, 0, 0)),
        ),
        scratch_shapes=[
            pltpu.VMEM((H + 2, W + 2, Cin), jnp.float32),    # padded input
            pltpu.VMEM((H + 2, W + 2, Cdec), jnp.float32),   # padded dec input
            pltpu.VMEM((HW, 9 * Cdec), jnp.float32),         # im2col patches
        ],
        compiler_params=pltpu.CompilerParams(
            dimension_semantics=("parallel",)),
    )(x_nhwc, w1, b1, w2, b2, wd, bd, ws, bs, wdm, bdm)
    return seg_cls_hw, dom3


# ----------------------------------------------------------------------------
# Model (forward pass, training mode)
# ----------------------------------------------------------------------------
def init_params(key):
    C_in, C1, C2, Cd, NCLS, NDOM = 4, 8, 16, 16, 3, 2
    ks = jax.random.split(key, 10)
    s = 0.1
    return {
        "enc1_w": s * jax.random.normal(ks[0], (3, 3, C_in, C1), jnp.float32),
        "enc1_b": s * jax.random.normal(ks[1], (C1,), jnp.float32),
        "enc2_w": s * jax.random.normal(ks[2], (3, 3, C1, C2), jnp.float32),
        "enc2_b": s * jax.random.normal(ks[3], (C2,), jnp.float32),
        "dec_w": s * jax.random.normal(ks[4], (3, 3, C1 + C2, Cd), jnp.float32),
        "dec_b": s * jax.random.normal(ks[5], (Cd,), jnp.float32),
        "seg_w": s * jax.random.normal(ks[6], (Cd, NCLS), jnp.float32),
        "seg_b": s * jax.random.normal(ks[7], (NCLS,), jnp.float32),
        "dom_w": s * jax.random.normal(ks[8], (C2, NDOM), jnp.float32),
        "dom_b": s * jax.random.normal(ks[9], (NDOM,), jnp.float32),
    }


def forward(params, x_nchw, training=True):
    # x_nchw: (N, C, H, W) like PyTorch; one tiny transpose to NHWC, then the
    # whole forward runs inside a single fused Pallas kernel.
    N, _, H, W = x_nchw.shape
    x = jnp.transpose(x_nchw, (0, 2, 3, 1)).astype(jnp.float32)
    seg_cls_hw, dom3 = _fused_forward(x, params)
    NCLS = seg_cls_hw.shape[1]
    seg_nchw = seg_cls_hw.reshape(N, NCLS, H, W)     # lane-dense out: no transpose
    if not training:
        return seg_nchw
    return seg_nchw, dom3[:, 0, :]


# ----------------------------------------------------------------------------
# Pure-JAX reference (independent path: lax.conv) for correctness check
# ----------------------------------------------------------------------------
def _ref_conv3x3(x, w, b, relu, stride):
    out = jax.lax.conv_general_dilated(
        x, w, window_strides=(stride, stride), padding=((1, 1), (1, 1)),
        dimension_numbers=("NHWC", "HWIO", "NHWC"))
    out = out + b[None, None, None, :]
    return jnp.maximum(out, 0.0) if relu else out


def reference_forward(params, x_nchw):
    x = jnp.transpose(x_nchw, (0, 2, 3, 1)).astype(jnp.float32)
    f1 = _ref_conv3x3(x, params["enc1_w"], params["enc1_b"], True, 1)
    f2 = _ref_conv3x3(f1, params["enc2_w"], params["enc2_b"], True, 2)
    f2_up = jnp.repeat(jnp.repeat(f2, 2, axis=1), 2, axis=2)
    dec_in = jnp.concatenate([f2_up, f1], axis=-1)
    dec = _ref_conv3x3(dec_in, params["dec_w"], params["dec_b"], True, 1)
    seg = jnp.einsum("nhwc,ck->nhwk", dec, params["seg_w"]) + params["seg_b"]
    seg_nchw = jnp.transpose(seg, (0, 3, 1, 2))
    pooled = jnp.mean(f2, axis=(1, 2))
    dom = pooled @ params["dom_w"] + params["dom_b"]
    return seg_nchw, dom


# ----------------------------------------------------------------------------
if __name__ == "__main__":
    key = jax.random.PRNGKey(0)
    k_in, k_par = jax.random.split(key)

    x = jax.random.normal(k_in, (2, 4, 16, 16), jnp.float32)  # NCHW like torch
    params = init_params(k_par)

    seg_out, dom_out = forward(params, x, training=True)
    seg_out = jax.block_until_ready(seg_out)
    dom_out = jax.block_until_ready(dom_out)

    seg_ref, dom_ref = reference_forward(params, x)
    assert seg_out.shape == (2, 3, 16, 16), seg_out.shape
    assert dom_out.shape == (2, 2), dom_out.shape
    assert jnp.allclose(seg_out, seg_ref, atol=2e-4, rtol=2e-4), (
        float(jnp.max(jnp.abs(seg_out - seg_ref))))
    assert jnp.allclose(dom_out, dom_ref, atol=2e-4, rtol=2e-4), (
        float(jnp.max(jnp.abs(dom_out - dom_ref))))

    print("KERNEL_OK")
</pallas_src>

<mosaic_0001>
module attributes {stable_mosaic.version = 11 : i64} {
  func.func @_fused_forward_kernel(%arg0: i32, %arg1: memref<1x16x16x4xf32, #tpu.memory_space<vmem>>, %arg2: memref<36x8xf32, #tpu.memory_space<vmem>>, %arg3: memref<1x8xf32, #tpu.memory_space<vmem>>, %arg4: memref<72x16xf32, #tpu.memory_space<vmem>>, %arg5: memref<1x16xf32, #tpu.memory_space<vmem>>, %arg6: memref<216x16xf32, #tpu.memory_space<vmem>>, %arg7: memref<1x16xf32, #tpu.memory_space<vmem>>, %arg8: memref<16x3xf32, #tpu.memory_space<vmem>>, %arg9: memref<1x3xf32, #tpu.memory_space<vmem>>, %arg10: memref<16x2xf32, #tpu.memory_space<vmem>>, %arg11: memref<1x2xf32, #tpu.memory_space<vmem>>, %arg12: memref<1x3x256xf32, #tpu.memory_space<vmem>>, %arg13: memref<1x1x2xf32, #tpu.memory_space<vmem>>, %arg14: memref<18x18x4xf32, #tpu.memory_space<vmem>>, %arg15: memref<18x18x24xf32, #tpu.memory_space<vmem>>, %arg16: memref<256x216xf32, #tpu.memory_space<vmem>>) attributes {dimension_semantics = [#tpu.dimension_semantics<parallel>], iteration_bounds = array<i64: 2>, scalar_prefetch = 0 : i64, scratch_operands = 3 : i64, tpu.core_type = #tpu.core_type<tc>, window_params = [{transform_indices = @transform_0, window_bounds = array<i64: 1, 16, 16, 4>}, {pipeline_mode = #tpu.pipeline_mode<synchronous>, transform_indices = @transform_1, window_bounds = array<i64: 36, 8>}, {pipeline_mode = #tpu.pipeline_mode<synchronous>, transform_indices = @transform_2, window_bounds = array<i64: 1, 8>}, {pipeline_mode = #tpu.pipeline_mode<synchronous>, transform_indices = @transform_3, window_bounds = array<i64: 72, 16>}, {pipeline_mode = #tpu.pipeline_mode<synchronous>, transform_indices = @transform_4, window_bounds = array<i64: 1, 16>}, {pipeline_mode = #tpu.pipeline_mode<synchronous>, transform_indices = @transform_5, window_bounds = array<i64: 216, 16>}, {pipeline_mode = #tpu.pipeline_mode<synchronous>, transform_indices = @transform_6, window_bounds = array<i64: 1, 16>}, {pipeline_mode = #tpu.pipeline_mode<synchronous>, transform_indices = @transform_7, window_bounds = array<i64: 16, 3>}, {pipeline_mode = #tpu.pipeline_mode<synchronous>, transform_indices = @transform_8, window_bounds = array<i64: 1, 3>}, {pipeline_mode = #tpu.pipeline_mode<synchronous>, transform_indices = @transform_9, window_bounds = array<i64: 16, 2>}, {pipeline_mode = #tpu.pipeline_mode<synchronous>, transform_indices = @transform_10, window_bounds = array<i64: 1, 2>}, {transform_indices = @transform_11, window_bounds = array<i64: 1, 3, 256>}, {transform_indices = @transform_12, window_bounds = array<i64: 1, 1, 2>}]} {
    %cst = arith.constant 0.000000e+00 : f32
    %0 = vector.broadcast %cst : f32 to vector<1x18x4xf32>
    %c0 = arith.constant 0 : index
    %c0_0 = arith.constant 0 : index
    %c0_1 = arith.constant 0 : index
    %1 = vector.load %arg14[%c0, %c0_0, %c0_1] : memref<18x18x4xf32, #tpu.memory_space<vmem>>, vector<1x18x4xf32>
    tpu.vector_store %arg14[%c0, %c0_0, %c0_1], %0 {strides = array<i32>} : memref<18x18x4xf32, #tpu.memory_space<vmem>>, vector<1x18x4xf32>,
    %cst_2 = arith.constant 0.000000e+00 : f32
    %2 = vector.broadcast %cst_2 : f32 to vector<1x18x4xf32>
    %c17 = arith.constant 17 : index
    %c0_3 = arith.constant 0 : index
    %c0_4 = arith.constant 0 : index
    %3 = vector.load %arg14[%c17, %c0_3, %c0_4] : memref<18x18x4xf32, #tpu.memory_space<vmem>>, vector<1x18x4xf32>
    tpu.vector_store %arg14[%c17, %c0_3, %c0_4], %2 {strides = array<i32>} : memref<18x18x4xf32, #tpu.memory_space<vmem>>, vector<1x18x4xf32>,
    %cst_5 = arith.constant 0.000000e+00 : f32
    %4 = vector.broadcast %cst_5 : f32 to vector<18x1x4xf32>
    %c0_6 = arith.constant 0 : index
    %c0_7 = arith.constant 0 : index
    %c0_8 = arith.constant 0 : index
    %5 = vector.load %arg14[%c0_6, %c0_7, %c0_8] : memref<18x18x4xf32, #tpu.memory_space<vmem>>, vector<18x1x4xf32>
    tpu.vector_store %arg14[%c0_6, %c0_7, %c0_8], %4 {strides = array<i32>} : memref<18x18x4xf32, #tpu.memory_space<vmem>>, vector<18x1x4xf32>,
    %cst_9 = arith.constant 0.000000e+00 : f32
    %6 = vector.broadcast %cst_9 : f32 to vector<18x1x4xf32>
    %c0_10 = arith.constant 0 : index
    %c17_11 = arith.constant 17 : index
    %c0_12 = arith.constant 0 : index
    %7 = vector.load %arg14[%c0_10, %c17_11, %c0_12] : memref<18x18x4xf32, #tpu.memory_space<vmem>>, vector<18x1x4xf32>
    tpu.vector_store %arg14[%c0_10, %c17_11, %c0_12], %6 {strides = array<i32>} : memref<18x18x4xf32, #tpu.memory_space<vmem>>, vector<18x1x4xf32>,
    %cst_13 = arith.constant 0.000000e+00 : f32
    %8 = vector.broadcast %cst_13 : f32 to vector<1x18x24xf32>
    %c0_14 = arith.constant 0 : index
    %c0_15 = arith.constant 0 : index
    %c0_16 = arith.constant 0 : index
    %9 = vector.load %arg15[%c0_14, %c0_15, %c0_16] : memref<18x18x24xf32, #tpu.memory_space<vmem>>, vector<1x18x24xf32>
    tpu.vector_store %arg15[%c0_14, %c0_15, %c0_16], %8 {strides = array<i32>} : memref<18x18x24xf32, #tpu.memory_space<vmem>>, vector<1x18x24xf32>,
    %cst_17 = arith.constant 0.000000e+00 : f32
    %10 = vector.broadcast %cst_17 : f32 to vector<1x18x24xf32>
    %c17_18 = arith.constant 17 : index
    %c0_19 = arith.constant 0 : index
    %c0_20 = arith.constant 0 : index
    %11 = vector.load %arg15[%c17_18, %c0_19, %c0_20] : memref<18x18x24xf32, #tpu.memory_space<vmem>>, vector<1x18x24xf32>
    tpu.vector_store %arg15[%c17_18, %c0_19, %c0_20], %10 {strides = array<i32>} : memref<18x18x24xf32, #tpu.memory_space<vmem>>, vector<1x18x24xf32>,
    %cst_21 = arith.constant 0.000000e+00 : f32
    %12 = vector.broadcast %cst_21 : f32 to vector<18x1x24xf32>
    %c0_22 = arith.constant 0 : index
    %c0_23 = arith.constant 0 : index
    %c0_24 = arith.constant 0 : index
    %13 = vector.load %arg15[%c0_22, %c0_23, %c0_24] : memref<18x18x24xf32, #tpu.memory_space<vmem>>, vector<18x1x24xf32>
    tpu.vector_store %arg15[%c0_22, %c0_23, %c0_24], %12 {strides = array<i32>} : memref<18x18x24xf32, #tpu.memory_space<vmem>>, vector<18x1x24xf32>,
    %cst_25 = arith.constant 0.000000e+00 : f32
    %14 = vector.broadcast %cst_25 : f32 to vector<18x1x24xf32>
    %c0_26 = arith.constant 0 : index
    %c17_27 = arith.constant 17 : index
    %c0_28 = arith.constant 0 : index
    %15 = vector.load %arg15[%c0_26, %c17_27, %c0_28] : memref<18x18x24xf32, #tpu.memory_space<vmem>>, vector<18x1x24xf32>
    tpu.vector_store %arg15[%c0_26, %c17_27, %c0_28], %14 {strides = array<i32>} : memref<18x18x24xf32, #tpu.memory_space<vmem>>, vector<18x1x24xf32>,
    %c0_29 = arith.constant 0 : index
    %c0_30 = arith.constant 0 : index
    %c0_31 = arith.constant 0 : index
    %c0_32 = arith.constant 0 : index
    %16 = vector.load %arg1[%c0_29, %c0_30, %c0_31, %c0_32] : memref<1x16x16x4xf32, #tpu.memory_space<vmem>>, vector<1x16x16x4xf32>
    %17 = vector.shape_cast %16 : vector<1x16x16x4xf32> to vector<16x16x4xf32>
    %c1 = arith.constant 1 : index
    %c1_33 = arith.constant 1 : index
    %c0_34 = arith.constant 0 : index
    %18 = vector.load %arg14[%c1, %c1_33, %c0_34] : memref<18x18x4xf32, #tpu.memory_space<vmem>>, vector<16x16x4xf32>
    tpu.vector_store %arg14[%c1, %c1_33, %c0_34], %17 {strides = array<i32>} : memref<18x18x4xf32, #tpu.memory_space<vmem>>, vector<16x16x4xf32>,
    %c0_35 = arith.constant 0 : index
    %c0_36 = arith.constant 0 : index
    %c0_37 = arith.constant 0 : index
    %19 = vector.load %arg14[%c0_35, %c0_36, %c0_37] : memref<18x18x4xf32, #tpu.memory_space<vmem>>, vector<18x18x4xf32>
    %20 = vector.extract_strided_slice %19 {offsets = [0, 0, 0], sizes = [16, 16, 4], strides = [1, 1, 1]} : vector<18x18x4xf32> to vector<16x16x4xf32>
    %21 = vector.shape_cast %20 : vector<16x16x4xf32> to vector<256x4xf32>
    %c0_38 = arith.constant 0 : index
    %c0_39 = arith.constant 0 : index
    %22 = vector.load %arg16[%c0_38, %c0_39] : memref<256x216xf32, #tpu.memory_space<vmem>>, vector<256x4xf32>
    tpu.vector_store %arg16[%c0_38, %c0_39], %21 {strides = array<i32>} : memref<256x216xf32, #tpu.memory_space<vmem>>, vector<256x4xf32>,
    %23 = vector.extract_strided_slice %19 {offsets = [0, 1, 0], sizes = [16, 16, 4], strides = [1, 1, 1]} : vector<18x18x4xf32> to vector<16x16x4xf32>
    %24 = vector.shape_cast %23 : vector<16x16x4xf32> to vector<256x4xf32>
    %c0_40 = arith.constant 0 : index
    %c4 = arith.constant 4 : index
    %25 = vector.load %arg16[%c0_40, %c4] : memref<256x216xf32, #tpu.memory_space<vmem>>, vector<256x4xf32>
    tpu.vector_store %arg16[%c0_40, %c4], %24 {strides = array<i32>} : memref<256x216xf32, #tpu.memory_space<vmem>>, vector<256x4xf32>,
    %26 = vector.extract_strided_slice %19 {offsets = [0, 2, 0], sizes = [16, 16, 4], strides = [1, 1, 1]} : vector<18x18x4xf32> to vector<16x16x4xf32>
    %27 = vector.shape_cast %26 : vector<16x16x4xf32> to vector<256x4xf32>
    %c0_41 = arith.constant 0 : index
    %c8 = arith.constant 8 : index
    %28 = vector.load %arg16[%c0_41, %c8] : memref<256x216xf32, #tpu.memory_space<vmem>>, vector<256x4xf32>
    tpu.vector_store %arg16[%c0_41, %c8], %27 {strides = array<i32>} : memref<256x216xf32, #tpu.memory_space<vmem>>, vector<256x4xf32>,
    %29 = vector.extract_strided_slice %19 {offsets = [1, 0, 0], sizes = [16, 16, 4], strides = [1, 1, 1]} : vector<18x18x4xf32> to vector<16x16x4xf32>
    %30 = vector.shape_cast %29 : vector<16x16x4xf32> to vector<256x4xf32>
    %c0_42 = arith.constant 0 : index
    %c12 = arith.constant 12 : index
    %31 = vector.load %arg16[%c0_42, %c12] : memref<256x216xf32, #tpu.memory_space<vmem>>, vector<256x4xf32>
    tpu.vector_store %arg16[%c0_42, %c12], %30 {strides = array<i32>} : memref<256x216xf32, #tpu.memory_space<vmem>>, vector<256x4xf32>,
    %32 = vector.extract_strided_slice %19 {offsets = [1, 1, 0], sizes = [16, 16, 4], strides = [1, 1, 1]} : vector<18x18x4xf32> to vector<16x16x4xf32>
    %33 = vector.shape_cast %32 : vector<16x16x4xf32> to vector<256x4xf32>
    %c0_43 = arith.constant 0 : index
    %c16 = arith.constant 16 : index
    %34 = vector.load %arg16[%c0_43, %c16] : memref<256x216xf32, #tpu.memory_space<vmem>>, vector<256x4xf32>
    tpu.vector_store %arg16[%c0_43, %c16], %33 {strides = array<i32>} : memref<256x216xf32, #tpu.memory_space<vmem>>, vector<256x4xf32>,
    %35 = vector.extract_strided_slice %19 {offsets = [1, 2, 0], sizes = [16, 16, 4], strides = [1, 1, 1]} : vector<18x18x4xf32> to vector<16x16x4xf32>
    %36 = vector.shape_cast %35 : vector<16x16x4xf32> to vector<256x4xf32>
    %c0_44 = arith.constant 0 : index
    %c20 = arith.constant 20 : index
    %37 = vector.load %arg16[%c0_44, %c20] : memref<256x216xf32, #tpu.memory_space<vmem>>, vector<256x4xf32>
    tpu.vector_store %arg16[%c0_44, %c20], %36 {strides = array<i32>} : memref<256x216xf32, #tpu.memory_space<vmem>>, vector<256x4xf32>,
    %38 = vector.extract_strided_slice %19 {offsets = [2, 0, 0], sizes = [16, 16, 4], strides = [1, 1, 1]} : vector<18x18x4xf32> to vector<16x16x4xf32>
    %39 = vector.shape_cast %38 : vector<16x16x4xf32> to vector<256x4xf32>
    %c0_45 = arith.constant 0 : index
    %c24 = arith.constant 24 : index
    %40 = vector.load %arg16[%c0_45, %c24] : memref<256x216xf32, #tpu.memory_space<vmem>>, vector<256x4xf32>
    tpu.vector_store %arg16[%c0_45, %c24], %39 {strides = array<i32>} : memref<256x216xf32, #tpu.memory_space<vmem>>, vector<256x4xf32>,
    %41 = vector.extract_strided_slice %19 {offsets = [2, 1, 0], sizes = [16, 16, 4], strides = [1, 1, 1]} : vector<18x18x4xf32> to vector<16x16x4xf32>
    %42 = vector.shape_cast %41 : vector<16x16x4xf32> to vector<256x4xf32>
    %c0_46 = arith.constant 0 : index
    %c28 = arith.constant 28 : index
    %43 = vector.load %arg16[%c0_46, %c28] : memref<256x216xf32, #tpu.memory_space<vmem>>, vector<256x4xf32>
    tpu.vector_store %arg16[%c0_46, %c28], %42 {strides = array<i32>} : memref<256x216xf32, #tpu.memory_space<vmem>>, vector<256x4xf32>,
    %44 = vector.extract_strided_slice %19 {offsets = [2, 2, 0], sizes = [16, 16, 4], strides = [1, 1, 1]} : vector<18x18x4xf32> to vector<16x16x4xf32>
    %45 = vector.shape_cast %44 : vector<16x16x4xf32> to vector<256x4xf32>
    %c0_47 = arith.constant 0 : index
    %c32 = arith.constant 32 : index
    %46 = vector.load %arg16[%c0_47, %c32] : memref<256x216xf32, #tpu.memory_space<vmem>>, vector<256x4xf32>
    tpu.vector_store %arg16[%c0_47, %c32], %45 {strides = array<i32>} : memref<256x216xf32, #tpu.memory_space<vmem>>, vector<256x4xf32>,
    %c0_48 = arith.constant 0 : index
    %c0_49 = arith.constant 0 : index
    %47 = vector.load %arg16[%c0_48, %c0_49] : memref<256x216xf32, #tpu.memory_space<vmem>>, vector<256x36xf32>
    %c0_50 = arith.constant 0 : index
    %c0_51 = arith.constant 0 : index
    %48 = vector.load %arg2[%c0_50, %c0_51] : memref<36x8xf32, #tpu.memory_space<vmem>>, vector<36x8xf32>
    %cst_52 = arith.constant dense<0.000000e+00> : vector<256x8xf32>
    %49 = tpu.matmul %47, %48, %cst_52 {dimension_numbers = #tpu.dot_dimension_numbers<[1], [0], [0], [1], [0, 0, 1, 1], [], []>} : vector<256x36xf32>, vector<36x8xf32>, vector<256x8xf32> -> vector<256x8xf32>
    %c0_53 = arith.constant 0 : index
    %c0_54 = arith.constant 0 : index
    %50 = vector.load %arg3[%c0_53, %c0_54] : memref<1x8xf32, #tpu.memory_space<vmem>>, vector<1x8xf32>
    %51 = vector.broadcast %50 : vector<1x8xf32> to vector<256x8xf32>
    %52 = arith.addf %49, %51 : vector<256x8xf32>
    %cst_55 = arith.constant 0.000000e+00 : f32
    %53 = vector.broadcast %cst_55 : f32 to vector<256x8xf32>
    %54 = arith.maximumf %52, %53 : vector<256x8xf32>
    %55 = vector.shape_cast %54 : vector<256x8xf32> to vector<16x16x8xf32>
    %c1_56 = arith.constant 1 : index
    %c1_57 = arith.constant 1 : index
    %c16_58 = arith.constant 16 : index
    %56 = vector.load %arg15[%c1_56, %c1_57, %c16_58] : memref<18x18x24xf32, #tpu.memory_space<vmem>>, vector<16x16x8xf32>
    tpu.vector_store %arg15[%c1_56, %c1_57, %c16_58], %55 {strides = array<i32>} : memref<18x18x24xf32, #tpu.memory_space<vmem>>, vector<16x16x8xf32>,
    %c0_59 = arith.constant 0 : index
    %c0_60 = arith.constant 0 : index
    %c16_61 = arith.constant 16 : index
    %57 = vector.load %arg15[%c0_59, %c0_60, %c16_61] : memref<18x18x24xf32, #tpu.memory_space<vmem>>, vector<18x18x8xf32>
    %58 = vector.shape_cast %57 : vector<18x18x8xf32> to vector<9x36x8xf32>
    %59 = vector.extract_strided_slice %58 {offsets = [0, 0, 0], sizes = [8, 18, 8], strides = [1, 1, 1]} : vector<9x36x8xf32> to vector<8x18x8xf32>
    %60 = vector.shape_cast %59 : vector<8x18x8xf32> to vector<72x2x8xf32>
    %61 = vector.extract_strided_slice %60 {offsets = [0, 0, 0], sizes = [72, 1, 8], strides = [1, 1, 1]} : vector<72x2x8xf32> to vector<72x1x8xf32>
    %62 = vector.shape_cast %61 : vector<72x1x8xf32> to vector<8x9x8xf32>
    %63 = vector.extract_strided_slice %60 {offsets = [0, 1, 0], sizes = [72, 1, 8], strides = [1, 1, 1]} : vector<72x2x8xf32> to vector<72x1x8xf32>
    %64 = vector.shape_cast %63 : vector<72x1x8xf32> to vector<8x9x8xf32>
    %65 = vector.extract_strided_slice %62 {offsets = [0, 0, 0], sizes = [8, 8, 8], strides = [1, 1, 1]} : vector<8x9x8xf32> to vector<8x8x8xf32>
    %66 = vector.shape_cast %65 : vector<8x8x8xf32> to vector<64x8xf32>
    %c0_62 = arith.constant 0 : index
    %c0_63 = arith.constant 0 : index
    %67 = vector.load %arg16[%c0_62, %c0_63] : memref<256x216xf32, #tpu.memory_space<vmem>>, vector<64x8xf32>
    tpu.vector_store %arg16[%c0_62, %c0_63], %66 {strides = array<i32>} : memref<256x216xf32, #tpu.memory_space<vmem>>, vector<64x8xf32>,
    %68 = vector.extract_strided_slice %64 {offsets = [0, 0, 0], sizes = [8, 8, 8], strides = [1, 1, 1]} : vector<8x9x8xf32> to vector<8x8x8xf32>
    %69 = vector.shape_cast %68 : vector<8x8x8xf32> to vector<64x8xf32>
    %c0_64 = arith.constant 0 : index
    %c8_65 = arith.constant 8 : index
    %70 = vector.load %arg16[%c0_64, %c8_65] : memref<256x216xf32, #tpu.memory_space<vmem>>, vector<64x8xf32>
    tpu.vector_store %arg16[%c0_64, %c8_65], %69 {strides = array<i32>} : memref<256x216xf32, #tpu.memory_space<vmem>>, vector<64x8xf32>,
    %71 = vector.extract_strided_slice %62 {offsets = [0, 1, 0], sizes = [8, 8, 8], strides = [1, 1, 1]} : vector<8x9x8xf32> to vector<8x8x8xf32>
    %72 = vector.shape_cast %71 : vector<8x8x8xf32> to vector<64x8xf32>
    %c0_66 = arith.constant 0 : index
    %c16_67 = arith.constant 16 : index
    %73 = vector.load %arg16[%c0_66, %c16_67] : memref<256x216xf32, #tpu.memory_space<vmem>>, vector<64x8xf32>
    tpu.vector_store %arg16[%c0_66, %c16_67], %72 {strides = array<i32>} : memref<256x216xf32, #tpu.memory_space<vmem>>, vector<64x8xf32>,
    %74 = vector.extract_strided_slice %58 {offsets = [0, 18, 0], sizes = [8, 18, 8], strides = [1, 1, 1]} : vector<9x36x8xf32> to vector<8x18x8xf32>
    %75 = vector.shape_cast %74 : vector<8x18x8xf32> to vector<72x2x8xf32>
    %76 = vector.extract_strided_slice %75 {offsets = [0, 0, 0], sizes = [72, 1, 8], strides = [1, 1, 1]} : vector<72x2x8xf32> to vector<72x1x8xf32>
    %77 = vector.shape_cast %76 : vector<72x1x8xf32> to vector<8x9x8xf32>
    %78 = vector.extract_strided_slice %75 {offsets = [0, 1, 0], sizes = [72, 1, 8], strides = [1, 1, 1]} : vector<72x2x8xf32> to vector<72x1x8xf32>
    %79 = vector.shape_cast %78 : vector<72x1x8xf32> to vector<8x9x8xf32>
    %80 = vector.extract_strided_slice %77 {offsets = [0, 0, 0], sizes = [8, 8, 8], strides = [1, 1, 1]} : vector<8x9x8xf32> to vector<8x8x8xf32>
    %81 = vector.shape_cast %80 : vector<8x8x8xf32> to vector<64x8xf32>
    %c0_68 = arith.constant 0 : index
    %c24_69 = arith.constant 24 : index
    %82 = vector.load %arg16[%c0_68, %c24_69] : memref<256x216xf32, #tpu.memory_space<vmem>>, vector<64x8xf32>
    tpu.vector_store %arg16[%c0_68, %c24_69], %81 {strides = array<i32>} : memref<256x216xf32, #tpu.memory_space<vmem>>, vector<64x8xf32>,
    %83 = vector.extract_strided_slice %79 {offsets = [0, 0, 0], sizes = [8, 8, 8], strides = [1, 1, 1]} : vector<8x9x8xf32> to vector<8x8x8xf32>
    %84 = vector.shape_cast %83 : vector<8x8x8xf32> to vector<64x8xf32>
    %c0_70 = arith.constant 0 : index
    %c32_71 = arith.constant 32 : index
    %85 = vector.load %arg16[%c0_70, %c32_71] : memref<256x216xf32, #tpu.memory_space<vmem>>, vector<64x8xf32>
    tpu.vector_store %arg16[%c0_70, %c32_71], %84 {strides = array<i32>} : memref<256x216xf32, #tpu.memory_space<vmem>>, vector<64x8xf32>,
    %86 = vector.extract_strided_slice %77 {offsets = [0, 1, 0], sizes = [8, 8, 8], strides = [1, 1, 1]} : vector<8x9x8xf32> to vector<8x8x8xf32>
    %87 = vector.shape_cast %86 : vector<8x8x8xf32> to vector<64x8xf32>
    %c0_72 = arith.constant 0 : index
    %c40 = arith.constant 40 : index
    %88 = vector.load %arg16[%c0_72, %c40] : memref<256x216xf32, #tpu.memory_space<vmem>>, vector<64x8xf32>
    tpu.vector_store %arg16[%c0_72, %c40], %87 {strides = array<i32>} : memref<256x216xf32, #tpu.memory_space<vmem>>, vector<64x8xf32>,
    %89 = vector.extract_strided_slice %58 {offsets = [1, 0, 0], sizes = [8, 18, 8], strides = [1, 1, 1]} : vector<9x36x8xf32> to vector<8x18x8xf32>
    %90 = vector.shape_cast %89 : vector<8x18x8xf32> to vector<72x2x8xf32>
    %91 = vector.extract_strided_slice %90 {offsets = [0, 0, 0], sizes = [72, 1, 8], strides = [1, 1, 1]} : vector<72x2x8xf32> to vector<72x1x8xf32>
    %92 = vector.shape_cast %91 : vector<72x1x8xf32> to vector<8x9x8xf32>
    %93 = vector.extract_strided_slice %90 {offsets = [0, 1, 0], sizes = [72, 1, 8], strides = [1, 1, 1]} : vector<72x2x8xf32> to vector<72x1x8xf32>
    %94 = vector.shape_cast %93 : vector<72x1x8xf32> to vector<8x9x8xf32>
    %95 = vector.extract_strided_slice %92 {offsets = [0, 0, 0], sizes = [8, 8, 8], strides = [1, 1, 1]} : vector<8x9x8xf32> to vector<8x8x8xf32>
    %96 = vector.shape_cast %95 : vector<8x8x8xf32> to vector<64x8xf32>
    %c0_73 = arith.constant 0 : index
    %c48 = arith.constant 48 : index
    %97 = vector.load %arg16[%c0_73, %c48] : memref<256x216xf32, #tpu.memory_space<vmem>>, vector<64x8xf32>
    tpu.vector_store %arg16[%c0_73, %c48], %96 {strides = array<i32>} : memref<256x216xf32, #tpu.memory_space<vmem>>, vector<64x8xf32>,
    %98 = vector.extract_strided_slice %94 {offsets = [0, 0, 0], sizes = [8, 8, 8], strides = [1, 1, 1]} : vector<8x9x8xf32> to vector<8x8x8xf32>
    %99 = vector.shape_cast %98 : vector<8x8x8xf32> to vector<64x8xf32>
    %c0_74 = arith.constant 0 : index
    %c56 = arith.constant 56 : index
    %100 = vector.load %arg16[%c0_74, %c56] : memref<256x216xf32, #tpu.memory_space<vmem>>, vector<64x8xf32>
    tpu.vector_store %arg16[%c0_74, %c56], %99 {strides = array<i32>} : memref<256x216xf32, #tpu.memory_space<vmem>>, vector<64x8xf32>,
    %101 = vector.extract_strided_slice %92 {offsets = [0, 1, 0], sizes = [8, 8, 8], strides = [1, 1, 1]} : vector<8x9x8xf32> to vector<8x8x8xf32>
    %102 = vector.shape_cast %101 : vector<8x8x8xf32> to vector<64x8xf32>
    %c0_75 = arith.constant 0 : index
    %c64 = arith.constant 64 : index
    %103 = vector.load %arg16[%c0_75, %c64] : memref<256x216xf32, #tpu.memory_space<vmem>>, vector<64x8xf32>
    tpu.vector_store %arg16[%c0_75, %c64], %102 {strides = array<i32>} : memref<256x216xf32, #tpu.memory_space<vmem>>, vector<64x8xf32>,
    %c0_76 = arith.constant 0 : index
    %c0_77 = arith.constant 0 : index
    %104 = vector.load %arg16[%c0_76, %c0_77] : memref<256x216xf32, #tpu.memory_space<vmem>>, vector<64x72xf32>
    %c0_78 = arith.constant 0 : index
    %c0_79 = arith.constant 0 : index
    %105 = vector.load %arg4[%c0_78, %c0_79] : memref<72x16xf32, #tpu.memory_space<vmem>>, vector<72x16xf32>
    %cst_80 = arith.constant dense<0.000000e+00> : vector<64x16xf32>
    %106 = tpu.matmul %104, %105, %cst_80 {dimension_numbers = #tpu.dot_dimension_numbers<[1], [0], [0], [1], [0, 0, 1, 1], [], []>} : vector<64x72xf32>, vector<72x16xf32>, vector<64x16xf32> -> vector<64x16xf32>
    %c0_81 = arith.constant 0 : index
    %c0_82 = arith.constant 0 : index
    %107 = vector.load %arg5[%c0_81, %c0_82] : memref<1x16xf32, #tpu.memory_space<vmem>>, vector<1x16xf32>
    %108 = vector.broadcast %107 : vector<1x16xf32> to vector<64x16xf32>
    %109 = arith.addf %106, %108 : vector<64x16xf32>
    %cst_83 = arith.constant 0.000000e+00 : f32
    %110 = vector.broadcast %cst_83 : f32 to vector<64x16xf32>
    %111 = arith.maximumf %109, %110 : vector<64x16xf32>
    %cst_84 = arith.constant dense<0.000000e+00> : vector<16xf32>
    %112 = vector.multi_reduction <add>, %111, %cst_84 [0] : vector<64x16xf32> to vector<16xf32>
    %113 = vector.shape_cast %112 : vector<16xf32> to vector<1x16xf32>
    %cst_85 = arith.constant 6.400000e+01 : f32
    %114 = vector.broadcast %cst_85 : f32 to vector<1x16xf32>
    %115 = arith.divf %113, %114 : vector<1x16xf32>
    %c0_86 = arith.constant 0 : index
    %c0_87 = arith.constant 0 : index
    %116 = vector.load %arg10[%c0_86, %c0_87] : memref<16x2xf32, #tpu.memory_space<vmem>>, vector<16x2xf32>
    %cst_88 = arith.constant dense<0.000000e+00> : vector<1x2xf32>
    %117 = tpu.matmul %115, %116, %cst_88 {dimension_numbers = #tpu.dot_dimension_numbers<[1], [0], [0], [1], [0, 0, 1, 1], [], []>} : vector<1x16xf32>, vector<16x2xf32>, vector<1x2xf32> -> vector<1x2xf32>
    %c0_89 = arith.constant 0 : index
    %c0_90 = arith.constant 0 : index
    %118 = vector.load %arg11[%c0_89, %c0_90] : memref<1x2xf32, #tpu.memory_space<vmem>>, vector<1x2xf32>
    %119 = arith.addf %117, %118 : vector<1x2xf32>
    %c0_91 = arith.constant 0 : index
    %c0_92 = arith.constant 0 : index
    %c0_93 = arith.constant 0 : index
    %120 = vector.load %arg13[%c0_91, %c0_92, %c0_93] : memref<1x1x2xf32, #tpu.memory_space<vmem>>, vector<1x1x2xf32>
    %121 = vector.shape_cast %120 : vector<1x1x2xf32> to vector<1x2xf32>
    %122 = vector.shape_cast %119 : vector<1x2xf32> to vector<1x1x2xf32>
    tpu.vector_store %arg13[%c0_91, %c0_92, %c0_93], %122 {strides = array<i32>} : memref<1x1x2xf32, #tpu.memory_space<vmem>>, vector<1x1x2xf32>,
    %123 = vector.shape_cast %111 : vector<64x16xf32> to vector<8x8x16xf32>
    %124 = vector.shape_cast %123 : vector<8x8x16xf32> to vector<8x8x1x16xf32>
    %125 = vector.shape_cast %124 : vector<8x8x1x16xf32> to vector<8x8x1x16xf32>
    %126 = vector.broadcast %125 : vector<8x8x1x16xf32> to vector<8x8x2x16xf32>
    %127 = vector.shape_cast %126 : vector<8x8x2x16xf32> to vector<8x16x16xf32>
    %128 = vector.shape_cast %127 : vector<8x16x16xf32> to vector<8x1x16x16xf32>
    %129 = vector.shape_cast %128 : vector<8x1x16x16xf32> to vector<8x1x16x16xf32>
    %130 = vector.broadcast %129 : vector<8x1x16x16xf32> to vector<8x2x16x16xf32>
    %131 = vector.shape_cast %130 : vector<8x2x16x16xf32> to vector<16x16x16xf32>
    %c1_94 = arith.constant 1 : index
    %c1_95 = arith.constant 1 : index
    %c0_96 = arith.constant 0 : index
    %132 = vector.load %arg15[%c1_94, %c1_95, %c0_96] : memref<18x18x24xf32, #tpu.memory_space<vmem>>, vector<16x16x16xf32>
    tpu.vector_store %arg15[%c1_94, %c1_95, %c0_96], %131 {strides = array<i32>} : memref<18x18x24xf32, #tpu.memory_space<vmem>>, vector<16x16x16xf32>,
    %c0_97 = arith.constant 0 : index
    %c0_98 = arith.constant 0 : index
    %c0_99 = arith.constant 0 : index
    %133 = vector.load %arg15[%c0_97, %c0_98, %c0_99] : memref<18x18x24xf32, #tpu.memory_space<vmem>>, vector<18x18x24xf32>
    %134 = vector.extract_strided_slice %133 {offsets = [0, 0, 0], sizes = [16, 16, 24], strides = [1, 1, 1]} : vector<18x18x24xf32> to vector<16x16x24xf32>
    %135 = vector.shape_cast %134 : vector<16x16x24xf32> to vector<256x24xf32>
    %c0_100 = arith.constant 0 : index
    %c0_101 = arith.constant 0 : index
    %136 = vector.load %arg16[%c0_100, %c0_101] : memref<256x216xf32, #tpu.memory_space<vmem>>, vector<256x24xf32>
    tpu.vector_store %arg16[%c0_100, %c0_101], %135 {strides = array<i32>} : memref<256x216xf32, #tpu.memory_space<vmem>>, vector<256x24xf32>,
    %137 = vector.extract_strided_slice %133 {offsets = [0, 1, 0], sizes = [16, 16, 24], strides = [1, 1, 1]} : vector<18x18x24xf32> to vector<16x16x24xf32>
    %138 = vector.shape_cast %137 : vector<16x16x24xf32> to vector<256x24xf32>
    %c0_102 = arith.constant 0 : index
    %c24_103 = arith.constant 24 : index
    %139 = vector.load %arg16[%c0_102, %c24_103] : memref<256x216xf32, #tpu.memory_space<vmem>>, vector<256x24xf32>
    tpu.vector_store %arg16[%c0_102, %c24_103], %138 {strides = array<i32>} : memref<256x216xf32, #tpu.memory_space<vmem>>, vector<256x24xf32>,
    %140 = vector.extract_strided_slice %133 {offsets = [0, 2, 0], sizes = [16, 16, 24], strides = [1, 1, 1]} : vector<18x18x24xf32> to vector<16x16x24xf32>
    %141 = vector.shape_cast %140 : vector<16x16x24xf32> to vector<256x24xf32>
    %c0_104 = arith.constant 0 : index
    %c48_105 = arith.constant 48 : index
    %142 = vector.load %arg16[%c0_104, %c48_105] : memref<256x216xf32, #tpu.memory_space<vmem>>, vector<256x24xf32>
    tpu.vector_store %arg16[%c0_104, %c48_105], %141 {strides = array<i32>} : memref<256x216xf32, #tpu.memory_space<vmem>>, vector<256x24xf32>,
    %143 = vector.extract_strided_slice %133 {offsets = [1, 0, 0], sizes = [16, 16, 24], strides = [1, 1, 1]} : vector<18x18x24xf32> to vector<16x16x24xf32>
    %144 = vector.shape_cast %143 : vector<16x16x24xf32> to vector<256x24xf32>
    %c0_106 = arith.constant 0 : index
    %c72 = arith.constant 72 : index
    %145 = vector.load %arg16[%c0_106, %c72] : memref<256x216xf32, #tpu.memory_space<vmem>>, vector<256x24xf32>
    tpu.vector_store %arg16[%c0_106, %c72], %144 {strides = array<i32>} : memref<256x216xf32, #tpu.memory_space<vmem>>, vector<256x24xf32>,
    %146 = vector.extract_strided_slice %133 {offsets = [1, 1, 0], sizes = [16, 16, 24], strides = [1, 1, 1]} : vector<18x18x24xf32> to vector<16x16x24xf32>
    %147 = vector.shape_cast %146 : vector<16x16x24xf32> to vector<256x24xf32>
    %c0_107 = arith.constant 0 : index
    %c96 = arith.constant 96 : index
    %148 = vector.load %arg16[%c0_107, %c96] : memref<256x216xf32, #tpu.memory_space<vmem>>, vector<256x24xf32>
    tpu.vector_store %arg16[%c0_107, %c96], %147 {strides = array<i32>} : memref<256x216xf32, #tpu.memory_space<vmem>>, vector<256x24xf32>,
    %149 = vector.extract_strided_slice %133 {offsets = [1, 2, 0], sizes = [16, 16, 24], strides = [1, 1, 1]} : vector<18x18x24xf32> to vector<16x16x24xf32>
    %150 = vector.shape_cast %149 : vector<16x16x24xf32> to vector<256x24xf32>
    %c0_108 = arith.constant 0 : index
    %c120 = arith.constant 120 : index
    %151 = vector.load %arg16[%c0_108, %c120] : memref<256x216xf32, #tpu.memory_space<vmem>>, vector<256x24xf32>
    tpu.vector_store %arg16[%c0_108, %c120], %150 {strides = array<i32>} : memref<256x216xf32, #tpu.memory_space<vmem>>, vector<256x24xf32>,
    %152 = vector.extract_strided_slice %133 {offsets = [2, 0, 0], sizes = [16, 16, 24], strides = [1, 1, 1]} : vector<18x18x24xf32> to vector<16x16x24xf32>
    %153 = vector.shape_cast %152 : vector<16x16x24xf32> to vector<256x24xf32>
    %c0_109 = arith.constant 0 : index
    %c144 = arith.constant 144 : index
    %154 = vector.load %arg16[%c0_109, %c144] : memref<256x216xf32, #tpu.memory_space<vmem>>, vector<256x24xf32>
    tpu.vector_store %arg16[%c0_109, %c144], %153 {strides = array<i32>} : memref<256x216xf32, #tpu.memory_space<vmem>>, vector<256x24xf32>,
    %155 = vector.extract_strided_slice %133 {offsets = [2, 1, 0], sizes = [16, 16, 24], strides = [1, 1, 1]} : vector<18x18x24xf32> to vector<16x16x24xf32>
    %156 = vector.shape_cast %155 : vector<16x16x24xf32> to vector<256x24xf32>
    %c0_110 = arith.constant 0 : index
    %c168 = arith.constant 168 : index
    %157 = vector.load %arg16[%c0_110, %c168] : memref<256x216xf32, #tpu.memory_space<vmem>>, vector<256x24xf32>
    tpu.vector_store %arg16[%c0_110, %c168], %156 {strides = array<i32>} : memref<256x216xf32, #tpu.memory_space<vmem>>, vector<256x24xf32>,
    %158 = vector.extract_strided_slice %133 {offsets = [2, 2, 0], sizes = [16, 16, 24], strides = [1, 1, 1]} : vector<18x18x24xf32> to vector<16x16x24xf32>
    %159 = vector.shape_cast %158 : vector<16x16x24xf32> to vector<256x24xf32>
    %c0_111 = arith.constant 0 : index
    %c192 = arith.constant 192 : index
    %160 = vector.load %arg16[%c0_111, %c192] : memref<256x216xf32, #tpu.memory_space<vmem>>, vector<256x24xf32>
    tpu.vector_store %arg16[%c0_111, %c192], %159 {strides = array<i32>} : memref<256x216xf32, #tpu.memory_space<vmem>>, vector<256x24xf32>,
    %c0_112 = arith.constant 0 : index
    %c0_113 = arith.constant 0 : index
    %161 = vector.load %arg16[%c0_112, %c0_113] : memref<256x216xf32, #tpu.memory_space<vmem>>, vector<256x216xf32>
    %c0_114 = arith.constant 0 : index
    %c0_115 = arith.constant 0 : index
    %162 = vector.load %arg6[%c0_114, %c0_115] : memref<216x16xf32, #tpu.memory_space<vmem>>, vector<216x16xf32>
    %cst_116 = arith.constant dense<0.000000e+00> : vector<256x16xf32>
    %163 = tpu.matmul %161, %162, %cst_116 {dimension_numbers = #tpu.dot_dimension_numbers<[1], [0], [0], [1], [0, 0, 1, 1], [], []>} : vector<256x216xf32>, vector<216x16xf32>, vector<256x16xf32> -> vector<256x16xf32>
    %c0_117 = arith.constant 0 : index
    %c0_118 = arith.constant 0 : index
    %164 = vector.load %arg7[%c0_117, %c0_118] : memref<1x16xf32, #tpu.memory_space<vmem>>, vector<1x16xf32>
    %165 = vector.broadcast %164 : vector<1x16xf32> to vector<256x16xf32>
    %166 = arith.addf %163, %165 : vector<256x16xf32>
    %cst_119 = arith.constant 0.000000e+00 : f32
    %167 = vector.broadcast %cst_119 : f32 to vector<256x16xf32>
    %168 = arith.maximumf %166, %167 : vector<256x16xf32>
    %c0_120 = arith.constant 0 : index
    %c0_121 = arith.constant 0 : index
    %169 = vector.load %arg8[%c0_120, %c0_121] : memref<16x3xf32, #tpu.memory_space<vmem>>, vector<16x3xf32>
    %cst_122 = arith.constant dense<0.000000e+00> : vector<256x3xf32>
    %170 = tpu.matmul %168, %169, %cst_122 {dimension_numbers = #tpu.dot_dimension_numbers<[1], [0], [0], [1], [0, 0, 1, 1], [], []>} : vector<256x16xf32>, vector<16x3xf32>, vector<256x3xf32> -> vector<256x3xf32>
    %c0_123 = arith.constant 0 : index
    %c0_124 = arith.constant 0 : index
    %171 = vector.load %arg9[%c0_123, %c0_124] : memref<1x3xf32, #tpu.memory_space<vmem>>, vector<1x3xf32>
    %172 = vector.broadcast %171 : vector<1x3xf32> to vector<256x3xf32>
    %173 = arith.addf %170, %172 : vector<256x3xf32>
    %174 = tpu.transpose %173, [1, 0] : vector<256x3xf32> -> vector<3x256xf32>
    %c0_125 = arith.constant 0 : index
    %c0_126 = arith.constant 0 : index
    %c0_127 = arith.constant 0 : index
    %175 = vector.load %arg12[%c0_125, %c0_126, %c0_127] : memref<1x3x256xf32, #tpu.memory_space<vmem>>, vector<1x3x256xf32>
    %176 = vector.shape_cast %175 : vector<1x3x256xf32> to vector<3x256xf32>
    %177 = vector.shape_cast %174 : vector<3x256xf32> to vector<1x3x256xf32>
    tpu.vector_store %arg12[%c0_125, %c0_126, %c0_127], %177 {strides = array<i32>} : memref<1x3x256xf32, #tpu.memory_space<vmem>>, vector<1x3x256xf32>,
    return
  }
  func.func @transform_0(%arg0: i32) -> (i32, i32, i32, i32) {
    %c0_i32 = arith.constant 0 : i32
    %c0_i32_0 = arith.constant 0 : i32
    %c0_i32_1 = arith.constant 0 : i32
    %c0_i32_2 = arith.constant 0 : i32
    return %arg0, %c0_i32, %c0_i32_0, %c0_i32_1 : i32, i32, i32, i32
  }
  func.func @transform_1(%arg0: i32) -> (i32, i32) {
    %c0_i32 = arith.constant 0 : i32
    %c0_i32_0 = arith.constant 0 : i32
    %c0_i32_1 = arith.constant 0 : i32
    return %c0_i32, %c0_i32_0 : i32, i32
  }
  func.func @transform_2(%arg0: i32) -> (i32, i32) {
    %c0_i32 = arith.constant 0 : i32
    %c0_i32_0 = arith.constant 0 : i32
    %c0_i32_1 = arith.constant 0 : i32
    return %c0_i32, %c0_i32_0 : i32, i32
  }
  func.func @transform_3(%arg0: i32) -> (i32, i32) {
    %c0_i32 = arith.constant 0 : i32
    %c0_i32_0 = arith.constant 0 : i32
    %c0_i32_1 = arith.constant 0 : i32
    return %c0_i32, %c0_i32_0 : i32, i32
  }
  func.func @transform_4(%arg0: i32) -> (i32, i32) {
    %c0_i32 = arith.constant 0 : i32
    %c0_i32_0 = arith.constant 0 : i32
    %c0_i32_1 = arith.constant 0 : i32
    return %c0_i32, %c0_i32_0 : i32, i32
  }
  func.func @transform_5(%arg0: i32) -> (i32, i32) {
    %c0_i32 = arith.constant 0 : i32
    %c0_i32_0 = arith.constant 0 : i32
    %c0_i32_1 = arith.constant 0 : i32
    return %c0_i32, %c0_i32_0 : i32, i32
  }
  func.func @transform_6(%arg0: i32) -> (i32, i32) {
    %c0_i32 = arith.constant 0 : i32
    %c0_i32_0 = arith.constant 0 : i32
    %c0_i32_1 = arith.constant 0 : i32
    return %c0_i32, %c0_i32_0 : i32, i32
  }
  func.func @transform_7(%arg0: i32) -> (i32, i32) {
    %c0_i32 = arith.constant 0 : i32
    %c0_i32_0 = arith.constant 0 : i32
    %c0_i32_1 = arith.constant 0 : i32
    return %c0_i32, %c0_i32_0 : i32, i32
  }
  func.func @transform_8(%arg0: i32) -> (i32, i32) {
    %c0_i32 = arith.constant 0 : i32
    %c0_i32_0 = arith.constant 0 : i32
    %c0_i32_1 = arith.constant 0 : i32
    return %c0_i32, %c0_i32_0 : i32, i32
  }
  func.func @transform_9(%arg0: i32) -> (i32, i32) {
    %c0_i32 = arith.constant 0 : i32
    %c0_i32_0 = arith.constant 0 : i32
    %c0_i32_1 = arith.constant 0 : i32
    return %c0_i32, %c0_i32_0 : i32, i32
  }
  func.func @transform_10(%arg0: i32) -> (i32, i32) {
    %c0_i32 = arith.constant 0 : i32
    %c0_i32_0 = arith.constant 0 : i32
    %c0_i32_1 = arith.constant 0 : i32
    return %c0_i32, %c0_i32_0 : i32, i32
  }
  func.func @transform_11(%arg0: i32) -> (i32, i32, i32) {
    %c0_i32 = arith.constant 0 : i32
    %c0_i32_0 = arith.constant 0 : i32
    %c0_i32_1 = arith.constant 0 : i32
    return %arg0, %c0_i32, %c0_i32_0 : i32, i32, i32
  }
  func.func @transform_12(%arg0: i32) -> (i32, i32, i32) {
    %c0_i32 = arith.constant 0 : i32
    %c0_i32_0 = arith.constant 0 : i32
    %c0_i32_1 = arith.constant 0 : i32
    return %arg0, %c0_i32, %c0_i32_0 : i32, i32, i32
  }
}

</mosaic_0001>

<bundles_post_ra>
// kernel: tpu_custom_call.1
= control target key start
LH: loop header
LB: loop body
LE: loop exit
PB: predicated region body
PF: predicated region fallthrough
CT: control target
= control target key end

     0   :  { %s11287_s0 = inlined_call_operand.vmem [shape: f32[2,16,16,4], index: 0, kind: input, shape index: {}]   ;;  %s11288_s1 = inlined_call_operand.vmem [shape: f32[36,8], index: 1, kind: input, shape index: {}]   ;;  %s11289_s2 = inlined_call_operand.vmem [shape: f32[1,8], index: 2, kind: input, shape index: {}]   ;;  %s11290_s3 = inlined_call_operand.vmem [shape: f32[72,16], index: 3, kind: input, shape index: {}]   ;;  %s11291_s4 = inlined_call_operand.vmem [shape: f32[1,16], index: 4, kind: input, shape index: {}]   ;;  %s11292_s5 = inlined_call_operand.vmem [shape: f32[216,16], index: 5, kind: input, shape index: {}]   ;;  %s11293_s6 = inlined_call_operand.vmem [shape: f32[1,16], index: 6, kind: input, shape index: {}]   ;;  %s11294_s7 = inlined_call_operand.vmem [shape: f32[16,3], index: 7, kind: input, shape index: {}]   ;;  %s11295_s8 = inlined_call_operand.vmem [shape: f32[1,3], index: 8, kind: input, shape index: {}]   ;;  %s11296_s9 = inlined_call_operand.vmem [shape: f32[16,2], index: 9, kind: input, shape index: {}]   ;;  %s11297_s10 = inlined_call_operand.vmem [shape: f32[1,2], index: 10, kind: input, shape index: {}]   ;;  %s11298_s11 = inlined_call_operand.vmem [shape: f32[2,3,256], index: 11, kind: output, shape index: {0}]   ;;  %s11299_s12 = inlined_call_operand.hbm [shape: f32[2,1,2], index: 12, kind: output, shape index: {1}]  }
   0x1   :  { %11516 = sst [smem:[#allocation54_spill]] %s11287_s0 }
   0x2   :  { %11517 = sst [smem:[#allocation55_spill]] %s11288_s1 }
   0x3   :  { %11518 = sst [smem:[#allocation56_spill]] %s11289_s2 }
   0x4   :  { %11519 = sst [smem:[#allocation57_spill]] %s11290_s3 }
   0x5   :  { %11520 = sst [smem:[#allocation58_spill]] %s11291_s4 }
   0x6   :  { %11521 = sst [smem:[#allocation59_spill]] %s11296_s9 }
   0x7   :  { %18 = vsyncpa [#allocation6], 0 }
   0x8   :  { %20 = vsyncpa [#allocation6 + $0x1], 0  ;;  %s6599_s21 = smov 0   ;;  %s6601_s22 = smov 0  }
   0x9   :  { %s6603_s23 = smov 0   ;;  %s6605_s24 = smov 0  }
   0xa LB: > { %s6620_s25 = sadd.s32 4294967295, %s6515_s24   ;;  %s6253_s26 = sadd.s32 4294967294, %s6515_s24   ;;  %s6515_s24 = sphi %s6605_s24, %s11801_s24   ;;  %s6511_s23 = sphi %s6603_s23, %s11800_s23   ;;  %s6507_s22 = sphi %s6601_s22, %s11799_s22   ;;  %s6503_s21 = sphi %s6599_s21, %s11798_s21  }
   0xb   : > { %s6624_s27 = sadd.s32 1, %s6515_s24   ;;  %s295_s28 = sadd.s32 1, %s6511_s23 }
   0xc   : > { %s292_s29 = ssub.s32 %s6515_s24, %s6624_s27  ;;  %p305_p0 = scmp.ne.s32.totalorder %s6511_s23, %s6507_s22 }
   0xd   : > { %p293_p1 = scmp.eq.s32.totalorder %s292_s29, 0  ;;  %p306_p2 = scmp.eq.s32.totalorder %s6620_s25, 1 }
   0xe   : > { %p311_p3 = scmp.ne.s32.totalorder %s6507_s22, %s6503_s21  ;;  %p312_p4 = scmp.eq.s32.totalorder %s6253_s26, 1 }
   0xf   : > { %s6635_s30 = scalar_select %p293_p1, %s6511_s23, %s295_s28  }
  0x10   : > { %p6637_p5 = por %p306_p2, %p305_p0  ;;  %p6641_p6 = por %p312_p4, %p311_p3 }
  0x11   : > { %p6256_p7 = scmp.ge.s32.totalorder %s6515_s24, 1  ;;  %p368_p8 = scmp.lt.s32.totalorder %s6515_s24, 3 }
  0x13   : > { %p369_p9 = pnand %p6256_p7, %p368_p8 }
  0x15   : > { %372 = sbr.rel (%p369_p9) target bundleno = 2887 (0xb47), region = 64 }
  0x1a   : > { %vm424_vm0 = vcmask 31744   ;;  %vm433_vm1 = vcmask 24576   ;;  %v11300_v0 = vmov 0.0   ;;  %vm715_vm2 = vcmask 1046528   ;;  %s6518_s15 = smov 4   ;;  %p414_p10 = scmp.lt.s32.totalorder %s6620_s25, 1 }
  0x1b   : > { %425 = vst.msk [vmem:[#allocation2] sm:$0xff] %vm424_vm0, %v11300_v0  ;;  %s11524_s0 = sld [smem:[#allocation54_spill]]  ;;  %vm427_vm3 = vcmask 25600   ;;  %vm925_vm4 = vcmask 1045504   ;;  %vm892_vm5 = vcmask 64544   ;;  %s11386_s26 = smov 8  }
  0x1c   : > { %426 = vst.msk [vmem:[#allocation2 + $0x8] sm:$0xff] %vm424_vm0, %v11300_v0  ;;  %s6713_s16 = scalar_select %p414_p10, %s6620_s25, 1  ;;  %vm1102_vm6 = vcmask 97344   ;;  %vm1233_vm7 = vcmask 130144   ;;  %vm1368_vm8 = vcmask 162944   ;;  %vm1502_vm9 = vcmask 195744  }
  0x1d   : > { %434 = vst.msk [vmem:[#allocation2] sm:$0x1] %vm433_vm1, %v11300_v0  ;;  %s6520_s28 = smov 12   ;;  %s11514_s29 = smov 16   ;;  %vm1633_vm10 = vcmask 228544   ;;  %vm1768_vm11 = vcmask 261344  }
  0x1e   : > { %430 = vst.msk [vmem:[#allocation2 + $0x198] sm:$0xff] %vm424_vm0, %v11300_v0  ;;  %s6369_s17 = sshll.u32 %s6713_s16, 8  ;;  %s6524_s18 = smov 28   ;;  %vm11438_vm12 = vcmask 1043456   ;;  %vm1902_vm13 = vcmask 294144   ;;  %vm1976_vm14 = vcmask 293888  }
  0x1f   : > { %431 = vst.msk [vmem:[#allocation2 + $0x1a0] sm:$0xff] %vm424_vm0, %v11300_v0  ;;  %s6525_s19 = smov 32   ;;  %s11636_s1 = sld [smem:[#allocation55_spill]]  ;;  %vm479_vm15 = vcmask 188416  }
  0x20   : > { %435 = vst.msk [vmem:[#allocation2 + $0x18] sm:$0x1] %vm433_vm1, %v11300_v0  ;;  %s11641_s2 = sld [smem:[#allocation56_spill]] }
  0x21   : > { %436 = vst.msk [vmem:[#allocation2 + $0x30] sm:$0x1] %vm433_vm1, %v11300_v0  ;;  %s6733_s20 = scalar_lea.vmem %s11524_s0, %s6369_s17  ;;  %s11384_s17 = smov 24  }
  0x22   : > { %437 = vst.msk [vmem:[#allocation2 + $0x48] sm:$0x1] %vm433_vm1, %v11300_v0  ;;  %v518_v6 = vld [vmem:[%s6733_s20 + $0x10] sm:$0xff]  ;;  %v519_v7 = vld [vmem:[%s6733_s20 + $0x18] sm:$0xff]  ;;  %v516_v8 = vld [vmem:[%s6733_s20] sm:$0xff]  ;;  %s11674_s3 = sld [smem:[#allocation57_spill]] }
  0x23   : > { %v6663_v1 = vld [vmem:[#allocation2 + $0x8] sm:$0xff]  ;;  %438 = vst.msk [vmem:[#allocation2 + $0x60] sm:$0x1] %vm433_vm1, %v11300_v0  ;;  %v517_v9 = vld [vmem:[%s6733_s20 + $0x8] sm:$0xff]  ;;  %v520_v13 = vld [vmem:[%s6733_s20 + $0x20] sm:$0xff]  ;;  %s11723_s4 = sld [smem:[#allocation58_spill]] }
  0x24   : > { %v6667_v2 = vld [vmem:[#allocation2] sm:$0xff]  ;;  %v717_v3 = vrot.slane %v6663_v1, 1  ;;  %439 = vst.msk [vmem:[#allocation2 + $0x78] sm:$0x1] %vm433_vm1, %v11300_v0  ;;  %v522_v17 = vld [vmem:[%s6733_s20 + $0x30] sm:$0xff]  ;;  %v523_v23 = vld [vmem:[%s6733_s20 + $0x38] sm:$0xff] }
  0x25   : > { %v716_v4 = vrot.slane %v6667_v2, 1  ;;  %440 = vst.msk [vmem:[#allocation2 + $0x90] sm:$0x1] %vm433_vm1, %v11300_v0  ;;  %v521_v15 = vld [vmem:[%s6733_s20 + $0x28] sm:$0xff]  ;;  %v524_v27 = vld [vmem:[%s6733_s20 + $0x40] sm:$0xff]  ;;  %v526_v37 = vld [vmem:[%s6733_s20 + $0x50] sm:$0xff] }
  0x26   : > { %441 = vst.msk [vmem:[#allocation2 + $0xa8] sm:$0x1] %vm433_vm1, %v11300_v0  ;;  %v525_v29 = vld [vmem:[%s6733_s20 + $0x48] sm:$0xff]  ;;  %v527_v40 = vld [vmem:[%s6733_s20 + $0x58] sm:$0xff]  ;;  %v528_v46 = vld [vmem:[%s6733_s20 + $0x60] sm:$0xff]  ;;  %s11731_s9 = sld [smem:[#allocation59_spill]] }
  0x27   : > { %v718_v5 = vsel %vm715_vm2, %v716_v4, %v717_v3  ;;  %442 = vst.msk [vmem:[#allocation2 + $0xc0] sm:$0x1] %vm433_vm1, %v11300_v0  ;;  %v529_v52 = vld [vmem:[%s6733_s20 + $0x68] sm:$0xff]  ;;  %v530_v55 = vld [vmem:[%s6733_s20 + $0x70] sm:$0xff]  ;;  %v531_v61 = vld [vmem:[%s6733_s20 + $0x78] sm:$0xff] }
  0x28   : > { %796 = vrot.lane.b32.xlu0 %v718_v5, %s6518_s15  ;;  %443 = vst.msk [vmem:[#allocation2 + $0xd8] sm:$0x1] %vm433_vm1, %v11300_v0  ;;  %v532_v63 = vld [vmem:[%s6733_s20 + $0x80] sm:$0xff]  ;;  %v533_v4 = vld [vmem:[%s6733_s20 + $0x88] sm:$0xff] }
  0x29   : > { %444 = vst.msk [vmem:[#allocation2 + $0xf0] sm:$0x1] %vm433_vm1, %v11300_v0 }
  0x2a   : > { %445 = vst.msk [vmem:[#allocation2 + $0x108] sm:$0x1] %vm433_vm1, %v11300_v0 }
  0x2b   : > { %446 = vst.msk [vmem:[#allocation2 + $0x120] sm:$0x1] %vm433_vm1, %v11300_v0 }
  0x2c   : > { %447 = vst.msk [vmem:[#allocation2 + $0x138] sm:$0x1] %vm433_vm1, %v11300_v0 }
  0x2d   : > { %448 = vst.msk [vmem:[#allocation2 + $0x150] sm:$0x1] %vm433_vm1, %v11300_v0 }
  0x2e   : > { %449 = vst.msk [vmem:[#allocation2 + $0x168] sm:$0x1] %vm433_vm1, %v11300_v0 }
  0x2f   : > { %450 = vst.msk [vmem:[#allocation2 + $0x180] sm:$0x1] %vm433_vm1, %v11300_v0 }
  0x30   : > { %453 = vst.msk [vmem:[#allocation2 + $0x29] sm:$0x1] %vm433_vm1, %v11300_v0 }
  0x31   : > { %454 = vst.msk [vmem:[#allocation2 + $0x41] sm:$0x1] %vm433_vm1, %v11300_v0 }
  0x32   : > { %455 = vst.msk [vmem:[#allocation2 + $0x59] sm:$0x1] %vm433_vm1, %v11300_v0 }
  0x33   : > { %456 = vst.msk [vmem:[#allocation2 + $0x71] sm:$0x1] %vm433_vm1, %v11300_v0 }
  0x34   : > { %457 = vst.msk [vmem:[#allocation2 + $0x89] sm:$0x1] %vm433_vm1, %v11300_v0 }
  0x35   : > { %458 = vst.msk [vmem:[#allocation2 + $0xa1] sm:$0x1] %vm433_vm1, %v11300_v0 }
  0x36   : > { %459 = vst.msk [vmem:[#allocation2 + $0xb9] sm:$0x1] %vm433_vm1, %v11300_v0 }
  0x37   : > { %460 = vst.msk [vmem:[#allocation2 + $0xd1] sm:$0x1] %vm433_vm1, %v11300_v0 }
  0x38   : > { %461 = vst.msk [vmem:[#allocation2 + $0xe9] sm:$0x1] %vm433_vm1, %v11300_v0 }
  0x39   : > { %462 = vst.msk [vmem:[#allocation2 + $0x101] sm:$0x1] %vm433_vm1, %v11300_v0 }
  0x3a   : > { %463 = vst.msk [vmem:[#allocation2 + $0x119] sm:$0x1] %vm433_vm1, %v11300_v0 }
  0x3b   : > { %464 = vst.msk [vmem:[#allocation2 + $0x131] sm:$0x1] %vm433_vm1, %v11300_v0 }
  0x3c   : > { %465 = vst.msk [vmem:[#allocation2 + $0x149] sm:$0x1] %vm433_vm1, %v11300_v0 }
  0x3d   : > { %466 = vst.msk [vmem:[#allocation2 + $0x161] sm:$0x1] %vm433_vm1, %v11300_v0 }
  0x3e   : > { %467 = vst.msk [vmem:[#allocation2 + $0x179] sm:$0x1] %vm433_vm1, %v11300_v0 }
  0x3f   : > { %468 = vst.msk [vmem:[#allocation2 + $0x191] sm:$0x1] %vm433_vm1, %v11300_v0 }
  0x40   : > { %635 = vst.msk [vmem:[#allocation4] sm:$0xff] %vm424_vm0, %v6667_v2 }
  0x41   : > { %636 = vst.msk [vmem:[#allocation4 + $0x10] sm:$0xff] %vm424_vm0, %v6663_v1 }
  0x42   : > { %551 = vst.msk [vmem:[#allocation2 + $0x31] sm:$0xff] %vm424_vm0, %v518_v6 }
  0x43   : > { %552 = vst.msk [vmem:[#allocation2 + $0x39] sm:$0xff] %vm424_vm0, %v519_v7 }
  0x44   : > { %451 = vst.msk [vmem:[#allocation2 + $0x198] sm:$0x1] %vm433_vm1, %v11300_v0 }
  0x45   : > { %428 = vst.msk [vmem:[#allocation2 + $0x10] sm:$0x3] %vm427_vm3, %v11300_v0 }
  0x46   : > { %452 = vst.msk [vmem:[#allocation2 + $0x11] sm:$0x1] %vm433_vm1, %v11300_v0 }
  0x47   : > { %432 = vst.msk [vmem:[#allocation2 + $0x1a8] sm:$0x3] %vm427_vm3, %v11300_v0  ;;  %vm2654_vm3 = vcmask 1042434  }
  0x48   : > { %549 = vst.msk [vmem:[#allocation2 + $0x19] sm:$0xff] %vm424_vm0, %v516_v8 }
  0x49   : > { %v6758_v10 = vld [vmem:[#allocation2 + $0x30] sm:$0xff]  ;;  %550 = vst.msk [vmem:[#allocation2 + $0x21] sm:$0xff] %vm424_vm0, %v517_v9 }
  0x4a   : > { %v6761_v11 = vld [vmem:[#allocation2 + $0x38] sm:$0xff]  ;;  %v726_v12 = vrot.slane %v6758_v10, 1  ;;  %639 = vst.msk [vmem:[#allocation4 + $0x40] sm:$0xff] %vm424_vm0, %v6758_v10  ;;  %v6773_v16 = vld [vmem:[#allocation2 + $0x40] sm:$0x3] }
  0x4b   : > { %v727_v14 = vrot.slane %v6761_v11, 1  ;;  %640 = vst.msk [vmem:[#allocation4 + $0x50] sm:$0xff] %vm424_vm0, %v6761_v11  ;;  %v729_v22 = vrot.slane %v6773_v16, 1 }
  0x4c   : > { %469 = vst.msk [vmem:[#allocation2 + $0x1a9] sm:$0x1] %vm433_vm1, %v11300_v0  ;;  %vm2652_vm1 = vcmask 1041409  }
  0x4d   : > { %v6777_v18 = vsel %vm715_vm2, %v726_v12, %v727_v14  ;;  %v6779_v19 = vld [vmem:[#allocation2 + $0x10] sm:$0x3]  ;;  %553 = vst.msk [vmem:[#allocation2 + $0x49] sm:$0xff] %vm424_vm0, %v520_v13  ;;  %v6812_v32 = vsel %vm715_vm2, %v727_v14, %v729_v22  ;;  %v534_v13 = vld [vmem:[%s6733_s20 + $0x90] sm:$0xff] }
  0x4e   : > { %804 = vrot.lane.b32.xlu2 %v6777_v18, %s6518_s15  ;;  %v719_v20 = vrot.slane %v6779_v19, 1  ;;  %554 = vst.msk [vmem:[#allocation2 + $0x51] sm:$0xff] %vm424_vm0, %v521_v15 }
  0x4f   : > { %v6786_v21 = vld [vmem:[#allocation2 + $0x18] sm:$0xff]  ;;  %555 = vst.msk [vmem:[#allocation2 + $0x61] sm:$0xff] %vm424_vm0, %v522_v17  ;;  %v535_v17 = vld [vmem:[%s6733_s20 + $0x98] sm:$0xff] }
  0x50   : > { %v720_v24 = vsel %vm715_vm2, %v717_v3, %v719_v20  ;;  %v6794_v25 = vld [vmem:[#allocation2 + $0x20] sm:$0xff]  ;;  %v721_v26 = vrot.slane %v6786_v21, 1  ;;  %637 = vst.msk [vmem:[#allocation4 + $0x20] sm:$0xff] %vm424_vm0, %v6786_v21  ;;  %v6805_v30 = vld [vmem:[#allocation2 + $0x28] sm:$0x3] }
  0x51   : > { %798 = vrot.lane.b32.xlu0 %v720_v24, %s6518_s15  ;;  %v722_v28 = vrot.slane %v6794_v25, 1  ;;  %638 = vst.msk [vmem:[#allocation4 + $0x30] sm:$0xff] %vm424_vm0, %v6794_v25  ;;  %v724_v36 = vrot.slane %v6805_v30, 1 }
  0x52   : > { %556 = vst.msk [vmem:[#allocation2 + $0x69] sm:$0xff] %vm424_vm0, %v523_v23 }
  0x53   : > { %v6809_v31 = vsel %vm715_vm2, %v721_v26, %v722_v28  ;;  %557 = vst.msk [vmem:[#allocation2 + $0x79] sm:$0xff] %vm424_vm0, %v524_v27  ;;  %v6845_v43 = vsel %vm715_vm2, %v722_v28, %v724_v36 }
  0x54   : > { %800 = vrot.lane.b32.xlu1 %v6809_v31, %s6518_s15  ;;  %v6817_v33 = vld [vmem:[#allocation2 + $0x48] sm:$0xff]  ;;  %558 = vst.msk [vmem:[#allocation2 + $0x81] sm:$0xff] %vm424_vm0, %v525_v29 }
  0x55   : > { %v6820_v34 = vld [vmem:[#allocation2 + $0x50] sm:$0xff]  ;;  %v731_v35 = vrot.slane %v6817_v33, 1  ;;  %641 = vst.msk [vmem:[#allocation4 + $0x60] sm:$0xff] %vm424_vm0, %v6817_v33  ;;  %v6857_v49 = vld [vmem:[#allocation2 + $0x58] sm:$0x3] }
  0x56   : > { %806 = vrot.lane.b32.xlu2 %v6812_v32, %s6518_s15  ;;  %v732_v38 = vrot.slane %v6820_v34, 1  ;;  %642 = vst.msk [vmem:[#allocation4 + $0x70] sm:$0xff] %vm424_vm0, %v6820_v34  ;;  %v6832_v39 = vld [vmem:[#allocation2 + $0x60] sm:$0xff]  ;;  %v734_v56 = vrot.slane %v6857_v49, 1 }
  0x57   : > { %643 = vst.msk [vmem:[#allocation4 + $0x80] sm:$0xff] %vm424_vm0, %v6832_v39  ;;  %v736_v42 = vrot.slane %v6832_v39, 1 }
  0x58   : > { %v6838_v41 = vsel %vm715_vm2, %v731_v35, %v732_v38  ;;  %559 = vst.msk [vmem:[#allocation2 + $0x91] sm:$0xff] %vm424_vm0, %v526_v37  ;;  %v6898_v3 = vsel %vm715_vm2, %v732_v38, %v734_v56  ;;  %v536_v35 = vld [vmem:[%s6733_s20 + $0xa0] sm:$0xff]  ;;  %v537_v38 = vld [vmem:[%s6733_s20 + $0xa8] sm:$0xff]  ;;  %v539_v56 = vld [vmem:[%s6733_s20 + $0xb8] sm:$0xff] }
  0x59   : > { %11525 = vst [vmem:[#allocation8_spill] sm:$0xff] %v6838_v41  ;;  %808 = vrot.lane.b32.xlu0 %v6838_v41, %s6518_s15  ;;  %v6847_v44 = vld [vmem:[#allocation2 + $0x68] sm:$0xff]  ;;  %v6849_v45 = vld [vmem:[#allocation2 + $0x70] sm:$0x3] }
  0x5a   : > { %560 = vst.msk [vmem:[#allocation2 + $0x99] sm:$0xff] %vm424_vm0, %v527_v40  ;;  %v737_v47 = vrot.slane %v6847_v44, 1  ;;  %v739_v48 = vrot.slane %v6849_v45, 1  ;;  %v6859_v50 = vld [vmem:[#allocation2 + $0x78] sm:$0xff] }
  0x5b   : > { %644 = vst.msk [vmem:[#allocation4 + $0x90] sm:$0xff] %vm424_vm0, %v6847_v44  ;;  %v6861_v51 = vld [vmem:[#allocation2 + $0x80] sm:$0xff]  ;;  %v6871_v54 = vld [vmem:[#allocation2 + $0x88] sm:$0x3]  ;;  %v741_v9 = vrot.slane %v6859_v50, 1 }
  0x5c   : > { %645 = vst.msk [vmem:[#allocation4 + $0xa0] sm:$0xff] %vm424_vm0, %v6859_v50  ;;  %802 = vrot.lane.b32.xlu1 %v6845_v43, %s6518_s15  ;;  %v6869_v53 = vsel %vm715_vm2, %v736_v42, %v737_v47  ;;  %v6881_v57 = vsel %vm715_vm2, %v737_v47, %v739_v48  ;;  %v742_v58 = vrot.slane %v6861_v51, 1  ;;  %v744_v59 = vrot.slane %v6871_v54, 1  ;;  %v538_v42 = vld [vmem:[%s6733_s20 + $0xb0] sm:$0xff] }
  0x5d   : > { %11526 = vst [vmem:[#allocation9_spill] sm:$0xff] %v6869_v53 }
  0x5e   : > { %646 = vst.msk [vmem:[#allocation4 + $0xb0] sm:$0xff] %vm424_vm0, %v6861_v51  ;;  %812 = vrot.lane.b32.xlu2 %v6869_v53, %s6518_s15  ;;  %v6907_v7 = vsel %vm715_vm2, %v742_v58, %v744_v59  ;;  %v6941_v24 = vsel %vm715_vm2, %v741_v9, %v742_v58  ;;  %v540_v59 = vld [vmem:[%s6733_s20 + $0xc0] sm:$0xff] }
  0x5f   : > { %561 = vst.msk [vmem:[#allocation2 + $0xa9] sm:$0xff] %vm424_vm0, %v528_v46  ;;  %v6886_v60 = vld [vmem:[#allocation2 + $0x90] sm:$0xff] }
  0x60   : > { %11527 = vst [vmem:[#allocation10_spill] sm:$0xff] %v6881_v57  ;;  %v746_v5 = vrot.slane %v6886_v60, 1 }
  0x61   : > { %562 = vst.msk [vmem:[#allocation2 + $0xb1] sm:$0xff] %vm424_vm0, %v529_v52  ;;  %v6890_v62 = vld [vmem:[#allocation2 + $0x98] sm:$0xff]  ;;  %814 = vrot.lane.b32.xlu0 %v6881_v57, %s6518_s15  ;;  %v6947_v28 = vld [vmem:[#allocation2 + $0xa0] sm:$0x3] }
  0x62   : > { %563 = vst.msk [vmem:[#allocation2 + $0xc1] sm:$0xff] %vm424_vm0, %v530_v55  ;;  %v747_v6 = vrot.slane %v6890_v62, 1  ;;  %v749_v46 = vrot.slane %v6947_v28, 1 }
  0x63   : > { %647 = vst.msk [vmem:[#allocation4 + $0xc0] sm:$0xff] %vm424_vm0, %v6886_v60 }
  0x64   : > { %648 = vst.msk [vmem:[#allocation4 + $0xd0] sm:$0xff] %vm424_vm0, %v6890_v62  ;;  %810 = vrot.lane.b32.xlu1 %v6898_v3, %s6518_s15  ;;  %v6924_v14 = vsel %vm715_vm2, %v746_v5, %v747_v6 }
  0x65   : > { %564 = vst.msk [vmem:[#allocation2 + $0xc9] sm:$0xff] %vm424_vm0, %v531_v61  ;;  %v6991_v61 = vsel %vm715_vm2, %v747_v6, %v749_v46 }
  0x66   : > { %11528 = vst [vmem:[#allocation11_spill] sm:$0xff] %v6907_v7  ;;  %v6912_v8 = vld [vmem:[#allocation2 + $0xa8] sm:$0xff]  ;;  %818 = vrot.lane.b32.xlu2 %v6907_v7, %s6518_s15 }
  0x67   : > { %565 = vst.msk [vmem:[#allocation2 + $0xd9] sm:$0xff] %vm424_vm0, %v532_v63  ;;  %v751_v20 = vrot.slane %v6912_v8, 1  ;;  %v541_v63 = vld [vmem:[%s6733_s20 + $0xc8] sm:$0xff] }
  0x68   : > { %566 = vst.msk [vmem:[#allocation2 + $0xe1] sm:$0xff] %vm424_vm0, %v533_v4  ;;  %v6916_v12 = vld [vmem:[#allocation2 + $0xb0] sm:$0xff]  ;;  %v6933_v23 = vld [vmem:[#allocation2 + $0xb8] sm:$0x3] }
  0x69   : > { %649 = vst.msk [vmem:[#allocation4 + $0xe0] sm:$0xff] %vm424_vm0, %v6912_v8  ;;  %v6928_v15 = vld [vmem:[#allocation2 + $0xc0] sm:$0xff]  ;;  %v752_v22 = vrot.slane %v6916_v12, 1  ;;  %820 = vrot.lane.b32.xlu0 %v6924_v14, %s6518_s15  ;;  %v754_v27 = vrot.slane %v6933_v23, 1 }
  0x6a   : > { %11529 = vst [vmem:[#allocation12_spill] sm:$0xff] %v6924_v14 }
  0x6b   : > { %650 = vst.msk [vmem:[#allocation4 + $0xf0] sm:$0xff] %vm424_vm0, %v6916_v12  ;;  %v6955_v36 = vsel %vm715_vm2, %v751_v20, %v752_v22  ;;  %v6974_v47 = vsel %vm715_vm2, %v752_v22, %v754_v27  ;;  %v542_v20 = vld [vmem:[%s6733_s20 + $0xd0] sm:$0xff] }
  0x6c   : > { %651 = vst.msk [vmem:[#allocation4 + $0x100] sm:$0xff] %vm424_vm0, %v6928_v15  ;;  %v6943_v26 = vld [vmem:[#allocation2 + $0xc8] sm:$0xff]  ;;  %816 = vrot.lane.b32.xlu1 %v6941_v24, %s6518_s15  ;;  %v6964_v40 = vld [vmem:[#allocation2 + $0xd0] sm:$0x3] }
  0x6d   : > { %567 = vst.msk [vmem:[#allocation2 + $0xf1] sm:$0xff] %vm424_vm0, %v534_v13  ;;  %v757_v48 = vrot.slane %v6943_v26, 1  ;;  %v759_v52 = vrot.slane %v6964_v40, 1  ;;  %v756_v13 = vrot.slane %v6928_v15, 1 }
  0x6e   : > { %11530 = vst [vmem:[#allocation13_spill] sm:$0xff] %v6941_v24  ;;  %v6951_v29 = vld [vmem:[#allocation2 + $0xd8] sm:$0xff]  ;;  %824 = vrot.lane.b32.xlu2 %v6955_v36, %s6518_s15 }
  0x6f   : > { %568 = vst.msk [vmem:[#allocation2 + $0xf9] sm:$0xff] %vm424_vm0, %v535_v17  ;;  %v6957_v37 = vld [vmem:[#allocation2 + $0xe0] sm:$0xff]  ;;  %v761_v4 = vrot.slane %v6951_v29, 1  ;;  %v7000_v9 = vsel %vm715_vm2, %v757_v48, %v759_v52  ;;  %v7034_v52 = vsel %vm715_vm2, %v756_v13, %v757_v48 }
  0x70   : > { %652 = vst.msk [vmem:[#allocation4 + $0x110] sm:$0xff] %vm424_vm0, %v6943_v26  ;;  %v762_v5 = vrot.slane %v6957_v37, 1  ;;  %v545_v48 = vld [vmem:[%s6733_s20 + $0xe8] sm:$0xff] }
  0x71   : > { %11531 = vst [vmem:[#allocation14_spill] sm:$0xff] %v6955_v36  ;;  %826 = vrot.lane.b32.xlu0 %v6974_v47, %s6518_s15 }
  0x72   : > { %653 = vst.msk [vmem:[#allocation4 + $0x120] sm:$0xff] %vm424_vm0, %v6951_v29  ;;  %v7017_v22 = vsel %vm715_vm2, %v761_v4, %v762_v5 }
  0x73   : > { %654 = vst.msk [vmem:[#allocation4 + $0x130] sm:$0xff] %vm424_vm0, %v6957_v37 }
  0x74   : > { %569 = vst.msk [vmem:[#allocation2 + $0x109] sm:$0xff] %vm424_vm0, %v536_v35  ;;  %v6979_v55 = vld [vmem:[#allocation2 + $0xf0] sm:$0xff]  ;;  %822 = vrot.lane.b32.xlu1 %v6991_v61, %s6518_s15 }
  0x75   : > { %11532 = vst [vmem:[#allocation15_spill] sm:$0xff] %v6974_v47  ;;  %v543_v35 = vld [vmem:[%s6733_s20 + $0xd8] sm:$0xff] }
  0x76   : > { %570 = vst.msk [vmem:[#allocation2 + $0x111] sm:$0xff] %vm424_vm0, %v537_v38  ;;  %v6983_v58 = vld [vmem:[#allocation2 + $0xf8] sm:$0xff]  ;;  %830 = vrot.lane.b32.xlu2 %v7000_v9, %s6518_s15  ;;  %v766_v38 = vrot.slane %v6979_v55, 1  ;;  %v7026_v46 = vld [vmem:[#allocation2 + $0x100] sm:$0x3] }
  0x77   : > { %571 = vst.msk [vmem:[#allocation2 + $0x121] sm:$0xff] %vm424_vm0, %v538_v42  ;;  %v767_v42 = vrot.slane %v6983_v58, 1 }
  0x78   : > { %655 = vst.msk [vmem:[#allocation4 + $0x140] sm:$0xff] %vm424_vm0, %v6979_v55 }
  0x79   : > { %11533 = vst [vmem:[#allocation16_spill] sm:$0xff] %v6991_v61  ;;  %832 = vrot.lane.b32.xlu0 %v7017_v22, %s6518_s15  ;;  %v7048_v0 = vsel %vm715_vm2, %v766_v38, %v767_v42 }
  0x7a   : > { %656 = vst.msk [vmem:[#allocation4 + $0x150] sm:$0xff] %vm424_vm0, %v6983_v58 }
  0x7b   : > { %572 = vst.msk [vmem:[#allocation2 + $0x129] sm:$0xff] %vm424_vm0, %v539_v56  ;;  %v7005_v6 = vld [vmem:[#allocation2 + $0x108] sm:$0xff] }
  0x7c   : > { %11534 = vst [vmem:[#allocation17_spill] sm:$0xff] %v7000_v9  ;;  %828 = vrot.lane.b32.xlu1 %v7034_v52, %s6518_s15 }
  0x7d   : > { %573 = vst.msk [vmem:[#allocation2 + $0x139] sm:$0xff] %vm424_vm0, %v540_v59  ;;  %v7009_v17 = vld [vmem:[#allocation2 + $0x110] sm:$0xff]  ;;  %v769_v59 = vrot.slane %v7026_v46, 1  ;;  %v7057_v13 = vld [vmem:[#allocation2 + $0x118] sm:$0x3] }
  0x7e   : > { %574 = vst.msk [vmem:[#allocation2 + $0x141] sm:$0xff] %vm424_vm0, %v541_v63  ;;  %v7021_v27 = vld [vmem:[#allocation2 + $0x120] sm:$0xff]  ;;  %v7040_v63 = vld [vmem:[#allocation2 + $0xe8] sm:$0x3]  ;;  %836 = vrot.lane.b32.xlu2 %v7048_v0, %s6518_s15  ;;  %v772_v47 = vrot.slane %v7009_v17, 1  ;;  %v774_v9 = vrot.slane %v7057_v13, 1 }
  0x7f   : > { %657 = vst.msk [vmem:[#allocation4 + $0x160] sm:$0xff] %vm424_vm0, %v7005_v6  ;;  %v7066_v38 = vsel %vm715_vm2, %v767_v42, %v769_v59  ;;  %v776_v42 = vrot.slane %v7021_v27, 1 }
  0x80   : > { %11535 = vst [vmem:[#allocation18_spill] sm:$0xff] %v7017_v22 }
  0x81   : > { %658 = vst.msk [vmem:[#allocation4 + $0x170] sm:$0xff] %vm424_vm0, %v7009_v17  ;;  %838 = vrot.lane.b32.xlu0 %v7066_v38, %s6518_s15 }
  0x82   : > { %659 = vst.msk [vmem:[#allocation4 + $0x180] sm:$0xff] %vm424_vm0, %v7021_v27  ;;  %v7036_v56 = vld [vmem:[#allocation2 + $0x128] sm:$0xff]  ;;  %v7115_v57 = vld [vmem:[#allocation2 + $0x130] sm:$0x3] }
  0x83   : > { %575 = vst.msk [vmem:[#allocation2 + $0x151] sm:$0xff] %vm424_vm0, %v542_v20  ;;  %v544_v20 = vld [vmem:[%s6733_s20 + $0xe0] sm:$0xff]  ;;  %v777_v59 = vrot.slane %v7036_v56, 1  ;;  %v779_v24 = vrot.slane %v7115_v57, 1 }
  0x84   : > { %11536 = vst [vmem:[#allocation19_spill] sm:$0xff] %v7034_v52  ;;  %v7044_v4 = vld [vmem:[#allocation2 + $0x138] sm:$0xff] }
  0x85   : > { %576 = vst.msk [vmem:[#allocation2 + $0x159] sm:$0xff] %vm424_vm0, %v543_v35  ;;  %v7050_v22 = vld [vmem:[#allocation2 + $0x140] sm:$0xff]  ;;  %v764_v35 = vrot.slane %v7040_v63, 1 }
  0x86   : > { %660 = vst.msk [vmem:[#allocation4 + $0x190] sm:$0xff] %vm424_vm0, %v7036_v56 }
  0x87   : > { %11537 = vst [vmem:[#allocation20_spill] sm:$0xff] %v7048_v0 }
  0x88   : > { %661 = vst.msk [vmem:[#allocation4 + $0x1a0] sm:$0xff] %vm424_vm0, %v7044_v4 }
  0x89   : > { %662 = vst.msk [vmem:[#allocation4 + $0x1b0] sm:$0xff] %vm424_vm0, %v7050_v22 }
  0x8a   : > { %577 = vst.msk [vmem:[#allocation2 + $0x169] sm:$0xff] %vm424_vm0, %v544_v20  ;;  %v7071_v52 = vld [vmem:[#allocation2 + $0x150] sm:$0xff]  ;;  %v7080_v20 = vsel %vm715_vm2, %v762_v5, %v764_v35  ;;  %v7101_v5 = vsel %vm715_vm2, %v776_v42, %v777_v59  ;;  %v782_v35 = vrot.slane %v7050_v22, 1 }
  0x8b   : > { %11538 = vst [vmem:[#allocation21_spill] sm:$0xff] %v7066_v38  ;;  %834 = vrot.lane.b32.xlu1 %v7080_v20, %s6518_s15  ;;  %v771_v38 = vrot.slane %v7005_v6, 1  ;;  %844 = vrot.lane.b32.xlu0 %v7101_v5, %s6518_s15 }
  0x8c   : > { %578 = vst.msk [vmem:[#allocation2 + $0x171] sm:$0xff] %vm424_vm0, %v545_v48  ;;  %v7073_v14 = vld [vmem:[#allocation2 + $0x158] sm:$0xff]  ;;  %v7087_v48 = vsel %vm715_vm2, %v772_v47, %v774_v9  ;;  %v781_v9 = vrot.slane %v7044_v4, 1  ;;  %v7122_v7 = vld [vmem:[#allocation2 + $0x160] sm:$0x3] }
  0x8d   : > { %663 = vst.msk [vmem:[#allocation4 + $0x1c0] sm:$0xff] %vm424_vm0, %v7071_v52  ;;  %842 = vrot.lane.b32.xlu2 %v7087_v48, %s6518_s15  ;;  %v7112_v61 = vsel %vm715_vm2, %v771_v38, %v772_v47  ;;  %v787_v38 = vrot.slane %v7073_v14, 1 }
  0x8e   : > { %11539 = vst [vmem:[#allocation22_spill] sm:$0xff] %v7080_v20  ;;  %v7107_v20 = vld [vmem:[#allocation2 + $0x148] sm:$0x3]  ;;  %v7118_v42 = vsel %vm715_vm2, %v781_v9, %v782_v35  ;;  %v7135_v9 = vsel %vm715_vm2, %v777_v59, %v779_v24  ;;  %v926_v24 = vrot.slane %v6667_v2, 2  ;;  %v927_v59 = vrot.slane %v6663_v1, 2 }
  0x8f   : > { %664 = vst.msk [vmem:[#allocation4 + $0x1d0] sm:$0xff] %vm424_vm0, %v7073_v14 }
  0x90   : > { %11540 = vst [vmem:[#allocation23_spill] sm:$0xff] %v7087_v48  ;;  %v784_v48 = vrot.slane %v7107_v20, 1 }
  0x91   : > { %v7091_v0 = vld [vmem:[#allocation2 + $0x168] sm:$0xff]  ;;  %11541 = vst [vmem:[#allocation24_spill] sm:$0xff] %v7101_v5  ;;  %v789_v5 = vrot.slane %v7122_v7, 1 }
  0x92   : > { %665 = vst.msk [vmem:[#allocation4 + $0x1e0] sm:$0xff] %vm424_vm0, %v7091_v0  ;;  %v7128_v47 = vsel %vm715_vm2, %v782_v35, %v784_v48  ;;  %v786_v48 = vrot.slane %v7071_v52, 1 }
  0x93   : > { %v7094_v36 = vld [vmem:[#allocation2 + $0x170] sm:$0xff]  ;;  %11542 = vst [vmem:[#allocation25_spill] sm:$0xff] %v7112_v61  ;;  %840 = vrot.lane.b32.xlu1 %v7112_v61, %s6518_s15  ;;  %850 = vrot.lane.b32.xlu0 %v7128_v47, %s6518_s15  ;;  %v791_v61 = vrot.slane %v7091_v0, 1  ;;  %v7140_v53 = vsel %vm715_vm2, %v787_v38, %v789_v5 }
  0x94   : > { %666 = vst.msk [vmem:[#allocation4 + $0x1f0] sm:$0xff] %vm424_vm0, %v7094_v36  ;;  %v792_v41 = vrot.slane %v7094_v36, 1  ;;  %v7155_v5 = vsel %vm715_vm2, %v786_v48, %v787_v38  ;;  %v934_v38 = vrot.slane %v6805_v30, 2 }
  0x95   : > { %11543 = vst [vmem:[#allocation26_spill] sm:$0xff] %v7118_v42  ;;  %848 = vrot.lane.b32.xlu2 %v7118_v42, %s6518_s15  ;;  %v7158_v42 = vld [vmem:[#allocation2 + $0x178] sm:$0x3] }
  0x96   : > { %11544 = vst [vmem:[#allocation27_spill] sm:$0xff] %v7128_v47  ;;  %v7148_v35 = vsel %vm715_vm2, %v791_v61, %v792_v41  ;;  %v929_v47 = vrot.slane %v6779_v19, 2  ;;  %v794_v1 = vrot.slane %v7158_v42, 1  ;;  %v932_v19 = vrot.slane %v6794_v25, 2 }
  0x97   : > { %11545 = vst [vmem:[#allocation28_spill] sm:$0xff] %v7135_v9 }
  0x98   : > { %11546 = vst [vmem:[#allocation29_spill] sm:$0xff] %v7140_v53  ;;  %v930_v61 = vsel %vm925_vm4, %v927_v59, %v929_v47  ;;  %v7171_v48 = vsel %vm715_vm2, %v792_v41, %v794_v1  ;;  %v941_v41 = vrot.slane %v6817_v33, 2  ;;  %v942_v47 = vrot.slane %v6820_v34, 2 }
  0x99   : > { %11547 = vst [vmem:[#allocation30_spill] sm:$0xff] %v7148_v35 }
  0x9a   : > { %11548 = vst [vmem:[#allocation31_spill] sm:$0xff] %v7155_v5  ;;  %v797_v2 = vpop.permute.xlu0 %796 }
  0x9b   : > { %846 = vrot.lane.b32.xlu1 %v7135_v9, %s6518_s15  ;;  %856 = vrot.lane.b32.xlu0 %v7148_v35, %s6518_s15  ;;  %893 = vst.msk [vmem:[#allocation4] sm:$0xff] %vm892_vm5, %v797_v2  ;;  %v937_v35 = vrot.slane %v6761_v11, 2  ;;  %v7176_v2 = vsel %vm925_vm4, %v932_v19, %v934_v38  ;;  %v7196_v38 = vsel %vm925_vm4, %v941_v41, %v942_v47  ;;  %v952_v41 = vrot.slane %v6861_v51, 2 }
  0x9c   : > { %11549 = vst [vmem:[#allocation32_spill] sm:$0xff] %v7171_v48 }
  0x9d   : > { %854 = vrot.lane.b32.xlu2 %v7140_v53, %s6518_s15  ;;  %v928_v53 = vsel %vm925_vm4, %v926_v24, %v927_v59  ;;  %v936_v24 = vrot.slane %v6758_v10, 2  ;;  %11551 = vst [vmem:[#allocation34_spill] sm:$0xff] %v7196_v38 }
  0x9f   : > { %v7184_v30 = vsel %vm925_vm4, %v936_v24, %v937_v35  ;;  %v939_v24 = vrot.slane %v6773_v16, 2  ;;  %v951_v16 = vrot.slane %v6859_v50, 2 }
  0xa0   : > { %11550 = vst [vmem:[#allocation33_spill] sm:$0xff] %v7184_v30 }
  0xa3   : > { %852 = vrot.lane.b32.xlu1 %v7155_v5, %s6518_s15  ;;  %1008 = vrot.lane.b32.xlu0 %v930_v61, %s11386_s26  ;;  %v944_v61 = vrot.slane %v6857_v49, 2  ;;  %v7212_v49 = vsel %vm925_vm4, %v937_v35, %v939_v24  ;;  %v956_v35 = vrot.slane %v6886_v60, 2  ;;  %v957_v24 = vrot.slane %v6890_v62, 2 }
  0xa5   : > { %1006 = vrot.lane.b32.xlu2 %v928_v53, %s11386_s26  ;;  %v931_v53 = vrot.slane %v6786_v21, 2 }
  0xa7   : > { %v7192_v1 = vsel %vm925_vm4, %v931_v53, %v932_v19  ;;  %v949_v19 = vrot.slane %v6849_v45, 2  ;;  %v946_v45 = vrot.slane %v6832_v39, 2 }
  0xa8   : > { %v805_v59 = vpop.permute.xlu2 %804 }
  0xa9   : > { %897 = vst.msk [vmem:[#allocation4 + $0x40] sm:$0xff] %vm892_vm5, %v805_v59  ;;  %v7204_v59 = vsel %vm925_vm4, %v942_v47, %v944_v61  ;;  %v7225_v61 = vsel %vm925_vm4, %v951_v16, %v952_v41  ;;  %v954_v16 = vrot.slane %v6871_v54, 2  ;;  %v966_v54 = vrot.slane %v6928_v15, 2 }
  0xaa   : > { %11552 = vst [vmem:[#allocation35_spill] sm:$0xff] %v7204_v59 }
  0xab   : > { %858 = vrot.lane.b32.xlu1 %v7171_v48, %s6518_s15  ;;  %1014 = vrot.lane.b32.xlu0 %v7184_v30, %s11386_s26  ;;  %v947_v30 = vrot.slane %v6847_v44, 2  ;;  %11554 = vst [vmem:[#allocation37_spill] sm:$0xff] %v7225_v61  ;;  %s6522_s15 = smov 20  }
  0xad   : > { %1012 = vrot.lane.b32.xlu2 %v7176_v2, %s11386_s26  ;;  %v7217_v47 = vsel %vm925_vm4, %v947_v30, %v949_v19  ;;  %v7233_v19 = vsel %vm925_vm4, %v946_v45, %v947_v30  ;;  %v964_v30 = vrot.slane %v6933_v23, 2  ;;  %v961_v23 = vrot.slane %v6912_v8, 2 }
  0xae   : > { %11553 = vst [vmem:[#allocation36_spill] sm:$0xff] %v7217_v47 }
  0xb0   : > { %v807_v53 = vpop.permute.xlu2 %806 }
  0xb1   : > { %898 = vst.msk [vmem:[#allocation4 + $0x50] sm:$0xff] %vm892_vm5, %v807_v53 }
  0xb3   : > { %1010 = vrot.lane.b32.xlu1 %v7192_v1, %s11386_s26  ;;  %1020 = vrot.lane.b32.xlu0 %v7204_v59, %s11386_s26  ;;  %v959_v59 = vrot.slane %v6947_v28, 2  ;;  %v7253_v28 = vsel %vm925_vm4, %v952_v41, %v954_v16  ;;  %v971_v16 = vrot.slane %v6951_v29, 2 }
  0xb4   : > { %11557 = vst [vmem:[#allocation40_spill] sm:$0xff] %v7253_v28 }
  0xb5   : > { %1018 = vrot.lane.b32.xlu2 %v7196_v38, %s11386_s26 }
  0xb8   : > { %v813_v53 = vpop.permute.xlu2 %812 }
  0xb9   : > { %901 = vst.msk [vmem:[#allocation4 + $0x80] sm:$0xff] %vm892_vm5, %v813_v53  ;;  %v7245_v53 = vsel %vm925_vm4, %v957_v24, %v959_v59 }
  0xba   : > { %11556 = vst [vmem:[#allocation39_spill] sm:$0xff] %v7245_v53 }
  0xbb   : > { %1016 = vrot.lane.b32.xlu1 %v7212_v49, %s11386_s26  ;;  %1026 = vrot.lane.b32.xlu0 %v7225_v61, %s11386_s26  ;;  %v962_v61 = vrot.slane %v6916_v12, 2 }
  0xbd   : > { %1024 = vrot.lane.b32.xlu2 %v7217_v47, %s11386_s26  ;;  %v7237_v47 = vsel %vm925_vm4, %v956_v35, %v957_v24  ;;  %v967_v35 = vrot.slane %v6943_v26, 2  ;;  %v7258_v59 = vsel %vm925_vm4, %v962_v61, %v964_v30  ;;  %v972_v30 = vrot.slane %v6957_v37, 2 }
  0xbe   : > { %11555 = vst [vmem:[#allocation38_spill] sm:$0xff] %v7237_v47 }
  0xbf   : > { %11558 = vst [vmem:[#allocation41_spill] sm:$0xff] %v7258_v59  ;;  %v7267_v41 = vsel %vm925_vm4, %v966_v54, %v967_v35  ;;  %v7280_v54 = vsel %vm925_vm4, %v971_v16, %v972_v30 }
  0xc0   : > { %v819_v45 = vpop.permute.xlu2 %818  ;;  %11559 = vst [vmem:[#allocation42_spill] sm:$0xff] %v7267_v41 }
  0xc1   : > { %904 = vst.msk [vmem:[#allocation4 + $0xb0] sm:$0xff] %vm892_vm5, %v819_v45 }
  0xc2   : > { %11560 = vst [vmem:[#allocation43_spill] sm:$0xff] %v7280_v54 }
  0xc3   : > { %1022 = vrot.lane.b32.xlu1 %v7233_v19, %s11386_s26  ;;  %1032 = vrot.lane.b32.xlu0 %v7245_v53, %s11386_s26  ;;  %v974_v53 = vrot.slane %v7040_v63, 2  ;;  %v977_v63 = vrot.slane %v6983_v58, 2 }
  0xc5   : > { %1030 = vrot.lane.b32.xlu2 %v7237_v47, %s11386_s26  ;;  %v799_v47 = vpop.permute.xlu0 %798 }
  0xc6   : > { %894 = vst.msk [vmem:[#allocation4 + $0x10] sm:$0xff] %vm892_vm5, %v799_v47  ;;  %v801_v24 = vpop.permute.xlu1 %800  ;;  %v7276_v47 = vsel %vm925_vm4, %v961_v23, %v962_v61  ;;  %v7289_v61 = vsel %vm925_vm4, %v972_v30, %v974_v53  ;;  %v979_v23 = vrot.slane %v7026_v46, 2  ;;  %v982_v53 = vrot.slane %v7009_v17, 2 }
  0xc7   : > { %895 = vst.msk [vmem:[#allocation4 + $0x20] sm:$0xff] %vm892_vm5, %v801_v24  ;;  %v969_v24 = vrot.slane %v6964_v40, 2  ;;  %v976_v46 = vrot.slane %v6979_v55, 2 }
  0xc8   : > { %v825_v45 = vpop.permute.xlu2 %824  ;;  %11561 = vst [vmem:[#allocation44_spill] sm:$0xff] %v7289_v61 }
  0xc9   : > { %907 = vst.msk [vmem:[#allocation4 + $0xe0] sm:$0xff] %vm892_vm5, %v825_v45  ;;  %v7298_v40 = vsel %vm925_vm4, %v967_v35, %v969_v24  ;;  %v986_v24 = vrot.slane %v7021_v27, 2 }
  0xca   : > { %11562 = vst [vmem:[#allocation45_spill] sm:$0xff] %v7298_v40 }
  0xcb   : > { %1028 = vrot.lane.b32.xlu1 %v7253_v28, %s11386_s26  ;;  %1038 = vrot.lane.b32.xlu0 %v7267_v41, %s11386_s26 }
  0xcd   : > { %1036 = vrot.lane.b32.xlu2 %v7258_v59, %s11386_s26  ;;  %v809_v59 = vpop.permute.xlu0 %808 }
  0xce   : > { %899 = vst.msk [vmem:[#allocation4 + $0x60] sm:$0xff] %vm892_vm5, %v809_v59  ;;  %v803_v45 = vpop.permute.xlu1 %802  ;;  %v981_v59 = vrot.slane %v7005_v6, 2 }
  0xcf   : > { %896 = vst.msk [vmem:[#allocation4 + $0x30] sm:$0xff] %vm892_vm5, %v803_v45  ;;  %v7303_v45 = vsel %vm925_vm4, %v977_v63, %v979_v23  ;;  %v987_v23 = vrot.slane %v7036_v56, 2 }
  0xd0   : > { %v831_v16 = vpop.permute.xlu2 %830  ;;  %11563 = vst [vmem:[#allocation46_spill] sm:$0xff] %v7303_v45  ;;  %v7312_v35 = vsel %vm925_vm4, %v981_v59, %v982_v53 }
  0xd1   : > { %910 = vst.msk [vmem:[#allocation4 + $0x110] sm:$0xff] %vm892_vm5, %v831_v16  ;;  %v7325_v59 = vsel %vm925_vm4, %v986_v24, %v987_v23 }
  0xd2   : > { %11564 = vst [vmem:[#allocation47_spill] sm:$0xff] %v7312_v35 }
  0xd3   : > { %1034 = vrot.lane.b32.xlu1 %v7276_v47, %s11386_s26  ;;  %1044 = vrot.lane.b32.xlu0 %v7289_v61, %s11386_s26  ;;  %11565 = vst [vmem:[#allocation48_spill] sm:$0xff] %v7325_v59 }
  0xd5   : > { %1042 = vrot.lane.b32.xlu2 %v7280_v54, %s11386_s26  ;;  %v815_v30 = vpop.permute.xlu0 %814 }
  0xd6   : > { %902 = vst.msk [vmem:[#allocation4 + $0x90] sm:$0xff] %vm892_vm5, %v815_v30  ;;  %v811_v16 = vpop.permute.xlu1 %810  ;;  %v7321_v30 = vsel %vm925_vm4, %v976_v46, %v977_v63  ;;  %v994_v46 = vrot.slane %v7107_v20, 2  ;;  %v991_v20 = vrot.slane %v7044_v4, 2 }
  0xd7   : > { %900 = vst.msk [vmem:[#allocation4 + $0x70] sm:$0xff] %vm892_vm5, %v811_v16  ;;  %v984_v16 = vrot.slane %v7057_v13, 2 }
  0xd8   : > { %v837_v61 = vpop.permute.xlu2 %836 }
  0xd9   : > { %913 = vst.msk [vmem:[#allocation4 + $0x140] sm:$0xff] %vm892_vm5, %v837_v61  ;;  %v7343_v13 = vsel %vm925_vm4, %v982_v53, %v984_v16  ;;  %v1001_v16 = vrot.slane %v7091_v0, 2 }
  0xda   : > { %11567 = vst [vmem:[#allocation50_spill] sm:$0xff] %v7343_v13 }
  0xdb   : > { %1040 = vrot.lane.b32.xlu1 %v7298_v40, %s11386_s26  ;;  %1050 = vrot.lane.b32.xlu0 %v7312_v35, %s11386_s26 }
  0xdd   : > { %1048 = vrot.lane.b32.xlu2 %v7303_v45, %s11386_s26  ;;  %v989_v45 = vrot.slane %v7115_v57, 2  ;;  %v821_v41 = vpop.permute.xlu0 %820  ;;  %v992_v57 = vrot.slane %v7050_v22, 2 }
  0xde   : > { %905 = vst.msk [vmem:[#allocation4 + $0xc0] sm:$0xff] %vm892_vm5, %v821_v41  ;;  %v817_v61 = vpop.permute.xlu1 %816  ;;  %v996_v41 = vrot.slane %v7071_v52, 2 }
  0xdf   : > { %v7334_v63 = vsel %vm925_vm4, %v987_v23, %v989_v45  ;;  %903 = vst.msk [vmem:[#allocation4 + $0xa0] sm:$0xff] %vm892_vm5, %v817_v61  ;;  %v997_v45 = vrot.slane %v7073_v14, 2  ;;  %v7348_v61 = vsel %vm925_vm4, %v992_v57, %v994_v46  ;;  %v1002_v46 = vrot.slane %v7094_v36, 2 }
  0xe0   : > { %11566 = vst [vmem:[#allocation49_spill] sm:$0xff] %v7334_v63 }
  0xe1   : > { %11568 = vst [vmem:[#allocation51_spill] sm:$0xff] %v7348_v61  ;;  %v7357_v53 = vsel %vm925_vm4, %v996_v41, %v997_v45  ;;  %v7370_v41 = vsel %vm925_vm4, %v1001_v16, %v1002_v46 }
  0xe3   : > { %1046 = vrot.lane.b32.xlu1 %v7321_v30, %s11386_s26  ;;  %1056 = vrot.lane.b32.xlu0 %v7334_v63, %s11386_s26 }
  0xe5   : > { %1054 = vrot.lane.b32.xlu2 %v7325_v59, %s11386_s26  ;;  %v827_v23 = vpop.permute.xlu0 %826 }
  0xe6   : > { %908 = vst.msk [vmem:[#allocation4 + $0xf0] sm:$0xff] %vm892_vm5, %v827_v23  ;;  %v7366_v23 = vsel %vm925_vm4, %v991_v20, %v992_v57 }
  0xe7   : > { %v843_v24 = vpop.permute.xlu2 %842  ;;  %11569 = vst [vmem:[#allocation52_spill] sm:$0xff] %v7366_v23 }
  0xe8   : > { %916 = vst.msk [vmem:[#allocation4 + $0x170] sm:$0xff] %vm892_vm5, %v843_v24  ;;  %v823_v24 = vpop.permute.xlu1 %822 }
  0xe9   : > { %906 = vst.msk [vmem:[#allocation4 + $0xd0] sm:$0xff] %vm892_vm5, %v823_v24  ;;  %v999_v24 = vrot.slane %v7122_v7, 2 }
  0xeb   : > { %1052 = vrot.lane.b32.xlu1 %v7343_v13, %s11386_s26  ;;  %1062 = vrot.lane.b32.xlu0 %v7357_v53, %s11386_s26  ;;  %v7386_v20 = vsel %vm925_vm4, %v997_v45, %v999_v24 }
  0xec   : > { %11570 = vst [vmem:[#allocation53_spill] sm:$0xff] %v7386_v20 }
  0xed   : > { %1060 = vrot.lane.b32.xlu2 %v7348_v61, %s11386_s26  ;;  %v1004_v61 = vrot.slane %v7158_v42, 2  ;;  %v833_v35 = vpop.permute.xlu0 %832 }
  0xee   : > { %911 = vst.msk [vmem:[#allocation4 + $0x120] sm:$0xff] %vm892_vm5, %v833_v35 }
  0xef   : > { %v849_v63 = vpop.permute.xlu2 %848  ;;  %v7379_v57 = vsel %vm925_vm4, %v1002_v46, %v1004_v61 }
  0xf0   : > { %919 = vst.msk [vmem:[#allocation4 + $0x1a0] sm:$0xff] %vm892_vm5, %v849_v63  ;;  %v829_v63 = vpop.permute.xlu1 %828 }
  0xf1   : > { %909 = vst.msk [vmem:[#allocation4 + $0x100] sm:$0xff] %vm892_vm5, %v829_v63 }
  0xf3   : > { %1058 = vrot.lane.b32.xlu1 %v7366_v23, %s11386_s26  ;;  %1068 = vrot.lane.b32.xlu0 %v7379_v57, %s11386_s26 }
  0xf5   : > { %1066 = vrot.lane.b32.xlu2 %v7370_v41, %s11386_s26  ;;  %v839_v35 = vpop.permute.xlu0 %838 }
  0xf6   : > { %914 = vst.msk [vmem:[#allocation4 + $0x150] sm:$0xff] %vm892_vm5, %v839_v35 }
  0xf7   : > { %v855_v42 = vpop.permute.xlu2 %854 }
  0xf8   : > { %922 = vst.msk [vmem:[#allocation4 + $0x1d0] sm:$0xff] %vm892_vm5, %v855_v42 }
  0xfb   : > { %1064 = vrot.lane.b32.xlu1 %v7386_v20, %s11386_s26  ;;  %1141 = vrot.lane.b32.xlu0 %v6758_v10, %s6520_s28  ;;  %s6529_s26 = smov 48  }
  0xfd   : > { %v835_v7 = vpop.permute.xlu1 %834  ;;  %1139 = vrot.lane.b32.xlu2 %v6794_v25, %s6520_s28  ;;  %v845_v45 = vpop.permute.xlu0 %844 }
  0xfe   : > { %912 = vst.msk [vmem:[#allocation4 + $0x130] sm:$0xff] %vm892_vm5, %v835_v7 }
  0xff   : > { %v1007_v61 = vpop.permute.xlu2 %1006  ;;  %917 = vst.msk [vmem:[#allocation4 + $0x180] sm:$0xff] %vm892_vm5, %v845_v45 }
 0x100   : > { %1103 = vst.msk [vmem:[#allocation4] sm:$0xff] %vm1102_vm6, %v1007_v61 }
 0x103   : > { %1137 = vrot.lane.b32.xlu1 %v6786_v21, %s6520_s28  ;;  %1147 = vrot.lane.b32.xlu0 %v6820_v34, %s6520_s28 }
 0x105   : > { %v841_v16 = vpop.permute.xlu1 %840  ;;  %1145 = vrot.lane.b32.xlu2 %v6817_v33, %s6520_s28  ;;  %v851_v46 = vpop.permute.xlu0 %850 }
 0x106   : > { %915 = vst.msk [vmem:[#allocation4 + $0x160] sm:$0xff] %vm892_vm5, %v841_v16 }
 0x107   : > { %v1013_v25 = vpop.permute.xlu2 %1012  ;;  %920 = vst.msk [vmem:[#allocation4 + $0x1b0] sm:$0xff] %vm892_vm5, %v851_v46 }
 0x108   : > { %1106 = vst.msk [vmem:[#allocation4 + $0x30] sm:$0xff] %vm1102_vm6, %v1013_v25 }
 0x10b   : > { %1143 = vrot.lane.b32.xlu1 %v6761_v11, %s6520_s28  ;;  %1153 = vrot.lane.b32.xlu0 %v6859_v50, %s6520_s28 }
 0x10d   : > { %v847_v21 = vpop.permute.xlu1 %846  ;;  %1151 = vrot.lane.b32.xlu2 %v6847_v44, %s6520_s28  ;;  %v857_v63 = vpop.permute.xlu0 %856 }
 0x10e   : > { %918 = vst.msk [vmem:[#allocation4 + $0x190] sm:$0xff] %vm892_vm5, %v847_v21  ;;  %v546_v21 = vld [vmem:[%s6733_s20 + $0xf0] sm:$0xff] }
 0x10f   : > { %v1019_v24 = vpop.permute.xlu2 %1018  ;;  %923 = vst.msk [vmem:[#allocation4 + $0x1e0] sm:$0xff] %vm892_vm5, %v857_v63 }
 0x110   : > { %1109 = vst.msk [vmem:[#allocation4 + $0x60] sm:$0xff] %vm1102_vm6, %v1019_v24  ;;  %v547_v24 = vld [vmem:[%s6733_s20 + $0xf8] sm:$0xff]  ;;  %s6526_s20 = smov 112  }
 0x111   : > { %579 = vst.msk [vmem:[#allocation2 + $0x181] sm:$0xff] %vm424_vm0, %v546_v21 }
 0x112   : > { %580 = vst.msk [vmem:[#allocation2 + $0x189] sm:$0xff] %vm424_vm0, %v547_v24  ;;  %vm2351_vm0 = vcmask 195712  }
 0x113   : > { %1149 = vrot.lane.b32.xlu1 %v6832_v39, %s6520_s28  ;;  %1159 = vrot.lane.b32.xlu0 %v6890_v62, %s6520_s28 }
 0x115   : > { %v853_v42 = vpop.permute.xlu1 %852  ;;  %1157 = vrot.lane.b32.xlu2 %v6886_v60, %s6520_s28  ;;  %v1009_v7 = vpop.permute.xlu0 %1008 }
 0x116   : > { %921 = vst.msk [vmem:[#allocation4 + $0x1c0] sm:$0xff] %vm892_vm5, %v853_v42 }
 0x117   : > { %v1025_v35 = vpop.permute.xlu2 %1024  ;;  %1104 = vst.msk [vmem:[#allocation4 + $0x10] sm:$0xff] %vm1102_vm6, %v1009_v7 }
 0x118   : > { %1112 = vst.msk [vmem:[#allocation4 + $0x90] sm:$0xff] %vm1102_vm6, %v1025_v35 }
 0x11b   : > { %1155 = vrot.lane.b32.xlu1 %v6861_v51, %s6520_s28  ;;  %1165 = vrot.lane.b32.xlu0 %v6928_v15, %s6520_s28 }
 0x11d   : > { %v859_v61 = vpop.permute.xlu1 %858  ;;  %1163 = vrot.lane.b32.xlu2 %v6916_v12, %s6520_s28  ;;  %v1015_v16 = vpop.permute.xlu0 %1014 }
 0x11e   : > { %924 = vst.msk [vmem:[#allocation4 + $0x1f0] sm:$0xff] %vm892_vm5, %v859_v61  ;;  %vm2656_vm5 = vcmask 1043459  }
 0x11f   : > { %v1031_v45 = vpop.permute.xlu2 %1030  ;;  %1107 = vst.msk [vmem:[#allocation4 + $0x40] sm:$0xff] %vm1102_vm6, %v1015_v16 }
 0x120   : > { %1115 = vst.msk [vmem:[#allocation4 + $0xc0] sm:$0xff] %vm1102_vm6, %v1031_v45 }
 0x123   : > { %1161 = vrot.lane.b32.xlu1 %v6912_v8, %s6520_s28  ;;  %1171 = vrot.lane.b32.xlu0 %v6957_v37, %s6520_s28 }
 0x125   : > { %v1011_v25 = vpop.permute.xlu1 %1010  ;;  %1169 = vrot.lane.b32.xlu2 %v6951_v29, %s6520_s28  ;;  %v1021_v63 = vpop.permute.xlu0 %1020 }
 0x126   : > { %1105 = vst.msk [vmem:[#allocation4 + $0x20] sm:$0xff] %vm1102_vm6, %v1011_v25 }
 0x127   : > { %v1037_v46 = vpop.permute.xlu2 %1036  ;;  %1110 = vst.msk [vmem:[#allocation4 + $0x70] sm:$0xff] %vm1102_vm6, %v1021_v63 }
 0x128   : > { %1118 = vst.msk [vmem:[#allocation4 + $0xf0] sm:$0xff] %vm1102_vm6, %v1037_v46 }
 0x12b   : > { %1167 = vrot.lane.b32.xlu1 %v6943_v26, %s6520_s28  ;;  %1177 = vrot.lane.b32.xlu0 %v7005_v6, %s6520_s28 }
 0x12d   : > { %v1017_v42 = vpop.permute.xlu1 %1016  ;;  %1175 = vrot.lane.b32.xlu2 %v6983_v58, %s6520_s28  ;;  %v1027_v7 = vpop.permute.xlu0 %1026 }
 0x12e   : > { %1108 = vst.msk [vmem:[#allocation4 + $0x50] sm:$0xff] %vm1102_vm6, %v1017_v42 }
 0x12f   : > { %v1043_v35 = vpop.permute.xlu2 %1042  ;;  %1113 = vst.msk [vmem:[#allocation4 + $0xa0] sm:$0xff] %vm1102_vm6, %v1027_v7 }
 0x130   : > { %1121 = vst.msk [vmem:[#allocation4 + $0x120] sm:$0xff] %vm1102_vm6, %v1043_v35  ;;  %v7482_v35 = vld [vmem:[#allocation2 + $0x188] sm:$0xff] }
 0x133   : > { %1173 = vrot.lane.b32.xlu1 %v6979_v55, %s6520_s28  ;;  %1183 = vrot.lane.b32.xlu0 %v7036_v56, %s6520_s28 }
 0x135   : > { %v1023_v61 = vpop.permute.xlu1 %1022  ;;  %1181 = vrot.lane.b32.xlu2 %v7021_v27, %s6520_s28  ;;  %v1033_v16 = vpop.permute.xlu0 %1032 }
 0x136   : > { %1111 = vst.msk [vmem:[#allocation4 + $0x80] sm:$0xff] %vm1102_vm6, %v1023_v61 }
 0x137   : > { %v1049_v45 = vpop.permute.xlu2 %1048  ;;  %1116 = vst.msk [vmem:[#allocation4 + $0xd0] sm:$0xff] %vm1102_vm6, %v1033_v16 }
 0x138   : > { %1124 = vst.msk [vmem:[#allocation4 + $0x150] sm:$0xff] %vm1102_vm6, %v1049_v45  ;;  %v7493_v45 = vld [vmem:[#allocation2 + $0x180] sm:$0xff] }
 0x13b   : > { %1179 = vrot.lane.b32.xlu1 %v7009_v17, %s6520_s28  ;;  %1189 = vrot.lane.b32.xlu0 %v7071_v52, %s6520_s28 }
 0x13d   : > { %v1029_v25 = vpop.permute.xlu1 %1028  ;;  %1187 = vrot.lane.b32.xlu2 %v7050_v22, %s6520_s28  ;;  %v1039_v21 = vpop.permute.xlu0 %1038 }
 0x13e   : > { %1114 = vst.msk [vmem:[#allocation4 + $0xb0] sm:$0xff] %vm1102_vm6, %v1029_v25 }
 0x13f   : > { %v1055_v46 = vpop.permute.xlu2 %1054  ;;  %1119 = vst.msk [vmem:[#allocation4 + $0x100] sm:$0xff] %vm1102_vm6, %v1039_v21 }
 0x140   : > { %1127 = vst.msk [vmem:[#allocation4 + $0x180] sm:$0xff] %vm1102_vm6, %v1055_v46 }
 0x143   : > { %1185 = vrot.lane.b32.xlu1 %v7044_v4, %s6520_s28  ;;  %1195 = vrot.lane.b32.xlu0 %v7094_v36, %s6520_s28 }
 0x145   : > { %v1035_v24 = vpop.permute.xlu1 %1034  ;;  %1193 = vrot.lane.b32.xlu2 %v7091_v0, %s6520_s28  ;;  %v1045_v42 = vpop.permute.xlu0 %1044 }
 0x146   : > { %1117 = vst.msk [vmem:[#allocation4 + $0xe0] sm:$0xff] %vm1102_vm6, %v1035_v24 }
 0x147   : > { %v1061_v63 = vpop.permute.xlu2 %1060  ;;  %1122 = vst.msk [vmem:[#allocation4 + $0x130] sm:$0xff] %vm1102_vm6, %v1045_v42 }
 0x148   : > { %1130 = vst.msk [vmem:[#allocation4 + $0x1b0] sm:$0xff] %vm1102_vm6, %v1061_v63  ;;  %v11571_v63 = vld [vmem:[#allocation9_spill] sm:$0xff] }
 0x14b   : > { %1191 = vrot.lane.b32.xlu1 %v7073_v14, %s6520_s28  ;;  %1272 = vrot.lane.b32.xlu0 %v6809_v31, %s11514_s29 }
 0x14d   : > { %v1041_v7 = vpop.permute.xlu1 %1040  ;;  %1199 = vrot.lane.b32.xlu2 %v7482_v35, %s6520_s28  ;;  %v1051_v16 = vpop.permute.xlu0 %1050 }
 0x14e   : > { %1120 = vst.msk [vmem:[#allocation4 + $0x110] sm:$0xff] %vm1102_vm6, %v1041_v7  ;;  %v11572_v7 = vld [vmem:[#allocation8_spill] sm:$0xff] }
 0x14f   : > { %v1067_v61 = vpop.permute.xlu2 %1066  ;;  %1125 = vst.msk [vmem:[#allocation4 + $0x160] sm:$0xff] %vm1102_vm6, %v1051_v16 }
 0x150   : > { %1133 = vst.msk [vmem:[#allocation4 + $0x1e0] sm:$0xff] %vm1102_vm6, %v1067_v61  ;;  %v11573_v61 = vld [vmem:[#allocation13_spill] sm:$0xff] }
 0x153   : > { %1197 = vrot.lane.b32.xlu1 %v7493_v45, %s6520_s28  ;;  %1278 = vrot.lane.b32.xlu0 %v6812_v32, %s11514_s29  ;;  %s11512_s28 = smov 120  }
 0x155   : > { %v1047_v25 = vpop.permute.xlu1 %1046  ;;  %1276 = vrot.lane.b32.xlu2 %v6777_v18, %s11514_s29  ;;  %v1057_v31 = vpop.permute.xlu0 %1056 }
 0x156   : > { %1123 = vst.msk [vmem:[#allocation4 + $0x140] sm:$0xff] %vm1102_vm6, %v1047_v25  ;;  %v11574_v25 = vld [vmem:[#allocation11_spill] sm:$0xff] }
 0x157   : > { %v1140_v46 = vpop.permute.xlu2 %1139  ;;  %1128 = vst.msk [vmem:[#allocation4 + $0x190] sm:$0xff] %vm1102_vm6, %v1057_v31  ;;  %v11575_v31 = vld [vmem:[#allocation10_spill] sm:$0xff] }
 0x158   : > { %1235 = vst.msk [vmem:[#allocation4 + $0x10] sm:$0xff] %vm1233_vm7, %v1140_v46 }
 0x15b   : > { %1274 = vrot.lane.b32.xlu1 %v6845_v43, %s11514_s29  ;;  %1284 = vrot.lane.b32.xlu0 %v11571_v63, %s11514_s29 }
 0x15d   : > { %v1053_v21 = vpop.permute.xlu1 %1052  ;;  %1282 = vrot.lane.b32.xlu2 %v6898_v3, %s11514_s29  ;;  %v1063_v42 = vpop.permute.xlu0 %1062 }
 0x15e   : > { %1126 = vst.msk [vmem:[#allocation4 + $0x170] sm:$0xff] %vm1102_vm6, %v1053_v21 }
 0x15f   : > { %v1146_v24 = vpop.permute.xlu2 %1145  ;;  %1131 = vst.msk [vmem:[#allocation4 + $0x1c0] sm:$0xff] %vm1102_vm6, %v1063_v42 }
 0x160   : > { %1238 = vst.msk [vmem:[#allocation4 + $0x40] sm:$0xff] %vm1233_vm7, %v1146_v24  ;;  %v11576_v24 = vld [vmem:[#allocation16_spill] sm:$0xff] }
 0x163   : > { %1280 = vrot.lane.b32.xlu1 %v11572_v7, %s11514_s29  ;;  %1290 = vrot.lane.b32.xlu0 %v11574_v25, %s11514_s29  ;;  %v11578_v25 = vld [vmem:[#allocation12_spill] sm:$0xff] }
 0x165   : > { %v1059_v43 = vpop.permute.xlu1 %1058  ;;  %1288 = vrot.lane.b32.xlu2 %v11573_v61, %s11514_s29  ;;  %v1069_v46 = vpop.permute.xlu0 %1068 }
 0x166   : > { %1129 = vst.msk [vmem:[#allocation4 + $0x1a0] sm:$0xff] %vm1102_vm6, %v1059_v43  ;;  %v11577_v43 = vld [vmem:[#allocation14_spill] sm:$0xff] }
 0x167   : > { %v1152_v16 = vpop.permute.xlu2 %1151  ;;  %1134 = vst.msk [vmem:[#allocation4 + $0x1f0] sm:$0xff] %vm1102_vm6, %v1069_v46  ;;  %v11579_v46 = vld [vmem:[#allocation19_spill] sm:$0xff] }
 0x168   : > { %1241 = vst.msk [vmem:[#allocation4 + $0x70] sm:$0xff] %vm1233_vm7, %v1152_v16 }
 0x16b   : > { %1286 = vrot.lane.b32.xlu1 %v11575_v31, %s11514_s29  ;;  %1296 = vrot.lane.b32.xlu0 %v11577_v43, %s11514_s29  ;;  %v11581_v43 = vld [vmem:[#allocation15_spill] sm:$0xff] }
 0x16d   : > { %v1065_v21 = vpop.permute.xlu1 %1064  ;;  %1294 = vrot.lane.b32.xlu2 %v11576_v24, %s11514_s29  ;;  %v1142_v16 = vpop.permute.xlu0 %1141 }
 0x16e   : > { %1132 = vst.msk [vmem:[#allocation4 + $0x1d0] sm:$0xff] %vm1102_vm6, %v1065_v21  ;;  %v11580_v21 = vld [vmem:[#allocation17_spill] sm:$0xff]  ;;  %vm2658_vm6 = vcmask 1044484  }
 0x16f   : > { %v1158_v42 = vpop.permute.xlu2 %1157  ;;  %1236 = vst.msk [vmem:[#allocation4 + $0x20] sm:$0xff] %vm1233_vm7, %v1142_v16  ;;  %v11582_v16 = vld [vmem:[#allocation22_spill] sm:$0xff] }
 0x170   : > { %1244 = vst.msk [vmem:[#allocation4 + $0xa0] sm:$0xff] %vm1233_vm7, %v1158_v42 }
 0x173   : > { %1292 = vrot.lane.b32.xlu1 %v11578_v25, %s11514_s29  ;;  %1302 = vrot.lane.b32.xlu0 %v11580_v21, %s11514_s29  ;;  %v11584_v21 = vld [vmem:[#allocation18_spill] sm:$0xff] }
 0x175   : > { %v1138_v63 = vpop.permute.xlu1 %1137  ;;  %1300 = vrot.lane.b32.xlu2 %v11579_v46, %s11514_s29  ;;  %v1148_v42 = vpop.permute.xlu0 %1147 }
 0x176   : > { %1234 = vst.msk [vmem:[#allocation4] sm:$0xff] %vm1233_vm7, %v1138_v63  ;;  %v11583_v63 = vld [vmem:[#allocation20_spill] sm:$0xff] }
 0x177   : > { %v1164_v24 = vpop.permute.xlu2 %1163  ;;  %1239 = vst.msk [vmem:[#allocation4 + $0x50] sm:$0xff] %vm1233_vm7, %v1148_v42  ;;  %v11585_v42 = vld [vmem:[#allocation25_spill] sm:$0xff] }
 0x178   : > { %1247 = vst.msk [vmem:[#allocation4 + $0xd0] sm:$0xff] %vm1233_vm7, %v1164_v24 }
 0x17b   : > { %1298 = vrot.lane.b32.xlu1 %v11581_v43, %s11514_s29  ;;  %1308 = vrot.lane.b32.xlu0 %v11583_v63, %s11514_s29  ;;  %v11587_v63 = vld [vmem:[#allocation21_spill] sm:$0xff] }
 0x17d   : > { %v1144_v25 = vpop.permute.xlu1 %1143  ;;  %1306 = vrot.lane.b32.xlu2 %v11582_v16, %s11514_s29  ;;  %v1154_v24 = vpop.permute.xlu0 %1153 }
 0x17e   : > { %1237 = vst.msk [vmem:[#allocation4 + $0x30] sm:$0xff] %vm1233_vm7, %v1144_v25  ;;  %v11586_v25 = vld [vmem:[#allocation23_spill] sm:$0xff] }
 0x17f   : > { %v1170_v46 = vpop.permute.xlu2 %1169  ;;  %1242 = vst.msk [vmem:[#allocation4 + $0x80] sm:$0xff] %vm1233_vm7, %v1154_v24 }
 0x180   : > { %1250 = vst.msk [vmem:[#allocation4 + $0x100] sm:$0xff] %vm1233_vm7, %v1170_v46 }
 0x183   : > { %1304 = vrot.lane.b32.xlu1 %v11584_v21, %s11514_s29  ;;  %1314 = vrot.lane.b32.xlu0 %v11586_v25, %s11514_s29  ;;  %v11589_v25 = vld [vmem:[#allocation24_spill] sm:$0xff] }
 0x185   : > { %v1150_v43 = vpop.permute.xlu1 %1149  ;;  %1312 = vrot.lane.b32.xlu2 %v11585_v42, %s11514_s29  ;;  %v1160_v46 = vpop.permute.xlu0 %1159 }
 0x186   : > { %1240 = vst.msk [vmem:[#allocation4 + $0x60] sm:$0xff] %vm1233_vm7, %v1150_v43  ;;  %v11588_v43 = vld [vmem:[#allocation26_spill] sm:$0xff] }
 0x187   : > { %v1176_v16 = vpop.permute.xlu2 %1175  ;;  %1245 = vst.msk [vmem:[#allocation4 + $0xb0] sm:$0xff] %vm1233_vm7, %v1160_v46 }
 0x188   : > { %1253 = vst.msk [vmem:[#allocation4 + $0x130] sm:$0xff] %vm1233_vm7, %v1176_v16 }
 0x18b   : > { %1310 = vrot.lane.b32.xlu1 %v11587_v63, %s11514_s29  ;;  %1320 = vrot.lane.b32.xlu0 %v11588_v43, %s11514_s29  ;;  %v1268_v43 = vrot.slane %v7482_v35, 1 }
 0x18d   : > { %v1156_v21 = vpop.permute.xlu1 %1155  ;;  %1318 = vrot.lane.b32.xlu2 %v7135_v9, %s11514_s29  ;;  %v1166_v16 = vpop.permute.xlu0 %1165 }
 0x18e   : > { %1243 = vst.msk [vmem:[#allocation4 + $0x90] sm:$0xff] %vm1233_vm7, %v1156_v21  ;;  %v11590_v21 = vld [vmem:[#allocation29_spill] sm:$0xff] }
 0x18f   : > { %v1182_v24 = vpop.permute.xlu2 %1181  ;;  %1248 = vst.msk [vmem:[#allocation4 + $0xe0] sm:$0xff] %vm1233_vm7, %v1166_v16 }
 0x190   : > { %1256 = vst.msk [vmem:[#allocation4 + $0x160] sm:$0xff] %vm1233_vm7, %v1182_v24  ;;  %v1267_v24 = vrot.slane %v7493_v45, 1 }
 0x193   : > { %1316 = vrot.lane.b32.xlu1 %v11589_v25, %s11514_s29  ;;  %1326 = vrot.lane.b32.xlu0 %v11590_v21, %s11514_s29  ;;  %v11591_v25 = vld [vmem:[#allocation27_spill] sm:$0xff]  ;;  %v7590_v21 = vld [vmem:[#allocation2 + $0x190] sm:$0x3] }
 0x195   : > { %v1162_v42 = vpop.permute.xlu1 %1161  ;;  %1324 = vrot.lane.b32.xlu2 %v7155_v5, %s11514_s29  ;;  %v1172_v9 = vpop.permute.xlu0 %1171 }
 0x196   : > { %1246 = vst.msk [vmem:[#allocation4 + $0xc0] sm:$0xff] %vm1233_vm7, %v1162_v42  ;;  %v7584_v42 = vsel %vm715_vm2, %v1267_v24, %v1268_v43 }
 0x197   : > { %v1188_v46 = vpop.permute.xlu2 %1187  ;;  %1251 = vst.msk [vmem:[#allocation4 + $0x110] sm:$0xff] %vm1233_vm7, %v1172_v9  ;;  %v11593_v9 = vld [vmem:[#allocation30_spill] sm:$0xff] }
 0x198   : > { %1259 = vst.msk [vmem:[#allocation4 + $0x190] sm:$0xff] %vm1233_vm7, %v1188_v46 }
 0x199   : > { %11592 = vst [vmem:[#allocation8_spill] sm:$0xff] %v7584_v42 }
 0x19b   : > { %1322 = vrot.lane.b32.xlu1 %v11591_v25, %s11514_s29  ;;  %1332 = vrot.lane.b32.xlu0 %v7584_v42, %s11514_s29 }
 0x19d   : > { %v1168_v16 = vpop.permute.xlu1 %1167  ;;  %1330 = vrot.lane.b32.xlu2 %v7171_v48, %s11514_s29  ;;  %v1178_v5 = vpop.permute.xlu0 %1177  ;;  %v1270_v48 = vrot.slane %v7590_v21, 1 }
 0x19e   : > { %1249 = vst.msk [vmem:[#allocation4 + $0xf0] sm:$0xff] %vm1233_vm7, %v1168_v16 }
 0x19f   : > { %v1194_v46 = vpop.permute.xlu2 %1193  ;;  %1254 = vst.msk [vmem:[#allocation4 + $0x140] sm:$0xff] %vm1233_vm7, %v1178_v5 }
 0x1a0   : > { %1262 = vst.msk [vmem:[#allocation4 + $0x1c0] sm:$0xff] %vm1233_vm7, %v1194_v46  ;;  %v7603_v46 = vsel %vm715_vm2, %v1268_v43, %v1270_v48 }
 0x1a3   : > { %1328 = vrot.lane.b32.xlu1 %v11593_v9, %s11514_s29  ;;  %1408 = vrot.lane.b32.xlu0 %v7176_v2, %s6522_s15  ;;  %v11594_v2 = vld [vmem:[#allocation33_spill] sm:$0xff] }
 0x1a5   : > { %v1174_v24 = vpop.permute.xlu1 %1173  ;;  %1406 = vrot.lane.b32.xlu2 %v7192_v1, %s6522_s15  ;;  %v1184_v42 = vpop.permute.xlu0 %1183 }
 0x1a6   : > { %1252 = vst.msk [vmem:[#allocation4 + $0x120] sm:$0xff] %vm1233_vm7, %v1174_v24  ;;  %v11595_v24 = vld [vmem:[#allocation36_spill] sm:$0xff] }
 0x1a7   : > { %v1200_v16 = vpop.permute.xlu2 %1199  ;;  %1257 = vst.msk [vmem:[#allocation4 + $0x170] sm:$0xff] %vm1233_vm7, %v1184_v42 }
 0x1a8   : > { %1265 = vst.msk [vmem:[#allocation4 + $0x1f0] sm:$0xff] %vm1233_vm7, %v1200_v16 }
 0x1ab   : > { %1334 = vrot.lane.b32.xlu1 %v7603_v46, %s11514_s29  ;;  %1414 = vrot.lane.b32.xlu0 %v7196_v38, %s6522_s15 }
 0x1ad   : > { %v1180_v5 = vpop.permute.xlu1 %1179  ;;  %1412 = vrot.lane.b32.xlu2 %v7212_v49, %s6522_s15  ;;  %v1190_v48 = vpop.permute.xlu0 %1189 }
 0x1ae   : > { %1255 = vst.msk [vmem:[#allocation4 + $0x150] sm:$0xff] %vm1233_vm7, %v1180_v5  ;;  %v11596_v5 = vld [vmem:[#allocation35_spill] sm:$0xff] }
 0x1af   : > { %v1277_v1 = vpop.permute.xlu2 %1276  ;;  %1260 = vst.msk [vmem:[#allocation4 + $0x1a0] sm:$0xff] %vm1233_vm7, %v1190_v48 }
 0x1b0   : > { %1371 = vst.msk [vmem:[#allocation4 + $0x20] sm:$0xff] %vm1368_vm8, %v1277_v1 }
 0x1b3   : > { %1410 = vrot.lane.b32.xlu1 %v11594_v2, %s6522_s15  ;;  %1420 = vrot.lane.b32.xlu0 %v11595_v24, %s6522_s15  ;;  %v11598_v24 = vld [vmem:[#allocation37_spill] sm:$0xff] }
 0x1b5   : > { %v1186_v43 = vpop.permute.xlu1 %1185  ;;  %1418 = vrot.lane.b32.xlu2 %v7233_v19, %s6522_s15  ;;  %v1196_v16 = vpop.permute.xlu0 %1195 }
 0x1b6   : > { %1258 = vst.msk [vmem:[#allocation4 + $0x180] sm:$0xff] %vm1233_vm7, %v1186_v43  ;;  %v11597_v43 = vld [vmem:[#allocation38_spill] sm:$0xff] }
 0x1b7   : > { %v1283_v42 = vpop.permute.xlu2 %1282  ;;  %1263 = vst.msk [vmem:[#allocation4 + $0x1d0] sm:$0xff] %vm1233_vm7, %v1196_v16 }
 0x1b8   : > { %1374 = vst.msk [vmem:[#allocation4 + $0x50] sm:$0xff] %vm1368_vm8, %v1283_v42 }
 0x1bb   : > { %1416 = vrot.lane.b32.xlu1 %v11596_v5, %s6522_s15  ;;  %1426 = vrot.lane.b32.xlu0 %v11597_v43, %s6522_s15  ;;  %v11600_v43 = vld [vmem:[#allocation39_spill] sm:$0xff] }
 0x1bd   : > { %v1192_v1 = vpop.permute.xlu1 %1191  ;;  %1424 = vrot.lane.b32.xlu2 %v7253_v28, %s6522_s15  ;;  %v1273_v42 = vpop.permute.xlu0 %1272 }
 0x1be   : > { %1261 = vst.msk [vmem:[#allocation4 + $0x1b0] sm:$0xff] %vm1233_vm7, %v1192_v1  ;;  %v11599_v1 = vld [vmem:[#allocation41_spill] sm:$0xff] }
 0x1bf   : > { %v1289_v48 = vpop.permute.xlu2 %1288  ;;  %1369 = vst.msk [vmem:[#allocation4] sm:$0xff] %vm1368_vm8, %v1273_v42 }
 0x1c0   : > { %1377 = vst.msk [vmem:[#allocation4 + $0x80] sm:$0xff] %vm1368_vm8, %v1289_v48 }
 0x1c3   : > { %1422 = vrot.lane.b32.xlu1 %v11598_v24, %s6522_s15  ;;  %1432 = vrot.lane.b32.xlu0 %v11599_v1, %s6522_s15 }
 0x1c5   : > { %v1198_v38 = vpop.permute.xlu1 %1197  ;;  %1430 = vrot.lane.b32.xlu2 %v7276_v47, %s6522_s15  ;;  %v1279_v48 = vpop.permute.xlu0 %1278 }
 0x1c6   : > { %1264 = vst.msk [vmem:[#allocation4 + $0x1e0] sm:$0xff] %vm1233_vm7, %v1198_v38  ;;  %vm2660_vm7 = vcmask 1045509  }
 0x1c7   : > { %v1295_v16 = vpop.permute.xlu2 %1294  ;;  %1372 = vst.msk [vmem:[#allocation4 + $0x30] sm:$0xff] %vm1368_vm8, %v1279_v48 }
 0x1c8   : > { %1380 = vst.msk [vmem:[#allocation4 + $0xb0] sm:$0xff] %vm1368_vm8, %v1295_v16  ;;  %v11601_v16 = vld [vmem:[#allocation42_spill] sm:$0xff] }
 0x1cb   : > { %1428 = vrot.lane.b32.xlu1 %v11600_v43, %s6522_s15  ;;  %1438 = vrot.lane.b32.xlu0 %v7280_v54, %s6522_s15  ;;  %v11603_v54 = vld [vmem:[#allocation44_spill] sm:$0xff] }
 0x1cd   : > { %v1275_v28 = vpop.permute.xlu1 %1274  ;;  %1436 = vrot.lane.b32.xlu2 %v7298_v40, %s6522_s15  ;;  %v1285_v38 = vpop.permute.xlu0 %1284 }
 0x1ce   : > { %1370 = vst.msk [vmem:[#allocation4 + $0x10] sm:$0xff] %vm1368_vm8, %v1275_v28  ;;  %v11602_v28 = vld [vmem:[#allocation46_spill] sm:$0xff] }
 0x1cf   : > { %v1301_v42 = vpop.permute.xlu2 %1300  ;;  %1375 = vst.msk [vmem:[#allocation4 + $0x60] sm:$0xff] %vm1368_vm8, %v1285_v38 }
 0x1d0   : > { %1383 = vst.msk [vmem:[#allocation4 + $0xe0] sm:$0xff] %vm1368_vm8, %v1301_v42 }
 0x1d3   : > { %1434 = vrot.lane.b32.xlu1 %v11601_v16, %s6522_s15  ;;  %1444 = vrot.lane.b32.xlu0 %v11602_v28, %s6522_s15 }
 0x1d5   : > { %v1281_v1 = vpop.permute.xlu1 %1280  ;;  %1442 = vrot.lane.b32.xlu2 %v7321_v30, %s6522_s15  ;;  %v1291_v42 = vpop.permute.xlu0 %1290 }
 0x1d6   : > { %1373 = vst.msk [vmem:[#allocation4 + $0x40] sm:$0xff] %vm1368_vm8, %v1281_v1 }
 0x1d7   : > { %v1307_v48 = vpop.permute.xlu2 %1306  ;;  %1378 = vst.msk [vmem:[#allocation4 + $0x90] sm:$0xff] %vm1368_vm8, %v1291_v42 }
 0x1d8   : > { %1386 = vst.msk [vmem:[#allocation4 + $0x110] sm:$0xff] %vm1368_vm8, %v1307_v48  ;;  %v11604_v48 = vld [vmem:[#allocation47_spill] sm:$0xff] }
 0x1db   : > { %1440 = vrot.lane.b32.xlu1 %v11603_v54, %s6522_s15  ;;  %1450 = vrot.lane.b32.xlu0 %v7325_v59, %s6522_s15  ;;  %v11606_v59 = vld [vmem:[#allocation49_spill] sm:$0xff] }
 0x1dd   : > { %v1287_v40 = vpop.permute.xlu1 %1286  ;;  %1448 = vrot.lane.b32.xlu2 %v7343_v13, %s6522_s15  ;;  %v1297_v1 = vpop.permute.xlu0 %1296 }
 0x1de   : > { %1376 = vst.msk [vmem:[#allocation4 + $0x70] sm:$0xff] %vm1368_vm8, %v1287_v40  ;;  %v11605_v40 = vld [vmem:[#allocation51_spill] sm:$0xff] }
 0x1df   : > { %v1313_v38 = vpop.permute.xlu2 %1312  ;;  %1381 = vst.msk [vmem:[#allocation4 + $0xc0] sm:$0xff] %vm1368_vm8, %v1297_v1  ;;  %v1402_v1 = vrot.slane %v7482_v35, 2 }
 0x1e0   : > { %1389 = vst.msk [vmem:[#allocation4 + $0x140] sm:$0xff] %vm1368_vm8, %v1313_v38 }
 0x1e3   : > { %1446 = vrot.lane.b32.xlu1 %v11604_v48, %s6522_s15  ;;  %1456 = vrot.lane.b32.xlu0 %v11605_v40, %s6522_s15  ;;  %v1404_v40 = vrot.slane %v7590_v21, 2 }
 0x1e5   : > { %v1293_v28 = vpop.permute.xlu1 %1292  ;;  %1454 = vrot.lane.b32.xlu2 %v7366_v23, %s6522_s15  ;;  %v1303_v38 = vpop.permute.xlu0 %1302 }
 0x1e6   : > { %1379 = vst.msk [vmem:[#allocation4 + $0xa0] sm:$0xff] %vm1368_vm8, %v1293_v28  ;;  %v1401_v28 = vrot.slane %v7493_v45, 2 }
 0x1e7   : > { %v1319_v42 = vpop.permute.xlu2 %1318  ;;  %1384 = vst.msk [vmem:[#allocation4 + $0xf0] sm:$0xff] %vm1368_vm8, %v1303_v38 }
 0x1e8   : > { %1392 = vst.msk [vmem:[#allocation4 + $0x170] sm:$0xff] %vm1368_vm8, %v1319_v42  ;;  %v7690_v38 = vsel %vm925_vm4, %v1401_v28, %v1402_v1 }
 0x1eb   : > { %1452 = vrot.lane.b32.xlu1 %v11606_v59, %s6522_s15  ;;  %1462 = vrot.lane.b32.xlu0 %v7370_v41, %s6522_s15 }
 0x1ed   : > { %v1299_v13 = vpop.permute.xlu1 %1298  ;;  %1460 = vrot.lane.b32.xlu2 %v7386_v20, %s6522_s15  ;;  %v1309_v23 = vpop.permute.xlu0 %1308 }
 0x1ee   : > { %1382 = vst.msk [vmem:[#allocation4 + $0xd0] sm:$0xff] %vm1368_vm8, %v1299_v13  ;;  %v7698_v13 = vsel %vm925_vm4, %v1402_v1, %v1404_v40 }
 0x1ef   : > { %v1325_v42 = vpop.permute.xlu2 %1324  ;;  %1387 = vst.msk [vmem:[#allocation4 + $0x120] sm:$0xff] %vm1368_vm8, %v1309_v23 }
 0x1f0   : > { %1395 = vst.msk [vmem:[#allocation4 + $0x1a0] sm:$0xff] %vm1368_vm8, %v1325_v42 }
 0x1f3   : > { %1458 = vrot.lane.b32.xlu1 %v7357_v53, %s6522_s15  ;;  %1468 = vrot.lane.b32.xlu0 %v7698_v13, %s6522_s15 }
 0x1f5   : > { %v1305_v20 = vpop.permute.xlu1 %1304  ;;  %1466 = vrot.lane.b32.xlu2 %v7690_v38, %s6522_s15  ;;  %v1315_v21 = vpop.permute.xlu0 %1314 }
 0x1f6   : > { %1385 = vst.msk [vmem:[#allocation4 + $0x100] sm:$0xff] %vm1368_vm8, %v1305_v20 }
 0x1f7   : > { %v1331_v42 = vpop.permute.xlu2 %1330  ;;  %1390 = vst.msk [vmem:[#allocation4 + $0x150] sm:$0xff] %vm1368_vm8, %v1315_v21 }
 0x1f8   : > { %1398 = vst.msk [vmem:[#allocation4 + $0x1d0] sm:$0xff] %vm1368_vm8, %v1331_v42 }
 0x1fb   : > { %1464 = vrot.lane.b32.xlu1 %v7379_v57, %s6522_s15  ;;  %1541 = vrot.lane.b32.xlu0 %v6817_v33, %s11384_s17  ;;  %s11677_s15 = smov 8  }
 0x1fd   : > { %v1311_v23 = vpop.permute.xlu1 %1310  ;;  %1539 = vrot.lane.b32.xlu2 %v6761_v11, %s11384_s17  ;;  %v1321_v40 = vpop.permute.xlu0 %1320 }
 0x1fe   : > { %1388 = vst.msk [vmem:[#allocation4 + $0x130] sm:$0xff] %vm1368_vm8, %v1311_v23 }
 0x1ff   : > { %v1407_v20 = vpop.permute.xlu2 %1406  ;;  %1393 = vst.msk [vmem:[#allocation4 + $0x180] sm:$0xff] %vm1368_vm8, %v1321_v40  ;;  %v11608_v40 = vld [vmem:[#allocation12_spill] sm:$0xff] }
 0x200   : > { %1503 = vst.msk [vmem:[#allocation4] sm:$0xff] %vm1502_vm9, %v1407_v20 }
 0x203   : > { %1537 = vrot.lane.b32.xlu1 %v6758_v10, %s11384_s17  ;;  %1547 = vrot.lane.b32.xlu0 %v6847_v44, %s11384_s17 }
 0x205   : > { %v1317_v1 = vpop.permute.xlu1 %1316  ;;  %1545 = vrot.lane.b32.xlu2 %v6832_v39, %s11384_s17  ;;  %v1327_v28 = vpop.permute.xlu0 %1326 }
 0x206   : > { %1391 = vst.msk [vmem:[#allocation4 + $0x160] sm:$0xff] %vm1368_vm8, %v1317_v1  ;;  %v11609_v1 = vld [vmem:[#allocation16_spill] sm:$0xff] }
 0x207   : > { %v1413_v11 = vpop.permute.xlu2 %1412  ;;  %1396 = vst.msk [vmem:[#allocation4 + $0x1b0] sm:$0xff] %vm1368_vm8, %v1327_v28 }
 0x208   : > { %1506 = vst.msk [vmem:[#allocation4 + $0x30] sm:$0xff] %vm1502_vm9, %v1413_v11 }
 0x20b   : > { %1543 = vrot.lane.b32.xlu1 %v6820_v34, %s11384_s17  ;;  %1553 = vrot.lane.b32.xlu0 %v6886_v60, %s11384_s17 }
 0x20d   : > { %v1323_v10 = vpop.permute.xlu1 %1322  ;;  %1551 = vrot.lane.b32.xlu2 %v6861_v51, %s11384_s17  ;;  %v1333_v39 = vpop.permute.xlu0 %1332 }
 0x20e   : > { %1394 = vst.msk [vmem:[#allocation4 + $0x190] sm:$0xff] %vm1368_vm8, %v1323_v10  ;;  %v11611_v10 = vld [vmem:[#allocation15_spill] sm:$0xff] }
 0x20f   : > { %v1419_v33 = vpop.permute.xlu2 %1418  ;;  %1399 = vst.msk [vmem:[#allocation4 + $0x1e0] sm:$0xff] %vm1368_vm8, %v1333_v39  ;;  %v11612_v39 = vld [vmem:[#allocation19_spill] sm:$0xff] }
 0x210   : > { %1509 = vst.msk [vmem:[#allocation4 + $0x60] sm:$0xff] %vm1502_vm9, %v1419_v33 }
 0x213   : > { %1549 = vrot.lane.b32.xlu1 %v6859_v50, %s11384_s17  ;;  %1559 = vrot.lane.b32.xlu0 %v6916_v12, %s11384_s17 }
 0x215   : > { %v1329_v34 = vpop.permute.xlu1 %1328  ;;  %1557 = vrot.lane.b32.xlu2 %v6912_v8, %s11384_s17  ;;  %v1409_v51 = vpop.permute.xlu0 %1408 }
 0x216   : > { %1397 = vst.msk [vmem:[#allocation4 + $0x1c0] sm:$0xff] %vm1368_vm8, %v1329_v34 }
 0x217   : > { %v1425_v44 = vpop.permute.xlu2 %1424  ;;  %1504 = vst.msk [vmem:[#allocation4 + $0x10] sm:$0xff] %vm1502_vm9, %v1409_v51 }
 0x218   : > { %1512 = vst.msk [vmem:[#allocation4 + $0x90] sm:$0xff] %vm1502_vm9, %v1425_v44  ;;  %v11613_v44 = vld [vmem:[#allocation14_spill] sm:$0xff] }
 0x21b   : > { %1555 = vrot.lane.b32.xlu1 %v6890_v62, %s11384_s17  ;;  %1565 = vrot.lane.b32.xlu0 %v6951_v29, %s11384_s17 }
 0x21d   : > { %v1335_v50 = vpop.permute.xlu1 %1334  ;;  %1563 = vrot.lane.b32.xlu2 %v6943_v26, %s11384_s17  ;;  %v1415_v8 = vpop.permute.xlu0 %1414 }
 0x21e   : > { %1400 = vst.msk [vmem:[#allocation4 + $0x1f0] sm:$0xff] %vm1368_vm8, %v1335_v50  ;;  %v11614_v50 = vld [vmem:[#allocation18_spill] sm:$0xff]  ;;  %vm2662_vm8 = vcmask 1046534  }
 0x21f   : > { %v1431_v60 = vpop.permute.xlu2 %1430  ;;  %1507 = vst.msk [vmem:[#allocation4 + $0x40] sm:$0xff] %vm1502_vm9, %v1415_v8  ;;  %v11615_v8 = vld [vmem:[#allocation22_spill] sm:$0xff] }
 0x220   : > { %1515 = vst.msk [vmem:[#allocation4 + $0xc0] sm:$0xff] %vm1502_vm9, %v1431_v60 }
 0x223   : > { %1561 = vrot.lane.b32.xlu1 %v6928_v15, %s11384_s17  ;;  %1571 = vrot.lane.b32.xlu0 %v6983_v58, %s11384_s17 }
 0x225   : > { %v1411_v62 = vpop.permute.xlu1 %1410  ;;  %1569 = vrot.lane.b32.xlu2 %v6979_v55, %s11384_s17  ;;  %v1421_v26 = vpop.permute.xlu0 %1420 }
 0x226   : > { %1505 = vst.msk [vmem:[#allocation4 + $0x20] sm:$0xff] %vm1502_vm9, %v1411_v62 }
 0x227   : > { %v1437_v12 = vpop.permute.xlu2 %1436  ;;  %1510 = vst.msk [vmem:[#allocation4 + $0x70] sm:$0xff] %vm1502_vm9, %v1421_v26 }
 0x228   : > { %1518 = vst.msk [vmem:[#allocation4 + $0xf0] sm:$0xff] %vm1502_vm9, %v1437_v12  ;;  %v11616_v12 = vld [vmem:[#allocation17_spill] sm:$0xff] }
 0x22b   : > { %1567 = vrot.lane.b32.xlu1 %v6957_v37, %s11384_s17  ;;  %1577 = vrot.lane.b32.xlu0 %v7021_v27, %s11384_s17 }
 0x22d   : > { %v1417_v15 = vpop.permute.xlu1 %1416  ;;  %1575 = vrot.lane.b32.xlu2 %v7009_v17, %s11384_s17  ;;  %v1427_v55 = vpop.permute.xlu0 %1426 }
 0x22e   : > { %1508 = vst.msk [vmem:[#allocation4 + $0x50] sm:$0xff] %vm1502_vm9, %v1417_v15 }
 0x22f   : > { %v1443_v29 = vpop.permute.xlu2 %1442  ;;  %1513 = vst.msk [vmem:[#allocation4 + $0xa0] sm:$0xff] %vm1502_vm9, %v1427_v55 }
 0x230   : > { %1521 = vst.msk [vmem:[#allocation4 + $0x120] sm:$0xff] %vm1502_vm9, %v1443_v29 }
 0x233   : > { %1573 = vrot.lane.b32.xlu1 %v7005_v6, %s11384_s17  ;;  %1583 = vrot.lane.b32.xlu0 %v7050_v22, %s11384_s17 }
 0x235   : > { %v1423_v37 = vpop.permute.xlu1 %1422  ;;  %1581 = vrot.lane.b32.xlu2 %v7044_v4, %s11384_s17  ;;  %v1433_v17 = vpop.permute.xlu0 %1432 }
 0x236   : > { %1511 = vst.msk [vmem:[#allocation4 + $0x80] sm:$0xff] %vm1502_vm9, %v1423_v37  ;;  %v11617_v37 = vld [vmem:[#allocation25_spill] sm:$0xff] }
 0x237   : > { %v1449_v58 = vpop.permute.xlu2 %1448  ;;  %1516 = vst.msk [vmem:[#allocation4 + $0xd0] sm:$0xff] %vm1502_vm9, %v1433_v17 }
 0x238   : > { %1524 = vst.msk [vmem:[#allocation4 + $0x150] sm:$0xff] %vm1502_vm9, %v1449_v58 }
 0x23b   : > { %1579 = vrot.lane.b32.xlu1 %v7036_v56, %s11384_s17  ;;  %1589 = vrot.lane.b32.xlu0 %v7091_v0, %s11384_s17  ;;  %v7794_v0 = vld [vmem:[#allocation2 + $0x1a0] sm:$0xff] }
 0x23c   : > { %v1668_v26 = vrot.slane %v7794_v0, 1 }
 0x23d   : > { %v1429_v6 = vpop.permute.xlu1 %1428  ;;  %1587 = vrot.lane.b32.xlu2 %v7073_v14, %s11384_s17  ;;  %v1439_v4 = vpop.permute.xlu0 %1438 }
 0x23e   : > { %1514 = vst.msk [vmem:[#allocation4 + $0xb0] sm:$0xff] %vm1502_vm9, %v1429_v6  ;;  %v11618_v6 = vld [vmem:[#allocation20_spill] sm:$0xff] }
 0x23f   : > { %v1455_v27 = vpop.permute.xlu2 %1454  ;;  %1519 = vst.msk [vmem:[#allocation4 + $0x100] sm:$0xff] %vm1502_vm9, %v1439_v4  ;;  %v11619_v4 = vld [vmem:[#allocation24_spill] sm:$0xff] }
 0x240   : > { %1527 = vst.msk [vmem:[#allocation4 + $0x180] sm:$0xff] %vm1502_vm9, %v1455_v27 }
 0x243   : > { %1585 = vrot.lane.b32.xlu1 %v7071_v52, %s11384_s17  ;;  %1595 = vrot.lane.b32.xlu0 %v7482_v35, %s11384_s17  ;;  %v7805_v35 = vld [vmem:[#allocation2 + $0x198] sm:$0xff] }
 0x244   : > { %v1667_v15 = vrot.slane %v7805_v35, 1 }
 0x245   : > { %v1435_v22 = vpop.permute.xlu1 %1434  ;;  %1593 = vrot.lane.b32.xlu2 %v7493_v45, %s11384_s17  ;;  %v1445_v56 = vpop.permute.xlu0 %1444 }
 0x246   : > { %1517 = vst.msk [vmem:[#allocation4 + $0xe0] sm:$0xff] %vm1502_vm9, %v1435_v22  ;;  %v1669_v58 = vsel %vm715_vm2, %v1667_v15, %v1668_v26  ;;  %v11620_v22 = vld [vmem:[#allocation28_spill] sm:$0xff] }
 0x247   : > { %v1461_v14 = vpop.permute.xlu2 %1460  ;;  %1522 = vst.msk [vmem:[#allocation4 + $0x130] sm:$0xff] %vm1502_vm9, %v1445_v56  ;;  %v11621_v56 = vld [vmem:[#allocation23_spill] sm:$0xff] }
 0x248   : > { %1530 = vst.msk [vmem:[#allocation4 + $0x1b0] sm:$0xff] %vm1502_vm9, %v1461_v14 }
 0x24b   : > { %1591 = vrot.lane.b32.xlu1 %v7094_v36, %s11384_s17  ;;  %1672 = vrot.lane.b32.xlu0 %v6777_v18, %s6524_s18 }
 0x24d   : > { %v1441_v52 = vpop.permute.xlu1 %1440  ;;  %1599 = vrot.lane.b32.xlu2 %v7794_v0, %s11384_s17  ;;  %v1451_v42 = vpop.permute.xlu0 %1450 }
 0x24e   : > { %1520 = vst.msk [vmem:[#allocation4 + $0x110] sm:$0xff] %vm1502_vm9, %v1441_v52 }
 0x24f   : > { %v1467_v45 = vpop.permute.xlu2 %1466  ;;  %1525 = vst.msk [vmem:[#allocation4 + $0x160] sm:$0xff] %vm1502_vm9, %v1451_v42  ;;  %v11622_v42 = vld [vmem:[#allocation31_spill] sm:$0xff] }
 0x250   : > { %1533 = vst.msk [vmem:[#allocation4 + $0x1e0] sm:$0xff] %vm1502_vm9, %v1467_v45 }
 0x253   : > { %1597 = vrot.lane.b32.xlu1 %v7805_v35, %s11384_s17  ;;  %1678 = vrot.lane.b32.xlu0 %v6898_v3, %s6524_s18  ;;  %v11607_v3 = vld [vmem:[#allocation9_spill] sm:$0xff]  ;;  %s11507_s17 = sand.u32 1, %s6507_s22  }
 0x255   : > { %v1447_v36 = vpop.permute.xlu1 %1446  ;;  %1676 = vrot.lane.b32.xlu2 %v11572_v7, %s6524_s18  ;;  %v1457_v18 = vpop.permute.xlu0 %1456 }
 0x256   : > { %1523 = vst.msk [vmem:[#allocation4 + $0x140] sm:$0xff] %vm1502_vm9, %v1447_v36 }
 0x257   : > { %v1540_v21 = vpop.permute.xlu2 %1539  ;;  %1528 = vst.msk [vmem:[#allocation4 + $0x190] sm:$0xff] %vm1502_vm9, %v1457_v18 }
 0x258   : > { %1635 = vst.msk [vmem:[#allocation4 + $0x10] sm:$0xff] %vm1633_vm10, %v1540_v21  ;;  %v11623_v21 = vld [vmem:[#allocation26_spill] sm:$0xff] }
 0x25b   : > { %1674 = vrot.lane.b32.xlu1 %v6812_v32, %s6524_s18  ;;  %1684 = vrot.lane.b32.xlu0 %v11573_v61, %s6524_s18  ;;  %v11610_v61 = vld [vmem:[#allocation11_spill] sm:$0xff] }
 0x25d   : > { %v1453_v23 = vpop.permute.xlu1 %1452  ;;  %1682 = vrot.lane.b32.xlu2 %v11575_v31, %s6524_s18  ;;  %v1463_v20 = vpop.permute.xlu0 %1462 }
 0x25e   : > { %1526 = vst.msk [vmem:[#allocation4 + $0x170] sm:$0xff] %vm1502_vm9, %v1453_v23  ;;  %v11624_v23 = vld [vmem:[#allocation32_spill] sm:$0xff] }
 0x25f   : > { %v1546_v7 = vpop.permute.xlu2 %1545  ;;  %1531 = vst.msk [vmem:[#allocation4 + $0x1c0] sm:$0xff] %vm1502_vm9, %v1463_v20  ;;  %v11625_v20 = vld [vmem:[#allocation29_spill] sm:$0xff] }
 0x260   : > { %1638 = vst.msk [vmem:[#allocation4 + $0x40] sm:$0xff] %vm1633_vm10, %v1546_v7 }
 0x263   : > { %1680 = vrot.lane.b32.xlu1 %v11607_v3, %s6524_s18  ;;  %1690 = vrot.lane.b32.xlu0 %v11609_v1, %s6524_s18 }
 0x265   : > { %v1459_v32 = vpop.permute.xlu1 %1458  ;;  %1688 = vrot.lane.b32.xlu2 %v11608_v40, %s6524_s18  ;;  %v1469_v11 = vpop.permute.xlu0 %1468 }
 0x266   : > { %1529 = vst.msk [vmem:[#allocation4 + $0x1a0] sm:$0xff] %vm1502_vm9, %v1459_v32  ;;  %v7899_v32 = vld [vmem:[#allocation2 + $0x1a8] sm:$0x3] }
 0x267   : > { %v1552_v31 = vpop.permute.xlu2 %1551  ;;  %1534 = vst.msk [vmem:[#allocation4 + $0x1f0] sm:$0xff] %vm1502_vm9, %v1469_v11  ;;  %v1670_v1 = vrot.slane %v7899_v32, 1 }
 0x268   : > { %1641 = vst.msk [vmem:[#allocation4 + $0x70] sm:$0xff] %vm1633_vm10, %v1552_v31  ;;  %v11626_v31 = vld [vmem:[#allocation8_spill] sm:$0xff] }
 0x26b   : > { %1686 = vrot.lane.b32.xlu1 %v11610_v61, %s6524_s18  ;;  %1696 = vrot.lane.b32.xlu0 %v11612_v39, %s6524_s18  ;;  %v1671_v61 = vsel %vm715_vm2, %v1668_v26, %v1670_v1 }
 0x26d   : > { %v1465_v28 = vpop.permute.xlu1 %1464  ;;  %1694 = vrot.lane.b32.xlu2 %v11611_v10, %s6524_s18  ;;  %v1542_v34 = vpop.permute.xlu0 %1541 }
 0x26e   : > { %1532 = vst.msk [vmem:[#allocation4 + $0x1d0] sm:$0xff] %vm1502_vm9, %v1465_v28  ;;  %vm2664_vm9 = vcmask 1047559  }
 0x26f   : > { %v1558_v33 = vpop.permute.xlu2 %1557  ;;  %1636 = vst.msk [vmem:[#allocation4 + $0x20] sm:$0xff] %vm1633_vm10, %v1542_v34  ;;  %v11628_v34 = vld [vmem:[#allocation40_spill] sm:$0xff] }
 0x270   : > { %1644 = vst.msk [vmem:[#allocation4 + $0xa0] sm:$0xff] %vm1633_vm10, %v1558_v33  ;;  %v11627_v33 = vld [vmem:[#allocation34_spill] sm:$0xff] }
 0x273   : > { %1692 = vrot.lane.b32.xlu1 %v11613_v44, %s6524_s18  ;;  %1702 = vrot.lane.b32.xlu0 %v11615_v8, %s6524_s18 }
 0x275   : > { %v1538_v51 = vpop.permute.xlu1 %1537  ;;  %1700 = vrot.lane.b32.xlu2 %v11614_v50, %s6524_s18  ;;  %v1548_v62 = vpop.permute.xlu0 %1547 }
 0x276   : > { %1634 = vst.msk [vmem:[#allocation4] sm:$0xff] %vm1633_vm10, %v1538_v51 }
 0x277   : > { %v1564_v60 = vpop.permute.xlu2 %1563  ;;  %1639 = vst.msk [vmem:[#allocation4 + $0x50] sm:$0xff] %vm1633_vm10, %v1548_v62  ;;  %v11631_v62 = vld [vmem:[#allocation45_spill] sm:$0xff] }
 0x278   : > { %1647 = vst.msk [vmem:[#allocation4 + $0xd0] sm:$0xff] %vm1633_vm10, %v1564_v60  ;;  %v11630_v60 = vld [vmem:[#allocation38_spill] sm:$0xff] }
 0x27b   : > { %1698 = vrot.lane.b32.xlu1 %v11616_v12, %s6524_s18  ;;  %1708 = vrot.lane.b32.xlu0 %v11617_v37, %s6524_s18  ;;  %v11634_v37 = vld [vmem:[#allocation50_spill] sm:$0xff] }
 0x27d   : > { %v1544_v29 = vpop.permute.xlu1 %1543  ;;  %1706 = vrot.lane.b32.xlu2 %v11587_v63, %s6524_s18  ;;  %v1554_v17 = vpop.permute.xlu0 %1553 }
 0x27e   : > { %1637 = vst.msk [vmem:[#allocation4 + $0x30] sm:$0xff] %vm1633_vm10, %v1544_v29  ;;  %v11633_v29 = vld [vmem:[#allocation43_spill] sm:$0xff] }
 0x27f   : > { %v1570_v55 = vpop.permute.xlu2 %1569  ;;  %1642 = vst.msk [vmem:[#allocation4 + $0x80] sm:$0xff] %vm1633_vm10, %v1554_v17 }
 0x280   : > { %1650 = vst.msk [vmem:[#allocation4 + $0x100] sm:$0xff] %vm1633_vm10, %v1570_v55 }
 0x283   : > { %1704 = vrot.lane.b32.xlu1 %v11618_v6, %s6524_s18  ;;  %1714 = vrot.lane.b32.xlu0 %v11620_v22, %s6524_s18 }
 0x285   : > { %v1550_v27 = vpop.permute.xlu1 %1549  ;;  %1712 = vrot.lane.b32.xlu2 %v11619_v4, %s6524_s18  ;;  %v1560_v14 = vpop.permute.xlu0 %1559 }
 0x286   : > { %1640 = vst.msk [vmem:[#allocation4 + $0x60] sm:$0xff] %vm1633_vm10, %v1550_v27  ;;  %v1970_v27 = vld [vmem:[%s11636_s1 + $0x18] sm:$0xff] }
 0x287   : > { %v1576_v63 = vpop.permute.xlu2 %1575  ;;  %1645 = vst.msk [vmem:[#allocation4 + $0xb0] sm:$0xff] %vm1633_vm10, %v1560_v14  ;;  %v1969_v14 = vld [vmem:[%s11636_s1 + $0x10] sm:$0xff] }
 0x288   : > { %1653 = vst.msk [vmem:[#allocation4 + $0x130] sm:$0xff] %vm1633_vm10, %v1576_v63  ;;  %v11638_v63 = vld [vmem:[#allocation48_spill] sm:$0xff] }
 0x28b   : > { %1710 = vrot.lane.b32.xlu1 %v11621_v56, %s6524_s18  ;;  %1720 = vrot.lane.b32.xlu0 %v11622_v42, %s6524_s18  ;;  %v1968_v56 = vld [vmem:[%s11636_s1 + $0x8] sm:$0xff]  ;;  %v11639_v42 = vld [vmem:[#allocation53_spill] sm:$0xff] }
 0x28d   : > { %v1556_v52 = vpop.permute.xlu1 %1555  ;;  %1718 = vrot.lane.b32.xlu2 %v11591_v25, %s6524_s18  ;;  %v1566_v36 = vpop.permute.xlu0 %1565 }
 0x28e   : > { %1643 = vst.msk [vmem:[#allocation4 + $0x90] sm:$0xff] %vm1633_vm10, %v1556_v52 }
 0x28f   : > { %v1582_v45 = vpop.permute.xlu2 %1581  ;;  %1648 = vst.msk [vmem:[#allocation4 + $0xe0] sm:$0xff] %vm1633_vm10, %v1566_v36  ;;  %v11640_v36 = vld [vmem:[#allocation51_spill] sm:$0xff] }
 0x290   : > { %1656 = vst.msk [vmem:[#allocation4 + $0x160] sm:$0xff] %vm1633_vm10, %v1582_v45  ;;  %v1967_v45 = vld [vmem:[%s11636_s1] sm:$0xff] }
 0x293   : > { %1716 = vrot.lane.b32.xlu1 %v11623_v21, %s6524_s18  ;;  %1726 = vrot.lane.b32.xlu0 %v11624_v23, %s6524_s18 }
 0x295   : > { %v1562_v18 = vpop.permute.xlu1 %1561  ;;  %1724 = vrot.lane.b32.xlu2 %v11593_v9, %s6524_s18  ;;  %v1572_v7 = vpop.permute.xlu0 %1571 }
 0x296   : > { %1646 = vst.msk [vmem:[#allocation4 + $0xc0] sm:$0xff] %vm1633_vm10, %v1562_v18 }
 0x297   : > { %v1588_v25 = vpop.permute.xlu2 %1587  ;;  %1651 = vst.msk [vmem:[#allocation4 + $0x110] sm:$0xff] %vm1633_vm10, %v1572_v7 }
 0x298   : > { %1659 = vst.msk [vmem:[#allocation4 + $0x190] sm:$0xff] %vm1633_vm10, %v1588_v25 }
 0x29b   : > { %1722 = vrot.lane.b32.xlu1 %v11625_v20, %s6524_s18  ;;  %1732 = vrot.lane.b32.xlu0 %v1669_v58, %s6524_s18 }
 0x29d   : > { %v1568_v3 = vpop.permute.xlu1 %1567  ;;  %1730 = vrot.lane.b32.xlu2 %v7603_v46, %s6524_s18  ;;  %v1578_v40 = vpop.permute.xlu0 %1577 }
 0x29e   : > { %1649 = vst.msk [vmem:[#allocation4 + $0xf0] sm:$0xff] %vm1633_vm10, %v1568_v3 }
 0x29f   : > { %v1594_v9 = vpop.permute.xlu2 %1593  ;;  %1654 = vst.msk [vmem:[#allocation4 + $0x140] sm:$0xff] %vm1633_vm10, %v1578_v40 }
 0x2a0   : > { %1662 = vst.msk [vmem:[#allocation4 + $0x1c0] sm:$0xff] %vm1633_vm10, %v1594_v9 }
 0x2a3   : > { %1728 = vrot.lane.b32.xlu1 %v11626_v31, %s6524_s18  ;;  %1808 = vrot.lane.b32.xlu0 %v7212_v49, %s6525_s19 }
 0x2a5   : > { %v1574_v11 = vpop.permute.xlu1 %1573  ;;  %1806 = vrot.lane.b32.xlu2 %v11594_v2, %s6525_s19  ;;  %v1584_v28 = vpop.permute.xlu0 %1583 }
 0x2a6   : > { %1652 = vst.msk [vmem:[#allocation4 + $0x120] sm:$0xff] %vm1633_vm10, %v1574_v11 }
 0x2a7   : > { %v1600_v46 = vpop.permute.xlu2 %1599  ;;  %1657 = vst.msk [vmem:[#allocation4 + $0x170] sm:$0xff] %vm1633_vm10, %v1584_v28 }
 0x2a8   : > { %1665 = vst.msk [vmem:[#allocation4 + $0x1f0] sm:$0xff] %vm1633_vm10, %v1600_v46 }
 0x2ab   : > { %1734 = vrot.lane.b32.xlu1 %v1671_v61, %s6524_s18  ;;  %1814 = vrot.lane.b32.xlu0 %v7233_v19, %s6525_s19  ;;  %v11629_v19 = vld [vmem:[#allocation36_spill] sm:$0xff]  ;;  %s11697_s18 = smov 24  }
 0x2ad   : > { %v1580_v10 = vpop.permute.xlu1 %1579  ;;  %1812 = vrot.lane.b32.xlu2 %v11596_v5, %s6525_s19  ;;  %v1590_v49 = vpop.permute.xlu0 %1589 }
 0x2ae   : > { %1655 = vst.msk [vmem:[#allocation4 + $0x150] sm:$0xff] %vm1633_vm10, %v1580_v10 }
 0x2af   : > { %v1677_v2 = vpop.permute.xlu2 %1676  ;;  %1660 = vst.msk [vmem:[#allocation4 + $0x1a0] sm:$0xff] %vm1633_vm10, %v1590_v49 }
 0x2b0   : > { %1771 = vst.msk [vmem:[#allocation4 + $0x20] sm:$0xff] %vm1768_vm11, %v1677_v2 }
 0x2b3   : > { %1810 = vrot.lane.b32.xlu1 %v11627_v33, %s6525_s19  ;;  %1820 = vrot.lane.b32.xlu0 %v11628_v34, %s6525_s19 }
 0x2b5   : > { %v1586_v39 = vpop.permute.xlu1 %1585  ;;  %1818 = vrot.lane.b32.xlu2 %v11598_v24, %s6525_s19  ;;  %v1596_v44 = vpop.permute.xlu0 %1595 }
 0x2b6   : > { %1658 = vst.msk [vmem:[#allocation4 + $0x180] sm:$0xff] %vm1633_vm10, %v1586_v39 }
 0x2b7   : > { %v1683_v5 = vpop.permute.xlu2 %1682  ;;  %1663 = vst.msk [vmem:[#allocation4 + $0x1d0] sm:$0xff] %vm1633_vm10, %v1596_v44 }
 0x2b8   : > { %1774 = vst.msk [vmem:[#allocation4 + $0x50] sm:$0xff] %vm1768_vm11, %v1683_v5 }
 0x2bb   : > { %1816 = vrot.lane.b32.xlu1 %v11629_v19, %s6525_s19  ;;  %1826 = vrot.lane.b32.xlu0 %v7276_v47, %s6525_s19  ;;  %v11632_v47 = vld [vmem:[#allocation41_spill] sm:$0xff] }
 0x2bd   : > { %v1592_v51 = vpop.permute.xlu1 %1591  ;;  %1824 = vrot.lane.b32.xlu2 %v11600_v43, %s6525_s19  ;;  %v1673_v50 = vpop.permute.xlu0 %1672 }
 0x2be   : > { %1661 = vst.msk [vmem:[#allocation4 + $0x1b0] sm:$0xff] %vm1633_vm10, %v1592_v51 }
 0x2bf   : > { %v1689_v24 = vpop.permute.xlu2 %1688  ;;  %1769 = vst.msk [vmem:[#allocation4] sm:$0xff] %vm1768_vm11, %v1673_v50 }
 0x2c0   : > { %1777 = vst.msk [vmem:[#allocation4 + $0x80] sm:$0xff] %vm1768_vm11, %v1689_v24 }
 0x2c3   : > { %1822 = vrot.lane.b32.xlu1 %v11630_v60, %s6525_s19  ;;  %1832 = vrot.lane.b32.xlu0 %v11631_v62, %s6525_s19 }
 0x2c5   : > { %v1598_v8 = vpop.permute.xlu1 %1597  ;;  %1830 = vrot.lane.b32.xlu2 %v11601_v16, %s6525_s19  ;;  %v1679_v12 = vpop.permute.xlu0 %1678 }
 0x2c6   : > { %1664 = vst.msk [vmem:[#allocation4 + $0x1e0] sm:$0xff] %vm1633_vm10, %v1598_v8  ;;  %vm470_vm10 = vcmask 195584  }
 0x2c7   : > { %v1695_v43 = vpop.permute.xlu2 %1694  ;;  %1772 = vst.msk [vmem:[#allocation4 + $0x30] sm:$0xff] %vm1768_vm11, %v1679_v12 }
 0x2c8   : > { %1780 = vst.msk [vmem:[#allocation4 + $0xb0] sm:$0xff] %vm1768_vm11, %v1695_v43 }
 0x2cb   : > { %1828 = vrot.lane.b32.xlu1 %v11632_v47, %s6525_s19  ;;  %1838 = vrot.lane.b32.xlu0 %v7321_v30, %s6525_s19  ;;  %v11635_v30 = vld [vmem:[#allocation46_spill] sm:$0xff] }
 0x2cd   : > { %v1675_v26 = vpop.permute.xlu1 %1674  ;;  %1836 = vrot.lane.b32.xlu2 %v11603_v54, %s6525_s19  ;;  %v1685_v15 = vpop.permute.xlu0 %1684 }
 0x2ce   : > { %1770 = vst.msk [vmem:[#allocation4 + $0x10] sm:$0xff] %vm1768_vm11, %v1675_v26  ;;  %v1802_v26 = vrot.slane %v7794_v0, 2 }
 0x2cf   : > { %v1701_v16 = vpop.permute.xlu2 %1700  ;;  %1775 = vst.msk [vmem:[#allocation4 + $0x60] sm:$0xff] %vm1768_vm11, %v1685_v15 }
 0x2d0   : > { %1783 = vst.msk [vmem:[#allocation4 + $0xe0] sm:$0xff] %vm1768_vm11, %v1701_v16  ;;  %v1804_v16 = vrot.slane %v7899_v32, 2 }
 0x2d3   : > { %1834 = vrot.lane.b32.xlu1 %v11633_v29, %s6525_s19  ;;  %1844 = vrot.lane.b32.xlu0 %v11634_v37, %s6525_s19  ;;  %v1805_v29 = vsel %vm925_vm4, %v1802_v26, %v1804_v16 }
 0x2d5   : > { %v1681_v55 = vpop.permute.xlu1 %1680  ;;  %1842 = vrot.lane.b32.xlu2 %v11604_v48, %s6525_s19  ;;  %v1691_v58 = vpop.permute.xlu0 %1690  ;;  %v1971_v48 = vld [vmem:[%s11636_s1 + $0x20] sm:$0xf]  ;;  %s11796_s1 = sand.u32 1, %s6507_s22  }
 0x2d6   : > { %1773 = vst.msk [vmem:[#allocation4 + $0x40] sm:$0xff] %vm1768_vm11, %v1681_v55  ;;  %6261 = vmatpush.msk.msra.mxu0 %vm11438_vm12, %v1971_v48  ;;  %6371 = vmatpush.msk.msra.mxu2 %vm11438_vm12, %v1971_v48  ;;  %vm473_vm12 = vcmask 189440  }
 0x2d7   : > { %v1707_v54 = vpop.permute.xlu2 %1706  ;;  %1778 = vst.msk [vmem:[#allocation4 + $0x90] sm:$0xff] %vm1768_vm11, %v1691_v58 }
 0x2d8   : > { %1786 = vst.msk [vmem:[#allocation4 + $0x110] sm:$0xff] %vm1768_vm11, %v1707_v54  ;;  %2089 = vmatpush.msra.mxu0 %v1970_v27  ;;  %6372 = vmatpush.msra.mxu2 %v1970_v27 }
 0x2da   : > { %2090 = vmatpush.msra.mxu0 %v1969_v14  ;;  %6373 = vmatpush.msra.mxu2 %v1969_v14 }
 0x2db   : > { %1840 = vrot.lane.b32.xlu1 %v11635_v30, %s6525_s19  ;;  %v1801_v30 = vrot.slane %v7805_v35, 2 }
 0x2dc   : > { %2091 = vmatpush.msra.mxu0 %v1968_v56  ;;  %6374 = vmatpush.msra.mxu2 %v1968_v56 }
 0x2dd   : > { %v1687_v17 = vpop.permute.xlu1 %1686  ;;  %1848 = vrot.lane.b32.xlu2 %v11606_v59, %s6525_s19  ;;  %v11637_v59 = vld [vmem:[#allocation52_spill] sm:$0xff]  ;;  %v1697_v4 = vpop.permute.xlu0 %1696  ;;  %v1803_v48 = vsel %vm925_vm4, %v1801_v30, %v1802_v26 }
 0x2de   : > { %1776 = vst.msk [vmem:[#allocation4 + $0x70] sm:$0xff] %vm1768_vm11, %v1687_v17  ;;  %1850 = vrot.lane.b32.xlu0 %v11637_v59, %s6525_s19  ;;  %2092 = vmatpush.msra.mxu0 %v1967_v45 }
 0x2df   : > { %v1713_v6 = vpop.permute.xlu2 %1712  ;;  %1781 = vst.msk [vmem:[#allocation4 + $0xc0] sm:$0xff] %vm1768_vm11, %v1697_v4  ;;  %6375 = vmatpush.msra.mxu2 %v1967_v45 }
 0x2e0   : > { %1789 = vst.msk [vmem:[#allocation4 + $0x140] sm:$0xff] %vm1768_vm11, %v1713_v6  ;;  %v8066_v6 = vld [vmem:[%s11641_s2] ss:$0 sm:$0xff]  ;;  %s11765_s2 = smov 16  }
 0x2e3   : > { %1846 = vrot.lane.b32.xlu1 %v11638_v63, %s6525_s19 }
 0x2e5   : > { %v1693_v22 = vpop.permute.xlu1 %1692  ;;  %1854 = vrot.lane.b32.xlu2 %v7357_v53, %s6525_s19  ;;  %v1703_v53 = vpop.permute.xlu0 %1702 }
 0x2e6   : > { %1779 = vst.msk [vmem:[#allocation4 + $0xa0] sm:$0xff] %vm1768_vm11, %v1693_v22  ;;  %1856 = vrot.lane.b32.xlu0 %v11639_v42, %s6525_s19 }
 0x2e7   : > { %v1719_v52 = vpop.permute.xlu2 %1718  ;;  %1784 = vst.msk [vmem:[#allocation4 + $0xf0] sm:$0xff] %vm1768_vm11, %v1703_v53 }
 0x2e8   : > { %1792 = vst.msk [vmem:[#allocation4 + $0x170] sm:$0xff] %vm1768_vm11, %v1719_v52 }
 0x2eb   : > { %1852 = vrot.lane.b32.xlu1 %v11640_v36, %s6525_s19 }
 0x2ed   : > { %v1699_v21 = vpop.permute.xlu1 %1698  ;;  %1860 = vrot.lane.b32.xlu2 %v7379_v57, %s6525_s19  ;;  %v1709_v25 = vpop.permute.xlu0 %1708 }
 0x2ee   : > { %1782 = vst.msk [vmem:[#allocation4 + $0xd0] sm:$0xff] %vm1768_vm11, %v1699_v21  ;;  %1862 = vrot.lane.b32.xlu0 %v7690_v38, %s6525_s19 }
 0x2ef   : > { %v1725_v18 = vpop.permute.xlu2 %1724  ;;  %1787 = vst.msk [vmem:[#allocation4 + $0x120] sm:$0xff] %vm1768_vm11, %v1709_v25 }
 0x2f0   : > { %1795 = vst.msk [vmem:[#allocation4 + $0x1a0] sm:$0xff] %vm1768_vm11, %v1725_v18 }
 0x2f3   : > { %1858 = vrot.lane.b32.xlu1 %v7370_v41, %s6525_s19 }
 0x2f5   : > { %v1705_v23 = vpop.permute.xlu1 %1704  ;;  %v1715_v57 = vpop.permute.xlu0 %1714  ;;  %1866 = vrot.lane.b32.xlu2 %v1803_v48, %s6525_s19 }
 0x2f6   : > { %1785 = vst.msk [vmem:[#allocation4 + $0x100] sm:$0xff] %vm1768_vm11, %v1705_v23  ;;  %1868 = vrot.lane.b32.xlu0 %v1805_v29, %s6525_s19 }
 0x2f7   : > { %v1731_v7 = vpop.permute.xlu2 %1730  ;;  %1790 = vst.msk [vmem:[#allocation4 + $0x150] sm:$0xff] %vm1768_vm11, %v1715_v57 }
 0x2f8   : > { %1798 = vst.msk [vmem:[#allocation4 + $0x1d0] sm:$0xff] %vm1768_vm11, %v1731_v7 }
 0x2fb   : > { %1864 = vrot.lane.b32.xlu1 %v7698_v13, %s6525_s19 }
 0x2fd   : > { %v1711_v20 = vpop.permute.xlu1 %1710  ;;  %v1721_v41 = vpop.permute.xlu0 %1720 }
 0x2fe   : > { %1788 = vst.msk [vmem:[#allocation4 + $0x130] sm:$0xff] %vm1768_vm11, %v1711_v20 }
 0x2ff   : > { %v1807_v38 = vpop.permute.xlu2 %1806  ;;  %1793 = vst.msk [vmem:[#allocation4 + $0x180] sm:$0xff] %vm1768_vm11, %v1721_v41 }
 0x300   : > { %1903 = vst.msk [vmem:[#allocation4] sm:$0xff] %vm1902_vm13, %v1807_v38 }
 0x305   : > { %v1717_v3 = vpop.permute.xlu1 %1716  ;;  %v1727_v13 = vpop.permute.xlu0 %1726 }
 0x306   : > { %1791 = vst.msk [vmem:[#allocation4 + $0x160] sm:$0xff] %vm1768_vm11, %v1717_v3 }
 0x307   : > { %v1935_v9 = vld [vmem:[#allocation4] sm:$0xff]  ;;  %v1813_v40 = vpop.permute.xlu2 %1812  ;;  %1796 = vst.msk [vmem:[#allocation4 + $0x1b0] sm:$0xff] %vm1768_vm11, %v1727_v13 }
 0x308   : > { %6262 = vmatmul.msk.f32.vlgmr.msra.gmra.mxu0 %vm1976_vm14, %v1935_v9  ;;  %1906 = vst.msk [vmem:[#allocation4 + $0x30] sm:$0xff] %vm1902_vm13, %v1813_v40 }
 0x30d   : > { %v1723_v31 = vpop.permute.xlu1 %1722  ;;  %v1733_v1 = vpop.permute.xlu0 %1732 }
 0x30e   : > { %1794 = vst.msk [vmem:[#allocation4 + $0x190] sm:$0xff] %vm1768_vm11, %v1723_v31 }
 0x30f   : > { %1799 = vst.msk [vmem:[#allocation4 + $0x1e0] sm:$0xff] %vm1768_vm11, %v1733_v1  ;;  %v1819_v28 = vpop.permute.xlu2 %1818  ;;  %v1938_v34 = vld [vmem:[#allocation4 + $0x30] sm:$0xff] }
 0x310   : > { %1909 = vst.msk [vmem:[#allocation4 + $0x60] sm:$0xff] %vm1902_vm13, %v1819_v28 }
 0x315   : > { %v1729_v11 = vpop.permute.xlu1 %1728  ;;  %v1809_v46 = vpop.permute.xlu0 %1808 }
 0x316   : > { %1797 = vst.msk [vmem:[#allocation4 + $0x1c0] sm:$0xff] %vm1768_vm11, %v1729_v11 }
 0x317   : > { %1904 = vst.msk [vmem:[#allocation4 + $0x10] sm:$0xff] %vm1902_vm13, %v1809_v46  ;;  %v1825_v19 = vpop.permute.xlu2 %1824  ;;  %v1941_v8 = vld [vmem:[#allocation4 + $0x60] sm:$0xff] }
 0x318   : > { %1912 = vst.msk [vmem:[#allocation4 + $0x90] sm:$0xff] %vm1902_vm13, %v1825_v19 }
 0x31d   : > { %v1735_v61 = vpop.permute.xlu1 %1734  ;;  %v1815_v2 = vpop.permute.xlu0 %1814 }
 0x31e   : > { %1800 = vst.msk [vmem:[#allocation4 + $0x1f0] sm:$0xff] %vm1768_vm11, %v1735_v61  ;;  %v1936_v10 = vld [vmem:[#allocation4 + $0x10] sm:$0xff]  ;;  %vm2739_vm11 = vcmask 64512  }
 0x31f   : > { %6263 = vmatmul.msk.f32.gmra.mxu0 %vm1976_vm14, %v1936_v10  ;;  %1907 = vst.msk [vmem:[#allocation4 + $0x40] sm:$0xff] %vm1902_vm13, %v1815_v2  ;;  %v1831_v43 = vpop.permute.xlu2 %1830  ;;  %v1944_v55 = vld [vmem:[#allocation4 + $0x90] sm:$0xff] }
 0x320   : > { %1915 = vst.msk [vmem:[#allocation4 + $0xc0] sm:$0xff] %vm1902_vm13, %v1831_v43 }
 0x325   : > { %v1811_v49 = vpop.permute.xlu1 %1810  ;;  %v1821_v33 = vpop.permute.xlu0 %1820 }
 0x326   : > { %1905 = vst.msk [vmem:[#allocation4 + $0x20] sm:$0xff] %vm1902_vm13, %v1811_v49  ;;  %v1939_v51 = vld [vmem:[#allocation4 + $0x40] sm:$0xff] }
 0x327   : > { %1910 = vst.msk [vmem:[#allocation4 + $0x70] sm:$0xff] %vm1902_vm13, %v1821_v33  ;;  %v1837_v54 = vpop.permute.xlu2 %1836  ;;  %v1947_v17 = vld [vmem:[#allocation4 + $0xc0] sm:$0xff] }
 0x328   : > { %1918 = vst.msk [vmem:[#allocation4 + $0xf0] sm:$0xff] %vm1902_vm13, %v1837_v54 }
 0x32d   : > { %v1937_v39 = vld [vmem:[#allocation4 + $0x20] sm:$0xff]  ;;  %v1817_v5 = vpop.permute.xlu1 %1816  ;;  %v1827_v24 = vpop.permute.xlu0 %1826 }
 0x32e   : > { %6264 = vmatmul.msk.f32.gmra.mxu0 %vm1976_vm14, %v1937_v39  ;;  %1908 = vst.msk [vmem:[#allocation4 + $0x50] sm:$0xff] %vm1902_vm13, %v1817_v5  ;;  %v1942_v62 = vld [vmem:[#allocation4 + $0x70] sm:$0xff] }
 0x32f   : > { %1913 = vst.msk [vmem:[#allocation4 + $0xa0] sm:$0xff] %vm1902_vm13, %v1827_v24  ;;  %v1843_v59 = vpop.permute.xlu2 %1842  ;;  %v1950_v56 = vld [vmem:[#allocation4 + $0xf0] sm:$0xff] }
 0x330   : > { %1921 = vst.msk [vmem:[#allocation4 + $0x120] sm:$0xff] %vm1902_vm13, %v1843_v59 }
 0x335   : > { %v1823_v44 = vpop.permute.xlu1 %1822  ;;  %v1940_v50 = vld [vmem:[#allocation4 + $0x50] sm:$0xff]  ;;  %v1833_v12 = vpop.permute.xlu0 %1832 }
 0x336   : > { %6265 = vmatmul.msk.f32.gmra.mxu0 %vm1976_vm14, %v1938_v34  ;;  %1911 = vst.msk [vmem:[#allocation4 + $0x80] sm:$0xff] %vm1902_vm13, %v1823_v44  ;;  %v1945_v37 = vld [vmem:[#allocation4 + $0xa0] sm:$0xff] }
 0x337   : > { %1916 = vst.msk [vmem:[#allocation4 + $0xd0] sm:$0xff] %vm1902_vm13, %v1833_v12  ;;  %v1849_v42 = vpop.permute.xlu2 %1848  ;;  %v1953_v7 = vld [vmem:[#allocation4 + $0x120] sm:$0xff] }
 0x338   : > { %1924 = vst.msk [vmem:[#allocation4 + $0x150] sm:$0xff] %vm1902_vm13, %v1849_v42 }
 0x33d   : > { %v1829_v60 = vpop.permute.xlu1 %1828  ;;  %v1943_v47 = vld [vmem:[#allocation4 + $0x80] sm:$0xff]  ;;  %v1839_v0 = vpop.permute.xlu0 %1838 }
 0x33e   : > { %6266 = vmatmul.msk.f32.gmra.mxu0 %vm1976_vm14, %v1939_v51  ;;  %1914 = vst.msk [vmem:[#allocation4 + $0xb0] sm:$0xff] %vm1902_vm13, %v1829_v60  ;;  %v1948_v27 = vld [vmem:[#allocation4 + $0xd0] sm:$0xff] }
 0x33f   : > { %1919 = vst.msk [vmem:[#allocation4 + $0x100] sm:$0xff] %vm1902_vm13, %v1839_v0  ;;  %v1855_v40 = vpop.permute.xlu2 %1854  ;;  %v1956_v10 = vld [vmem:[#allocation4 + $0x150] sm:$0xff] }
 0x340   : > { %1927 = vst.msk [vmem:[#allocation4 + $0x180] sm:$0xff] %vm1902_vm13, %v1855_v40 }
 0x345   : > { %v1835_v15 = vpop.permute.xlu1 %1834  ;;  %v1946_v32 = vld [vmem:[#allocation4 + $0xb0] sm:$0xff]  ;;  %v1845_v14 = vpop.permute.xlu0 %1844 }
 0x346   : > { %6267 = vmatmul.msk.f32.gmra.mxu0 %vm1976_vm14, %v1940_v50  ;;  %1917 = vst.msk [vmem:[#allocation4 + $0xe0] sm:$0xff] %vm1902_vm13, %v1835_v15  ;;  %v1951_v45 = vld [vmem:[#allocation4 + $0x100] sm:$0xff] }
 0x347   : > { %1922 = vst.msk [vmem:[#allocation4 + $0x130] sm:$0xff] %vm1902_vm13, %v1845_v14  ;;  %v1861_v44 = vpop.permute.xlu2 %1860  ;;  %v1959_v26 = vld [vmem:[#allocation4 + $0x180] sm:$0xff] }
 0x348   : > { %1930 = vst.msk [vmem:[#allocation4 + $0x1b0] sm:$0xff] %vm1902_vm13, %v1861_v44 }
 0x34d   : > { %v1841_v58 = vpop.permute.xlu1 %1840  ;;  %v1949_v22 = vld [vmem:[#allocation4 + $0xe0] sm:$0xff] }
 0x34e   : > { %6268 = vmatmul.msk.f32.gmra.mxu0 %vm1976_vm14, %v1941_v8  ;;  %1920 = vst.msk [vmem:[#allocation4 + $0x110] sm:$0xff] %vm1902_vm13, %v1841_v58  ;;  %v1954_v3 = vld [vmem:[#allocation4 + $0x130] sm:$0xff] }
 0x34f   : > { %v1867_v12 = vpop.permute.xlu2 %1866  ;;  %v1962_v59 = vld [vmem:[#allocation4 + $0x1b0] sm:$0xff] }
 0x350   : > { %v1851_v25 = vpop.permute.xlu0 %1850  ;;  %1933 = vst.msk [vmem:[#allocation4 + $0x1e0] sm:$0xff] %vm1902_vm13, %v1867_v12 }
 0x351   : > { %1925 = vst.msk [vmem:[#allocation4 + $0x160] sm:$0xff] %vm1902_vm13, %v1851_v25 }
 0x355   : > { %v1847_v52 = vpop.permute.xlu1 %1846  ;;  %v1952_v18 = vld [vmem:[#allocation4 + $0x110] sm:$0xff] }
 0x356   : > { %6269 = vmatmul.msk.f32.gmra.mxu0 %vm1976_vm14, %v1942_v62  ;;  %1923 = vst.msk [vmem:[#allocation4 + $0x140] sm:$0xff] %vm1902_vm13, %v1847_v52 }
 0x357   : > { %v1965_v25 = vld [vmem:[#allocation4 + $0x1e0] sm:$0xff] }
 0x358   : > { %v1857_v46 = vpop.permute.xlu0 %1856  ;;  %v1957_v5 = vld [vmem:[#allocation4 + $0x160] sm:$0xff] }
 0x359   : > { %1928 = vst.msk [vmem:[#allocation4 + $0x190] sm:$0xff] %vm1902_vm13, %v1857_v46 }
 0x35d   : > { %v1853_v20 = vpop.permute.xlu1 %1852  ;;  %v1955_v1 = vld [vmem:[#allocation4 + $0x140] sm:$0xff] }
 0x35e   : > { %6270 = vmatmul.msk.f32.gmra.mxu0 %vm1976_vm14, %v1943_v47  ;;  %1926 = vst.msk [vmem:[#allocation4 + $0x170] sm:$0xff] %vm1902_vm13, %v1853_v20 }
 0x360   : > { %v1863_v51 = vpop.permute.xlu0 %1862 }
 0x361   : > { %1931 = vst.msk [vmem:[#allocation4 + $0x1c0] sm:$0xff] %vm1902_vm13, %v1863_v51 }
 0x365   : > { %v1859_v49 = vpop.permute.xlu1 %1858  ;;  %v1958_v50 = vld [vmem:[#allocation4 + $0x170] sm:$0xff] }
 0x366   : > { %6271 = vmatmul.msk.f32.gmra.mxu0 %vm1976_vm14, %v1944_v55  ;;  %1929 = vst.msk [vmem:[#allocation4 + $0x1a0] sm:$0xff] %vm1902_vm13, %v1859_v49  ;;  %v11642_v55 = vmov 0.0  }
 0x367   : > { %499 = vst.msk [vmem:[#allocation3 + $0x29] sm:$0x1] %vm479_vm15, %v11642_v55 }
 0x368   : > { %v1869_v43 = vpop.permute.xlu0 %1868  ;;  %481 = vst.msk [vmem:[#allocation3 + $0x18] sm:$0x1] %vm479_vm15, %v11642_v55 }
 0x369   : > { %1934 = vst.msk [vmem:[#allocation4 + $0x1f0] sm:$0xff] %vm1902_vm13, %v1869_v43 }
 0x36a   : > { %482 = vst.msk [vmem:[#allocation3 + $0x30] sm:$0x1] %vm479_vm15, %v11642_v55 }
 0x36b   : > { %483 = vst.msk [vmem:[#allocation3 + $0x48] sm:$0x1] %vm479_vm15, %v11642_v55 }
 0x36c   : > { %484 = vst.msk [vmem:[#allocation3 + $0x60] sm:$0x1] %vm479_vm15, %v11642_v55 }
 0x36d   : > { %v1865_v62 = vpop.permute.xlu1 %1864  ;;  %485 = vst.msk [vmem:[#allocation3 + $0x78] sm:$0x1] %vm479_vm15, %v11642_v55  ;;  %v1961_v30 = vld [vmem:[#allocation4 + $0x1a0] sm:$0xff] }
 0x36e   : > { %6272 = vmatmul.msk.f32.gmra.mxu0 %vm1976_vm14, %v1945_v37  ;;  %1932 = vst.msk [vmem:[#allocation4 + $0x1d0] sm:$0xff] %vm1902_vm13, %v1865_v62  ;;  %v1960_v37 = vld [vmem:[#allocation4 + $0x190] sm:$0xff]  ;;  %vm2892_vm13 = vcmask 130112  }
 0x36f   : > { %486 = vst.msk [vmem:[#allocation3 + $0x90] sm:$0x1] %vm479_vm15, %v11642_v55 }
 0x370   : > { %v1966_v29 = vld [vmem:[#allocation4 + $0x1f0] sm:$0xff]  ;;  %487 = vst.msk [vmem:[#allocation3 + $0xa8] sm:$0x1] %vm479_vm15, %v11642_v55 }
 0x371   : > { %6293 = vmatmul.msk.f32.vlgmr.msra.gmra.mxu2 %vm1976_vm14, %v1966_v29  ;;  %488 = vst.msk [vmem:[#allocation3 + $0xc0] sm:$0x1] %vm479_vm15, %v11642_v55 }
 0x372   : > { %489 = vst.msk [vmem:[#allocation3 + $0xd8] sm:$0x1] %vm479_vm15, %v11642_v55 }
 0x373   : > { %490 = vst.msk [vmem:[#allocation3 + $0xf0] sm:$0x1] %vm479_vm15, %v11642_v55 }
 0x374   : > { %491 = vst.msk [vmem:[#allocation3 + $0x108] sm:$0x1] %vm479_vm15, %v11642_v55 }
 0x375   : > { %492 = vst.msk [vmem:[#allocation3 + $0x120] sm:$0x1] %vm479_vm15, %v11642_v55 }
 0x376   : > { %6273 = vmatmul.msk.f32.gmra.mxu0 %vm1976_vm14, %v1946_v32  ;;  %493 = vst.msk [vmem:[#allocation3 + $0x138] sm:$0x1] %vm479_vm15, %v11642_v55 }
 0x377   : > { %494 = vst.msk [vmem:[#allocation3 + $0x150] sm:$0x1] %vm479_vm15, %v11642_v55 }
 0x378   : > { %495 = vst.msk [vmem:[#allocation3 + $0x168] sm:$0x1] %vm479_vm15, %v11642_v55 }
 0x379   : > { %496 = vst.msk [vmem:[#allocation3 + $0x180] sm:$0x1] %vm479_vm15, %v11642_v55 }
 0x37a   : > { %500 = vst.msk [vmem:[#allocation3 + $0x41] sm:$0x1] %vm479_vm15, %v11642_v55 }
 0x37b   : > { %501 = vst.msk [vmem:[#allocation3 + $0x59] sm:$0x1] %vm479_vm15, %v11642_v55 }
 0x37c   : > { %502 = vst.msk [vmem:[#allocation3 + $0x71] sm:$0x1] %vm479_vm15, %v11642_v55 }
 0x37d   : > { %503 = vst.msk [vmem:[#allocation3 + $0x89] sm:$0x1] %vm479_vm15, %v11642_v55 }
 0x37e   : > { %6274 = vmatmul.msk.f32.gmra.mxu0 %vm1976_vm14, %v1947_v17  ;;  %504 = vst.msk [vmem:[#allocation3 + $0xa1] sm:$0x1] %vm479_vm15, %v11642_v55 }
 0x37f   : > { %505 = vst.msk [vmem:[#allocation3 + $0xb9] sm:$0x1] %vm479_vm15, %v11642_v55 }
 0x380   : > { %506 = vst.msk [vmem:[#allocation3 + $0xd1] sm:$0x1] %vm479_vm15, %v11642_v55 }
 0x381   : > { %507 = vst.msk [vmem:[#allocation3 + $0xe9] sm:$0x1] %vm479_vm15, %v11642_v55 }
 0x382   : > { %508 = vst.msk [vmem:[#allocation3 + $0x101] sm:$0x1] %vm479_vm15, %v11642_v55 }
 0x383   : > { %509 = vst.msk [vmem:[#allocation3 + $0x119] sm:$0x1] %vm479_vm15, %v11642_v55 }
 0x384   : > { %510 = vst.msk [vmem:[#allocation3 + $0x131] sm:$0x1] %vm479_vm15, %v11642_v55 }
 0x385   : > { %v2094_v4 = vpop.f32.mrf.mxu0  ;;  %511 = vst.msk [vmem:[#allocation3 + $0x149] sm:$0x1] %vm479_vm15, %v11642_v55 }
 0x386   : > { %6275 = vmatmul.msk.f32.gmra.mxu0 %vm1976_vm14, %v1948_v27  ;;  %v2095_v35 = vadd.f32 %v8066_v6, %v2094_v4  ;;  %512 = vst.msk [vmem:[#allocation3 + $0x161] sm:$0x1] %vm479_vm15, %v11642_v55 }
 0x387   : > { %513 = vst.msk [vmem:[#allocation3 + $0x179] sm:$0x1] %vm479_vm15, %v11642_v55 }
 0x388   : > { %v2190_v63 = vmax.f32 %v2095_v35, 0.0  ;;  %514 = vst.msk [vmem:[#allocation3 + $0x191] sm:$0x1] %vm479_vm15, %v11642_v55 }
 0x389   : > { %471 = vst.msk [vmem:[#allocation3] sm:$0xff] %vm470_vm10, %v11642_v55 }
 0x38a   : > { %2254 = vrot.lane.b32.xlu1 %v2190_v63, %s11514_s29  ;;  %472 = vst.msk [vmem:[#allocation3 + $0x8] sm:$0xff] %vm470_vm10, %v11642_v55 }
 0x38b   : > { %480 = vst.msk [vmem:[#allocation3] sm:$0x1] %vm479_vm15, %v11642_v55 }
 0x38c   : > { %476 = vst.msk [vmem:[#allocation3 + $0x198] sm:$0xff] %vm470_vm10, %v11642_v55 }
 0x38d   : > { %477 = vst.msk [vmem:[#allocation3 + $0x1a0] sm:$0xff] %vm470_vm10, %v11642_v55 }
 0x38e   : > { %6276 = vmatmul.msk.f32.gmra.mxu0 %vm1976_vm14, %v1949_v22  ;;  %v1963_v22 = vld [vmem:[#allocation4 + $0x1c0] sm:$0xff]  ;;  %497 = vst.msk [vmem:[#allocation3 + $0x198] sm:$0x1] %vm479_vm15, %v11642_v55 }
 0x396   : > { %6277 = vmatmul.msk.f32.gmra.mxu0 %vm1976_vm14, %v1950_v56 }
 0x39c   : > { %v2097_v53 = vpop.f32.mrf.mxu0 }
 0x39d   : > { %v2098_v36 = vadd.f32 %v8066_v6, %v2097_v53  ;;  %v1964_v53 = vld [vmem:[#allocation4 + $0x1d0] sm:$0xff] }
 0x39e   : > { %6278 = vmatmul.msk.f32.gmra.mxu0 %vm1976_vm14, %v1951_v45 }
 0x39f   : > { %v2191_v21 = vmax.f32 %v2098_v36, 0.0 }
 0x3a1   : > { %2256 = vrot.lane.b32.xlu2 %v2191_v21, %s11514_s29 }
 0x3a6   : > { %6279 = vmatmul.msk.f32.gmra.mxu0 %vm1976_vm14, %v1952_v18 }
 0x3ab   : > { %v2100_v23 = vpop.f32.mrf.mxu0 }
 0x3ac   : > { %v2101_v57 = vadd.f32 %v8066_v6, %v2100_v23 }
 0x3ae   : > { %v2192_v38 = vmax.f32 %v2101_v57, 0.0  ;;  %6280 = vmatmul.msk.f32.gmra.mxu0 %vm1976_vm14, %v1953_v7 }
 0x3b0   : > { %2258 = vrot.lane.b32.xlu0 %v2192_v38, %s11514_s29 }
 0x3b3   : > { %v2103_v41 = vpop.f32.mrf.mxu0 }
 0x3b4   : > { %v2104_v9 = vadd.f32 %v8066_v6, %v2103_v41 }
 0x3b6   : > { %v2193_v13 = vmax.f32 %v2104_v9, 0.0  ;;  %6281 = vmatmul.msk.f32.gmra.mxu0 %vm1976_vm14, %v1954_v3 }
 0x3b8   : > { %2260 = vrot.lane.b32.xlu1 %v2193_v13, %s11514_s29 }
 0x3bb   : > { %v2106_v31 = vpop.f32.mrf.mxu0 }
 0x3bc   : > { %v2107_v11 = vadd.f32 %v8066_v6, %v2106_v31 }
 0x3be   : > { %v2194_v61 = vmax.f32 %v2107_v11, 0.0  ;;  %6282 = vmatmul.msk.f32.gmra.mxu0 %vm1976_vm14, %v1955_v1 }
 0x3c0   : > { %2262 = vrot.lane.b32.xlu2 %v2194_v61, %s11514_s29 }
 0x3c3   : > { %v2109_v28 = vpop.f32.mrf.mxu0 }
 0x3c4   : > { %v2110_v2 = vadd.f32 %v8066_v6, %v2109_v28 }
 0x3c6   : > { %v2195_v33 = vmax.f32 %v2110_v2, 0.0  ;;  %6283 = vmatmul.msk.f32.gmra.mxu0 %vm1976_vm14, %v1956_v10 }
 0x3c8   : > { %2264 = vrot.lane.b32.xlu0 %v2195_v33, %s11514_s29 }
 0x3cb   : > { %v2112_v39 = vpop.f32.mrf.mxu0 }
 0x3cc   : > { %v2113_v34 = vadd.f32 %v8066_v6, %v2112_v39 }
 0x3ce   : > { %v2196_v19 = vmax.f32 %v2113_v34, 0.0  ;;  %6284 = vmatmul.msk.f32.gmra.mxu0 %vm1976_vm14, %v1957_v5 }
 0x3d0   : > { %2266 = vrot.lane.b32.xlu1 %v2196_v19, %s11514_s29 }
 0x3d3   : > { %v2115_v24 = vpop.f32.mrf.mxu0 }
 0x3d4   : > { %v2116_v60 = vadd.f32 %v8066_v6, %v2115_v24 }
 0x3d6   : > { %v2197_v8 = vmax.f32 %v2116_v60, 0.0  ;;  %6285 = vmatmul.msk.f32.gmra.mxu0 %vm1976_vm14, %v1958_v50 }
 0x3d8   : > { %2268 = vrot.lane.b32.xlu2 %v2197_v8, %s11514_s29 }
 0x3db   : > { %v2118_v47 = vpop.f32.mrf.mxu0 }
 0x3dc   : > { %v2119_v16 = vadd.f32 %v8066_v6, %v2118_v47 }
 0x3de   : > { %v2198_v15 = vmax.f32 %v2119_v16, 0.0  ;;  %6286 = vmatmul.msk.f32.gmra.mxu0 %vm1976_vm14, %v1959_v26 }
 0x3e0   : > { %2270 = vrot.lane.b32.xlu0 %v2198_v15, %s11514_s29 }
 0x3e3   : > { %v2121_v54 = vpop.f32.mrf.mxu0 }
 0x3e4   : > { %v2122_v0 = vadd.f32 %v8066_v6, %v2121_v54 }
 0x3e6   : > { %v2199_v32 = vmax.f32 %v2122_v0, 0.0  ;;  %6287 = vmatmul.msk.f32.gmra.mxu0 %vm1976_vm14, %v1960_v37 }
 0x3e8   : > { %2272 = vrot.lane.b32.xlu1 %v2199_v32, %s11514_s29 }
 0x3eb   : > { %v2124_v58 = vpop.f32.mrf.mxu0 }
 0x3ec   : > { %v2125_v17 = vadd.f32 %v8066_v6, %v2124_v58 }
 0x3ee   : > { %v2200_v48 = vmax.f32 %v2125_v17, 0.0  ;;  %6288 = vmatmul.msk.f32.gmra.mxu0 %vm1976_vm14, %v1961_v30 }
 0x3f0   : > { %2274 = vrot.lane.b32.xlu2 %v2200_v48, %s11514_s29 }
 0x3f3   : > { %v2127_v27 = vpop.f32.mrf.mxu0 }
 0x3f4   : > { %v2128_v4 = vadd.f32 %v8066_v6, %v2127_v27 }
 0x3f6   : > { %v2201_v35 = vmax.f32 %v2128_v4, 0.0  ;;  %6289 = vmatmul.msk.f32.gmra.mxu0 %vm1976_vm14, %v1962_v59 }
 0x3f8   : > { %2276 = vrot.lane.b32.xlu0 %v2201_v35, %s11514_s29 }
 0x3fb   : > { %v2130_v63 = vpop.f32.mrf.mxu0  ;;  %v2257_v45 = vpop.permute.xlu2 %2256 }
 0x3fc   : > { %v2131_v14 = vadd.f32 %v8066_v6, %v2130_v63  ;;  %v2255_v56 = vpop.permute.xlu1 %2254  ;;  %2353 = vst.msk [vmem:[#allocation3 + $0x21] sm:$0xff] %vm2351_vm0, %v2257_v45 }
 0x3fd   : > { %2352 = vst.msk [vmem:[#allocation3 + $0x19] sm:$0xff] %vm2351_vm0, %v2255_v56 }
 0x3fe   : > { %v2202_v52 = vmax.f32 %v2131_v14, 0.0  ;;  %6290 = vmatmul.msk.f32.gmra.mxu0 %vm1976_vm14, %v1963_v22 }
 0x400   : > { %2278 = vrot.lane.b32.xlu1 %v2202_v52, %s11514_s29 }
 0x403   : > { %v2133_v42 = vpop.f32.mrf.mxu0 }
 0x404   : > { %v2134_v36 = vadd.f32 %v8066_v6, %v2133_v42 }
 0x406   : > { %v2203_v21 = vmax.f32 %v2134_v36, 0.0  ;;  %6291 = vmatmul.msk.f32.gmra.mxu0 %vm1976_vm14, %v1964_v53 }
 0x408   : > { %2280 = vrot.lane.b32.xlu2 %v2203_v21, %s11514_s29 }
 0x40b   : > { %v2136_v18 = vpop.f32.mrf.mxu0 }
 0x40c   : > { %v2137_v23 = vadd.f32 %v8066_v6, %v2136_v18 }
 0x40e   : > { %v2204_v7 = vmax.f32 %v2137_v23, 0.0  ;;  %6292 = vmatmul.msk.f32.gmra.mxu0 %vm1976_vm14, %v1965_v25  ;;  %vm3125_vm14 = vcmask 261312  }
 0x410   : > { %2282 = vrot.lane.b32.xlu0 %v2204_v7, %s11514_s29 }
 0x413   : > { %v2139_v57 = vpop.f32.mrf.mxu0 }
 0x414   : > { %v2140_v20 = vadd.f32 %v8066_v6, %v2139_v57 }
 0x416   : > { %v2205_v38 = vmax.f32 %v2140_v20, 0.0 }
 0x418   : > { %2284 = vrot.lane.b32.xlu1 %v2205_v38, %s11514_s29 }
 0x41a   : > { %v2263_v41 = vpop.permute.xlu2 %2262 }
 0x41b   : > { %2356 = vst.msk [vmem:[#allocation3 + $0x49] sm:$0xff] %vm2351_vm0, %v2263_v41  ;;  %v2142_v3 = vpop.f32.mrf.mxu0 }
 0x41c   : > { %v2143_v9 = vadd.f32 %v8066_v6, %v2142_v3 }
 0x41e   : > { %v2206_v40 = vmax.f32 %v2143_v9, 0.0 }
 0x420   : > { %2286 = vrot.lane.b32.xlu2 %v2206_v40, %s11514_s29 }
 0x422   : > { %v2259_v13 = vpop.permute.xlu0 %2258  ;;  %v2393_v31 = vld [vmem:[#allocation3 + $0x48] sm:$0xff] }
 0x423   : > { %2354 = vst.msk [vmem:[#allocation3 + $0x31] sm:$0xff] %vm2351_vm0, %v2259_v13  ;;  %v2145_v1 = vpop.f32.mrf.mxu0  ;;  %v2504_v11 = vrot.slane %v2393_v31, 2  ;;  %v2505_v46 = vrot.slane %v2393_v31, 4  ;;  %v2506_v61 = vrot.slane %v2393_v31, 6  ;;  %v3142_v10 = vperm.slane %v2393_v31, 1 }
 0x424   : > { %v2146_v28 = vadd.f32 %v8066_v6, %v2145_v1 }
 0x425   : > { %v8204_v2 = vperm.slane %v2504_v11, 0  ;;  %v8206_v49 = vperm.slane %v2505_v46, 0  ;;  %v8208_v33 = vperm.slane %v2506_v61, 0  ;;  %v3143_v39 = vperm.slane %v2504_v11, 1 }
 0x426   : > { %v2207_v5 = vmax.f32 %v2146_v28, 0.0  ;;  %v3144_v34 = vperm.slane %v2505_v46, 1  ;;  %v3145_v19 = vperm.slane %v2506_v61, 1 }
 0x427   : > { %v3302_v44 = vsel %vm2652_vm1, %v8206_v49, %v8204_v2  ;;  %v3205_v51 = vsel %vm2652_vm1, %v3143_v39, %v3142_v10 }
 0x428   : > { %2288 = vrot.lane.b32.xlu0 %v2207_v5, %s11514_s29  ;;  %v8217_v24 = vsel %vm2654_vm3, %v8208_v33, %v3302_v44  ;;  %v3206_v50 = vsel %vm2654_vm3, %v3144_v34, %v3205_v51 }
 0x429   : > { %v8221_v60 = vsel %vm2656_vm5, %v3145_v19, %v3206_v50 }
 0x42a   : > { %v2261_v8 = vpop.permute.xlu1 %2260  ;;  %v8223_v43 = vld [vmem:[#allocation3 + $0x30] sm:$0xff] }
 0x42b   : > { %2355 = vst.msk [vmem:[#allocation3 + $0x39] sm:$0xff] %vm2351_vm0, %v2261_v8  ;;  %v2148_v62 = vpop.f32.mrf.mxu0  ;;  %v2498_v12 = vrot.slane %v8223_v43, 2  ;;  %v2499_v47 = vrot.slane %v8223_v43, 4  ;;  %v2500_v26 = vrot.slane %v8223_v43, 6  ;;  %v2756_v15 = vperm.slane %v8223_v43, 1 }
 0x42c   : > { %v2149_v16 = vadd.f32 %v8066_v6, %v2148_v62 }
 0x42d   : > { %v8231_v29 = vperm.slane %v2498_v12, 0  ;;  %v8233_v54 = vperm.slane %v2499_v47, 0  ;;  %v8235_v37 = vperm.slane %v2500_v26, 0  ;;  %v2757_v0 = vperm.slane %v2498_v12, 1 }
 0x42e   : > { %v2208_v32 = vmax.f32 %v2149_v16, 0.0  ;;  %v2758_v58 = vperm.slane %v2499_v47, 1  ;;  %v2759_v30 = vperm.slane %v2500_v26, 1 }
 0x42f   : > { %v2819_v17 = vsel %vm2652_vm1, %v2757_v0, %v2756_v15  ;;  %v2916_v48 = vsel %vm2652_vm1, %v8233_v54, %v8231_v29 }
 0x430   : > { %2290 = vrot.lane.b32.xlu1 %v2208_v32, %s11514_s29  ;;  %v2820_v27 = vsel %vm2654_vm3, %v2758_v58, %v2819_v17  ;;  %v2917_v59 = vsel %vm2654_vm3, %v8235_v37, %v2916_v48 }
 0x431   : > { %v2821_v4 = vsel %vm2656_vm5, %v2759_v30, %v2820_v27 }
 0x432   : > { %v8246_v35 = vld [vmem:[#allocation3 + $0x38] sm:$0xff]  ;;  %v2269_v63 = vpop.permute.xlu2 %2268 }
 0x433   : > { %2359 = vst.msk [vmem:[#allocation3 + $0x69] sm:$0xff] %vm2351_vm0, %v2269_v63  ;;  %v2151_v22 = vpop.f32.mrf.mxu0  ;;  %v2501_v14 = vrot.slane %v8246_v35, 2  ;;  %v2502_v56 = vrot.slane %v8246_v35, 4  ;;  %v11406_v52 = vperm.slane %v8246_v35, 0  ;;  %v2503_v42 = vrot.slane %v8246_v35, 6 }
 0x434   : > { %v2152_v45 = vadd.f32 %v8066_v6, %v2151_v22  ;;  %v2760_v53 = vperm.slane %v8246_v35, 1 }
 0x435   : > { %v8255_v36 = vperm.slane %v2501_v14, 0  ;;  %v8257_v21 = vperm.slane %v2502_v56, 0  ;;  %v2761_v25 = vperm.slane %v2501_v14, 1  ;;  %v2762_v23 = vperm.slane %v2502_v56, 1 }
 0x436   : > { %v2209_v18 = vmax.f32 %v2152_v45, 0.0  ;;  %v2822_v7 = vsel %vm2658_vm6, %v2760_v53, %v2821_v4  ;;  %v2918_v57 = vsel %vm2656_vm5, %v11406_v52, %v2917_v59  ;;  %v8264_v20 = vperm.slane %v2503_v42, 0 }
 0x437   : > { %v2763_v38 = vperm.slane %v2503_v42, 1  ;;  %v2823_v41 = vsel %vm2660_vm7, %v2761_v25, %v2822_v7  ;;  %v2919_v3 = vsel %vm2658_vm6, %v8255_v36, %v2918_v57 }
 0x438   : > { %2292 = vrot.lane.b32.xlu2 %v2209_v18, %s11514_s29  ;;  %v2824_v9 = vsel %vm2662_vm8, %v2762_v23, %v2823_v41  ;;  %v2920_v40 = vsel %vm2660_vm7, %v8257_v21, %v2919_v3 }
 0x439   : > { %v8273_v31 = vsel %vm2664_vm9, %v2763_v38, %v2824_v9  ;;  %v8277_v1 = vsel %vm2662_vm8, %v8264_v20, %v2920_v40 }
 0x43a   : > { %v2265_v13 = vpop.permute.xlu0 %2264  ;;  %11643 = vst [vmem:[#allocation13_spill] sm:$0xff] %v8277_v1 }
 0x43b   : > { %2357 = vst.msk [vmem:[#allocation3 + $0x51] sm:$0xff] %vm2351_vm0, %v2265_v13  ;;  %v2154_v11 = vpop.f32.mrf.mxu0 }
 0x43c   : > { %v2155_v46 = vadd.f32 %v8066_v6, %v2154_v11 }
 0x43e   : > { %v2210_v61 = vmax.f32 %v2155_v46, 0.0 }
 0x440   : > { %2294 = vrot.lane.b32.xlu0 %v2210_v61, %s11514_s29 }
 0x442   : > { %v8282_v28 = vld [vmem:[#allocation3 + $0x50] sm:$0xff]  ;;  %v2267_v10 = vpop.permute.xlu1 %2266 }
 0x443   : > { %2358 = vst.msk [vmem:[#allocation3 + $0x61] sm:$0xff] %vm2351_vm0, %v2267_v10  ;;  %v2157_v39 = vpop.f32.mrf.mxu0  ;;  %v2507_v5 = vrot.slane %v8282_v28, 2  ;;  %v2508_v34 = vrot.slane %v8282_v28, 4  ;;  %v2509_v44 = vrot.slane %v8282_v28, 6  ;;  %v11395_v19 = vperm.slane %v8282_v28, 0 }
 0x444   : > { %v2158_v51 = vadd.f32 %v8066_v6, %v2157_v39  ;;  %v3146_v50 = vperm.slane %v8282_v28, 1 }
 0x445   : > { %v8291_v8 = vperm.slane %v2507_v5, 0  ;;  %v8293_v62 = vperm.slane %v2508_v34, 0  ;;  %v3304_v47 = vsel %vm2656_vm5, %v11395_v19, %v8217_v24  ;;  %v3147_v26 = vperm.slane %v2507_v5, 1 }
 0x446   : > { %v2211_v12 = vmax.f32 %v2158_v51, 0.0  ;;  %v3148_v16 = vperm.slane %v2508_v34, 1  ;;  %v8299_v15 = vperm.slane %v2509_v44, 0  ;;  %v3208_v32 = vsel %vm2658_vm6, %v3146_v50, %v8221_v60 }
 0x447   : > { %v3305_v0 = vsel %vm2658_vm6, %v8291_v8, %v3304_v47  ;;  %v3149_v30 = vperm.slane %v2509_v44, 1  ;;  %v3209_v17 = vsel %vm2660_vm7, %v3147_v26, %v3208_v32 }
 0x448   : > { %2296 = vrot.lane.b32.xlu1 %v2211_v12, %s11514_s29  ;;  %v3306_v58 = vsel %vm2660_vm7, %v8293_v62, %v3305_v0  ;;  %v3210_v48 = vsel %vm2662_vm8, %v3148_v16, %v3209_v17 }
 0x449   : > { %v8311_v24 = vsel %vm2662_vm8, %v8299_v15, %v3306_v58  ;;  %v8317_v4 = vsel %vm2664_vm9, %v3149_v30, %v3210_v48 }
 0x44a   : > { %v8314_v27 = vld [vmem:[#allocation3 + $0x60] sm:$0xff]  ;;  %v2275_v59 = vpop.permute.xlu2 %2274  ;;  %v8327_v53 = vld [vmem:[#allocation3 + $0x68] sm:$0xff] }
 0x44b   : > { %2362 = vst.msk [vmem:[#allocation3 + $0x91] sm:$0xff] %vm2351_vm0, %v2275_v59  ;;  %v2160_v60 = vpop.f32.mrf.mxu0  ;;  %v2510_v63 = vrot.slane %v8314_v27, 2  ;;  %v2511_v22 = vrot.slane %v8314_v27, 4  ;;  %v2512_v18 = vrot.slane %v8314_v27, 6  ;;  %v2764_v25 = vperm.slane %v8314_v27, 1 }
 0x44c   : > { %v2161_v14 = vadd.f32 %v8066_v6, %v2160_v60  ;;  %v2513_v41 = vrot.slane %v8327_v53, 2  ;;  %v2514_v5 = vrot.slane %v8327_v53, 4  ;;  %v2515_v34 = vrot.slane %v8327_v53, 6 }
 0x44d   : > { %v8323_v45 = vperm.slane %v2510_v63, 0  ;;  %v8325_v42 = vperm.slane %v2511_v22, 0  ;;  %v2765_v23 = vperm.slane %v2510_v63, 1  ;;  %v2766_v7 = vperm.slane %v2511_v22, 1 }
 0x44e   : > { %v2212_v56 = vmax.f32 %v2161_v14, 0.0  ;;  %v8341_v11 = vperm.slane %v2512_v18, 0  ;;  %v2608_v44 = vperm.slane %v8327_v53, 0  ;;  %v2767_v12 = vperm.slane %v2512_v18, 1 }
 0x44f   : > { %v2826_v57 = vsel %vm2652_vm1, %v2765_v23, %v2764_v25  ;;  %v2923_v40 = vsel %vm2652_vm1, %v8325_v42, %v8323_v45  ;;  %v8358_v26 = vperm.slane %v2513_v41, 0  ;;  %v2768_v0 = vperm.slane %v8327_v53, 1 }
 0x450   : > { %2298 = vrot.lane.b32.xlu2 %v2212_v56, %s11514_s29  ;;  %v2827_v9 = vsel %vm2654_vm3, %v2766_v7, %v2826_v57  ;;  %v2769_v32 = vperm.slane %v2513_v41, 1  ;;  %v2924_v30 = vsel %vm2654_vm3, %v8341_v11, %v2923_v40  ;;  %v8372_v48 = vperm.slane %v2514_v5, 0 }
 0x451   : > { %v2828_v58 = vsel %vm2656_vm5, %v2767_v12, %v2827_v9  ;;  %v2770_v59 = vperm.slane %v2514_v5, 1  ;;  %v2925_v63 = vsel %vm2656_vm5, %v2608_v44, %v2924_v30  ;;  %v8378_v22 = vperm.slane %v2515_v34, 0 }
 0x452   : > { %v2271_v38 = vpop.permute.xlu0 %2270  ;;  %v8334_v3 = vld [vmem:[#allocation3 + $0x90] sm:$0xff]  ;;  %v2829_v60 = vsel %vm2658_vm6, %v2768_v0, %v2828_v58  ;;  %v2926_v56 = vsel %vm2658_vm6, %v8358_v26, %v2925_v63  ;;  %v2771_v23 = vperm.slane %v2515_v34, 1 }
 0x453   : > { %2360 = vst.msk [vmem:[#allocation3 + $0x79] sm:$0xff] %vm2351_vm0, %v2271_v38  ;;  %v2163_v13 = vpop.f32.mrf.mxu0  ;;  %v11398_v46 = vrot.slane %v8334_v3, 2  ;;  %v11397_v61 = vrot.slane %v8334_v3, 4  ;;  %v11396_v10 = vrot.slane %v8334_v3, 6  ;;  %v2830_v14 = vsel %vm2660_vm7, %v2769_v32, %v2829_v60 }
 0x454   : > { %v2164_v39 = vadd.f32 %v8066_v6, %v2163_v13  ;;  %v2831_v7 = vsel %vm2662_vm8, %v2770_v59, %v2830_v14  ;;  %v2927_v57 = vsel %vm2660_vm7, %v8372_v48, %v2926_v56 }
 0x455   : > { %v8352_v51 = vperm.slane %v11398_v46, 0  ;;  %v8356_v50 = vperm.slane %v11397_v61, 0  ;;  %v8362_v16 = vperm.slane %v11396_v10, 0  ;;  %v8398_v5 = vsel %vm2664_vm9, %v2771_v23, %v2831_v7 }
 0x456   : > { %v2213_v47 = vmax.f32 %v2164_v39, 0.0  ;;  %v8402_v34 = vsel %vm2662_vm8, %v8378_v22, %v2927_v57 }
 0x457   : > { %v2930_v17 = vsel %vm2652_vm1, %v8356_v50, %v8352_v51  ;;  %11644 = vst [vmem:[#allocation10_spill] sm:$0xff] %v8402_v34 }
 0x458   : > { %2300 = vrot.lane.b32.xlu0 %v2213_v47, %s11514_s29  ;;  %v8390_v38 = vsel %vm2654_vm3, %v8362_v16, %v2930_v17 }
 0x45a   : > { %v2273_v18 = vpop.permute.xlu1 %2272  ;;  %v8383_v25 = vld [vmem:[#allocation3 + $0x78] sm:$0xff] }
 0x45b   : > { %2361 = vst.msk [vmem:[#allocation3 + $0x81] sm:$0xff] %vm2351_vm0, %v2273_v18  ;;  %v2166_v41 = vpop.f32.mrf.mxu0  ;;  %v11394_v9 = vrot.slane %v8383_v25, 2  ;;  %v11393_v40 = vrot.slane %v8383_v25, 4  ;;  %v11391_v13 = vrot.slane %v8383_v25, 6 }
 0x45c   : > { %v2167_v39 = vadd.f32 %v8066_v6, %v2166_v41 }
 0x45d   : > { %v8406_v12 = vperm.slane %v11394_v9, 0  ;;  %v8410_v47 = vperm.slane %v11393_v40, 0  ;;  %v8414_v0 = vperm.slane %v11391_v13, 0  ;;  %v2604_v9 = vperm.slane %v8314_v27, 0 }
 0x45e   : > { %v2214_v32 = vmax.f32 %v2167_v39, 0.0 }
 0x45f   : > { %v3309_v58 = vsel %vm2652_vm1, %v8410_v47, %v8406_v12 }
 0x460   : > { %2302 = vrot.lane.b32.xlu1 %v2214_v32, %s11514_s29  ;;  %v3310_v30 = vsel %vm2654_vm3, %v8414_v0, %v3309_v58 }
 0x462   : > { %v8430_v17 = vld [vmem:[#allocation3 + $0x80] sm:$0xff]  ;;  %v2281_v59 = vpop.permute.xlu2 %2280 }
 0x463   : > { %2365 = vst.msk [vmem:[#allocation3 + $0xb1] sm:$0xff] %vm2351_vm0, %v2281_v59  ;;  %v2169_v60 = vpop.f32.mrf.mxu0  ;;  %v11389_v63 = vrot.slane %v8430_v17, 2  ;;  %v11388_v14 = vrot.slane %v8430_v17, 4  ;;  %v11392_v56 = vperm.slane %v8430_v17, 0  ;;  %v11390_v57 = vrot.slane %v8430_v17, 6 }
 0x464   : > { %v2170_v18 = vadd.f32 %v8066_v6, %v2169_v60 }
 0x465   : > { %v8443_v7 = vperm.slane %v11389_v63, 0  ;;  %v8448_v41 = vperm.slane %v11388_v14, 0  ;;  %v3311_v39 = vsel %vm2656_vm5, %v11392_v56, %v3310_v30  ;;  %v8459_v60 = vperm.slane %v11390_v57, 0  ;;  %v8464_v63 = vld [vmem:[#allocation3] sm:$0xff] }
 0x466   : > { %v2215_v23 = vmax.f32 %v2170_v18, 0.0  ;;  %v11402_v13 = vrot.slane %v8464_v63, 4  ;;  %v11404_v10 = vrot.slane %v8464_v63, 6 }
 0x467   : > { %v3312_v58 = vsel %vm2658_vm6, %v8443_v7, %v3311_v39  ;;  %v11399_v39 = vrot.slane %v8464_v63, 2 }
 0x468   : > { %2304 = vrot.lane.b32.xlu2 %v2215_v23, %s11514_s29  ;;  %v3313_v18 = vsel %vm2660_vm7, %v8448_v41, %v3312_v58  ;;  %v2588_v58 = vperm.slane %v8464_v63, 0 }
 0x469   : > { %v8468_v30 = vsel %vm2662_vm8, %v8459_v60, %v3313_v18  ;;  %v8479_v56 = vperm.slane %v11399_v39, 0  ;;  %v2673_v39 = vsel %vm2652_vm1, %v8323_v45, %v2604_v9 }
 0x46a   : > { %v2277_v32 = vpop.permute.xlu0 %2276  ;;  %11645 = vst [vmem:[#allocation21_spill] sm:$0xff] %v8468_v30  ;;  %v2674_v9 = vsel %vm2654_vm3, %v8325_v42, %v2673_v39 }
 0x46b   : > { %2363 = vst.msk [vmem:[#allocation3 + $0x99] sm:$0xff] %vm2351_vm0, %v2277_v32  ;;  %v2172_v59 = vpop.f32.mrf.mxu0  ;;  %v2653_v27 = vsel %vm2652_vm1, %v8479_v56, %v2588_v58  ;;  %v8521_v58 = vperm.slane %v11404_v10, 0  ;;  %v2675_v10 = vsel %vm2656_vm5, %v8341_v11, %v2674_v9  ;;  %v2612_v9 = vperm.slane %v8334_v3, 0 }
 0x46c   : > { %v2173_v14 = vadd.f32 %v8066_v6, %v2172_v59  ;;  %11646 = vst [vmem:[#allocation27_spill] sm:$0xff] %v8479_v56 }
 0x46d   : > { %11649 = vst [vmem:[#allocation35_spill] sm:$0xff] %v8521_v58 }
 0x46e   : > { %v2216_v23 = vmax.f32 %v2173_v14, 0.0 }
 0x470   : > { %2306 = vrot.lane.b32.xlu0 %v2216_v23, %s11514_s29 }
 0x472   : > { %v8472_v32 = vld [vmem:[#allocation3 + $0x98] sm:$0xff]  ;;  %v2279_v57 = vpop.permute.xlu1 %2278 }
 0x473   : > { %2364 = vst.msk [vmem:[#allocation3 + $0xa9] sm:$0xff] %vm2351_vm0, %v2279_v57  ;;  %v2175_v59 = vpop.f32.mrf.mxu0  ;;  %v11400_v14 = vrot.slane %v8472_v32, 2  ;;  %v11401_v18 = vrot.slane %v8472_v32, 4  ;;  %v11405_v23 = vperm.slane %v8472_v32, 0  ;;  %v11403_v19 = vrot.slane %v8472_v32, 6 }
 0x474   : > { %v2176_v40 = vadd.f32 %v8066_v6, %v2175_v59  ;;  %v8500_v59 = vperm.slane %v11402_v13, 0 }
 0x475   : > { %v8490_v57 = vperm.slane %v11400_v14, 0  ;;  %v8494_v61 = vperm.slane %v11401_v18, 0  ;;  %v2932_v14 = vsel %vm2656_vm5, %v11405_v23, %v8390_v38  ;;  %v8509_v18 = vld [vmem:[#allocation3 + $0x8] sm:$0xff]  ;;  %v2187_v23 = vpop.f32.mrf.mxu2 }
 0x476   : > { %v2217_v46 = vmax.f32 %v2176_v40, 0.0  ;;  %11647 = vst [vmem:[#allocation30_spill] sm:$0xff] %v8500_v59  ;;  %v8513_v40 = vperm.slane %v11403_v19, 0  ;;  %v2655_v13 = vsel %vm2654_vm3, %v8500_v59, %v2653_v27  ;;  %v11409_v42 = vrot.slane %v8509_v18, 2 }
 0x477   : > { %11648 = vst [vmem:[#allocation33_spill] sm:$0xff] %v8509_v18  ;;  %v2933_v45 = vsel %vm2658_vm6, %v8490_v57, %v2932_v14  ;;  %v2657_v27 = vsel %vm2656_vm5, %v8521_v58, %v2655_v13  ;;  %v2188_v11 = vadd.f32 %v8066_v6, %v2187_v23  ;;  %v11412_v53 = vrot.slane %v8509_v18, 6 }
 0x478   : > { %2308 = vrot.lane.b32.xlu1 %v2217_v46, %s11514_s29  ;;  %v2934_v38 = vsel %vm2660_vm7, %v8494_v61, %v2933_v45  ;;  %v11407_v45 = vperm.slane %v8509_v18, 0  ;;  %v8545_v34 = vperm.slane %v11409_v42, 0 }
 0x479   : > { %v8529_v19 = vsel %vm2662_vm8, %v8513_v40, %v2934_v38  ;;  %v11408_v38 = vrot.slane %v8509_v18, 4 }
 0x47a   : > { %v2287_v46 = vpop.permute.xlu2 %2286  ;;  %11650 = vst [vmem:[#allocation37_spill] sm:$0xff] %v8545_v34  ;;  %v2659_v13 = vsel %vm2658_vm6, %v11407_v45, %v2657_v27 }
 0x47b   : > { %2368 = vst.msk [vmem:[#allocation3 + $0xd9] sm:$0xff] %vm2351_vm0, %v2287_v46  ;;  %v2178_v14 = vpop.f32.mrf.mxu0  ;;  %v2676_v46 = vsel %vm2658_vm6, %v2608_v44, %v2675_v10  ;;  %v2661_v45 = vsel %vm2660_vm7, %v8545_v34, %v2659_v13 }
 0x47c   : > { %v2179_v39 = vadd.f32 %v8066_v6, %v2178_v14  ;;  %v2596_v14 = vperm.slane %v8223_v43, 0  ;;  %v8561_v43 = vperm.slane %v11408_v38, 0  ;;  %v2221_v38 = vmax.f32 %v2188_v11, 0.0 }
 0x47e   : > { %v2218_v52 = vmax.f32 %v2179_v39, 0.0  ;;  %v2666_v10 = vsel %vm2652_vm1, %v8231_v29, %v2596_v14  ;;  %v2677_v39 = vsel %vm2660_vm7, %v8358_v26, %v2676_v46  ;;  %11651 = vst [vmem:[#allocation39_spill] sm:$0xff] %v8561_v43  ;;  %v2663_v11 = vsel %vm2662_vm8, %v8561_v43, %v2661_v45 }
 0x47f   : > { %v2678_v58 = vsel %vm2662_vm8, %v8372_v48, %v2677_v39 }
 0x480   : > { %2310 = vrot.lane.b32.xlu2 %v2218_v52, %s11514_s29  ;;  %v2680_v52 = vsel %vm2652_vm1, %v8352_v51, %v2612_v9  ;;  %v2667_v51 = vsel %vm2654_vm3, %v8233_v54, %v2666_v10  ;;  %v8578_v9 = vperm.slane %v11412_v53, 0  ;;  %v8604_v45 = vsel %vm2664_vm9, %v8378_v22, %v2678_v58 }
 0x481   : > { %v2681_v54 = vsel %vm2654_vm3, %v8356_v50, %v2680_v52  ;;  %v2668_v10 = vsel %vm2656_vm5, %v8235_v37, %v2667_v51  ;;  %11654 = vst [vmem:[#allocation44_spill] sm:$0xff] %v8604_v45 }
 0x482   : > { %v2283_v44 = vpop.permute.xlu0 %2282  ;;  %v8565_v23 = vld [vmem:[#allocation3 + $0xd8] sm:$0xff]  ;;  %11652 = vst [vmem:[#allocation42_spill] sm:$0xff] %v8578_v9  ;;  %v2665_v50 = vsel %vm2664_vm9, %v8578_v9, %v2663_v11  ;;  %v2682_v37 = vsel %vm2656_vm5, %v8362_v16, %v2681_v54 }
 0x483   : > { %2366 = vst.msk [vmem:[#allocation3 + $0xc1] sm:$0xff] %vm2351_vm0, %v2283_v44  ;;  %v2181_v27 = vpop.f32.mrf.mxu0  ;;  %v2540_v29 = vrot.slane %v8565_v23, 2  ;;  %v2541_v14 = vrot.slane %v8565_v23, 4  ;;  %v2542_v26 = vrot.slane %v8565_v23, 6  ;;  %v3166_v51 = vperm.slane %v8565_v23, 1 }
 0x484   : > { %v2182_v46 = vadd.f32 %v8066_v6, %v2181_v27 }
 0x485   : > { %v8580_v44 = vperm.slane %v2540_v29, 0  ;;  %v8582_v42 = vperm.slane %v2541_v14, 0  ;;  %v8584_v13 = vperm.slane %v2542_v26, 0  ;;  %v3167_v22 = vperm.slane %v2540_v29, 1 }
 0x486   : > { %v2219_v34 = vmax.f32 %v2182_v46, 0.0  ;;  %v11653_v46 = vperm.slane %v8246_v35, 0  ;;  %v3168_v58 = vperm.slane %v2541_v14, 1  ;;  %v3169_v54 = vperm.slane %v2542_v26, 1 }
 0x487   : > { %v3323_v27 = vsel %vm2652_vm1, %v8582_v42, %v8580_v44  ;;  %v3226_v43 = vsel %vm2652_vm1, %v3167_v22, %v3166_v51 }
 0x488   : > { %2316 = vrot.lane.b32.xlu2 %v2221_v38, %s11514_s29  ;;  %2312 = vrot.lane.b32.xlu0 %v2219_v34, %s11514_s29  ;;  %v2669_v48 = vsel %vm2658_vm6, %v11653_v46, %v2668_v10  ;;  %v8612_v39 = vsel %vm2654_vm3, %v8584_v13, %v3323_v27  ;;  %v11655_v34 = vperm.slane %v8472_v32, 0 }
 0x48a   : > { %v2285_v38 = vpop.permute.xlu1 %2284  ;;  %v2683_v35 = vsel %vm2658_vm6, %v11655_v34, %v2682_v37  ;;  %v2408_v52 = vld [vmem:[#allocation3 + $0xc0] sm:$0xff] }
 0x48b   : > { %2367 = vst.msk [vmem:[#allocation3 + $0xc9] sm:$0xff] %vm2351_vm0, %v2285_v38  ;;  %v2184_v11 = vpop.f32.mrf.mxu0  ;;  %v2534_v10 = vrot.slane %v2408_v52, 2  ;;  %v2535_v46 = vrot.slane %v2408_v52, 4  ;;  %v2536_v16 = vrot.slane %v2408_v52, 6  ;;  %v2620_v53 = vperm.slane %v2408_v52, 0 }
 0x48c   : > { %v2185_v27 = vadd.f32 %v8066_v6, %v2184_v11  ;;  %v2780_v9 = vperm.slane %v2408_v52, 1  ;;  %v3227_v38 = vsel %vm2654_vm3, %v3168_v58, %v3226_v43 }
 0x48d   : > { %v2621_v59 = vperm.slane %v2534_v10, 0  ;;  %v2622_v37 = vperm.slane %v2535_v46, 0  ;;  %v2623_v34 = vperm.slane %v2536_v16, 0  ;;  %v2781_v56 = vperm.slane %v2534_v10, 1 }
 0x48e   : > { %v2220_v55 = vmax.f32 %v2185_v27, 0.0  ;;  %v2782_v29 = vperm.slane %v2535_v46, 1  ;;  %v2783_v14 = vperm.slane %v2536_v16, 1  ;;  %v8625_v26 = vsel %vm2656_vm5, %v3169_v54, %v3227_v38 }
 0x48f   : > { %v2687_v1 = vsel %vm2652_vm1, %v2621_v59, %v2620_v53  ;;  %v2840_v30 = vsel %vm2652_vm1, %v2781_v56, %v2780_v9  ;;  %v2937_v6 = vsel %vm2652_vm1, %v2622_v37, %v2621_v59  ;;  %v2670_v56 = vsel %vm2660_vm7, %v8255_v36, %v2669_v48 }
 0x490   : > { %2314 = vrot.lane.b32.xlu1 %v2220_v55, %s11514_s29  ;;  %2719 = vrot.lane.b32.xlu2 %v8604_v45, %s6526_s20  ;;  %v2841_v52 = vsel %vm2654_vm3, %v2782_v29, %v2840_v30  ;;  %v2938_v51 = vsel %vm2654_vm3, %v2623_v34, %v2937_v6  ;;  %v2684_v55 = vsel %vm2660_vm7, %v8490_v57, %v2683_v35 }
 0x491   : > { %2715 = vrot.lane.b32.xlu0 %v2665_v50, %s6526_s20  ;;  %v2842_v53 = vsel %vm2656_vm5, %v2783_v14, %v2841_v52  ;;  %v2688_v59 = vsel %vm2654_vm3, %v2622_v37, %v2687_v1  ;;  %v2671_v50 = vsel %vm2662_vm8, %v8257_v21, %v2670_v56  ;;  %v2685_v36 = vsel %vm2662_vm8, %v8494_v61, %v2684_v55 }
 0x492   : > { %v2409_v43 = vld [vmem:[#allocation3 + $0xc8] sm:$0xff]  ;;  %v2293_v9 = vpop.permute.xlu2 %2292  ;;  %v2689_v16 = vsel %vm2656_vm5, %v2623_v34, %v2688_v59  ;;  %v8650_v27 = vsel %vm2664_vm9, %v8264_v20, %v2671_v50  ;;  %v8657_v61 = vsel %vm2664_vm9, %v8513_v40, %v2685_v36  ;;  %v11660_v55 = vrot.slane %v8464_v63, 2 }
 0x493   : > { %2371 = vst.msk [vmem:[#allocation3 + $0xf9] sm:$0xff] %vm2351_vm0, %v2293_v9  ;;  %v2537_v22 = vrot.slane %v2409_v43, 2  ;;  %v2538_v30 = vrot.slane %v2409_v43, 4  ;;  %v2624_v58 = vperm.slane %v2409_v43, 0  ;;  %v2539_v11 = vrot.slane %v2409_v43, 6 }
 0x494   : > { %v2784_v10 = vperm.slane %v2409_v43, 1  ;;  %11656 = vst [vmem:[#allocation47_spill] sm:$0xff] %v8650_v27  ;;  %v2748_v9 = vperm.slane %v8464_v63, 1  ;;  %v2749_v59 = vperm.slane %v11660_v55, 1 }
 0x495   : > { %v2625_v48 = vperm.slane %v2537_v22, 0  ;;  %v2626_v46 = vperm.slane %v2538_v30, 0  ;;  %v2690_v57 = vsel %vm2658_vm6, %v2624_v58, %v2689_v16  ;;  %v2785_v1 = vperm.slane %v2537_v22, 1  ;;  %11657 = vst [vmem:[#allocation49_spill] sm:$0xff] %v8657_v61 }
 0x496   : > { %v2786_v35 = vperm.slane %v2538_v30, 1  ;;  %v2843_v54 = vsel %vm2658_vm6, %v2784_v10, %v2842_v53  ;;  %v2939_v21 = vsel %vm2656_vm5, %v2624_v58, %v2938_v51  ;;  %v2787_v37 = vperm.slane %v2539_v11, 1 }
 0x497   : > { %v2844_v34 = vsel %vm2660_vm7, %v2785_v1, %v2843_v54  ;;  %v2940_v29 = vsel %vm2658_vm6, %v2625_v48, %v2939_v21  ;;  %v2691_v20 = vsel %vm2660_vm7, %v2625_v48, %v2690_v57  ;;  %v2627_v6 = vperm.slane %v2539_v11, 0 }
 0x498   : > { %2717 = vrot.lane.b32.xlu1 %v8650_v27, %s6526_s20  ;;  %v2845_v14 = vsel %vm2662_vm8, %v2786_v35, %v2844_v34  ;;  %v2941_v40 = vsel %vm2660_vm7, %v2626_v46, %v2940_v29  ;;  %v2692_v51 = vsel %vm2662_vm8, %v2626_v46, %v2691_v20  ;;  %v2772_v10 = vperm.slane %v8334_v3, 1 }
 0x499   : > { %2721 = vrot.lane.b32.xlu0 %v8657_v61, %s6526_s20  ;;  %v8666_v52 = vsel %vm2664_vm9, %v2787_v37, %v2845_v14  ;;  %v8672_v56 = vsel %vm2662_vm8, %v2627_v6, %v2941_v40  ;;  %v8675_v53 = vsel %vm2664_vm9, %v2627_v6, %v2692_v51  ;;  %v11661_v48 = vrot.slane %v8464_v63, 4 }
 0x49a   : > { %v2289_v38 = vpop.permute.xlu0 %2288  ;;  %11658 = vst [vmem:[#allocation9_spill] sm:$0xff] %v8672_v56  ;;  %v11662_v16 = vrot.slane %v8334_v3, 2  ;;  %v2812_v54 = vsel %vm2652_vm1, %v2749_v59, %v2748_v9  ;;  %v11663_v29 = vrot.slane %v8334_v3, 4  ;;  %v11664_v40 = vrot.slane %v8464_v63, 6 }
 0x49b   : > { %2369 = vst.msk [vmem:[#allocation3 + $0xe1] sm:$0xff] %vm2351_vm0, %v2289_v38  ;;  %v2750_v46 = vperm.slane %v11661_v48, 1 }
 0x49c   : > { %11659 = vst [vmem:[#allocation12_spill] sm:$0xff] %v8675_v53  ;;  %v2773_v57 = vperm.slane %v11662_v16, 1  ;;  %v2774_v20 = vperm.slane %v11663_v29, 1  ;;  %v2751_v51 = vperm.slane %v11664_v40, 1 }
 0x49d   : > { %v2813_v55 = vsel %vm2654_vm3, %v2750_v46, %v2812_v54  ;;  %v11666_v46 = vrot.slane %v8334_v3, 6  ;;  %v2752_v54 = vperm.slane %v8509_v18, 1 }
 0x49e   : > { %v2833_v59 = vsel %vm2652_vm1, %v2773_v57, %v2772_v10 }
 0x49f   : > { %v2775_v10 = vperm.slane %v11666_v46, 1 }
 0x4a0   : > { %2723 = vrot.lane.b32.xlu1 %v8675_v53, %s6526_s20 }
 0x4a2   : > { %v2291_v43 = vpop.permute.xlu1 %2290  ;;  %v8682_v22 = vld [vmem:[#allocation3 + $0xe0] sm:$0xff] }
 0x4a3   : > { %2370 = vst.msk [vmem:[#allocation3 + $0xf1] sm:$0xff] %vm2351_vm0, %v2291_v43  ;;  %v2543_v30 = vrot.slane %v8682_v22, 2  ;;  %v2544_v58 = vrot.slane %v8682_v22, 4  ;;  %v2545_v50 = vrot.slane %v8682_v22, 6  ;;  %v11418_v11 = vperm.slane %v8682_v22, 0 }
 0x4a4   : > { %v3170_v36 = vperm.slane %v8682_v22, 1 }
 0x4a5   : > { %v8695_v1 = vperm.slane %v2543_v30, 0  ;;  %v8697_v35 = vperm.slane %v2544_v58, 0  ;;  %v3325_v21 = vsel %vm2656_vm5, %v11418_v11, %v8612_v39  ;;  %v3171_v37 = vperm.slane %v2543_v30, 1 }
 0x4a6   : > { %v3172_v34 = vperm.slane %v2544_v58, 1  ;;  %v8706_v14 = vperm.slane %v2545_v50, 0  ;;  %v3229_v6 = vsel %vm2658_vm6, %v3170_v36, %v8625_v26  ;;  %v3173_v39 = vperm.slane %v2545_v50, 1 }
 0x4a7   : > { %v3326_v38 = vsel %vm2658_vm6, %v8695_v1, %v3325_v21  ;;  %v3230_v9 = vsel %vm2660_vm7, %v3171_v37, %v3229_v6  ;;  %v2814_v37 = vsel %vm2656_vm5, %v2751_v51, %v2813_v55 }
 0x4a8   : > { %v3327_v43 = vsel %vm2660_vm7, %v8697_v35, %v3326_v38  ;;  %v3231_v58 = vsel %vm2662_vm8, %v3172_v34, %v3230_v9  ;;  %v2834_v34 = vsel %vm2654_vm3, %v2774_v20, %v2833_v59  ;;  %v2815_v59 = vsel %vm2658_vm6, %v2752_v54, %v2814_v37 }
 0x4a9   : > { %v8721_v30 = vsel %vm2662_vm8, %v8706_v14, %v3327_v43  ;;  %v8725_v48 = vsel %vm2664_vm9, %v3173_v39, %v3231_v58  ;;  %v11667_v39 = vrot.slane %v8509_v18, 2  ;;  %v11668_v58 = vrot.slane %v8509_v18, 4 }
 0x4aa   : > { %v2299_v26 = vpop.permute.xlu2 %2298  ;;  %v2414_v36 = vld [vmem:[#allocation3 + $0xf0] sm:$0xff]  ;;  %v2415_v63 = vld [vmem:[#allocation3 + $0xf8] sm:$0xff]  ;;  %11665 = vst [vmem:[#allocation16_spill] sm:$0xff] %v8725_v48 }
 0x4ab   : > { %2374 = vst.msk [vmem:[#allocation3 + $0x121] sm:$0xff] %vm2351_vm0, %v2299_v26  ;;  %v2546_v50 = vrot.slane %v2414_v36, 2  ;;  %v2547_v16 = vrot.slane %v2414_v36, 4  ;;  %v2548_v21 = vrot.slane %v2414_v36, 6  ;;  %v2549_v57 = vrot.slane %v2415_v63, 2 }
 0x4ac   : > { %v2550_v29 = vrot.slane %v2415_v63, 4  ;;  %v2628_v38 = vperm.slane %v2414_v36, 0  ;;  %v2753_v9 = vperm.slane %v11667_v39, 1  ;;  %v2754_v26 = vperm.slane %v11668_v58, 1 }
 0x4ad   : > { %v2629_v6 = vperm.slane %v2546_v50, 0  ;;  %v2630_v40 = vperm.slane %v2547_v16, 0  ;;  %v2631_v43 = vperm.slane %v2548_v21, 0  ;;  %v2789_v3 = vperm.slane %v2546_v50, 1 }
 0x4ae   : > { %v2551_v46 = vrot.slane %v2415_v63, 6  ;;  %v2788_v56 = vperm.slane %v2414_v36, 1  ;;  %v2790_v53 = vperm.slane %v2547_v16, 1  ;;  %v2632_v51 = vperm.slane %v2415_v63, 0 }
 0x4af   : > { %v2694_v11 = vsel %vm2652_vm1, %v2629_v6, %v2628_v38  ;;  %v2633_v55 = vperm.slane %v2549_v57, 0  ;;  %v2634_v27 = vperm.slane %v2550_v29, 0  ;;  %v2944_v45 = vsel %vm2652_vm1, %v2630_v40, %v2629_v6 }
 0x4b0   : > { %v2695_v20 = vsel %vm2654_vm3, %v2630_v40, %v2694_v11  ;;  %v2847_v39 = vsel %vm2652_vm1, %v2789_v3, %v2788_v56  ;;  %v2791_v36 = vperm.slane %v2548_v21, 1  ;;  %v2945_v38 = vsel %vm2654_vm3, %v2631_v43, %v2944_v45 }
 0x4b1   : > { %v2696_v61 = vsel %vm2656_vm5, %v2631_v43, %v2695_v20  ;;  %v2848_v16 = vsel %vm2654_vm3, %v2790_v53, %v2847_v39  ;;  %v2635_v11 = vperm.slane %v2551_v46, 0  ;;  %v2792_v40 = vperm.slane %v2415_v63, 1 }
 0x4b2   : > { %v2295_v58 = vpop.permute.xlu0 %2294  ;;  %v2697_v50 = vsel %vm2658_vm6, %v2632_v51, %v2696_v61  ;;  %v8744_v48 = vld [vmem:[#allocation3 + $0x120] sm:$0xff]  ;;  %v2849_v21 = vsel %vm2656_vm5, %v2791_v36, %v2848_v16  ;;  %v2816_v45 = vsel %vm2660_vm7, %v2753_v9, %v2815_v59  ;;  %v2776_v43 = vperm.slane %v8472_v32, 1 }
 0x4b3   : > { %2372 = vst.msk [vmem:[#allocation3 + $0x109] sm:$0xff] %vm2351_vm0, %v2295_v58  ;;  %v2698_v54 = vsel %vm2660_vm7, %v2633_v55, %v2697_v50  ;;  %v2558_v37 = vrot.slane %v8744_v48, 2  ;;  %v2559_v56 = vrot.slane %v8744_v48, 4  ;;  %v2560_v61 = vrot.slane %v8744_v48, 6 }
 0x4b4   : > { %v2699_v6 = vsel %vm2662_vm8, %v2634_v27, %v2698_v54  ;;  %v2793_v3 = vperm.slane %v2549_v57, 1  ;;  %v2794_v39 = vperm.slane %v2550_v29, 1  ;;  %v2850_v58 = vsel %vm2658_vm6, %v2792_v40, %v2849_v21 }
 0x4b5   : > { %v8756_v53 = vsel %vm2664_vm9, %v2635_v11, %v2699_v6  ;;  %v8764_v20 = vperm.slane %v2558_v37, 0  ;;  %v8768_v63 = vperm.slane %v2559_v56, 0  ;;  %v11669_v50 = vrot.slane %v8509_v18, 6 }
 0x4b6   : > { %2725 = vrot.lane.b32.xlu2 %v8756_v53, %s6526_s20  ;;  %v2795_v59 = vperm.slane %v2551_v46, 1  ;;  %v2851_v57 = vsel %vm2660_vm7, %v2793_v3, %v2850_v58  ;;  %v2946_v36 = vsel %vm2656_vm5, %v2632_v51, %v2945_v38  ;;  %v2817_v16 = vsel %vm2662_vm8, %v2754_v26, %v2816_v45 }
 0x4b7   : > { %v2755_v9 = vperm.slane %v11669_v50, 1  ;;  %v8778_v54 = vperm.slane %v2560_v61, 0  ;;  %v2852_v6 = vsel %vm2662_vm8, %v2794_v39, %v2851_v57  ;;  %v2947_v29 = vsel %vm2658_vm6, %v2633_v55, %v2946_v36 }
 0x4b8   : > { %v8783_v40 = vsel %vm2664_vm9, %v2795_v59, %v2852_v6  ;;  %v2948_v21 = vsel %vm2660_vm7, %v2634_v27, %v2947_v29  ;;  %v11670_v3 = vrot.slane %v8472_v32, 2  ;;  %v2835_v51 = vsel %vm2656_vm5, %v2775_v10, %v2834_v34 }
 0x4b9   : > { %v8792_v38 = vsel %vm2662_vm8, %v2635_v11, %v2948_v21  ;;  %v2951_v55 = vsel %vm2652_vm1, %v8768_v63, %v8764_v20  ;;  %v2818_v45 = vsel %vm2664_vm9, %v2755_v9, %v2817_v16  ;;  %v2836_v10 = vsel %vm2658_vm6, %v2776_v43, %v2835_v51 }
 0x4ba   : > { %v2297_v46 = vpop.permute.xlu1 %2296  ;;  %v2777_v58 = vperm.slane %v11670_v3, 1  ;;  %v8789_v26 = vld [vmem:[#allocation3 + $0x108] sm:$0xff]  ;;  %11671 = vst [vmem:[#allocation11_spill] sm:$0xff] %v8792_v38  ;;  %v8805_v34 = vsel %vm2654_vm3, %v8778_v54, %v2951_v55  ;;  %v11672_v43 = vrot.slane %v8472_v32, 4  ;;  %v11673_v3 = vrot.slane %v8472_v32, 6 }
 0x4bb   : > { %2373 = vst.msk [vmem:[#allocation3 + $0x111] sm:$0xff] %vm2351_vm0, %v2297_v46  ;;  %v11428_v27 = vrot.slane %v8789_v26, 2  ;;  %v11427_v39 = vrot.slane %v8789_v26, 4  ;;  %v11426_v50 = vrot.slane %v8789_v26, 6 }
 0x4bc   : > { %v2778_v57 = vperm.slane %v11672_v43, 1  ;;  %v2837_v36 = vsel %vm2660_vm7, %v2777_v58, %v2836_v10  ;;  %v2779_v51 = vperm.slane %v11673_v3, 1  ;;  %v3537_v10 = vld [vmem:[%s11674_s3 + $0x40] sm:$0xff] }
 0x4bd   : > { %v8809_v11 = vperm.slane %v11428_v27, 0  ;;  %v8813_v59 = vperm.slane %v11427_v39, 0  ;;  %v8817_v9 = vperm.slane %v11426_v50, 0  ;;  %3574 = vmatpush.msrb.mxu0 %v3537_v10  ;;  %6376 = vmatpush.msra.mxu1 %v3537_v10  ;;  %v2797_v10 = vperm.slane %v2558_v37, 1 }
 0x4be   : > { %2868 = vrot.lane.b32.xlu2 %v2818_v45, %s11512_s28  ;;  %v2838_v21 = vsel %vm2662_vm8, %v2778_v57, %v2837_v36  ;;  %v2636_v50 = vperm.slane %v8744_v48, 0 }
 0x4bf   : > { %v3330_v16 = vsel %vm2652_vm1, %v8813_v59, %v8809_v11  ;;  %v8842_v57 = vsel %vm2664_vm9, %v2779_v51, %v2838_v21 }
 0x4c0   : > { %v3331_v6 = vsel %vm2654_vm3, %v8817_v9, %v3330_v16 }
 0x4c2   : > { %v2305_v29 = vpop.permute.xlu2 %2304  ;;  %v8829_v46 = vld [vmem:[#allocation3 + $0x110] sm:$0xff] }
 0x4c3   : > { %2377 = vst.msk [vmem:[#allocation3 + $0x141] sm:$0xff] %vm2351_vm0, %v2305_v29  ;;  %v11425_v55 = vrot.slane %v8829_v46, 2  ;;  %v11423_v58 = vrot.slane %v8829_v46, 4  ;;  %v11429_v45 = vperm.slane %v8829_v46, 0  ;;  %v11424_v43 = vrot.slane %v8829_v46, 6 }
 0x4c5   : > { %v8846_v32 = vperm.slane %v11425_v55, 0  ;;  %v8850_v36 = vperm.slane %v11423_v58, 0  ;;  %v3332_v16 = vsel %vm2656_vm5, %v11429_v45, %v3331_v6  ;;  %v8859_v29 = vperm.slane %v11424_v43, 0  ;;  %v6447_v43 = vld [vmem:[#allocation3 + $0x48] sm:$0xff] }
 0x4c6   : > { %2874 = vrot.lane.b32.xlu2 %v8842_v57, %s11512_s28  ;;  %v2796_v6 = vperm.slane %v8744_v48, 1  ;;  %v2989_v55 = vperm.slane %v6447_v43, 0 }
 0x4c7   : > { %v3333_v21 = vsel %vm2658_vm6, %v8846_v32, %v3332_v16  ;;  %v2798_v16 = vperm.slane %v2559_v56, 1  ;;  %v2799_v56 = vperm.slane %v2560_v61, 1 }
 0x4c8   : > { %v3334_v3 = vsel %vm2660_vm7, %v8850_v36, %v3333_v21  ;;  %v2854_v21 = vsel %vm2652_vm1, %v2797_v10, %v2796_v6  ;;  %v3052_v37 = vsel %vm2652_vm1, %v8204_v2, %v2989_v55 }
 0x4c9   : > { %v8869_v58 = vsel %vm2662_vm8, %v8859_v29, %v3334_v3  ;;  %v2701_v3 = vsel %vm2652_vm1, %v8764_v20, %v2636_v50  ;;  %v2855_v39 = vsel %vm2654_vm3, %v2798_v16, %v2854_v21 }
 0x4ca   : > { %v2301_v51 = vpop.permute.xlu0 %2300  ;;  %v2702_v45 = vsel %vm2654_vm3, %v8768_v63, %v2701_v3  ;;  %v2856_v20 = vsel %vm2656_vm5, %v2799_v56, %v2855_v39  ;;  %v11675_v3 = vperm.slane %v8282_v28, 0 }
 0x4cb   : > { %2375 = vst.msk [vmem:[#allocation3 + $0x129] sm:$0xff] %vm2351_vm0, %v2301_v51  ;;  %v3053_v51 = vsel %vm2654_vm3, %v8206_v49, %v3052_v37  ;;  %v2703_v61 = vsel %vm2656_vm5, %v8778_v54, %v2702_v45 }
 0x4cc   : > { %v3054_v49 = vsel %vm2656_vm5, %v8208_v33, %v3053_v51  ;;  %v3013_v33 = vperm.slane %v8565_v23, 0 }
 0x4cd   : > { %v3055_v38 = vsel %vm2658_vm6, %v11675_v3, %v3054_v49 }
 0x4d2   : > { %v2303_v27 = vpop.permute.xlu1 %2302  ;;  %v2421_v43 = vld [vmem:[#allocation3 + $0x128] sm:$0xff] }
 0x4d3   : > { %2376 = vst.msk [vmem:[#allocation3 + $0x139] sm:$0xff] %vm2351_vm0, %v2303_v27  ;;  %v2561_v10 = vrot.slane %v2421_v43, 2  ;;  %v2562_v2 = vrot.slane %v2421_v43, 4  ;;  %v2563_v55 = vrot.slane %v2421_v43, 6  ;;  %v2800_v6 = vperm.slane %v2421_v43, 1 }
 0x4d4   : > { %v2640_v50 = vperm.slane %v2421_v43, 0 }
 0x4d5   : > { %v2801_v16 = vperm.slane %v2561_v10, 1  ;;  %v2802_v21 = vperm.slane %v2562_v2, 1  ;;  %v2857_v48 = vsel %vm2658_vm6, %v2800_v6, %v2856_v20  ;;  %v2641_v63 = vperm.slane %v2561_v10, 0 }
 0x4d6   : > { %v2642_v37 = vperm.slane %v2562_v2, 0  ;;  %v2704_v27 = vsel %vm2658_vm6, %v2640_v50, %v2703_v61  ;;  %v2803_v39 = vperm.slane %v2563_v55, 1  ;;  %v2953_v51 = vsel %vm2656_vm5, %v2640_v50, %v8805_v34 }
 0x4d7   : > { %v2858_v43 = vsel %vm2660_vm7, %v2801_v16, %v2857_v48  ;;  %v2643_v6 = vperm.slane %v2563_v55, 0  ;;  %v2705_v54 = vsel %vm2660_vm7, %v2641_v63, %v2704_v27  ;;  %v2954_v45 = vsel %vm2658_vm6, %v2641_v63, %v2953_v51  ;;  %v2387_v55 = vld [vmem:[#allocation3 + $0x18] sm:$0xff]  ;;  %v3536_v16 = vld [vmem:[%s11674_s3 + $0x38] sm:$0xff] }
 0x4d8   : > { %v2859_v56 = vsel %vm2662_vm8, %v2802_v21, %v2858_v43  ;;  %v2706_v28 = vsel %vm2662_vm8, %v2642_v37, %v2705_v54  ;;  %v3073_v2 = vsel %vm2652_vm1, %v8580_v44, %v3013_v33  ;;  %v2955_v23 = vsel %vm2660_vm7, %v2642_v37, %v2954_v45  ;;  %3575 = vmatpush.msrb.mxu0 %v3536_v16 }
 0x4d9   : > { %v8907_v10 = vsel %vm2664_vm9, %v2803_v39, %v2859_v56  ;;  %v8916_v34 = vsel %vm2664_vm9, %v2643_v6, %v2706_v28  ;;  %v8919_v50 = vsel %vm2662_vm8, %v2643_v6, %v2955_v23  ;;  %v3056_v44 = vsel %vm2660_vm7, %v8291_v8, %v3055_v38  ;;  %6377 = vmatpush.msra.mxu1 %v3536_v16 }
 0x4da   : > { %v2311_v20 = vpop.permute.xlu2 %2310  ;;  %2880 = vrot.lane.b32.xlu2 %v8907_v10, %s11512_s28  ;;  %2727 = vrot.lane.b32.xlu0 %v8916_v34, %s6526_s20  ;;  %v3074_v49 = vsel %vm2654_vm3, %v8582_v42, %v3073_v2  ;;  %v2492_v21 = vrot.slane %v2387_v55, 2  ;;  %v3057_v48 = vsel %vm2662_vm8, %v8293_v62, %v3056_v44  ;;  %v11676_v63 = vperm.slane %v8682_v22, 0  ;;  %v8946_v22 = vld [vmem:[#allocation3 + $0x20] sm:$0xff] }
 0x4db   : > { %2380 = vst.msk [vmem:[#allocation3 + $0x169] sm:$0xff] %vm2351_vm0, %v2311_v20  ;;  %v3075_v61 = vsel %vm2656_vm5, %v8584_v13, %v3074_v49  ;;  %v2493_v38 = vrot.slane %v2387_v55, 4  ;;  %v3058_v42 = vsel %vm2664_vm9, %v8299_v15, %v3057_v48  ;;  %v3134_v37 = vperm.slane %v2387_v55, 1 }
 0x4dc   : > { %v3076_v8 = vsel %vm2658_vm6, %v11676_v63, %v3075_v61  ;;  %v3135_v27 = vperm.slane %v2492_v21, 1  ;;  %v2494_v13 = vrot.slane %v2387_v55, 6  ;;  %v2981_v33 = vperm.slane %v2387_v55, 0 }
 0x4dd   : > { %v3077_v62 = vsel %vm2660_vm7, %v8695_v1, %v3076_v8  ;;  %v3136_v15 = vperm.slane %v2493_v38, 1  ;;  %v8950_v51 = vperm.slane %v2492_v21, 0  ;;  %v2495_v6 = vrot.slane %v8946_v22, 2 }
 0x4de   : > { %v3198_v43 = vsel %vm2652_vm1, %v3135_v27, %v3134_v37  ;;  %v3078_v56 = vsel %vm2662_vm8, %v8697_v35, %v3077_v62  ;;  %v3137_v54 = vperm.slane %v2494_v13, 1  ;;  %v2997_v1 = vperm.slane %v8383_v25, 0 }
 0x4df   : > { %v3199_v45 = vsel %vm2654_vm3, %v3136_v15, %v3198_v43  ;;  %v8957_v28 = vperm.slane %v2493_v38, 0  ;;  %v3079_v2 = vsel %vm2664_vm9, %v8706_v14, %v3078_v56  ;;  %v3045_v23 = vsel %vm2652_vm1, %v8950_v51, %v2981_v33 }
 0x4e0   : > { %v3059_v35 = vsel %vm2652_vm1, %v8406_v12, %v2997_v1  ;;  %v11430_v44 = vrot.slane %v8946_v22, 4  ;;  %v3138_v16 = vperm.slane %v8946_v22, 1  ;;  %v8972_v21 = vperm.slane %v2495_v6, 1 }
 0x4e1   : > { %v3200_v48 = vsel %vm2656_vm5, %v3137_v54, %v3199_v45  ;;  %v8975_v61 = vperm.slane %v2494_v13, 0  ;;  %v11678_v12 = vrot.slane %v8383_v25, 2  ;;  %v3046_v37 = vsel %vm2654_vm3, %v8957_v28, %v3045_v23 }
 0x4e2   : > { %v2317_v3 = vpop.permute.xlu2 %2316  ;;  %3103 = vrot.lane.b32.xlu2 %v3058_v42, %s11677_s15  ;;  %v2307_v39 = vpop.permute.xlu0 %2306  ;;  %2870 = vrot.lane.b32.xlu0 %v8273_v31, %s11512_s28  ;;  %v11679_v62 = vrot.slane %v8383_v25, 4  ;;  %v8989_v45 = vperm.slane %v11430_v44, 1 }
 0x4e3   : > { %2383 = vst.msk [vmem:[#allocation3 + $0x189] sm:$0xff] %vm2351_vm0, %v2317_v3  ;;  %v3151_v63 = vperm.slane %v11678_v12, 1  ;;  %v3060_v3 = vsel %vm2654_vm3, %v8410_v47, %v3059_v35  ;;  %v3047_v12 = vsel %vm2656_vm5, %v8975_v61, %v3046_v37  ;;  %v3021_v37 = vperm.slane %v8789_v26, 0 }
 0x4e4   : > { %2378 = vst.msk [vmem:[#allocation3 + $0x151] sm:$0xff] %vm2351_vm0, %v2307_v39  ;;  %v3150_v39 = vperm.slane %v8383_v25, 1  ;;  %v3152_v13 = vperm.slane %v11679_v62, 1  ;;  %v3061_v35 = vsel %vm2656_vm5, %v8414_v0, %v3060_v3 }
 0x4ea   : > { %v2720_v20 = vpop.permute.xlu2 %2719  ;;  %v2309_v55 = vpop.permute.xlu1 %2308  ;;  %3109 = vrot.lane.b32.xlu2 %v3079_v2, %s11677_s15  ;;  %2876 = vrot.lane.b32.xlu0 %v8666_v52, %s11512_s28  ;;  %v3212_v2 = vsel %vm2652_vm1, %v3151_v63, %v3150_v39 }
 0x4eb   : > { %2742 = vst.msk [vmem:[#allocation4 + $0x20] sm:$0xff] %vm2739_vm11, %v2720_v20  ;;  %v2426_v14 = vld [vmem:[#allocation3 + $0x150] sm:$0xff]  ;;  %v3213_v39 = vsel %vm2654_vm3, %v3152_v13, %v3212_v2  ;;  %v3080_v13 = vsel %vm2652_vm1, %v8809_v11, %v3021_v37 }
 0x4ec   : > { %2379 = vst.msk [vmem:[#allocation3 + $0x159] sm:$0xff] %vm2351_vm0, %v2309_v55  ;;  %v2570_v8 = vrot.slane %v2426_v14, 2  ;;  %v2571_v38 = vrot.slane %v2426_v14, 4  ;;  %v2572_v42 = vrot.slane %v2426_v14, 6  ;;  %v2804_v27 = vperm.slane %v2426_v14, 1 }
 0x4ed   : > { %v2644_v33 = vperm.slane %v2426_v14, 0  ;;  %v8995_v55 = vperm.slane %v2495_v6, 0  ;;  %v3201_v14 = vsel %vm2658_vm6, %v3138_v16, %v3200_v48  ;;  %v11680_v16 = vperm.slane %v8430_v17, 0 }
 0x4ee   : > { %v2805_v15 = vperm.slane %v2570_v8, 1  ;;  %v2806_v43 = vperm.slane %v2571_v38, 1  ;;  %v2645_v56 = vperm.slane %v2570_v8, 0  ;;  %v2646_v54 = vperm.slane %v2571_v38, 0  ;;  %v9004_v38 = vld [vmem:[#allocation3 + $0x168] sm:$0xff] }
 0x4ef   : > { %v2647_v1 = vperm.slane %v2572_v42, 0  ;;  %v3062_v48 = vsel %vm2658_vm6, %v11680_v16, %v3061_v35  ;;  %v11437_v20 = vrot.slane %v9004_v38, 4 }
 0x4f0   : > { %v2861_v23 = vsel %vm2652_vm1, %v2805_v15, %v2804_v27  ;;  %v2708_v47 = vsel %vm2652_vm1, %v2645_v56, %v2644_v33  ;;  %v2958_v8 = vsel %vm2652_vm1, %v2646_v54, %v2645_v56  ;;  %v3154_v27 = vperm.slane %v8430_v17, 1 }
 0x4f1   : > { %v2862_v63 = vsel %vm2654_vm3, %v2806_v43, %v2861_v23  ;;  %v2959_v6 = vsel %vm2654_vm3, %v2647_v1, %v2958_v8  ;;  %v2807_v15 = vperm.slane %v2572_v42, 1  ;;  %v2709_v0 = vsel %vm2654_vm3, %v2646_v54, %v2708_v47 }
 0x4f2   : > { %v2576_v42 = vrot.slane %v9004_v38, 2  ;;  %v2710_v35 = vsel %vm2656_vm5, %v2647_v1, %v2709_v0 }
 0x4f3   : > { %v2427_v62 = vld [vmem:[#allocation3 + $0x158] sm:$0xff]  ;;  %v2863_v23 = vsel %vm2656_vm5, %v2807_v15, %v2862_v63 }
 0x4f4   : > { %v2573_v3 = vrot.slane %v2427_v62, 2  ;;  %v2574_v43 = vrot.slane %v2427_v62, 4  ;;  %v2575_v33 = vrot.slane %v2427_v62, 6  ;;  %v2808_v56 = vperm.slane %v2427_v62, 1 }
 0x4f5   : > { %v2648_v44 = vperm.slane %v2427_v62, 0  ;;  %v3037_v62 = vperm.slane %v9004_v38, 0 }
 0x4f6   : > { %v2809_v2 = vperm.slane %v2573_v3, 1  ;;  %v2810_v54 = vperm.slane %v2574_v43, 1  ;;  %v2864_v47 = vsel %vm2658_vm6, %v2808_v56, %v2863_v23  ;;  %v2649_v8 = vperm.slane %v2573_v3, 0 }
 0x4f7   : > { %v2650_v16 = vperm.slane %v2574_v43, 0  ;;  %v2711_v49 = vsel %vm2658_vm6, %v2648_v44, %v2710_v35  ;;  %v2811_v18 = vperm.slane %v2575_v33, 1  ;;  %v2960_v11 = vsel %vm2656_vm5, %v2648_v44, %v2959_v6  ;;  %v9037_v44 = vld [vmem:[#allocation3 + $0xa8] sm:$0xff] }
 0x4f8   : > { %v2865_v63 = vsel %vm2660_vm7, %v2809_v2, %v2864_v47  ;;  %v2651_v37 = vperm.slane %v2575_v33, 0  ;;  %v2712_v56 = vsel %vm2660_vm7, %v2649_v8, %v2711_v49  ;;  %v2961_v1 = vsel %vm2658_vm6, %v2649_v8, %v2960_v11 }
 0x4f9   : > { %v2866_v15 = vsel %vm2662_vm8, %v2810_v54, %v2865_v63  ;;  %v2713_v3 = vsel %vm2662_vm8, %v2650_v16, %v2712_v56  ;;  %v9034_v23 = vperm.slane %v2576_v42, 0  ;;  %v2962_v2 = vsel %vm2660_vm7, %v2650_v16, %v2961_v1 }
 0x4fa   : > { %v9029_v0 = vsel %vm2664_vm9, %v2811_v18, %v2866_v15  ;;  %v2313_v43 = vpop.permute.xlu0 %2312  ;;  %v9042_v49 = vsel %vm2664_vm9, %v2651_v37, %v2713_v3  ;;  %v3202_v18 = vsel %vm2660_vm7, %v8972_v21, %v3201_v14  ;;  %v11681_v6 = vrot.slane %v8383_v25, 6  ;;  %v3535_v25 = vld [vmem:[%s11674_s3 + $0x30] sm:$0xff] }
 0x4fb   : > { %2882 = vrot.lane.b32.xlu0 %v9029_v0, %s11512_s28  ;;  %2381 = vst.msk [vmem:[#allocation3 + $0x171] sm:$0xff] %vm2351_vm0, %v2313_v43  ;;  %v9050_v54 = vsel %vm2662_vm8, %v2651_v37, %v2962_v2  ;;  %2729 = vrot.lane.b32.xlu1 %v9042_v49, %s6526_s20  ;;  %v3063_v47 = vsel %vm2660_vm7, %v8443_v7, %v3062_v48  ;;  %v11436_v35 = vrot.slane %v9004_v38, 6  ;;  %v11682_v8 = vperm.slane %v8946_v22, 0  ;;  %s6531_s20 = smov 72  }
 0x4fc   : > { %v3153_v33 = vperm.slane %v11681_v6, 1  ;;  %v3295_v21 = vsel %vm2652_vm1, %v8957_v28, %v8950_v51  ;;  %v3081_v14 = vsel %vm2654_vm3, %v8813_v59, %v3080_v13  ;;  %v9070_v7 = vperm.slane %v11437_v20, 0  ;;  %3576 = vmatpush.msrb.mxu0 %v3535_v25  ;;  %6378 = vmatpush.msra.mxu1 %v3535_v25 }
 0x4fd   : > { %v3048_v16 = vsel %vm2658_vm6, %v11682_v8, %v3047_v12  ;;  %v11683_v48 = vrot.slane %v8430_v17, 2  ;;  %v3094_v11 = vsel %vm2652_vm1, %v9034_v23, %v3037_v62  ;;  %v11684_v15 = vrot.slane %v8946_v22, 6 }
 0x4fe   : > { %v3214_v12 = vsel %vm2656_vm5, %v3153_v33, %v3213_v39  ;;  %v2528_v59 = vrot.slane %v9037_v44, 2  ;;  %v3064_v13 = vsel %vm2662_vm8, %v8448_v41, %v3063_v47  ;;  %v3203_v37 = vsel %vm2662_vm8, %v8989_v45, %v3202_v18 }
 0x4ff   : > { %v3155_v63 = vperm.slane %v11683_v48, 1  ;;  %v3141_v51 = vperm.slane %v11684_v15, 1  ;;  %v3215_v28 = vsel %vm2658_vm6, %v3154_v27, %v3214_v12  ;;  %v11685_v39 = vrot.slane %v8946_v22, 4 }
 0x500   : > { %v11686_v1 = vmov %v11684_v15  ;;  %v3082_v3 = vsel %vm2656_vm5, %v8817_v9, %v3081_v14  ;;  %v9097_v27 = vperm.slane %v11436_v35, 0  ;;  %v3049_v41 = vsel %vm2660_vm7, %v8995_v55, %v3048_v16 }
 0x501   : > { %v9087_v56 = vperm.slane %v11685_v39, 0  ;;  %v9091_v62 = vperm.slane %v11686_v1, 0  ;;  %v3296_v45 = vsel %vm2654_vm3, %v8975_v61, %v3295_v21  ;;  %v11687_v43 = vperm.slane %v8829_v46, 0 }
 0x502   : > { %v3095_v18 = vsel %vm2654_vm3, %v9070_v7, %v3094_v11  ;;  %v11688_v6 = vrot.slane %v8430_v17, 4  ;;  %v3216_v33 = vsel %vm2660_vm7, %v3155_v63, %v3215_v28  ;;  %v2315_v47 = vpop.permute.xlu1 %2314  ;;  %v3065_v8 = vsel %vm2664_vm9, %v8459_v60, %v3064_v13  ;;  %v9113_v16 = vld [vmem:[#allocation3 + $0x170] sm:$0xff] }
 0x503   : > { %v3083_v2 = vsel %vm2658_vm6, %v11687_v43, %v3082_v3  ;;  %v2529_v61 = vrot.slane %v9037_v44, 4  ;;  %v2530_v25 = vrot.slane %v9037_v44, 6  ;;  %v3159_v21 = vperm.slane %v2528_v59, 1  ;;  %2382 = vst.msk [vmem:[#allocation3 + $0x181] sm:$0xff] %vm2351_vm0, %v2315_v47  ;;  %3105 = vrot.lane.b32.xlu0 %v3065_v8, %s11677_s15  ;;  %v2716_v14 = vpop.permute.xlu0 %2715  ;;  %2872 = vrot.lane.b32.xlu1 %v8398_v5, %s11512_s28 }
 0x504   : > { %v3156_v9 = vperm.slane %v11688_v6, 1  ;;  %v11434_v48 = vrot.slane %v9113_v16, 2  ;;  %v11432_v63 = vrot.slane %v9113_v16, 4  ;;  %v11433_v12 = vrot.slane %v9113_v16, 6  ;;  %2740 = vst.msk [vmem:[#allocation4] sm:$0xff] %vm2739_vm11, %v2716_v14 }
 0x505   : > { %v11435_v60 = vperm.slane %v9113_v16, 0  ;;  %v3084_v11 = vsel %vm2660_vm7, %v8846_v32, %v3083_v2  ;;  %v3096_v15 = vsel %vm2656_vm5, %v9097_v27, %v3095_v18  ;;  %v3158_v28 = vperm.slane %v9037_v44, 1  ;;  %v9146_v2 = vld [vmem:[#allocation3 + $0x138] sm:$0xff] }
 0x506   : > { %v9131_v13 = vperm.slane %v2528_v59, 0  ;;  %v9135_v39 = vperm.slane %v11434_v48, 0  ;;  %v9139_v1 = vperm.slane %v11432_v63, 0  ;;  %v11689_v32 = vrot.slane %v8789_v26, 2 }
 0x507   : > { %v3097_v3 = vsel %vm2658_vm6, %v11435_v60, %v3096_v15  ;;  %v3160_v18 = vperm.slane %v2529_v61, 1  ;;  %v3219_v59 = vsel %vm2652_vm1, %v3159_v21, %v3158_v28  ;;  %v3005_v6 = vperm.slane %v9037_v44, 0 }
 0x508   : > { %v3175_v43 = vperm.slane %v11689_v32, 1  ;;  %v9150_v47 = vperm.slane %v2529_v61, 0  ;;  %v3085_v8 = vsel %vm2662_vm8, %v8850_v36, %v3084_v11  ;;  %v9156_v14 = vperm.slane %v11433_v12, 0 }
 0x509   : > { %v3098_v15 = vsel %vm2660_vm7, %v9135_v39, %v3097_v3  ;;  %v3174_v32 = vperm.slane %v8789_v26, 1  ;;  %v3066_v44 = vsel %vm2652_vm1, %v9131_v13, %v3005_v6  ;;  %v11690_v61 = vrot.slane %v8789_v26, 4 }
 0x50a   : > { %v3099_v63 = vsel %vm2662_vm8, %v9139_v1, %v3098_v15  ;;  %v2564_v36 = vrot.slane %v9146_v2, 2  ;;  %v3204_v28 = vsel %vm2664_vm9, %v3141_v51, %v3203_v37  ;;  %v11691_v12 = vperm.slane %v8946_v22, 0  ;;  %v9175_v15 = vld [vmem:[#allocation3 + $0xb0] sm:$0xff]  ;;  %v2718_v60 = vpop.permute.xlu1 %2717 }
 0x50b   : > { %v3176_v21 = vperm.slane %v11690_v61, 1  ;;  %v3100_v11 = vsel %vm2664_vm9, %v9156_v14, %v3099_v63  ;;  %v3233_v3 = vsel %vm2652_vm1, %v3175_v43, %v3174_v32  ;;  %v3086_v6 = vsel %vm2664_vm9, %v8859_v29, %v3085_v8  ;;  %2741 = vst.msk [vmem:[#allocation4 + $0x10] sm:$0xff] %vm2739_vm11, %v2718_v60  ;;  %v2722_v22 = vpop.permute.xlu0 %2721  ;;  %2878 = vrot.lane.b32.xlu1 %v8783_v40, %s11512_s28 }
 0x50c   : > { %v3297_v48 = vsel %vm2656_vm5, %v11691_v12, %v3296_v45  ;;  %3115 = vrot.lane.b32.xlu2 %v3100_v11, %s11677_s15  ;;  %v3050_v61 = vsel %vm2662_vm8, %v9087_v56, %v3049_v41  ;;  %v11692_v63 = vrot.slane %v8430_v17, 6  ;;  %v3217_v37 = vsel %vm2662_vm8, %v3156_v9, %v3216_v33  ;;  %3111 = vrot.lane.b32.xlu0 %v3086_v6, %s11677_s15 }
 0x50d   : > { %v3161_v45 = vperm.slane %v2530_v25, 1  ;;  %v3220_v12 = vsel %vm2654_vm3, %v3160_v18, %v3219_v59  ;;  %v3067_v29 = vsel %vm2654_vm3, %v9150_v47, %v3066_v44  ;;  %v2565_v43 = vrot.slane %v9146_v2, 4  ;;  %2743 = vst.msk [vmem:[#allocation4 + $0x30] sm:$0xff] %vm2739_vm11, %v2722_v22 }
 0x50e   : > { %v3157_v51 = vperm.slane %v11692_v63, 1  ;;  %v9194_v17 = vperm.slane %v2530_v25, 0  ;;  %v3178_v41 = vperm.slane %v8829_v46, 1  ;;  %v3234_v9 = vsel %vm2654_vm3, %v3176_v21, %v3233_v3 }
 0x50f   : > { %v3183_v33 = vperm.slane %v2564_v36, 1  ;;  %v2531_v60 = vrot.slane %v9175_v15, 2  ;;  %v3162_v18 = vperm.slane %v9175_v15, 1  ;;  %v11693_v59 = vrot.slane %v8789_v26, 6 }
 0x510   : > { %v9202_v32 = vperm.slane %v2564_v36, 0  ;;  %v3221_v44 = vsel %vm2656_vm5, %v3161_v45, %v3220_v12  ;;  %v3009_v11 = vperm.slane %v9175_v15, 0  ;;  %v3068_v25 = vsel %vm2656_vm5, %v9194_v17, %v3067_v29 }
 0x511   : > { %v3177_v8 = vperm.slane %v11693_v59, 1  ;;  %v3182_v6 = vperm.slane %v9146_v2, 1  ;;  %v11694_v21 = vrot.slane %v8829_v46, 2  ;;  %v3184_v22 = vperm.slane %v2565_v43, 1  ;;  %v2726_v59 = vpop.permute.xlu2 %2725 }
 0x512   : > { %v3029_v26 = vperm.slane %v9146_v2, 0  ;;  %v2566_v45 = vrot.slane %v9146_v2, 6  ;;  %v9216_v35 = vperm.slane %v2565_v43, 0  ;;  %2745 = vst.msk [vmem:[#allocation4 + $0x50] sm:$0xff] %vm2739_vm11, %v2726_v59  ;;  %v3218_v29 = vsel %vm2664_vm9, %v3157_v51, %v3217_v37  ;;  %v2724_v20 = vpop.permute.xlu1 %2723 }
 0x513   : > { %v3179_v3 = vperm.slane %v11694_v21, 1  ;;  %v3235_v63 = vsel %vm2656_vm5, %v3177_v8, %v3234_v9  ;;  %v3240_v12 = vsel %vm2652_vm1, %v3183_v33, %v3182_v6  ;;  %v2532_v21 = vrot.slane %v9175_v15, 4  ;;  %2744 = vst.msk [vmem:[#allocation4 + $0x40] sm:$0xff] %vm2739_vm11, %v2724_v20  ;;  %v9237_v6 = vld [vmem:[#allocation3 + $0x140] sm:$0xff] }
 0x514   : > { %v3236_v36 = vsel %vm2658_vm6, %v3178_v41, %v3235_v63  ;;  %v3222_v9 = vsel %vm2658_vm6, %v3162_v18, %v3221_v44  ;;  %v3087_v8 = vsel %vm2652_vm1, %v9202_v32, %v3029_v26  ;;  %3258 = vrot.lane.b32.xlu2 %v3218_v29, %s11514_s29  ;;  %v3163_v41 = vperm.slane %v2531_v60, 1  ;;  %3254 = vrot.lane.b32.xlu0 %v3204_v28, %s11514_s29  ;;  %v3534_v28 = vld [vmem:[%s11674_s3 + $0x28] sm:$0xff] }
 0x515   : > { %v3069_v2 = vsel %vm2658_vm6, %v3009_v11, %v3068_v25  ;;  %v11695_v43 = vrot.slane %v8829_v46, 4  ;;  %v3298_v51 = vsel %vm2658_vm6, %v8995_v55, %v3297_v48  ;;  %v3051_v37 = vsel %vm2664_vm9, %v9091_v62, %v3050_v61  ;;  %3577 = vmatpush.msrb.mxu0 %v3534_v28  ;;  %6379 = vmatpush.msra.mxu1 %v3534_v28 }
 0x516   : > { %v3010_v18 = vperm.slane %v2531_v60, 0  ;;  %v3237_v44 = vsel %vm2660_vm7, %v3179_v3, %v3236_v36  ;;  %v3241_v25 = vsel %vm2654_vm3, %v3184_v22, %v3240_v12  ;;  %3101 = vrot.lane.b32.xlu1 %v3051_v37, %s11677_s15  ;;  %v2533_v63 = vrot.slane %v9175_v15, 6 }
 0x517   : > { %v3180_v33 = vperm.slane %v11695_v43, 1  ;;  %v3223_v55 = vsel %vm2660_vm7, %v3163_v41, %v3222_v9  ;;  %v3185_v48 = vperm.slane %v2566_v45, 1  ;;  %v3088_v20 = vsel %vm2654_vm3, %v9216_v35, %v3087_v8 }
 0x518   : > { %v3164_v61 = vperm.slane %v2532_v21, 1  ;;  %v3011_v60 = vperm.slane %v2532_v21, 0  ;;  %v3070_v3 = vsel %vm2660_vm7, %v3010_v18, %v3069_v2  ;;  %v3032_v26 = vperm.slane %v2566_v45, 0 }
 0x519   : > { %v3238_v22 = vsel %vm2662_vm8, %v3180_v33, %v3237_v44  ;;  %v2567_v59 = vrot.slane %v9237_v6, 2  ;;  %v3242_v36 = vsel %vm2656_vm5, %v3185_v48, %v3241_v25  ;;  %v3316_v12 = vsel %vm2652_vm1, %v9150_v47, %v9131_v13  ;;  %v2869_v41 = vpop.permute.xlu2 %2868 }
 0x51a   : > { %v3224_v29 = vsel %vm2662_vm8, %v3164_v61, %v3223_v55  ;;  %v11696_v9 = vrot.slane %v8829_v46, 6  ;;  %v3186_v8 = vperm.slane %v9237_v6, 1  ;;  %v3089_v45 = vsel %vm2656_vm5, %v3032_v26, %v3088_v20  ;;  %2893 = vst.msk [vmem:[#allocation4] sm:$0xff] %vm2892_vm13, %v2869_v41  ;;  %v2389_v61 = vld [vmem:[#allocation3 + $0x28] sm:$0x3] }
 0x51b   : > { %v3165_v2 = vperm.slane %v2533_v63, 1  ;;  %v3071_v43 = vsel %vm2662_vm8, %v3011_v60, %v3070_v3  ;;  %v3033_v33 = vperm.slane %v9237_v6, 0  ;;  %v3012_v37 = vperm.slane %v2533_v63, 0  ;;  %v2404_v3 = vld [vmem:[#allocation3 + $0xa0] sm:$0x3] }
 0x51c   : > { %v3181_v21 = vperm.slane %v11696_v9, 1  ;;  %v2568_v47 = vrot.slane %v9237_v6, 4  ;;  %v3243_v46 = vsel %vm2658_vm6, %v3186_v8, %v3242_v36  ;;  %v3187_v25 = vperm.slane %v2567_v59, 1 }
 0x51d   : > { %v3225_v44 = vsel %vm2664_vm9, %v3165_v2, %v3224_v29  ;;  %v3090_v55 = vsel %vm2658_vm6, %v3033_v33, %v3089_v45  ;;  %v3317_v48 = vsel %vm2654_vm3, %v9194_v17, %v3316_v12  ;;  %v3072_v63 = vsel %vm2664_vm9, %v3012_v37, %v3071_v43 }
 0x51e   : > { %v3239_v13 = vsel %vm2664_vm9, %v3181_v21, %v3238_v22  ;;  %3260 = vrot.lane.b32.xlu0 %v3225_v44, %s11514_s29  ;;  %v3034_v20 = vperm.slane %v2567_v59, 0  ;;  %v3299_v28 = vsel %vm2660_vm7, %v9087_v56, %v3298_v51  ;;  %3107 = vrot.lane.b32.xlu1 %v3072_v63, %s11677_s15  ;;  %v2569_v22 = vrot.slane %v9237_v6, 6 }
 0x51f   : > { %3264 = vrot.lane.b32.xlu2 %v3239_v13, %s11514_s29  ;;  %v3244_v36 = vsel %vm2660_vm7, %v3187_v25, %v3243_v46  ;;  %v3188_v29 = vperm.slane %v2568_v47, 1  ;;  %v3318_v17 = vsel %vm2656_vm5, %v3009_v11, %v3317_v48  ;;  %v3035_v12 = vperm.slane %v2568_v47, 0 }
 0x520   : > { %v3091_v9 = vsel %vm2660_vm7, %v3034_v20, %v3090_v55  ;;  %v3300_v59 = vsel %vm2662_vm8, %v9091_v62, %v3299_v28  ;;  %v3337_v56 = vsel %vm2652_vm1, %v9216_v35, %v9202_v32  ;;  %v3287_v6 = vperm.slane %v2389_v61, 0 }
 0x521   : > { %v3245_v51 = vsel %vm2662_vm8, %v3188_v29, %v3244_v36  ;;  %v2904_v21 = vperm.slane %v2404_v3, 0  ;;  %v2875_v8 = vpop.permute.xlu2 %2874  ;;  %v3189_v45 = vperm.slane %v2569_v22, 1  ;;  %v3092_v41 = vsel %vm2662_vm8, %v3035_v12, %v3091_v9  ;;  %v2413_v3 = vld [vmem:[#allocation3 + $0xe8] sm:$0x3] }
 0x522   : > { %v3319_v15 = vsel %vm2658_vm6, %v3010_v18, %v3318_v17  ;;  %2896 = vst.msk [vmem:[#allocation4 + $0x30] sm:$0xff] %vm2892_vm13, %v2875_v8  ;;  %v3036_v11 = vperm.slane %v2569_v22, 0  ;;  %v3301_v2 = vsel %vm2664_vm9, %v3287_v6, %v3300_v59  ;;  %v3338_v62 = vsel %vm2654_vm3, %v3032_v26, %v3337_v56  ;;  %v2407_v26 = vld [vmem:[#allocation3 + $0xb8] sm:$0x3] }
 0x523   : > { %v9295_v35 = vsel %vm2664_vm9, %v2904_v21, %v8529_v19  ;;  %v3246_v32 = vsel %vm2664_vm9, %v3189_v45, %v3245_v51  ;;  %v3320_v43 = vsel %vm2660_vm7, %v3011_v60, %v3319_v15  ;;  %v3339_v13 = vsel %vm2656_vm5, %v3033_v33, %v3338_v62  ;;  %v2395_v19 = vld [vmem:[#allocation3 + $0x58] sm:$0x3] }
 0x524   : > { %2976 = vst.msk [vmem:[#allocation4 + $0x30] sm:$0xff] %vm2351_vm0, %v9295_v35  ;;  %v3093_v18 = vsel %vm2664_vm9, %v3036_v11, %v3092_v41  ;;  %v3321_v47 = vsel %vm2662_vm8, %v3012_v37, %v3320_v43  ;;  %v3290_v46 = vperm.slane %v2407_v26, 0  ;;  %v3340_v44 = vsel %vm2658_vm6, %v3034_v20, %v3339_v13 }
 0x525   : > { %v3190_v25 = vperm.slane %v9004_v38, 1  ;;  %v3191_v55 = vperm.slane %v2576_v42, 1  ;;  %v3288_v48 = vperm.slane %v2395_v19, 0  ;;  %v3341_v33 = vsel %vm2660_vm7, %v3035_v12, %v3340_v44  ;;  %v2425_v42 = vld [vmem:[#allocation3 + $0x148] sm:$0x3] }
 0x526   : > { %3266 = vrot.lane.b32.xlu0 %v3246_v32, %s11514_s29  ;;  %3113 = vrot.lane.b32.xlu1 %v3093_v18, %s11677_s15  ;;  %v3322_v63 = vsel %vm2664_vm9, %v3290_v46, %v3321_v47  ;;  %v11698_v37 = vrot.slane %v9004_v38, 4  ;;  %v3344_v20 = vsel %vm2652_vm1, %v9070_v7, %v9034_v23  ;;  %v3342_v22 = vsel %vm2662_vm8, %v3036_v11, %v3341_v33  ;;  %v2431_v11 = vld [vmem:[#allocation3 + $0x178] sm:$0x3]  ;;  %v3533_v18 = vld [vmem:[%s11674_s3 + $0x20] sm:$0xff]  ;;  %s11439_s15 = smov 40  }
 0x527   : > { %3351 = vrot.lane.b32.xlu2 %v3301_v2, %s11697_s18  ;;  %v3308_v60 = vsel %vm2664_vm9, %v3288_v48, %v8311_v24  ;;  %v3247_v61 = vsel %vm2652_vm1, %v3191_v55, %v3190_v25  ;;  %v9325_v24 = vld [vmem:[#allocation3 + $0x180] sm:$0xff]  ;;  %v11699_v36 = vrot.slane %v9004_v38, 6  ;;  %v3345_v9 = vsel %vm2654_vm3, %v9097_v27, %v3344_v20  ;;  %3578 = vmatpush.msrb.mxu0 %v3533_v18  ;;  %v9375_v44 = vld [vmem:[#allocation3 + $0x188] sm:$0xff]  ;;  %v11705_v33 = vld [vmem:[#allocation44_spill] sm:$0xff] }
 0x528   : > { %v3192_v28 = vperm.slane %v11698_v37, 1  ;;  %v3293_v23 = vperm.slane %v2425_v42, 0  ;;  %v3194_v7 = vperm.slane %v9113_v16, 1  ;;  %v11700_v12 = vperm.slane %v9113_v16, 0  ;;  %6380 = vmatpush.msra.mxu1 %v3533_v18  ;;  %v2401_v20 = vld [vmem:[#allocation3 + $0x88] sm:$0x3] }
 0x529   : > { %v3193_v29 = vperm.slane %v11699_v36, 1  ;;  %v2582_v59 = vrot.slane %v9325_v24, 2  ;;  %v3291_v56 = vperm.slane %v2413_v3, 0  ;;  %v11701_v38 = vrot.slane %v9113_v16, 2 }
 0x52a   : > { %v3248_v17 = vsel %vm2654_vm3, %v3192_v28, %v3247_v61  ;;  %v3343_v51 = vsel %vm2664_vm9, %v3293_v23, %v3342_v22  ;;  %v3384_v8 = vperm.slane %v9325_v24, 0  ;;  %v2583_v15 = vrot.slane %v9325_v24, 4  ;;  %v11706_v23 = vld [vmem:[#allocation21_spill] sm:$0xff] }
 0x52b   : > { %v3195_v6 = vperm.slane %v11701_v38, 1  ;;  %v3249_v21 = vsel %vm2656_vm5, %v3193_v29, %v3248_v17  ;;  %v3329_v45 = vsel %vm2664_vm9, %v3291_v56, %v8721_v30  ;;  %v9353_v2 = vperm.slane %v2582_v59, 0  ;;  %v11707_v17 = vld [vmem:[#allocation49_spill] sm:$0xff] }
 0x52c   : > { %v3250_v41 = vsel %vm2658_vm6, %v3194_v7, %v3249_v21  ;;  %v11703_v62 = vrot.slane %v9113_v16, 4  ;;  %v2584_v26 = vrot.slane %v9325_v24, 6  ;;  %v3294_v19 = vperm.slane %v2431_v11, 0 }
 0x52d   : > { %v3251_v43 = vsel %vm2660_vm7, %v3195_v6, %v3250_v41  ;;  %v3392_v13 = vsel %vm2652_vm1, %v9353_v2, %v3384_v8  ;;  %v9370_v47 = vperm.slane %v2583_v15, 0  ;;  %v11704_v55 = vrot.slane %v9113_v16, 6  ;;  %v2422_v6 = vld [vmem:[#allocation3 + $0x130] sm:$0x3]  ;;  %v3532_v41 = vld [vmem:[%s11674_s3 + $0x18] sm:$0xff] }
 0x52e   : > { %3353 = vrot.lane.b32.xlu0 %v3308_v60, %s11697_s18  ;;  %3256 = vrot.lane.b32.xlu1 %v8317_v4, %s11514_s29  ;;  %v3346_v4 = vsel %vm2656_vm5, %v11700_v12, %v3345_v9  ;;  %v3196_v32 = vperm.slane %v11703_v62, 1  ;;  %v2585_v37 = vrot.slane %v9375_v44, 2  ;;  %v3388_v16 = vperm.slane %v9375_v44, 0  ;;  %v11709_v62 = vld [vmem:[#allocation13_spill] sm:$0xff] }
 0x52f   : > { %3357 = vrot.lane.b32.xlu2 %v3322_v63, %s11697_s18  ;;  %v3347_v27 = vsel %vm2658_vm6, %v9135_v39, %v3346_v4  ;;  %v11702_v39 = vld [vmem:[#allocation16_spill] sm:$0xff]  ;;  %v3393_v25 = vsel %vm2654_vm3, %v9370_v47, %v3392_v13  ;;  %v3197_v48 = vperm.slane %v11704_v55, 1  ;;  %v9383_v63 = vperm.slane %v2584_v26, 0  ;;  %3579 = vmatpush.msrb.mxu0 %v3532_v41  ;;  %v11711_v13 = vld [vmem:[#allocation9_spill] sm:$0xff]  ;;  %v2398_v55 = vld [vmem:[#allocation3 + $0x70] sm:$0x3] }
 0x530   : > { %v3348_v30 = vsel %vm2660_vm7, %v9139_v1, %v3347_v27  ;;  %v3252_v46 = vsel %vm2662_vm8, %v3196_v32, %v3251_v43  ;;  %v2586_v42 = vrot.slane %v9375_v44, 4  ;;  %v9401_v3 = vperm.slane %v2585_v37, 0  ;;  %6381 = vmatpush.msra.mxu1 %v3532_v41 }
 0x531   : > { %v3349_v1 = vsel %vm2662_vm8, %v9156_v14, %v3348_v30  ;;  %v3253_v14 = vsel %vm2664_vm9, %v3197_v48, %v3252_v46  ;;  %v3394_v28 = vsel %vm2656_vm5, %v9383_v63, %v3393_v25  ;;  %v3289_v22 = vperm.slane %v2401_v20, 0  ;;  %v2410_v30 = vld [vmem:[#allocation3 + $0xd0] sm:$0x3]  ;;  %v11714_v46 = vld [vmem:[#allocation30_spill] sm:$0xff]  ;;  %v11718_v20 = vld [vmem:[#allocation37_spill] sm:$0xff] }
 0x532   : > { %v3350_v60 = vsel %vm2664_vm9, %v3294_v19, %v3349_v1  ;;  %v3395_v61 = vsel %vm2658_vm6, %v3388_v16, %v3394_v28  ;;  %v2587_v36 = vrot.slane %v9375_v44, 6  ;;  %v9410_v9 = vperm.slane %v2586_v42, 0  ;;  %v11713_v1 = vld [vmem:[#allocation27_spill] sm:$0xff] }
 0x533   : > { %v3396_v29 = vsel %vm2660_vm7, %v9401_v3, %v3395_v61  ;;  %v3315_v7 = vsel %vm2664_vm9, %v3289_v22, %v11706_v23  ;;  %v2907_v8 = vperm.slane %v2422_v6, 0  ;;  %v2905_v18 = vperm.slane %v2410_v30, 0  ;;  %v11719_v23 = vld [vmem:[#allocation39_spill] sm:$0xff] }
 0x534   : > { %v3397_v12 = vsel %vm2662_vm8, %v9410_v9, %v3396_v29  ;;  %v9421_v4 = vperm.slane %v2587_v36, 0  ;;  %v2909_v25 = vsel %vm2652_vm1, %v11714_v46, %v11713_v1  ;;  %v3432_v48 = vperm.slane %v9325_v24, 1 }
 0x535   : > { %v2943_v19 = vsel %vm2664_vm9, %v2905_v18, %v11711_v13  ;;  %v2903_v22 = vperm.slane %v2398_v55, 0  ;;  %v3434_v29 = vperm.slane %v2583_v15, 1  ;;  %v2428_v15 = vld [vmem:[#allocation3 + $0x160] sm:$0x3]  ;;  %v3530_v55 = vld [vmem:[%s11674_s3 + $0x8] sm:$0xff] }
 0x536   : > { %3359 = vrot.lane.b32.xlu0 %v3329_v45, %s11697_s18  ;;  %3262 = vrot.lane.b32.xlu1 %v11702_v39, %s11514_s29  ;;  %v3398_v56 = vsel %vm2664_vm9, %v9421_v4, %v3397_v12  ;;  %v9435_v45 = vsel %vm2664_vm9, %v2907_v8, %v8919_v50  ;;  %v11708_v50 = vld [vmem:[#allocation47_spill] sm:$0xff]  ;;  %v11720_v12 = vld [vmem:[#allocation10_spill] sm:$0xff]  ;;  %v3531_v8 = vld [vmem:[%s11674_s3 + $0x10] sm:$0xff] }
 0x537   : > { %3363 = vrot.lane.b32.xlu2 %v3343_v51, %s11697_s18  ;;  %v2881_v51 = vpop.permute.xlu2 %2880  ;;  %3580 = vmatpush.msrb.mxu0 %v3531_v8 }
 0x538   : > { %6382 = vmatpush.msra.mxu1 %v3531_v8 }
 0x539   : > { %3581 = vmatpush.msrb.mxu0 %v3530_v55 }
 0x53a   : > { %6383 = vmatpush.msra.mxu1 %v3530_v55 }
 0x53e   : > { %3365 = vrot.lane.b32.xlu0 %v3350_v60, %s11697_s18  ;;  %3268 = vrot.lane.b32.xlu1 %v3253_v14, %s11514_s29  ;;  %v3433_v60 = vperm.slane %v2582_v59, 1  ;;  %v3481_v59 = vsel %vm2652_vm1, %v9370_v47, %v9353_v2  ;;  %v3435_v2 = vperm.slane %v2584_v26, 1  ;;  %v2908_v26 = vperm.slane %v2428_v15, 0 }
 0x53f   : > { %3401 = vrot.lane.b32.xlu2 %v11705_v33, %s6525_s19  ;;  %v3482_v47 = vsel %vm2654_vm3, %v9383_v63, %v3481_v59  ;;  %v3436_v63 = vperm.slane %v9375_v44, 1 }
 0x546   : > { %3403 = vrot.lane.b32.xlu0 %v11707_v17, %s6525_s19  ;;  %3355 = vrot.lane.b32.xlu1 %v3315_v7, %s11697_s18  ;;  %v3440_v17 = vsel %vm2652_vm1, %v3433_v60, %v3432_v48  ;;  %vm3471_vm1 = vcmask 523712  }
 0x547   : > { %3407 = vrot.lane.b32.xlu2 %v8756_v53, %s6525_s19  ;;  %v2419_v53 = vld [vmem:[#allocation3 + $0x118] sm:$0x3] }
 0x548   : > { %v3292_v38 = vperm.slane %v2419_v53, 0  ;;  %v2929_v53 = vsel %vm2664_vm9, %v2903_v22, %v11720_v12 }
 0x54a   : > { %v3336_v21 = vsel %vm2664_vm9, %v3292_v38, %v8869_v58  ;;  %v2392_v58 = vld [vmem:[#allocation3 + $0x40] sm:$0x3] }
 0x54b   : > { %v2902_v11 = vperm.slane %v2392_v58, 0  ;;  %v2416_v58 = vld [vmem:[#allocation3 + $0x100] sm:$0x3] }
 0x54c   : > { %v2728_v27 = vpop.permute.xlu0 %2727 }
 0x54d   : > { %2746 = vst.msk [vmem:[#allocation4 + $0x60] sm:$0xff] %vm2739_vm11, %v2728_v27  ;;  %v2922_v32 = vsel %vm2664_vm9, %v2902_v11, %v11709_v62  ;;  %v3441_v27 = vsel %vm2654_vm3, %v3434_v29, %v3440_v17  ;;  %v2906_v11 = vperm.slane %v2416_v58, 0  ;;  %v3437_v62 = vperm.slane %v2585_v37, 1 }
 0x54e   : > { %3409 = vrot.lane.b32.xlu0 %v8916_v34, %s6525_s19  ;;  %3361 = vrot.lane.b32.xlu1 %v3336_v21, %s11697_s18  ;;  %2899 = vst.msk [vmem:[#allocation4 + $0x60] sm:$0xff] %vm2892_vm13, %v2881_v51  ;;  %v3104_v34 = vpop.permute.xlu2 %3103  ;;  %v11721_v51 = vld [vmem:[#allocation42_spill] sm:$0xff]  ;;  %v3438_v37 = vperm.slane %v2586_v42, 1 }
 0x54f   : > { %3413 = vrot.lane.b32.xlu2 %v3398_v56, %s6525_s19  ;;  %2979 = vst.msk [vmem:[#allocation4 + $0x60] sm:$0xff] %vm2351_vm0, %v9435_v45 }
 0x554   : > { %v2871_v39 = vpop.permute.xlu0 %2870 }
 0x555   : > { %2894 = vst.msk [vmem:[#allocation4 + $0x10] sm:$0xff] %vm2892_vm13, %v2871_v39  ;;  %v2964_v39 = vsel %vm2664_vm9, %v2908_v26, %v9050_v54  ;;  %v2434_v54 = vld [vmem:[#allocation3 + $0x190] sm:$0x3] }
 0x556   : > { %3447 = vrot.lane.b32.xlu0 %v8273_v31, %s11439_s15  ;;  %3399 = vrot.lane.b32.xlu1 %v11708_v50, %s6525_s19  ;;  %2974 = vst.msk [vmem:[#allocation4 + $0x10] sm:$0xff] %vm2351_vm0, %v2922_v32  ;;  %v3110_v31 = vpop.permute.xlu2 %3109  ;;  %v3442_v50 = vsel %vm2656_vm5, %v3435_v2, %v3441_v27 }
 0x557   : > { %3451 = vrot.lane.b32.xlu2 %v8842_v57, %s11439_s15  ;;  %3127 = vst.msk [vmem:[#allocation4 + $0x10] sm:$0xff] %vm3125_vm14, %v3104_v34  ;;  %v11710_v57 = vld [vmem:[#allocation12_spill] sm:$0xff] }
 0x55c   : > { %v2877_v43 = vpop.permute.xlu0 %2876 }
 0x55d   : > { %2897 = vst.msk [vmem:[#allocation4 + $0x40] sm:$0xff] %vm2892_vm13, %v2877_v43 }
 0x55e   : > { %3453 = vrot.lane.b32.xlu0 %v8666_v52, %s11439_s15  ;;  %3405 = vrot.lane.b32.xlu1 %v11710_v57, %s6525_s19  ;;  %2977 = vst.msk [vmem:[#allocation4 + $0x40] sm:$0xff] %vm2351_vm0, %v2943_v19  ;;  %v11712_v52 = vmov 0.0  }
 0x55f   : > { %3457 = vrot.lane.b32.xlu2 %v8907_v10, %s11439_s15  ;;  %3130 = vst.msk [vmem:[#allocation4 + $0x40] sm:$0xff] %vm3125_vm14, %v3110_v31  ;;  %v3443_v31 = vsel %vm2658_vm6, %v3436_v63, %v3442_v50 }
 0x560   : > { %474 = vst.msk [vmem:[#allocation3 + $0x10] sm:$0x3] %vm473_vm12, %v11712_v52  ;;  %v3444_v43 = vsel %vm2660_vm7, %v3437_v62, %v3443_v31 }
 0x561   : > { %498 = vst.msk [vmem:[#allocation3 + $0x11] sm:$0x1] %vm479_vm15, %v11712_v52  ;;  %v3445_v42 = vsel %vm2662_vm8, %v3438_v37, %v3444_v43  ;;  %v9617_v37 = vld [vmem:[#allocation3] sm:$0xff] }
 0x562   : > { %478 = vst.msk [vmem:[#allocation3 + $0x1a8] sm:$0x3] %vm473_vm12, %v11712_v52  ;;  %vm3278_vm12 = vcmask 326912  }
 0x563   : > { %515 = vst.msk [vmem:[#allocation3 + $0x1a9] sm:$0x1] %vm479_vm15, %v11712_v52  ;;  %v3439_v52 = vperm.slane %v2587_v36, 1  ;;  %vm3375_vm15 = vcmask 392512  }
 0x566   : > { %3459 = vrot.lane.b32.xlu0 %v9029_v0, %s11439_s15  ;;  %3411 = vrot.lane.b32.xlu1 %v9042_v49, %s6525_s19  ;;  %v3116_v10 = vpop.permute.xlu2 %3115  ;;  %v11715_v0 = vld [vmem:[#allocation35_spill] sm:$0xff]  ;;  %v11716_v49 = vld [vmem:[#allocation33_spill] sm:$0xff]  ;;  %s10269_s19 = scalar_lea.vmem [#allocation5], %s11507_s17  ;;  %s6158_s17 = scalar_lea.sflag [#allocation6], %s11796_s1 }
 0x567   : > { %3488 = vrot.lane.b32.xlu2 %v2922_v32, %s6529_s26  ;;  %v2910_v33 = vsel %vm2654_vm3, %v11715_v0, %v2909_v25  ;;  %v11717_v14 = vperm.slane %v11716_v49, 0  ;;  %v11722_v32 = vld [vmem:[#allocation11_spill] sm:$0xff]  ;;  %vm3512_vm3 = vcmask 589312  }
 0x568   : > { %v2386_v56 = vld [vmem:[#allocation3 + $0x10] sm:$0x3]  ;;  %v2950_v30 = vsel %vm2664_vm9, %v2906_v11, %v11722_v32 }
 0x569   : > { %v2911_v28 = vsel %vm2656_vm5, %v11717_v14, %v2910_v33  ;;  %v2901_v6 = vperm.slane %v2386_v56, 0 }
 0x56a   : > { %v2912_v61 = vsel %vm2658_vm6, %v11718_v20, %v2911_v28  ;;  %v3529_v20 = vld [vmem:[%s11674_s3] sm:$0xff] }
 0x56b   : > { %v2913_v7 = vsel %vm2660_vm7, %v11719_v23, %v2912_v61  ;;  %3582 = vmatpush.msrb.mxu0 %v3529_v20  ;;  %6384 = vmatpush.msra.mxu1 %v3529_v20 }
 0x56c   : > { %v2914_v38 = vsel %vm2662_vm8, %v11721_v51, %v2913_v7 }
 0x56d   : > { %v2883_v41 = vpop.permute.xlu0 %2882  ;;  %v2915_v34 = vsel %vm2664_vm9, %v2901_v6, %v2914_v38  ;;  %v2730_v24 = vpop.permute.xlu1 %2729 }
 0x56e   : > { %3490 = vrot.lane.b32.xlu0 %v2929_v53, %s6529_s26  ;;  %3449 = vrot.lane.b32.xlu1 %v8398_v5, %s11439_s15  ;;  %v3259_v21 = vpop.permute.xlu2 %3258  ;;  %v3483_v5 = vsel %vm2656_vm5, %v3388_v16, %v3482_v47  ;;  %2973 = vst.msk [vmem:[#allocation4] sm:$0xff] %vm2351_vm0, %v2915_v34  ;;  %vm3542_vm5 = vcmask 588800  }
 0x56f   : > { %3494 = vrot.lane.b32.xlu2 %v2943_v19, %s6529_s26  ;;  %2747 = vst.msk [vmem:[#allocation4 + $0x70] sm:$0xff] %vm2739_vm11, %v2730_v24  ;;  %v3484_v16 = vsel %vm2658_vm6, %v9401_v3, %v3483_v5  ;;  %v3480_v19 = vperm.slane %v2434_v54, 0  ;;  %vm3616_vm6 = vcmask 130048   ;;  %vm4683_vm11 = vcmask 785984  }
 0x570   : > { %2900 = vst.msk [vmem:[#allocation4 + $0x70] sm:$0xff] %vm2892_vm13, %v2883_v41  ;;  %v3485_v3 = vsel %vm2660_vm7, %v9410_v9, %v3484_v16 }
 0x571   : > { %2980 = vst.msk [vmem:[#allocation4 + $0x70] sm:$0xff] %vm2351_vm0, %v2964_v39 }
 0x572   : > { %3133 = vst.msk [vmem:[#allocation4 + $0x70] sm:$0xff] %vm3125_vm14, %v3116_v10  ;;  %v3446_v10 = vsel %vm2664_vm9, %v3439_v52, %v3445_v42 }
 0x575   : > { %v3106_v18 = vpop.permute.xlu0 %3105  ;;  %v2873_v13 = vpop.permute.xlu1 %2872 }
 0x576   : > { %3496 = vrot.lane.b32.xlu0 %v2950_v30, %s6529_s26  ;;  %3455 = vrot.lane.b32.xlu1 %v8783_v40, %s11439_s15  ;;  %2895 = vst.msk [vmem:[#allocation4 + $0x20] sm:$0xff] %vm2892_vm13, %v2873_v13  ;;  %v3486_v40 = vsel %vm2662_vm8, %v9421_v4, %v3485_v3  ;;  %v9619_v3 = vld [vmem:[#allocation3 + $0x8] sm:$0xff]  ;;  %vm4343_vm8 = vcmask 392384  }
 0x577   : > { %3500 = vrot.lane.b32.xlu2 %v2964_v39, %s6529_s26  ;;  %2975 = vst.msk [vmem:[#allocation4 + $0x20] sm:$0xff] %vm2351_vm0, %v2929_v53  ;;  %v3487_v9 = vsel %vm2664_vm9, %v3480_v19, %v3486_v40  ;;  %v4168_v43 = vrot.slane %v9619_v3, 1  ;;  %v9628_v13 = vld [vmem:[%s11723_s4] ss:$0 sm:$0xff]  ;;  %vm3672_vm9 = vcmask 8192  }
 0x578   : > { %3128 = vst.msk [vmem:[#allocation4 + $0x20] sm:$0xff] %vm3125_vm14, %v3106_v18  ;;  %v4167_v18 = vrot.slane %v9617_v37, 1 }
 0x579   : > { %v3265_v57 = vpop.permute.xlu2 %3264  ;;  %3281 = vst.msk [vmem:[#allocation4 + $0x20] sm:$0xff] %vm3278_vm12, %v3259_v21 }
 0x57a   : > { %v4169_v19 = vsel %vm715_vm2, %v4167_v18, %v4168_v43 }
 0x57d   : > { %v2879_v4 = vpop.permute.xlu1 %2878 }
 0x57e   : > { %3502 = vrot.lane.b32.xlu0 %v3487_v9, %s6529_s26  ;;  %3461 = vrot.lane.b32.xlu1 %v3446_v10, %s11439_s15  ;;  %v3112_v36 = vpop.permute.xlu0 %3111  ;;  %2898 = vst.msk [vmem:[#allocation4 + $0x50] sm:$0xff] %vm2892_vm13, %v2879_v4  ;;  %v4035_v4 = vld [vmem:[#allocation3 + $0x10] sm:$0x3]  ;;  %s11758_s15 = smov 40   ;;  %vm4818_vm13 = vcmask 982784  }
 0x57f   : > { %2978 = vst.msk [vmem:[#allocation4 + $0x50] sm:$0xff] %vm2351_vm0, %v2950_v30  ;;  %vm3423_vm0 = vcmask 458112  }
 0x580   : > { %3131 = vst.msk [vmem:[#allocation4 + $0x50] sm:$0xff] %vm3125_vm14, %v3112_v36 }
 0x581   : > { %v3352_v44 = vpop.permute.xlu2 %3351  ;;  %3284 = vst.msk [vmem:[#allocation4 + $0x50] sm:$0xff] %vm3278_vm12, %v3265_v57 }
 0x586   : > { %3492 = vrot.lane.b32.xlu1 %v9295_v35, %s6529_s26  ;;  %v3255_v46 = vpop.permute.xlu0 %3254 }
 0x588   : > { %v3102_v25 = vpop.permute.xlu1 %3101 }
 0x589   : > { %v3358_v1 = vpop.permute.xlu2 %3357  ;;  %3126 = vst.msk [vmem:[#allocation4] sm:$0xff] %vm3125_vm14, %v3102_v25 }
 0x58a   : > { %3279 = vst.msk [vmem:[#allocation4] sm:$0xff] %vm3278_vm12, %v3255_v46 }
 0x58b   : > { %3376 = vst.msk [vmem:[#allocation4] sm:$0xff] %vm3375_vm15, %v3352_v44 }
 0x58e   : > { %3498 = vrot.lane.b32.xlu1 %v9435_v45, %s6529_s26 }
 0x590   : > { %v3261_v48 = vpop.permute.xlu0 %3260  ;;  %v3108_v60 = vpop.permute.xlu1 %3107 }
 0x591   : > { %v3364_v35 = vpop.permute.xlu2 %3363  ;;  %3129 = vst.msk [vmem:[#allocation4 + $0x30] sm:$0xff] %vm3125_vm14, %v3108_v60 }
 0x592   : > { %3282 = vst.msk [vmem:[#allocation4 + $0x30] sm:$0xff] %vm3278_vm12, %v3261_v48 }
 0x593   : > { %3379 = vst.msk [vmem:[#allocation4 + $0x30] sm:$0xff] %vm3375_vm15, %v3358_v1 }
 0x596   : > { %4247 = vrot.lane.b32.xlu1 %v4169_v19, %s11697_s18 }
 0x598   : > { %v3267_v33 = vpop.permute.xlu0 %3266  ;;  %v3114_v49 = vpop.permute.xlu1 %3113 }
 0x599   : > { %v3402_v0 = vpop.permute.xlu2 %3401  ;;  %3132 = vst.msk [vmem:[#allocation4 + $0x60] sm:$0xff] %vm3125_vm14, %v3114_v49  ;;  %vm4952_vm14 = vcmask 1048512  }
 0x59a   : > { %3285 = vst.msk [vmem:[#allocation4 + $0x60] sm:$0xff] %vm3278_vm12, %v3267_v33  ;;  %v4170_v33 = vrot.slane %v4035_v4, 1 }
 0x59b   : > { %3382 = vst.msk [vmem:[#allocation4 + $0x60] sm:$0xff] %vm3375_vm15, %v3364_v35 }
 0x5a0   : > { %v3354_v45 = vpop.permute.xlu0 %3353  ;;  %v3257_v28 = vpop.permute.xlu1 %3256 }
 0x5a1   : > { %v3408_v14 = vpop.permute.xlu2 %3407  ;;  %3280 = vst.msk [vmem:[#allocation4 + $0x10] sm:$0xff] %vm3278_vm12, %v3257_v28 }
 0x5a2   : > { %3377 = vst.msk [vmem:[#allocation4 + $0x10] sm:$0xff] %vm3375_vm15, %v3354_v45  ;;  %v4171_v45 = vsel %vm715_vm2, %v4168_v43, %v4170_v33 }
 0x5a3   : > { %3425 = vst.msk [vmem:[#allocation4 + $0x10] sm:$0xff] %vm3423_vm0, %v3402_v0  ;;  %4249 = vrot.lane.b32.xlu2 %v4171_v45, %s11697_s18 }
 0x5a8   : > { %v3360_v61 = vpop.permute.xlu0 %3359  ;;  %v3263_v22 = vpop.permute.xlu1 %3262 }
 0x5a9   : > { %v3414_v29 = vpop.permute.xlu2 %3413  ;;  %3283 = vst.msk [vmem:[#allocation4 + $0x40] sm:$0xff] %vm3278_vm12, %v3263_v22 }
 0x5aa   : > { %3380 = vst.msk [vmem:[#allocation4 + $0x40] sm:$0xff] %vm3375_vm15, %v3360_v61 }
 0x5ab   : > { %3428 = vst.msk [vmem:[#allocation4 + $0x40] sm:$0xff] %vm3423_vm0, %v3408_v14 }
 0x5b0   : > { %v3366_v59 = vpop.permute.xlu0 %3365  ;;  %v3269_v23 = vpop.permute.xlu1 %3268 }
 0x5b1   : > { %3286 = vst.msk [vmem:[#allocation4 + $0x70] sm:$0xff] %vm3278_vm12, %v3269_v23  ;;  %v3452_v7 = vpop.permute.xlu2 %3451  ;;  %vm5115_vm12 = vcmask 326784  }
 0x5b2   : > { %3383 = vst.msk [vmem:[#allocation4 + $0x70] sm:$0xff] %vm3375_vm15, %v3366_v59 }
 0x5b3   : > { %3431 = vst.msk [vmem:[#allocation4 + $0x70] sm:$0xff] %vm3423_vm0, %v3414_v29 }
 0x5b8   : > { %v3404_v17 = vpop.permute.xlu0 %3403  ;;  %v3356_v12 = vpop.permute.xlu1 %3355 }
 0x5b9   : > { %3378 = vst.msk [vmem:[#allocation4 + $0x20] sm:$0xff] %vm3375_vm15, %v3356_v12  ;;  %v3458_v53 = vpop.permute.xlu2 %3457 }
 0x5ba   : > { %3426 = vst.msk [vmem:[#allocation4 + $0x20] sm:$0xff] %vm3423_vm0, %v3404_v17 }
 0x5bb   : > { %3474 = vst.msk [vmem:[#allocation4 + $0x20] sm:$0xff] %vm3471_vm1, %v3452_v7 }
 0x5c0   : > { %v3410_v56 = vpop.permute.xlu0 %3409  ;;  %v3362_v51 = vpop.permute.xlu1 %3361 }
 0x5c1   : > { %3381 = vst.msk [vmem:[#allocation4 + $0x50] sm:$0xff] %vm3375_vm15, %v3362_v51  ;;  %v3489_v38 = vpop.permute.xlu2 %3488  ;;  %vm5250_vm15 = vcmask 523584  }
 0x5c2   : > { %3429 = vst.msk [vmem:[#allocation4 + $0x50] sm:$0xff] %vm3423_vm0, %v3410_v56 }
 0x5c3   : > { %3477 = vst.msk [vmem:[#allocation4 + $0x50] sm:$0xff] %vm3471_vm1, %v3458_v53 }
 0x5c8   : > { %v3448_v15 = vpop.permute.xlu0 %3447  ;;  %v3400_v2 = vpop.permute.xlu1 %3399 }
 0x5c9   : > { %3424 = vst.msk [vmem:[#allocation4] sm:$0xff] %vm3423_vm0, %v3400_v2  ;;  %v3495_v6 = vpop.permute.xlu2 %3494 }
 0x5ca   : > { %3472 = vst.msk [vmem:[#allocation4] sm:$0xff] %vm3471_vm1, %v3448_v15 }
 0x5cb   : > { %3513 = vst.msk [vmem:[#allocation4] sm:$0xff] %vm3512_vm3, %v3489_v38 }
 0x5d0   : > { %v3454_v47 = vpop.permute.xlu0 %3453  ;;  %v3406_v21 = vpop.permute.xlu1 %3405 }
 0x5d1   : > { %3427 = vst.msk [vmem:[#allocation4 + $0x30] sm:$0xff] %vm3423_vm0, %v3406_v21  ;;  %v3501_v58 = vpop.permute.xlu2 %3500 }
 0x5d2   : > { %3475 = vst.msk [vmem:[#allocation4 + $0x30] sm:$0xff] %vm3471_vm1, %v3454_v47  ;;  %v3521_v27 = vld [vmem:[#allocation4] sm:$0xff] }
 0x5d3   : > { %3516 = vst.msk [vmem:[#allocation4 + $0x30] sm:$0xff] %vm3512_vm3, %v3495_v6  ;;  %6294 = vmatmul.msk.f32.vlgmr.msrb.gmra.mxu0 %vm3542_vm5, %v3521_v27 }
 0x5d4   : > { %4087 = vst.msk [vmem:[#allocation4] sm:$0xff] %vm470_vm10, %v9617_v37 }
 0x5d8   : > { %v3460_v8 = vpop.permute.xlu0 %3459  ;;  %v3412_v41 = vpop.permute.xlu1 %3411 }
 0x5d9   : > { %3430 = vst.msk [vmem:[#allocation4 + $0x60] sm:$0xff] %vm3423_vm0, %v3412_v41  ;;  %vm5384_vm0 = vcmask 720384  }
 0x5da   : > { %3478 = vst.msk [vmem:[#allocation4 + $0x60] sm:$0xff] %vm3471_vm1, %v3460_v8  ;;  %v3524_v32 = vld [vmem:[#allocation4 + $0x30] sm:$0xff] }
 0x5db   : > { %3519 = vst.msk [vmem:[#allocation4 + $0x60] sm:$0xff] %vm3512_vm3, %v3501_v58 }
 0x5e0   : > { %v3491_v34 = vpop.permute.xlu0 %3490  ;;  %v3450_v24 = vpop.permute.xlu1 %3449 }
 0x5e1   : > { %3473 = vst.msk [vmem:[#allocation4 + $0x10] sm:$0xff] %vm3471_vm1, %v3450_v24 }
 0x5e2   : > { %3514 = vst.msk [vmem:[#allocation4 + $0x10] sm:$0xff] %vm3512_vm3, %v3491_v34  ;;  %v3527_v54 = vld [vmem:[#allocation4 + $0x60] sm:$0xff] }
 0x5e8   : > { %v3497_v26 = vpop.permute.xlu0 %3496  ;;  %v3456_v63 = vpop.permute.xlu1 %3455 }
 0x5e9   : > { %3476 = vst.msk [vmem:[#allocation4 + $0x40] sm:$0xff] %vm3471_vm1, %v3456_v63  ;;  %v3522_v5 = vld [vmem:[#allocation4 + $0x10] sm:$0xff] }
 0x5ea   : > { %3517 = vst.msk [vmem:[#allocation4 + $0x40] sm:$0xff] %vm3512_vm3, %v3497_v26  ;;  %6295 = vmatmul.msk.f32.gmra.mxu0 %vm3542_vm5, %v3522_v5 }
 0x5eb   : > { %4088 = vst.msk [vmem:[#allocation4 + $0x10] sm:$0xff] %vm470_vm10, %v9619_v3 }
 0x5f0   : > { %v3503_v50 = vpop.permute.xlu0 %3502  ;;  %v3462_v11 = vpop.permute.xlu1 %3461 }
 0x5f1   : > { %3479 = vst.msk [vmem:[#allocation4 + $0x70] sm:$0xff] %vm3471_vm1, %v3462_v11  ;;  %v3525_v31 = vld [vmem:[#allocation4 + $0x40] sm:$0xff]  ;;  %vm5512_vm1 = vcmask 719872  }
 0x5f2   : > { %3520 = vst.msk [vmem:[#allocation4 + $0x70] sm:$0xff] %vm3512_vm3, %v3503_v50 }
 0x5f8   : > { %v3493_v39 = vpop.permute.xlu1 %3492 }
 0x5f9   : > { %3515 = vst.msk [vmem:[#allocation4 + $0x20] sm:$0xff] %vm3512_vm3, %v3493_v39  ;;  %v3528_v57 = vld [vmem:[#allocation4 + $0x70] sm:$0xff] }
 0x600   : > { %v3499_v62 = vpop.permute.xlu1 %3498  ;;  %v3523_v16 = vld [vmem:[#allocation4 + $0x20] sm:$0xff] }
 0x601   : > { %3518 = vst.msk [vmem:[#allocation4 + $0x50] sm:$0xff] %vm3512_vm3, %v3499_v62  ;;  %6296 = vmatmul.msk.f32.gmra.mxu0 %vm3542_vm5, %v3523_v16 }
 0x608   : > { %v3526_v30 = vld [vmem:[#allocation4 + $0x50] sm:$0xff] }
 0x609   : > { %6297 = vmatmul.msk.f32.gmra.mxu0 %vm3542_vm5, %v3524_v32  ;;  %6299 = vmatmul.msk.f32.vlgmr.msra.gmra.mxu1 %vm3542_vm5, %v3526_v30 }
 0x611   : > { %6298 = vmatmul.msk.f32.gmra.mxu0 %vm3542_vm5, %v3525_v31  ;;  %6300 = vmatmul.msk.f32.gmra.mxu1 %vm3542_vm5, %v3527_v54 }
 0x619   : > { %6301 = vmatmul.msk.f32.gmra.mxu1 %vm3542_vm5, %v3528_v57 }
 0x650   : > { %v3584_v52 = vpop.f32.mrf.mxu0 }
 0x651   : > { %v3585_v40 = vadd.f32 %v9628_v13, %v3584_v52 }
 0x653   : > { %v9635_v42 = vmax.f32 %v3585_v40, 0.0 }
 0x655   : > { %v3682_v9 = vrot.slane %v9635_v42, 1  ;;  %v3683_v10 = vrot.slane %v9635_v42, 2  ;;  %v3684_v44 = vrot.slane %v9635_v42, 3  ;;  %v3685_v36 = vrot.slane %v9635_v42, 4 }
 0x656   : > { %v3686_v1 = vrot.slane %v9635_v42, 5  ;;  %v3687_v46 = vrot.slane %v9635_v42, 6  ;;  %v3738_v25 = vperm.slane %v9635_v42, 0  ;;  %v3688_v55 = vrot.slane %v9635_v42, 7 }
 0x657   : > { %v3739_v35 = vperm.slane %v3682_v9, 0  ;;  %v3740_v48 = vperm.slane %v3683_v10, 0  ;;  %v3741_v60 = vperm.slane %v3684_v44, 0  ;;  %v3742_v0 = vperm.slane %v3685_v36, 0 }
 0x658   : > { %3802 = vst [vmem:[#allocation1] ss:$4 sm:$0xff] %v3738_v25  ;;  %v3743_v49 = vperm.slane %v3686_v1, 0  ;;  %v3744_v14 = vperm.slane %v3687_v46, 0  ;;  %v3745_v28 = vperm.slane %v3688_v55, 0 }
 0x659   : > { %3804 = vst [vmem:[#allocation1 + $0x1] ss:$4 sm:$0xff] %v3739_v35 }
 0x65a   : > { %3806 = vst [vmem:[#allocation1 + $0x2] ss:$4 sm:$0xff] %v3740_v48 }
 0x65b   : > { %3808 = vst [vmem:[#allocation1 + $0x3] ss:$4 sm:$0xff] %v3741_v60 }
 0x65c   : > { %3810 = vst [vmem:[#allocation1 + $0x20] ss:$4 sm:$0xff] %v3742_v0 }
 0x65d   : > { %3812 = vst [vmem:[#allocation1 + $0x21] ss:$4 sm:$0xff] %v3743_v49 }
 0x65e   : > { %3814 = vst [vmem:[#allocation1 + $0x22] ss:$4 sm:$0xff] %v3744_v14 }
 0x65f   : > { %3816 = vst [vmem:[#allocation1 + $0x23] ss:$4 sm:$0xff] %v3745_v28 }
 0x662   : > { %v3817_v20 = vld.sshfl [vmem:[#allocation1] sm:$0xff pattern:$0x73625140] }
 0x663   : > { %3819 = vst [vmem:[#allocation1] ss:$4 sm:$0xff] %v3738_v25 }
 0x664   : > { %3820 = vst [vmem:[#allocation1 + $0x1] ss:$4 sm:$0xff] %v3739_v35 }
 0x665   : > { %3821 = vst [vmem:[#allocation1 + $0x2] ss:$4 sm:$0xff] %v3740_v48 }
 0x666   : > { %v3818_v61 = vld.sshfl [vmem:[#allocation1 + $0x20] sm:$0xff pattern:$0x73625140]  ;;  %3822 = vst [vmem:[#allocation1 + $0x3] ss:$4 sm:$0xff] %v3741_v60 }
 0x667   : > { %3823 = vst [vmem:[#allocation1 + $0x20] ss:$4 sm:$0xff] %v3742_v0  ;;  %v3587_v22 = vpop.f32.mrf.mxu0 }
 0x668   : > { %3824 = vst [vmem:[#allocation1 + $0x21] ss:$4 sm:$0xff] %v3743_v49  ;;  %v3588_v29 = vadd.f32 %v9628_v13, %v3587_v22 }
 0x669   : > { %3825 = vst [vmem:[#allocation1 + $0x22] ss:$4 sm:$0xff] %v3744_v14 }
 0x66a   : > { %3826 = vst [vmem:[#allocation1 + $0x23] ss:$4 sm:$0xff] %v3745_v28  ;;  %v9648_v59 = vmax.f32 %v3588_v29, 0.0 }
 0x66b   : > { %4001 = vst.msk [vmem:[#allocation3 + $0x19] sm:$0xff] %vm3616_vm6, %v3817_v20 }
 0x66c   : > { %4002 = vst.msk [vmem:[#allocation3 + $0x21] sm:$0xff] %vm3616_vm6, %v3818_v61  ;;  %v3689_v23 = vrot.slane %v9648_v59, 1  ;;  %v3690_v7 = vrot.slane %v9648_v59, 2  ;;  %v3691_v17 = vrot.slane %v9648_v59, 3  ;;  %v3692_v53 = vrot.slane %v9648_v59, 4 }
 0x66d   : > { %v3827_v12 = vld.sshfl [vmem:[#allocation1] sm:$0xff pattern:$0x73625140]  ;;  %v3693_v56 = vrot.slane %v9648_v59, 5  ;;  %v3694_v51 = vrot.slane %v9648_v59, 6  ;;  %v3746_v38 = vperm.slane %v9648_v59, 0 }
 0x66e   : > { %4003 = vst.msk [vmem:[#allocation3 + $0x31] sm:$0xff] %vm3616_vm6, %v3827_v12  ;;  %v3747_v15 = vperm.slane %v3689_v23, 0  ;;  %v3748_v2 = vperm.slane %v3690_v7, 0  ;;  %v3695_v47 = vrot.slane %v9648_v59, 7  ;;  %v3749_v6 = vperm.slane %v3691_v17, 0 }
 0x66f   : > { %3829 = vst [vmem:[#allocation1] ss:$4 sm:$0xff] %v3746_v38  ;;  %v3750_v27 = vperm.slane %v3692_v53, 0  ;;  %v3751_v8 = vperm.slane %v3693_v56, 0  ;;  %v3752_v41 = vperm.slane %v3694_v51, 0 }
 0x670   : > { %3830 = vst [vmem:[#allocation1 + $0x1] ss:$4 sm:$0xff] %v3747_v15  ;;  %v3753_v63 = vperm.slane %v3695_v47, 0 }
 0x671   : > { %v3828_v21 = vld.sshfl [vmem:[#allocation1 + $0x20] sm:$0xff pattern:$0x73625140]  ;;  %3831 = vst [vmem:[#allocation1 + $0x2] ss:$4 sm:$0xff] %v3748_v2 }
 0x672   : > { %4004 = vst.msk [vmem:[#allocation3 + $0x39] sm:$0xff] %vm3616_vm6, %v3828_v21  ;;  %v9662_v58 = vld [vmem:[#allocation3 + $0x18] sm:$0xff] }
 0x673   : > { %v9664_v34 = vld [vmem:[#allocation3 + $0x20] sm:$0xff]  ;;  %v9666_v24 = vld [vmem:[#allocation3 + $0x28] sm:$0x3]  ;;  %v4172_v26 = vrot.slane %v9662_v58, 1  ;;  %3832 = vst [vmem:[#allocation1 + $0x3] ss:$4 sm:$0xff] %v3749_v6 }
 0x674   : > { %v4173_v5 = vrot.slane %v9664_v34, 1  ;;  %v4175_v50 = vrot.slane %v9666_v24, 1  ;;  %3833 = vst [vmem:[#allocation1 + $0x20] ss:$4 sm:$0xff] %v3750_v27 }
 0x675   : > { %v9671_v11 = vld [vmem:[#allocation3 + $0x30] sm:$0xff]  ;;  %3834 = vst [vmem:[#allocation1 + $0x21] ss:$4 sm:$0xff] %v3751_v8 }
 0x676   : > { %v9674_v39 = vsel %vm715_vm2, %v4173_v5, %v4175_v50  ;;  %v9677_v62 = vsel %vm715_vm2, %v4172_v26, %v4173_v5  ;;  %3835 = vst [vmem:[#allocation1 + $0x22] ss:$4 sm:$0xff] %v3752_v41  ;;  %v4177_v16 = vrot.slane %v9671_v11, 1  ;;  %v3618_v5 = vsel %vm3616_vm6, %v9648_v59, 0.0 }
 0x677   : > { %4253 = vrot.lane.b32.xlu1 %v9674_v39, %s11697_s18  ;;  %4251 = vrot.lane.b32.xlu0 %v9677_v62, %s11697_s18  ;;  %3836 = vst [vmem:[#allocation1 + $0x23] ss:$4 sm:$0xff] %v3753_v63 }
 0x678   : > { %4090 = vst.msk [vmem:[#allocation4 + $0x30] sm:$0xff] %vm470_vm10, %v9664_v34 }
 0x679   : > { %v9686_v32 = vld [vmem:[#allocation3 + $0x38] sm:$0xff]  ;;  %v4041_v30 = vld [vmem:[#allocation3 + $0x40] sm:$0x3]  ;;  %4089 = vst.msk [vmem:[#allocation4 + $0x20] sm:$0xff] %vm470_vm10, %v9662_v58 }
 0x67a   : > { %v4178_v31 = vrot.slane %v9686_v32, 1  ;;  %v4180_v54 = vrot.slane %v4041_v30, 1  ;;  %v3837_v57 = vld.sshfl [vmem:[#allocation1] sm:$0xff pattern:$0x73625140]  ;;  %4092 = vst.msk [vmem:[#allocation4 + $0x50] sm:$0xff] %vm470_vm10, %v9686_v32 }
 0x67b   : > { %3839 = vst [vmem:[#allocation1] ss:$4 sm:$0xff] %v3746_v38 }
 0x67c   : > { %v9694_v18 = vsel %vm715_vm2, %v4178_v31, %v4180_v54  ;;  %v9697_v43 = vsel %vm715_vm2, %v4177_v16, %v4178_v31  ;;  %3840 = vst [vmem:[#allocation1 + $0x1] ss:$4 sm:$0xff] %v3747_v15  ;;  %v3617_v54 = vsel %vm3616_vm6, %v9635_v42, 0.0 }
 0x67d   : > { %11724 = vst [vmem:[#allocation15_spill] sm:$0xff] %v9694_v18  ;;  %4255 = vrot.lane.b32.xlu2 %v9697_v43, %s11697_s18 }
 0x67e   : > { %3841 = vst [vmem:[#allocation1 + $0x2] ss:$4 sm:$0xff] %v3748_v2  ;;  %v3590_v19 = vpop.f32.mrf.mxu0  ;;  %v3838_v52 = vld.sshfl [vmem:[#allocation1 + $0x20] sm:$0xff pattern:$0x73625140] }
 0x67f   : > { %3842 = vst [vmem:[#allocation1 + $0x3] ss:$4 sm:$0xff] %v3749_v6  ;;  %4257 = vrot.lane.b32.xlu0 %v9694_v18, %s11697_s18  ;;  %v3591_v40 = vadd.f32 %v9628_v13, %v3590_v19  ;;  %v3619_v19 = vadd.f32 %v3618_v5, %v3617_v54  ;;  %v4377_v18 = vrot.slane %v9619_v3, 2 }
 0x680   : > { %3843 = vst [vmem:[#allocation1 + $0x20] ss:$4 sm:$0xff] %v3750_v27 }
 0x681   : > { %3844 = vst [vmem:[#allocation1 + $0x21] ss:$4 sm:$0xff] %v3751_v8  ;;  %v9704_v9 = vmax.f32 %v3591_v40, 0.0 }
 0x682   : > { %3845 = vst [vmem:[#allocation1 + $0x22] ss:$4 sm:$0xff] %v3752_v41 }
 0x683   : > { %3846 = vst [vmem:[#allocation1 + $0x23] ss:$4 sm:$0xff] %v3753_v63  ;;  %v3696_v10 = vrot.slane %v9704_v9, 1  ;;  %v3697_v44 = vrot.slane %v9704_v9, 2  ;;  %v3698_v36 = vrot.slane %v9704_v9, 3  ;;  %v3754_v4 = vperm.slane %v9704_v9, 0 }
 0x684   : > { %4005 = vst.msk [vmem:[#allocation3 + $0x49] sm:$0xff] %vm3616_vm6, %v3837_v57  ;;  %v3699_v1 = vrot.slane %v9704_v9, 4  ;;  %v3700_v55 = vrot.slane %v9704_v9, 5  ;;  %v3701_v48 = vrot.slane %v9704_v9, 6  ;;  %v3702_v60 = vrot.slane %v9704_v9, 7 }
 0x685   : > { %4006 = vst.msk [vmem:[#allocation3 + $0x51] sm:$0xff] %vm3616_vm6, %v3838_v52  ;;  %v3755_v46 = vperm.slane %v3696_v10, 0  ;;  %v3756_v35 = vperm.slane %v3697_v44, 0  ;;  %v3757_v33 = vperm.slane %v3698_v36, 0  ;;  %v3620_v59 = vsel %vm3616_vm6, %v9704_v9, 0.0 }
 0x686   : > { %v3847_v25 = vld.sshfl [vmem:[#allocation1] sm:$0xff pattern:$0x73625140]  ;;  %4091 = vst.msk [vmem:[#allocation4 + $0x40] sm:$0xff] %vm470_vm10, %v9671_v11  ;;  %v3593_v0 = vpop.f32.mrf.mxu0  ;;  %v3758_v49 = vperm.slane %v3699_v1, 0  ;;  %v3599_v14 = vpop.f32.mrf.mxu1  ;;  %v3759_v28 = vperm.slane %v3700_v55, 0  ;;  %v3621_v10 = vadd.f32 %v3620_v59, %v3619_v19 }
 0x687   : > { %4007 = vst.msk [vmem:[#allocation3 + $0x61] sm:$0xff] %vm3616_vm6, %v3847_v25  ;;  %v3760_v20 = vperm.slane %v3701_v48, 0  ;;  %v3761_v61 = vperm.slane %v3702_v60, 0  ;;  %v3594_v38 = vadd.f32 %v9628_v13, %v3593_v0  ;;  %v3600_v57 = vadd.f32 %v9628_v13, %v3599_v14 }
 0x688   : > { %3849 = vst [vmem:[#allocation1] ss:$4 sm:$0xff] %v3754_v4  ;;  %v6530_v0 = vmov 64.0  }
 0x689   : > { %3850 = vst [vmem:[#allocation1 + $0x1] ss:$4 sm:$0xff] %v3755_v46  ;;  %v9753_v26 = vmax.f32 %v3594_v38, 0.0  ;;  %v9784_v36 = vmax.f32 %v3600_v57, 0.0  ;;  %6445 = vrcp.f32 %v6530_v0  ;;  %v3646_v0 = vld [vmem:[%s11731_s9] sm:$0xff] }
 0x68a   : > { %v3848_v45 = vld.sshfl [vmem:[#allocation1 + $0x20] sm:$0xff pattern:$0x73625140]  ;;  %3851 = vst [vmem:[#allocation1 + $0x2] ss:$4 sm:$0xff] %v3756_v35 }
 0x68b   : > { %4008 = vst.msk [vmem:[#allocation3 + $0x69] sm:$0xff] %vm3616_vm6, %v3848_v45  ;;  %v9720_v22 = vld [vmem:[#allocation3 + $0x48] sm:$0xff]  ;;  %v3622_v52 = vsel %vm3616_vm6, %v9753_v26, 0.0  ;;  %v3703_v40 = vrot.slane %v9753_v26, 1  ;;  %v3704_v42 = vrot.slane %v9753_v26, 2  ;;  %v3705_v44 = vrot.slane %v9753_v26, 3 }
 0x68c   : > { %3852 = vst [vmem:[#allocation1 + $0x3] ss:$4 sm:$0xff] %v3757_v33  ;;  %v9722_v29 = vld [vmem:[#allocation3 + $0x50] sm:$0xff]  ;;  %v9724_v23 = vld [vmem:[#allocation3 + $0x58] sm:$0x3]  ;;  %v4182_v7 = vrot.slane %v9720_v22, 1  ;;  %v3623_v1 = vadd.f32 %v3622_v52, %v3621_v10 }
 0x68d   : > { %3853 = vst [vmem:[#allocation1 + $0x20] ss:$4 sm:$0xff] %v3758_v49  ;;  %v4183_v17 = vrot.slane %v9722_v29, 1  ;;  %v4185_v12 = vrot.slane %v9724_v23, 1  ;;  %v3762_v25 = vperm.slane %v9753_v26, 0  ;;  %v3763_v48 = vperm.slane %v3703_v40, 0 }
 0x68e   : > { %3854 = vst [vmem:[#allocation1 + $0x21] ss:$4 sm:$0xff] %v3759_v28  ;;  %v3596_v51 = vpop.f32.mrf.mxu0  ;;  %v9746_v2 = vld [vmem:[#allocation3 + $0x60] sm:$0xff]  ;;  %v3602_v6 = vpop.f32.mrf.mxu1  ;;  %v3708_v45 = vrot.slane %v9753_v26, 6 }
 0x68f   : > { %3855 = vst [vmem:[#allocation1 + $0x22] ss:$4 sm:$0xff] %v3760_v20  ;;  %v9730_v53 = vsel %vm715_vm2, %v4183_v17, %v4185_v12  ;;  %v9733_v56 = vsel %vm715_vm2, %v4182_v7, %v4183_v17  ;;  %v3597_v27 = vadd.f32 %v9628_v13, %v3596_v51  ;;  %v4187_v41 = vrot.slane %v9746_v2, 1 }
 0x690   : > { %11725 = vst [vmem:[#allocation19_spill] sm:$0xff] %v9730_v53  ;;  %4261 = vrot.lane.b32.xlu2 %v9730_v53, %s11697_s18  ;;  %4259 = vrot.lane.b32.xlu1 %v9733_v56, %s11697_s18  ;;  %v3603_v55 = vadd.f32 %v9628_v13, %v3602_v6  ;;  %v6446_v6 = vpop.eup %6445 }
 0x691   : > { %11726 = vst [vmem:[#allocation14_spill] sm:$0xff] %v9733_v56  ;;  %v9766_v31 = vmax.f32 %v3597_v27, 0.0  ;;  %v3639_v52 = vmul.f32 64.0, %v6446_v6  ;;  %vm3643_vm7 = vweird.f32 %v6446_v6  ;;  %v4376_v56 = vrot.slane %v9617_v37, 2 }
 0x692   : > { %3856 = vst [vmem:[#allocation1 + $0x23] ss:$4 sm:$0xff] %v3761_v61  ;;  %v9744_v15 = vld [vmem:[#allocation3 + $0x68] sm:$0xff]  ;;  %v9750_v8 = vld [vmem:[#allocation3 + $0x70] sm:$0x3]  ;;  %v9798_v17 = vmax.f32 %v3603_v55, 0.0 }
 0x693   : > { %4094 = vst.msk [vmem:[#allocation4 + $0x70] sm:$0xff] %vm470_vm10, %v9722_v29  ;;  %v3857_v47 = vld.sshfl [vmem:[#allocation1] sm:$0xff pattern:$0x73625140]  ;;  %v4188_v21 = vrot.slane %v9744_v15, 1  ;;  %v4190_v63 = vrot.slane %v9750_v8, 1 }
 0x694   : > { %4093 = vst.msk [vmem:[#allocation4 + $0x60] sm:$0xff] %vm470_vm10, %v9720_v22  ;;  %v3624_v9 = vsel %vm3616_vm6, %v9766_v31, 0.0 }
 0x695   : > { %3859 = vst [vmem:[#allocation1] ss:$4 sm:$0xff] %v3754_v4  ;;  %v9759_v16 = vsel %vm715_vm2, %v4187_v41, %v4188_v21  ;;  %v9762_v30 = vsel %vm715_vm2, %v4188_v21, %v4190_v63  ;;  %v3625_v60 = vadd.f32 %v3624_v9, %v3623_v1  ;;  %v3768_v21 = vperm.slane %v3708_v45, 0  ;;  %v3647_v1 = vld [vmem:[%s11731_s9 + $0x8] sm:$0xff]  ;;  %s6171_s9 = sshll.u32 %s10269_s19, 4  ;;  %s6172_s9 = int_to_ptr.vmem [resolvable:$true] %s6171_s9 }
 0x696   : > { %3860 = vst [vmem:[#allocation1 + $0x1] ss:$4 sm:$0xff] %v3755_v46  ;;  %4263 = vrot.lane.b32.xlu0 %v9759_v16, %s11697_s18  ;;  %v3605_v4 = vpop.f32.mrf.mxu1  ;;  %3666 = vmatpush.msrb.mxu2 %v3647_v1 }
 0x697   : > { %3861 = vst [vmem:[#allocation1 + $0x2] ss:$4 sm:$0xff] %v3756_v35  ;;  %v3706_v35 = vrot.slane %v9753_v26, 4  ;;  %v3606_v14 = vadd.f32 %v9628_v13, %v3605_v4 }
 0x698   : > { %3862 = vst [vmem:[#allocation1 + $0x3] ss:$4 sm:$0xff] %v3757_v33  ;;  %4265 = vrot.lane.b32.xlu1 %v9762_v30, %s11697_s18  ;;  %v3707_v33 = vrot.slane %v9753_v26, 5  ;;  %3667 = vmatpush.msrb.mxu2 %v3646_v0 }
 0x699   : > { %v3858_v50 = vld.sshfl [vmem:[#allocation1 + $0x20] sm:$0xff pattern:$0x73625140]  ;;  %11727 = vst [vmem:[#allocation18_spill] sm:$0xff] %v9759_v16  ;;  %v3766_v12 = vperm.slane %v3706_v35, 0  ;;  %v9801_v13 = vmax.f32 %v3606_v14, 0.0 }
 0x69a   : > { %3863 = vst [vmem:[#allocation1 + $0x20] ss:$4 sm:$0xff] %v3758_v49  ;;  %v3764_v49 = vperm.slane %v3704_v42, 0  ;;  %v3767_v38 = vperm.slane %v3707_v33, 0 }
 0x69b   : > { %11728 = vst [vmem:[#allocation22_spill] sm:$0xff] %v9762_v30  ;;  %v3630_v19 = vsel %vm3616_vm6, %v9801_v13, 0.0 }
 0x69c   : > { %3864 = vst [vmem:[#allocation1 + $0x21] ss:$4 sm:$0xff] %v3759_v28  ;;  %v3709_v28 = vrot.slane %v9753_v26, 7  ;;  %v3628_v26 = vsel %vm3616_vm6, %v9798_v17, 0.0 }
 0x69d   : > { %3865 = vst [vmem:[#allocation1 + $0x22] ss:$4 sm:$0xff] %v3760_v20  ;;  %v3765_v20 = vperm.slane %v3705_v44, 0 }
 0x69e   : > { %3866 = vst [vmem:[#allocation1 + $0x23] ss:$4 sm:$0xff] %v3761_v61  ;;  %v3626_v61 = vsel %vm3616_vm6, %v9784_v36, 0.0  ;;  %v3769_v27 = vperm.slane %v3709_v28, 0 }
 0x69f   : > { %4009 = vst.msk [vmem:[#allocation3 + $0x79] sm:$0xff] %vm3616_vm6, %v3857_v47  ;;  %v3867_v46 = vld.sshfl [vmem:[#allocation1] sm:$0xff pattern:$0x73625140]  ;;  %v3627_v51 = vadd.f32 %v3626_v61, %v3625_v60 }
 0x6a0   : > { %4010 = vst.msk [vmem:[#allocation3 + $0x81] sm:$0xff] %vm3616_vm6, %v3858_v50 }
 0x6a1   : > { %4096 = vst.msk [vmem:[#allocation4 + $0x90] sm:$0xff] %vm470_vm10, %v9744_v15  ;;  %v3629_v54 = vadd.f32 %v3628_v26, %v3627_v51 }
 0x6a2   : > { %4011 = vst.msk [vmem:[#allocation3 + $0x91] sm:$0xff] %vm3616_vm6, %v3867_v46  ;;  %v3640_v46 = vsub.f32 1.0, %v3639_v52 }
 0x6a3   : > { %3869 = vst [vmem:[#allocation1] ss:$4 sm:$0xff] %v3762_v25  ;;  %v3631_v42 = vadd.f32 %v3630_v19, %v3629_v54  ;;  %v3714_v54 = vrot.slane %v9766_v31, 5 }
 0x6a4   : > { %3870 = vst [vmem:[#allocation1 + $0x1] ss:$4 sm:$0xff] %v3763_v48  ;;  %v3641_v45 = vmul.f32 %v6446_v6, %v3640_v46 }
 0x6a5   : > { %v3868_v7 = vld.sshfl [vmem:[#allocation1 + $0x20] sm:$0xff pattern:$0x73625140]  ;;  %3871 = vst [vmem:[#allocation1 + $0x2] ss:$4 sm:$0xff] %v3764_v49  ;;  %v3632_v33 = vrot.slane %v3631_v42, 4 }
 0x6a6   : > { %4012 = vst.msk [vmem:[#allocation3 + $0x99] sm:$0xff] %vm3616_vm6, %v3868_v7  ;;  %v9803_v47 = vld [vmem:[#allocation3 + $0x78] sm:$0xff]  ;;  %v3642_v51 = vadd.f32 %v6446_v6, %v3641_v45 }
 0x6a7   : > { %3872 = vst [vmem:[#allocation1 + $0x3] ss:$4 sm:$0xff] %v3765_v20  ;;  %v9805_v41 = vld [vmem:[#allocation3 + $0x80] sm:$0xff]  ;;  %v9809_v63 = vld [vmem:[#allocation3 + $0x88] sm:$0x3]  ;;  %v4192_v50 = vrot.slane %v9803_v47, 1  ;;  %v3633_v28 = vadd.f32 %v3632_v33, %v3631_v42 }
 0x6a8   : > { %3873 = vst [vmem:[#allocation1 + $0x20] ss:$4 sm:$0xff] %v3766_v12  ;;  %v4193_v5 = vrot.slane %v9805_v41, 1  ;;  %v4195_v59 = vrot.slane %v9809_v63, 1 }
 0x6a9   : > { %3874 = vst [vmem:[#allocation1 + $0x21] ss:$4 sm:$0xff] %v3767_v38  ;;  %v9814_v57 = vld [vmem:[#allocation3 + $0x90] sm:$0xff]  ;;  %v3634_v7 = vrot.slane %v3633_v28, 2 }
 0x6aa   : > { %3875 = vst [vmem:[#allocation1 + $0x22] ss:$4 sm:$0xff] %v3768_v21  ;;  %v9821_v40 = vsel %vm715_vm2, %v4192_v50, %v4193_v5  ;;  %v4197_v10 = vrot.slane %v9814_v57, 1  ;;  %v9825_v9 = vsel %vm715_vm2, %v4193_v5, %v4195_v59 }
 0x6ab   : > { %3876 = vst [vmem:[#allocation1 + $0x23] ss:$4 sm:$0xff] %v3769_v27  ;;  %4267 = vrot.lane.b32.xlu2 %v9821_v40, %s11697_s18  ;;  %4269 = vrot.lane.b32.xlu0 %v9825_v9, %s11697_s18 }
 0x6ac   : > { %4095 = vst.msk [vmem:[#allocation4 + $0x80] sm:$0xff] %vm470_vm10, %v9746_v2 }
 0x6ad   : > { %11729 = vst [vmem:[#allocation17_spill] sm:$0xff] %v9821_v40  ;;  %v9831_v44 = vld [vmem:[#allocation3 + $0x98] sm:$0xff]  ;;  %v9833_v4 = vld [vmem:[#allocation3 + $0xa0] sm:$0x3] }
 0x6ae   : > { %11730 = vst [vmem:[#allocation25_spill] sm:$0xff] %v9825_v9  ;;  %v3877_v55 = vld.sshfl [vmem:[#allocation1] sm:$0xff pattern:$0x73625140]  ;;  %v4198_v35 = vrot.slane %v9831_v44, 1  ;;  %v4200_v60 = vrot.slane %v9833_v4, 1 }
 0x6af   : > { %4098 = vst.msk [vmem:[#allocation4 + $0xb0] sm:$0xff] %vm470_vm10, %v9805_v41  ;;  %v3735_v9 = vrot.slane %v9801_v13, 5 }
 0x6b0   : > { %4097 = vst.msk [vmem:[#allocation4 + $0xa0] sm:$0xff] %vm470_vm10, %v9803_v47  ;;  %v9848_v14 = vsel %vm715_vm2, %v4197_v10, %v4198_v35  ;;  %v3716_v10 = vrot.slane %v9766_v31, 7 }
 0x6b1   : > { %3879 = vst [vmem:[#allocation1] ss:$4 sm:$0xff] %v3762_v25  ;;  %4271 = vrot.lane.b32.xlu1 %v9848_v14, %s11697_s18  ;;  %v9853_v25 = vsel %vm715_vm2, %v4198_v35, %v4200_v60 }
 0x6b2   : > { %3880 = vst [vmem:[#allocation1 + $0x1] ss:$4 sm:$0xff] %v3763_v48  ;;  %v3878_v61 = vld.sshfl [vmem:[#allocation1 + $0x20] sm:$0xff pattern:$0x73625140]  ;;  %v3635_v48 = vadd.f32 %v3634_v7, %v3633_v28 }
 0x6b3   : > { %11732 = vst [vmem:[#allocation20_spill] sm:$0xff] %v9848_v14  ;;  %4273 = vrot.lane.b32.xlu2 %v9853_v25, %s11697_s18  ;;  %v3734_v14 = vrot.slane %v9801_v13, 4 }
 0x6b4   : > { %3881 = vst [vmem:[#allocation1 + $0x2] ss:$4 sm:$0xff] %v3764_v49  ;;  %v3710_v49 = vrot.slane %v9766_v31, 1  ;;  %v3636_v26 = vrot.slane %v3635_v48, 1 }
 0x6b5   : > { %3882 = vst [vmem:[#allocation1 + $0x3] ss:$4 sm:$0xff] %v3765_v20  ;;  %v3711_v20 = vrot.slane %v9766_v31, 2  ;;  %v3798_v30 = vperm.slane %v3734_v14, 0 }
 0x6b6   : > { %11733 = vst [vmem:[#allocation24_spill] sm:$0xff] %v9853_v25  ;;  %v3637_v50 = vadd.f32 %v3636_v26, %v3635_v48  ;;  %v3771_v59 = vperm.slane %v3710_v49, 0 }
 0x6b7   : > { %3883 = vst [vmem:[#allocation1 + $0x20] ss:$4 sm:$0xff] %v3766_v12  ;;  %v3644_v12 = vsel %vm3643_vm7, %v6446_v6, %v3642_v51  ;;  %v3772_v19 = vperm.slane %v3711_v20, 0  ;;  %v3715_v6 = vrot.slane %v9766_v31, 6 }
 0x6b8   : > { %3884 = vst [vmem:[#allocation1 + $0x21] ss:$4 sm:$0xff] %v3767_v38  ;;  %v3712_v38 = vrot.slane %v9766_v31, 3  ;;  %v3645_v52 = vmul.f32 %v3644_v12, %v3637_v50 }
 0x6b9   : > { %3885 = vst [vmem:[#allocation1 + $0x22] ss:$4 sm:$0xff] %v3768_v21  ;;  %v3770_v21 = vperm.slane %v9766_v31, 0 }
 0x6ba   : > { %3886 = vst [vmem:[#allocation1 + $0x23] ss:$4 sm:$0xff] %v3769_v27  ;;  %v3713_v27 = vrot.slane %v9766_v31, 4  ;;  %v3773_v1 = vperm.slane %v3712_v38, 0  ;;  %6302 = vmatmul.msk.f32.vlgmr.msrb.gmra.mxu2 %vm3616_vm6, %v3645_v52  ;;  %v3776_v31 = vperm.slane %v3715_v6, 0  ;;  %v3719_v52 = vrot.slane %v9784_v36, 3 }
 0x6bb   : > { %4013 = vst.msk [vmem:[#allocation3 + $0xa9] sm:$0xff] %vm3616_vm6, %v3877_v55  ;;  %v3775_v55 = vperm.slane %v3714_v54, 0  ;;  %v3778_v6 = vperm.slane %v9784_v36, 0 }
 0x6bc   : > { %4014 = vst.msk [vmem:[#allocation3 + $0xb1] sm:$0xff] %vm3616_vm6, %v3878_v61  ;;  %v3887_v5 = vld.sshfl [vmem:[#allocation1] sm:$0xff pattern:$0x73625140]  ;;  %v3774_v46 = vperm.slane %v3713_v27, 0  ;;  %v3777_v61 = vperm.slane %v3716_v10, 0 }
 0x6bd   : > { %4100 = vst.msk [vmem:[#allocation4 + $0xd0] sm:$0xff] %vm470_vm10, %v9831_v44  ;;  %v3721_v10 = vrot.slane %v9784_v36, 5 }
 0x6be   : > { %4015 = vst.msk [vmem:[#allocation3 + $0xc1] sm:$0xff] %vm3616_vm6, %v3887_v5 }
 0x6bf   : > { %3889 = vst [vmem:[#allocation1] ss:$4 sm:$0xff] %v3770_v21 }
 0x6c0   : > { %3890 = vst [vmem:[#allocation1 + $0x1] ss:$4 sm:$0xff] %v3771_v59 }
 0x6c1   : > { %v3888_v42 = vld.sshfl [vmem:[#allocation1 + $0x20] sm:$0xff pattern:$0x73625140]  ;;  %3891 = vst [vmem:[#allocation1 + $0x2] ss:$4 sm:$0xff] %v3772_v19 }
 0x6c2   : > { %4016 = vst.msk [vmem:[#allocation3 + $0xc9] sm:$0xff] %vm3616_vm6, %v3888_v42  ;;  %v9872_v35 = vld [vmem:[#allocation3 + $0xa8] sm:$0xff] }
 0x6c3   : > { %3892 = vst [vmem:[#allocation1 + $0x3] ss:$4 sm:$0xff] %v3773_v1  ;;  %v9874_v60 = vld [vmem:[#allocation3 + $0xb0] sm:$0xff]  ;;  %v9876_v0 = vld [vmem:[#allocation3 + $0xb8] sm:$0x3]  ;;  %v4202_v33 = vrot.slane %v9872_v35, 1 }
 0x6c4   : > { %3893 = vst [vmem:[#allocation1 + $0x20] ss:$4 sm:$0xff] %v3774_v46  ;;  %v4203_v45 = vrot.slane %v9874_v60, 1  ;;  %v4205_v28 = vrot.slane %v9876_v0, 1 }
 0x6c5   : > { %3894 = vst [vmem:[#allocation1 + $0x21] ss:$4 sm:$0xff] %v3775_v55  ;;  %v9881_v7 = vld [vmem:[#allocation3 + $0xc0] sm:$0xff] }
 0x6c6   : > { %3895 = vst [vmem:[#allocation1 + $0x22] ss:$4 sm:$0xff] %v3776_v31  ;;  %v9884_v51 = vsel %vm715_vm2, %v4203_v45, %v4205_v28  ;;  %v9887_v48 = vsel %vm715_vm2, %v4202_v33, %v4203_v45  ;;  %v4207_v49 = vrot.slane %v9881_v7, 1  ;;  %v3783_v28 = vperm.slane %v3721_v10, 0 }
 0x6c7   : > { %11734 = vst [vmem:[#allocation28_spill] sm:$0xff] %v9884_v51  ;;  %4277 = vrot.lane.b32.xlu1 %v9884_v51, %s11697_s18  ;;  %4275 = vrot.lane.b32.xlu0 %v9887_v48, %s11697_s18 }
 0x6c8   : > { %11735 = vst [vmem:[#allocation23_spill] sm:$0xff] %v9887_v48 }
 0x6c9   : > { %3896 = vst [vmem:[#allocation1 + $0x23] ss:$4 sm:$0xff] %v3777_v61  ;;  %v9898_v20 = vld [vmem:[#allocation3 + $0xc8] sm:$0xff]  ;;  %v9900_v26 = vld [vmem:[#allocation3 + $0xd0] sm:$0x3] }
 0x6ca   : > { %4099 = vst.msk [vmem:[#allocation4 + $0xc0] sm:$0xff] %vm470_vm10, %v9814_v57  ;;  %v3897_v12 = vld.sshfl [vmem:[#allocation1] sm:$0xff pattern:$0x73625140]  ;;  %v4208_v5 = vrot.slane %v9898_v20, 1  ;;  %v4210_v38 = vrot.slane %v9900_v26, 1 }
 0x6cb   : > { %4102 = vst.msk [vmem:[#allocation4 + $0xf0] sm:$0xff] %vm470_vm10, %v9874_v60 }
 0x6cc   : > { %4101 = vst.msk [vmem:[#allocation4 + $0xe0] sm:$0xff] %vm470_vm10, %v9872_v35  ;;  %v9907_v50 = vsel %vm715_vm2, %v4208_v5, %v4210_v38  ;;  %v9910_v27 = vsel %vm715_vm2, %v4207_v49, %v4208_v5 }
 0x6cd   : > { %3899 = vst [vmem:[#allocation1] ss:$4 sm:$0xff] %v3770_v21  ;;  %4279 = vrot.lane.b32.xlu2 %v9910_v27, %s11697_s18  ;;  %v3717_v21 = vrot.slane %v9784_v36, 1 }
 0x6ce   : > { %3900 = vst [vmem:[#allocation1 + $0x1] ss:$4 sm:$0xff] %v3771_v59  ;;  %v3718_v59 = vrot.slane %v9784_v36, 2 }
 0x6cf   : > { %11736 = vst [vmem:[#allocation31_spill] sm:$0xff] %v9907_v50  ;;  %4281 = vrot.lane.b32.xlu0 %v9907_v50, %s11697_s18  ;;  %v3779_v42 = vperm.slane %v3717_v21, 0  ;;  %v3730_v50 = vrot.slane %v9798_v17, 7 }
 0x6d0   : > { %11737 = vst [vmem:[#allocation26_spill] sm:$0xff] %v9910_v27  ;;  %v3898_v54 = vld.sshfl [vmem:[#allocation1 + $0x20] sm:$0xff pattern:$0x73625140]  ;;  %v3780_v33 = vperm.slane %v3718_v59, 0 }
 0x6d1   : > { %3901 = vst [vmem:[#allocation1 + $0x2] ss:$4 sm:$0xff] %v3772_v19  ;;  %v3720_v19 = vrot.slane %v9784_v36, 4 }
 0x6d2   : > { %3902 = vst [vmem:[#allocation1 + $0x3] ss:$4 sm:$0xff] %v3773_v1 }
 0x6d3   : > { %3903 = vst [vmem:[#allocation1 + $0x20] ss:$4 sm:$0xff] %v3774_v46  ;;  %v3722_v46 = vrot.slane %v9784_v36, 6  ;;  %v3782_v45 = vperm.slane %v3720_v19, 0 }
 0x6d4   : > { %3904 = vst [vmem:[#allocation1 + $0x21] ss:$4 sm:$0xff] %v3775_v55  ;;  %v3723_v55 = vrot.slane %v9784_v36, 7 }
 0x6d5   : > { %3905 = vst [vmem:[#allocation1 + $0x22] ss:$4 sm:$0xff] %v3776_v31  ;;  %v3781_v31 = vperm.slane %v3719_v52, 0  ;;  %v3784_v49 = vperm.slane %v3722_v46, 0 }
 0x6d6   : > { %3906 = vst [vmem:[#allocation1 + $0x23] ss:$4 sm:$0xff] %v3777_v61 }
 0x6d7   : > { %4017 = vst.msk [vmem:[#allocation3 + $0xd9] sm:$0xff] %vm3616_vm6, %v3897_v12  ;;  %v3785_v12 = vperm.slane %v3723_v55, 0 }
 0x6d8   : > { %4018 = vst.msk [vmem:[#allocation3 + $0xe1] sm:$0xff] %vm3616_vm6, %v3898_v54 }
 0x6d9   : > { %v3907_v1 = vld.sshfl [vmem:[#allocation1] sm:$0xff pattern:$0x73625140]  ;;  %4104 = vst.msk [vmem:[#allocation4 + $0x110] sm:$0xff] %vm470_vm10, %v9898_v20 }
 0x6da   : > { %3909 = vst [vmem:[#allocation1] ss:$4 sm:$0xff] %v3778_v6 }
 0x6db   : > { %3910 = vst [vmem:[#allocation1 + $0x1] ss:$4 sm:$0xff] %v3779_v42 }
 0x6dc   : > { %3911 = vst [vmem:[#allocation1 + $0x2] ss:$4 sm:$0xff] %v3780_v33 }
 0x6dd   : > { %v3908_v61 = vld.sshfl [vmem:[#allocation1 + $0x20] sm:$0xff pattern:$0x73625140]  ;;  %3912 = vst [vmem:[#allocation1 + $0x3] ss:$4 sm:$0xff] %v3781_v31 }
 0x6de   : > { %3913 = vst [vmem:[#allocation1 + $0x20] ss:$4 sm:$0xff] %v3782_v45  ;;  %v9928_v5 = vld [vmem:[#allocation3 + $0xd8] sm:$0xff] }
 0x6df   : > { %3914 = vst [vmem:[#allocation1 + $0x21] ss:$4 sm:$0xff] %v3783_v28  ;;  %v9930_v38 = vld [vmem:[#allocation3 + $0xe0] sm:$0xff]  ;;  %v9932_v54 = vld [vmem:[#allocation3 + $0xe8] sm:$0x3]  ;;  %v4212_v36 = vrot.slane %v9928_v5, 1 }
 0x6e0   : > { %3915 = vst [vmem:[#allocation1 + $0x22] ss:$4 sm:$0xff] %v3784_v49  ;;  %v4213_v21 = vrot.slane %v9930_v38, 1  ;;  %v4215_v59 = vrot.slane %v9932_v54, 1 }
 0x6e1   : > { %3916 = vst [vmem:[#allocation1 + $0x23] ss:$4 sm:$0xff] %v3785_v12 }
 0x6e2   : > { %4019 = vst.msk [vmem:[#allocation3 + $0xf1] sm:$0xff] %vm3616_vm6, %v3907_v1  ;;  %v9939_v52 = vsel %vm715_vm2, %v4213_v21, %v4215_v59  ;;  %v9942_v19 = vsel %vm715_vm2, %v4212_v36, %v4213_v21  ;;  %v4250_v1 = vpop.permute.xlu2 %4249 }
 0x6e3   : > { %11738 = vst [vmem:[#allocation32_spill] sm:$0xff] %v9939_v52  ;;  %4285 = vrot.lane.b32.xlu2 %v9939_v52, %s11697_s18  ;;  %4283 = vrot.lane.b32.xlu1 %v9942_v19, %s11697_s18 }
 0x6e4   : > { %11739 = vst [vmem:[#allocation29_spill] sm:$0xff] %v9942_v19  ;;  %v3917_v10 = vld.sshfl [vmem:[#allocation1] sm:$0xff pattern:$0x73625140] }
 0x6e5   : > { %4020 = vst.msk [vmem:[#allocation3 + $0xf9] sm:$0xff] %vm3616_vm6, %v3908_v61 }
 0x6e6   : > { %4103 = vst.msk [vmem:[#allocation4 + $0x100] sm:$0xff] %vm470_vm10, %v9881_v7 }
 0x6e7   : > { %4106 = vst.msk [vmem:[#allocation4 + $0x130] sm:$0xff] %vm470_vm10, %v9930_v38 }
 0x6e8   : > { %4105 = vst.msk [vmem:[#allocation4 + $0x120] sm:$0xff] %vm470_vm10, %v9928_v5  ;;  %v3918_v46 = vld.sshfl [vmem:[#allocation1 + $0x20] sm:$0xff pattern:$0x73625140] }
 0x6e9   : > { %4345 = vst.msk [vmem:[#allocation4 + $0x10] sm:$0xff] %vm4343_vm8, %v4250_v1  ;;  %v9957_v55 = vld [vmem:[#allocation3 + $0xf0] sm:$0xff] }
 0x6ea   : > { %4021 = vst.msk [vmem:[#allocation3 + $0x109] sm:$0xff] %vm3616_vm6, %v3917_v10  ;;  %v4217_v21 = vrot.slane %v9957_v55, 1 }
 0x6eb   : > { %4022 = vst.msk [vmem:[#allocation3 + $0x111] sm:$0xff] %vm3616_vm6, %v3918_v46 }
 0x6ec   : > { %v9960_v61 = vld [vmem:[#allocation3 + $0xf8] sm:$0xff]  ;;  %v9962_v36 = vld [vmem:[#allocation3 + $0x100] sm:$0x3]  ;;  %4107 = vst.msk [vmem:[#allocation4 + $0x140] sm:$0xff] %vm470_vm10, %v9957_v55 }
 0x6ed   : > { %v4218_v59 = vrot.slane %v9960_v61, 1  ;;  %v4220_v1 = vrot.slane %v9962_v36, 1  ;;  %4108 = vst.msk [vmem:[#allocation4 + $0x150] sm:$0xff] %vm470_vm10, %v9960_v61 }
 0x6ee   : > { %3919 = vst [vmem:[#allocation1] ss:$4 sm:$0xff] %v3778_v6 }
 0x6ef   : > { %v9972_v10 = vsel %vm715_vm2, %v4218_v59, %v4220_v1  ;;  %v9975_v46 = vsel %vm715_vm2, %v4217_v21, %v4218_v59  ;;  %3920 = vst [vmem:[#allocation1 + $0x1] ss:$4 sm:$0xff] %v3779_v42  ;;  %v3724_v59 = vrot.slane %v9798_v17, 1 }
 0x6f0   : > { %11740 = vst [vmem:[#allocation8_spill] sm:$0xff] %v9972_v10  ;;  %4289 = vrot.lane.b32.xlu1 %v9972_v10, %s11697_s18  ;;  %4287 = vrot.lane.b32.xlu0 %v9975_v46, %s11697_s18  ;;  %v4256_v10 = vpop.permute.xlu2 %4255 }
 0x6f1   : > { %11741 = vst [vmem:[#allocation34_spill] sm:$0xff] %v9975_v46  ;;  %v9981_v52 = vld [vmem:[#allocation3 + $0x108] sm:$0xff]  ;;  %v3729_v46 = vrot.slane %v9798_v17, 6 }
 0x6f2   : > { %3921 = vst [vmem:[#allocation1 + $0x2] ss:$4 sm:$0xff] %v3780_v33  ;;  %v9983_v19 = vld [vmem:[#allocation3 + $0x110] sm:$0xff]  ;;  %v9985_v6 = vld [vmem:[#allocation3 + $0x118] sm:$0x3]  ;;  %v4222_v1 = vrot.slane %v9981_v52, 1 }
 0x6f3   : > { %3922 = vst [vmem:[#allocation1 + $0x3] ss:$4 sm:$0xff] %v3781_v31  ;;  %v4223_v21 = vrot.slane %v9983_v19, 1  ;;  %v4225_v42 = vrot.slane %v9985_v6, 1 }
 0x6f4   : > { %3923 = vst [vmem:[#allocation1 + $0x20] ss:$4 sm:$0xff] %v3782_v45  ;;  %v3725_v45 = vrot.slane %v9798_v17, 2 }
 0x6f5   : > { %3924 = vst [vmem:[#allocation1 + $0x21] ss:$4 sm:$0xff] %v3783_v28  ;;  %v9992_v33 = vsel %vm715_vm2, %v4223_v21, %v4225_v42  ;;  %v9995_v31 = vsel %vm715_vm2, %v4222_v1, %v4223_v21  ;;  %v3726_v28 = vrot.slane %v9798_v17, 3  ;;  %v3727_v1 = vrot.slane %v9798_v17, 4 }
 0x6f6   : > { %3925 = vst [vmem:[#allocation1 + $0x22] ss:$4 sm:$0xff] %v3784_v49  ;;  %4291 = vrot.lane.b32.xlu2 %v9995_v31, %s11697_s18  ;;  %v3786_v49 = vperm.slane %v9798_v17, 0  ;;  %v3787_v21 = vperm.slane %v3724_v59, 0  ;;  %v3728_v42 = vrot.slane %v9798_v17, 5  ;;  %v3792_v59 = vperm.slane %v3729_v46, 0  ;;  %v4248_v17 = vpop.permute.xlu1 %4247 }
 0x6f7   : > { %11742 = vst [vmem:[#allocation40_spill] sm:$0xff] %v9992_v33  ;;  %v3789_v27 = vperm.slane %v3726_v28, 0 }
 0x6f8   : > { %3926 = vst [vmem:[#allocation1 + $0x23] ss:$4 sm:$0xff] %v3785_v12  ;;  %4293 = vrot.lane.b32.xlu0 %v9992_v33, %s11697_s18  ;;  %v3790_v33 = vperm.slane %v3727_v1, 0 }
 0x6f9   : > { %11743 = vst [vmem:[#allocation36_spill] sm:$0xff] %v9995_v31  ;;  %v3788_v31 = vperm.slane %v3725_v45, 0 }
 0x6fa   : > { %4110 = vst.msk [vmem:[#allocation4 + $0x170] sm:$0xff] %vm470_vm10, %v9983_v19  ;;  %v3927_v12 = vld.sshfl [vmem:[#allocation1] sm:$0xff pattern:$0x73625140] }
 0x6fb   : > { %4109 = vst.msk [vmem:[#allocation4 + $0x160] sm:$0xff] %vm470_vm10, %v9981_v52 }
 0x6fc   : > { %4348 = vst.msk [vmem:[#allocation4 + $0x40] sm:$0xff] %vm4343_vm8, %v4256_v10  ;;  %v3791_v10 = vperm.slane %v3728_v42, 0 }
 0x6fd   : > { %4023 = vst.msk [vmem:[#allocation3 + $0x121] sm:$0xff] %vm3616_vm6, %v3927_v12  ;;  %v3793_v12 = vperm.slane %v3730_v50, 0 }
 0x6fe   : > { %3929 = vst [vmem:[#allocation1] ss:$4 sm:$0xff] %v3786_v49 }
 0x6ff   : > { %3930 = vst [vmem:[#allocation1 + $0x1] ss:$4 sm:$0xff] %v3787_v21  ;;  %v3928_v51 = vld.sshfl [vmem:[#allocation1 + $0x20] sm:$0xff pattern:$0x73625140] }
 0x700   : > { %3931 = vst [vmem:[#allocation1 + $0x2] ss:$4 sm:$0xff] %v3788_v31 }
 0x701   : > { %4024 = vst.msk [vmem:[#allocation3 + $0x129] sm:$0xff] %vm3616_vm6, %v3928_v51 }
 0x702   : > { %3932 = vst [vmem:[#allocation1 + $0x3] ss:$4 sm:$0xff] %v3789_v27 }
 0x703   : > { %3933 = vst [vmem:[#allocation1 + $0x20] ss:$4 sm:$0xff] %v3790_v33 }
 0x704   : > { %3934 = vst [vmem:[#allocation1 + $0x21] ss:$4 sm:$0xff] %v3791_v10  ;;  %v10015_v48 = vld [vmem:[#allocation3 + $0x120] sm:$0xff] }
 0x705   : > { %3935 = vst [vmem:[#allocation1 + $0x22] ss:$4 sm:$0xff] %v3792_v59  ;;  %v4227_v45 = vrot.slane %v10015_v48, 1 }
 0x706   : > { %3936 = vst [vmem:[#allocation1 + $0x23] ss:$4 sm:$0xff] %v3793_v12 }
 0x707   : > { %4111 = vst.msk [vmem:[#allocation4 + $0x180] sm:$0xff] %vm470_vm10, %v10015_v48 }
 0x708   : > { %v10020_v28 = vld [vmem:[#allocation3 + $0x128] sm:$0xff]  ;;  %v10022_v1 = vld [vmem:[#allocation3 + $0x130] sm:$0x3]  ;;  %4344 = vst.msk [vmem:[#allocation4] sm:$0xff] %vm4343_vm8, %v4248_v17 }
 0x709   : > { %v4228_v51 = vrot.slane %v10020_v28, 1  ;;  %v4230_v50 = vrot.slane %v10022_v1, 1  ;;  %4112 = vst.msk [vmem:[#allocation4 + $0x190] sm:$0xff] %vm470_vm10, %v10020_v28  ;;  %v3937_v46 = vld.sshfl [vmem:[#allocation1] sm:$0xff pattern:$0x73625140] }
 0x70a   : > { %4025 = vst.msk [vmem:[#allocation3 + $0x139] sm:$0xff] %vm3616_vm6, %v3937_v46 }
 0x70b   : > { %v10031_v42 = vsel %vm715_vm2, %v4228_v51, %v4230_v50  ;;  %v10034_v25 = vsel %vm715_vm2, %v4227_v45, %v4228_v51  ;;  %3939 = vst [vmem:[#allocation1] ss:$4 sm:$0xff] %v3786_v49  ;;  %v4262_v45 = vpop.permute.xlu2 %4261  ;;  %v4254_v51 = vpop.permute.xlu1 %4253 }
 0x70c   : > { %11744 = vst [vmem:[#allocation38_spill] sm:$0xff] %v10031_v42  ;;  %4297 = vrot.lane.b32.xlu2 %v10031_v42, %s11697_s18  ;;  %4295 = vrot.lane.b32.xlu1 %v10034_v25, %s11697_s18  ;;  %v3794_v42 = vperm.slane %v9801_v13, 0 }
 0x70d   : > { %11745 = vst [vmem:[#allocation45_spill] sm:$0xff] %v10034_v25  ;;  %v3938_v17 = vld.sshfl [vmem:[#allocation1 + $0x20] sm:$0xff pattern:$0x73625140] }
 0x70e   : > { %3940 = vst [vmem:[#allocation1 + $0x1] ss:$4 sm:$0xff] %v3787_v21  ;;  %v3731_v21 = vrot.slane %v9801_v13, 1 }
 0x70f   : > { %3941 = vst [vmem:[#allocation1 + $0x2] ss:$4 sm:$0xff] %v3788_v31 }
 0x710   : > { %4026 = vst.msk [vmem:[#allocation3 + $0x141] sm:$0xff] %vm3616_vm6, %v3938_v17  ;;  %v3733_v17 = vrot.slane %v9801_v13, 3 }
 0x711   : > { %3942 = vst [vmem:[#allocation1 + $0x3] ss:$4 sm:$0xff] %v3789_v27  ;;  %v10041_v50 = vld [vmem:[#allocation3 + $0x138] sm:$0xff]  ;;  %v4252_v27 = vpop.permute.xlu0 %4251 }
 0x712   : > { %3943 = vst [vmem:[#allocation1 + $0x20] ss:$4 sm:$0xff] %v3790_v33  ;;  %v4232_v49 = vrot.slane %v10041_v50, 1  ;;  %v3797_v40 = vperm.slane %v3733_v17, 0 }
 0x713   : > { %3944 = vst [vmem:[#allocation1 + $0x21] ss:$4 sm:$0xff] %v3791_v10  ;;  %v4268_v17 = vpop.permute.xlu2 %4267 }
 0x714   : > { %3945 = vst [vmem:[#allocation1 + $0x22] ss:$4 sm:$0xff] %v3792_v59 }
 0x715   : > { %3946 = vst [vmem:[#allocation1 + $0x23] ss:$4 sm:$0xff] %v3793_v12  ;;  %v3732_v12 = vrot.slane %v9801_v13, 2 }
 0x716   : > { %4113 = vst.msk [vmem:[#allocation4 + $0x1a0] sm:$0xff] %vm470_vm10, %v10041_v50 }
 0x717   : > { %v10047_v46 = vld [vmem:[#allocation3 + $0x140] sm:$0xff]  ;;  %v10049_v31 = vld [vmem:[#allocation3 + $0x148] sm:$0x3]  ;;  %4351 = vst.msk [vmem:[#allocation4 + $0x70] sm:$0xff] %vm4343_vm8, %v4262_v45 }
 0x718   : > { %v4233_v33 = vrot.slane %v10047_v46, 1  ;;  %v4235_v10 = vrot.slane %v10049_v31, 1  ;;  %4114 = vst.msk [vmem:[#allocation4 + $0x1b0] sm:$0xff] %vm470_vm10, %v10047_v46  ;;  %v3947_v59 = vld.sshfl [vmem:[#allocation1] sm:$0xff pattern:$0x73625140] }
 0x719   : > { %4347 = vst.msk [vmem:[#allocation4 + $0x30] sm:$0xff] %vm4343_vm8, %v4254_v51  ;;  %v3795_v51 = vperm.slane %v3731_v21, 0 }
 0x71a   : > { %v10061_v25 = vsel %vm715_vm2, %v4233_v33, %v4235_v10  ;;  %v10064_v45 = vsel %vm715_vm2, %v4232_v49, %v4233_v33  ;;  %4346 = vst.msk [vmem:[#allocation4 + $0x20] sm:$0xff] %vm4343_vm8, %v4252_v27  ;;  %v3736_v49 = vrot.slane %v9801_v13, 6  ;;  %v3796_v33 = vperm.slane %v3732_v12, 0 }
 0x71b   : > { %11746 = vst [vmem:[#allocation41_spill] sm:$0xff] %v10061_v25  ;;  %4301 = vrot.lane.b32.xlu1 %v10061_v25, %s11697_s18  ;;  %4299 = vrot.lane.b32.xlu0 %v10064_v45, %s11697_s18  ;;  %v3737_v27 = vrot.slane %v9801_v13, 7  ;;  %v3799_v25 = vperm.slane %v3735_v9, 0  ;;  %v4258_v13 = vpop.permute.xlu0 %4257 }
 0x71c   : > { %11747 = vst [vmem:[#allocation43_spill] sm:$0xff] %v10064_v45  ;;  %v3948_v10 = vld.sshfl [vmem:[#allocation1 + $0x20] sm:$0xff pattern:$0x73625140]  ;;  %v3800_v16 = vperm.slane %v3736_v49, 0 }
 0x71d   : > { %4027 = vst.msk [vmem:[#allocation3 + $0x151] sm:$0xff] %vm3616_vm6, %v3947_v59  ;;  %v3801_v45 = vperm.slane %v3737_v27, 0 }
 0x71e   : > { %3949 = vst [vmem:[#allocation1] ss:$4 sm:$0xff] %v3794_v42 }
 0x71f   : > { %4028 = vst.msk [vmem:[#allocation3 + $0x159] sm:$0xff] %vm3616_vm6, %v3948_v10 }
 0x720   : > { %3950 = vst [vmem:[#allocation1 + $0x1] ss:$4 sm:$0xff] %v3795_v51 }
 0x721   : > { %3951 = vst [vmem:[#allocation1 + $0x2] ss:$4 sm:$0xff] %v3796_v33 }
 0x722   : > { %3952 = vst [vmem:[#allocation1 + $0x3] ss:$4 sm:$0xff] %v3797_v40 }
 0x723   : > { %3953 = vst [vmem:[#allocation1 + $0x20] ss:$4 sm:$0xff] %v3798_v30 }
 0x724   : > { %3954 = vst [vmem:[#allocation1 + $0x21] ss:$4 sm:$0xff] %v3799_v25  ;;  %v10077_v21 = vld [vmem:[#allocation3 + $0x150] sm:$0xff] }
 0x725   : > { %3955 = vst [vmem:[#allocation1 + $0x22] ss:$4 sm:$0xff] %v3800_v16  ;;  %v4237_v59 = vrot.slane %v10077_v21, 1 }
 0x726   : > { %v10080_v12 = vld [vmem:[#allocation3 + $0x158] sm:$0xff]  ;;  %v10082_v10 = vld [vmem:[#allocation3 + $0x160] sm:$0x3]  ;;  %3956 = vst [vmem:[#allocation1 + $0x23] ss:$4 sm:$0xff] %v3801_v45 }
 0x727   : > { %v4238_v14 = vrot.slane %v10080_v12, 1  ;;  %v4240_v9 = vrot.slane %v10082_v10, 1  ;;  %4116 = vst.msk [vmem:[#allocation4 + $0x1d0] sm:$0xff] %vm470_vm10, %v10080_v12 }
 0x728   : > { %4115 = vst.msk [vmem:[#allocation4 + $0x1c0] sm:$0xff] %vm470_vm10, %v10077_v21 }
 0x729   : > { %v10091_v49 = vsel %vm715_vm2, %v4238_v14, %v4240_v9  ;;  %v10094_v27 = vsel %vm715_vm2, %v4237_v59, %v4238_v14  ;;  %4349 = vst.msk [vmem:[#allocation4 + $0x50] sm:$0xff] %vm4343_vm8, %v4258_v13  ;;  %v3957_v53 = vld.sshfl [vmem:[#allocation1] sm:$0xff pattern:$0x73625140]  ;;  %v4260_v9 = vpop.permute.xlu1 %4259  ;;  %v4378_v13 = vsel %vm925_vm4, %v4376_v56, %v4377_v18  ;;  %v4382_v56 = vrot.slane %v9664_v34, 2 }
 0x72a   : > { %11748 = vst [vmem:[#allocation50_spill] sm:$0xff] %v10091_v49  ;;  %4305 = vrot.lane.b32.xlu0 %v10091_v49, %s11697_s18  ;;  %4303 = vrot.lane.b32.xlu2 %v10094_v27, %s11697_s18  ;;  %v4274_v49 = vpop.permute.xlu2 %4273 }
 0x72b   : > { %11749 = vst [vmem:[#allocation46_spill] sm:$0xff] %v10094_v27 }
 0x72c   : > { %4029 = vst.msk [vmem:[#allocation3 + $0x169] sm:$0xff] %vm3616_vm6, %v3957_v53  ;;  %v4264_v53 = vpop.permute.xlu0 %4263 }
 0x72d   : > { %3959 = vst [vmem:[#allocation1] ss:$4 sm:$0xff] %v3794_v42  ;;  %v3958_v59 = vld.sshfl [vmem:[#allocation1 + $0x20] sm:$0xff pattern:$0x73625140] }
 0x72e   : > { %3960 = vst [vmem:[#allocation1 + $0x1] ss:$4 sm:$0xff] %v3795_v51 }
 0x72f   : > { %3961 = vst [vmem:[#allocation1 + $0x2] ss:$4 sm:$0xff] %v3796_v33 }
 0x730   : > { %4030 = vst.msk [vmem:[#allocation3 + $0x171] sm:$0xff] %vm3616_vm6, %v3958_v59 }
 0x731   : > { %3962 = vst [vmem:[#allocation1 + $0x3] ss:$4 sm:$0xff] %v3797_v40 }
 0x732   : > { %3963 = vst [vmem:[#allocation1 + $0x20] ss:$4 sm:$0xff] %v3798_v30  ;;  %4456 = vrot.lane.b32.xlu0 %v4378_v13, %s6529_s26  ;;  %v4384_v30 = vrot.slane %v9666_v24, 2  ;;  %v4280_v33 = vpop.permute.xlu2 %4279 }
 0x733   : > { %3964 = vst [vmem:[#allocation1 + $0x21] ss:$4 sm:$0xff] %v3799_v25  ;;  %v10106_v14 = vld [vmem:[#allocation3 + $0x168] sm:$0xff]  ;;  %v4266_v25 = vpop.permute.xlu1 %4265 }
 0x734   : > { %3965 = vst [vmem:[#allocation1 + $0x22] ss:$4 sm:$0xff] %v3800_v16  ;;  %v4242_v37 = vrot.slane %v10106_v14, 1  ;;  %v10136_v24 = vsel %vm925_vm4, %v4382_v56, %v4384_v30  ;;  %v4391_v30 = vrot.slane %v9720_v22, 2 }
 0x735   : > { %3966 = vst [vmem:[#allocation1 + $0x23] ss:$4 sm:$0xff] %v3801_v45 }
 0x736   : > { %4117 = vst.msk [vmem:[#allocation4 + $0x1e0] sm:$0xff] %vm470_vm10, %v10106_v14 }
 0x737   : > { %v10112_v3 = vld [vmem:[#allocation3 + $0x170] sm:$0xff]  ;;  %v10114_v42 = vld [vmem:[#allocation3 + $0x178] sm:$0x3]  ;;  %4354 = vst.msk [vmem:[#allocation4 + $0xa0] sm:$0xff] %vm4343_vm8, %v4268_v17  ;;  %v4270_v17 = vpop.permute.xlu0 %4269 }
 0x738   : > { %v4243_v40 = vrot.slane %v10112_v3, 1  ;;  %v4245_v16 = vrot.slane %v10114_v42, 1  ;;  %4118 = vst.msk [vmem:[#allocation4 + $0x1f0] sm:$0xff] %vm470_vm10, %v10112_v3  ;;  %vm4552_vm10 = vcmask 589184  }
 0x739   : > { %4350 = vst.msk [vmem:[#allocation4 + $0x60] sm:$0xff] %vm4343_vm8, %v4260_v9  ;;  %v6448_v9 = vld [vmem:[#allocation3 + $0x10] sm:$0x3] }
 0x73a   : > { %v10125_v45 = vsel %vm715_vm2, %v4243_v40, %v4245_v16  ;;  %v10128_v51 = vsel %vm715_vm2, %v4242_v37, %v4243_v40  ;;  %4357 = vst.msk [vmem:[#allocation4 + $0xd0] sm:$0xff] %vm4343_vm8, %v4274_v49  ;;  %4462 = vrot.lane.b32.xlu0 %v10136_v24, %s6529_s26  ;;  %v4379_v59 = vrot.slane %v6448_v9, 2  ;;  %v3967_v49 = vld.sshfl [vmem:[#allocation1] sm:$0xff pattern:$0x73625140]  ;;  %v4381_v37 = vrot.slane %v9662_v58, 2 }
 0x73b   : > { %11750 = vst [vmem:[#allocation52_spill] sm:$0xff] %v10125_v45  ;;  %4309 = vrot.lane.b32.xlu2 %v10125_v45, %s11697_s18  ;;  %4307 = vrot.lane.b32.xlu1 %v10128_v51, %s11697_s18  ;;  %v4392_v40 = vrot.slane %v9722_v29, 2  ;;  %s11510_s18 = smov 64  }
 0x73c   : > { %11751 = vst [vmem:[#allocation48_spill] sm:$0xff] %v10128_v51  ;;  %v3968_v13 = vld.sshfl [vmem:[#allocation1 + $0x20] sm:$0xff pattern:$0x73625140]  ;;  %v4380_v16 = vsel %vm925_vm4, %v4377_v18, %v4379_v59  ;;  %v4387_v18 = vrot.slane %v9686_v32, 2  ;;  %v4397_v59 = vrot.slane %v9744_v15, 2 }
 0x73d   : > { %4353 = vst.msk [vmem:[#allocation4 + $0x90] sm:$0xff] %vm4343_vm8, %v4266_v25  ;;  %v10157_v25 = vsel %vm925_vm4, %v4391_v30, %v4392_v40 }
 0x73e   : > { %4352 = vst.msk [vmem:[#allocation4 + $0x80] sm:$0xff] %vm4343_vm8, %v4264_v53  ;;  %v10151_v53 = vsel %vm925_vm4, %v4381_v37, %v4382_v56  ;;  %v4386_v56 = vrot.slane %v9671_v11, 2 }
 0x73f   : > { %4360 = vst.msk [vmem:[#allocation4 + $0x100] sm:$0xff] %vm4343_vm8, %v4280_v33  ;;  %v4272_v33 = vpop.permute.xlu1 %4271 }
 0x740   : > { %4355 = vst.msk [vmem:[#allocation4 + $0xb0] sm:$0xff] %vm4343_vm8, %v4270_v17  ;;  %v6449_v17 = vld [vmem:[#allocation3 + $0x40] sm:$0x3]  ;;  %v10170_v30 = vsel %vm925_vm4, %v4386_v56, %v4387_v18  ;;  %v4407_v56 = vrot.slane %v9831_v44, 2 }
 0x741   : > { %4031 = vst.msk [vmem:[#allocation3 + $0x181] sm:$0xff] %vm3616_vm6, %v3967_v49  ;;  %v4389_v9 = vrot.slane %v6449_v17, 2  ;;  %v4399_v49 = vrot.slane %v9750_v8, 2  ;;  %v4276_v8 = vpop.permute.xlu0 %4275  ;;  %v4394_v17 = vrot.slane %v9724_v23, 2 }
 0x742   : > { %4032 = vst.msk [vmem:[#allocation3 + $0x189] sm:$0xff] %vm3616_vm6, %v3968_v13  ;;  %4468 = vrot.lane.b32.xlu0 %v10157_v25, %s6529_s26  ;;  %v4286_v13 = vpop.permute.xlu2 %4285 }
 0x743   : > { %4460 = vrot.lane.b32.xlu2 %v10151_v53, %s6529_s26  ;;  %4458 = vrot.lane.b32.xlu1 %v4380_v16, %s6529_s26  ;;  %4356 = vst.msk [vmem:[#allocation4 + $0xc0] sm:$0xff] %vm4343_vm8, %v4272_v33  ;;  %v10167_v37 = vsel %vm925_vm4, %v4387_v18, %v4389_v9  ;;  %v10178_v16 = vsel %vm925_vm4, %v4397_v59, %v4399_v49  ;;  %v4396_v18 = vrot.slane %v9746_v2, 2  ;;  %v4406_v9 = vrot.slane %v9814_v57, 2 }
 0x744   : > { %4363 = vst.msk [vmem:[#allocation4 + $0x130] sm:$0xff] %vm4343_vm8, %v4286_v13  ;;  %v10192_v13 = vsel %vm925_vm4, %v4392_v40, %v4394_v17  ;;  %v4404_v40 = vrot.slane %v9809_v63, 2  ;;  %v4414_v17 = vrot.slane %v9876_v0, 2  ;;  %v4411_v0 = vrot.slane %v9872_v35, 2 }
 0x745   : > { %4358 = vst.msk [vmem:[#allocation4 + $0xe0] sm:$0xff] %vm4343_vm8, %v4276_v8  ;;  %v10189_v49 = vsel %vm925_vm4, %v4396_v18, %v4397_v59  ;;  %v4402_v59 = vrot.slane %v9805_v41, 2  ;;  %v4401_v8 = vrot.slane %v9803_v47, 2  ;;  %v4412_v18 = vrot.slane %v9874_v60, 2 }
 0x747   : > { %v4278_v33 = vpop.permute.xlu1 %4277  ;;  %v10210_v45 = vsel %vm925_vm4, %v4402_v59, %v4404_v40  ;;  %v10220_v63 = vsel %vm925_vm4, %v4412_v18, %v4414_v17  ;;  %v4422_v40 = vrot.slane %v9930_v38, 2  ;;  %v10230_v27 = vsel %vm925_vm4, %v4411_v0, %v4412_v18 }
 0x748   : > { %4359 = vst.msk [vmem:[#allocation4 + $0xf0] sm:$0xff] %vm4343_vm8, %v4278_v33  ;;  %v10199_v33 = vsel %vm925_vm4, %v4406_v9, %v4407_v56  ;;  %v10213_v9 = vsel %vm925_vm4, %v4401_v8, %v4402_v59  ;;  %v4421_v59 = vrot.slane %v9928_v5, 2  ;;  %v4417_v18 = vrot.slane %v9898_v20, 2 }
 0x749   : > { %v4282_v23 = vpop.permute.xlu0 %4281  ;;  %11752 = vst [vmem:[#allocation53_spill] sm:$0xff] %v10220_v63  ;;  %v4419_v0 = vrot.slane %v9900_v26, 2 }
 0x74a   : > { %4474 = vrot.lane.b32.xlu0 %v10178_v16, %s6529_s26  ;;  %4361 = vst.msk [vmem:[#allocation4 + $0x110] sm:$0xff] %vm4343_vm8, %v4282_v23  ;;  %v4409_v23 = vrot.slane %v9833_v4, 2  ;;  %v10241_v4 = vsel %vm925_vm4, %v4421_v59, %v4422_v40  ;;  %v4429_v59 = vrot.slane %v9962_v36, 2 }
 0x74b   : > { %4466 = vrot.lane.b32.xlu2 %v10167_v37, %s6529_s26  ;;  %4464 = vrot.lane.b32.xlu1 %v10170_v30, %s6529_s26  ;;  %11753 = vst [vmem:[#allocation51_spill] sm:$0xff] %v10230_v27 }
 0x74c   : > { %v10233_v17 = vsel %vm925_vm4, %v4407_v56, %v4409_v23  ;;  %11754 = vst [vmem:[#allocation16_spill] sm:$0xff] %v10241_v4  ;;  %v3669_v56 = vpop.f32.mrf.mxu2  ;;  %v4416_v23 = vrot.slane %v9881_v7, 2 }
 0x750   : > { %v4292_v51 = vpop.permute.xlu2 %4291 }
 0x751   : > { %4366 = vst.msk [vmem:[#allocation4 + $0x160] sm:$0xff] %vm4343_vm8, %v4292_v51  ;;  %v3648_v51 = vld [vmem:[%s11297_s10] sm:$0x1] }
 0x752   : > { %4480 = vrot.lane.b32.xlu0 %v10199_v33, %s6529_s26 }
 0x753   : > { %4472 = vrot.lane.b32.xlu2 %v10189_v49, %s6529_s26  ;;  %4470 = vrot.lane.b32.xlu1 %v10192_v13, %s6529_s26 }
 0x755   : > { %v4284_v8 = vpop.permute.xlu1 %4283 }
 0x756   : > { %4362 = vst.msk [vmem:[#allocation4 + $0x120] sm:$0xff] %vm4343_vm8, %v4284_v8  ;;  %v4427_v8 = vrot.slane %v9960_v61, 2 }
 0x758   : > { %v10265_v26 = vsel %vm925_vm4, %v4427_v8, %v4429_v59  ;;  %v4437_v59 = vrot.slane %v10020_v28, 2 }
 0x759   : > { %11755 = vst [vmem:[#allocation44_spill] sm:$0xff] %v10265_v26 }
 0x75a   : > { %4486 = vrot.lane.b32.xlu0 %v10220_v63, %s6529_s26  ;;  %v3670_v63 = vadd.f32 %v3669_v56, %v3648_v51 }
 0x75b   : > { %4478 = vrot.lane.b32.xlu2 %v10210_v45, %s6529_s26  ;;  %4476 = vrot.lane.b32.xlu1 %v10213_v9, %s6529_s26 }
 0x75c   : > { %3673 = vst.msk [vmem:[%s10269_s19] sm:$0x1] %vm3672_vm9, %v3670_v63 }
 0x762   : > { %4492 = vrot.lane.b32.xlu0 %v10241_v4, %s6529_s26  ;;  %v10255_v4 = vsel %vm925_vm4, %v4417_v18, %v4419_v0  ;;  %v4290_v51 = vpop.permute.xlu1 %4289  ;;  %v4288_v56 = vpop.permute.xlu0 %4287  ;;  %v4424_v0 = vrot.slane %v9932_v54, 2 }
 0x763   : > { %4484 = vrot.lane.b32.xlu2 %v10230_v27, %s6529_s26  ;;  %4482 = vrot.lane.b32.xlu1 %v10233_v17, %s6529_s26  ;;  %v10258_v27 = vsel %vm925_vm4, %v4416_v23, %v4417_v18  ;;  %v4426_v18 = vrot.slane %v9957_v55, 2  ;;  %4365 = vst.msk [vmem:[#allocation4 + $0x150] sm:$0xff] %vm4343_vm8, %v4290_v51  ;;  %v4436_v23 = vrot.slane %v10015_v48, 2  ;;  %v4432_v51 = vrot.slane %v9983_v19, 2 }
 0x764   : > { %4364 = vst.msk [vmem:[#allocation4 + $0x140] sm:$0xff] %vm4343_vm8, %v4288_v56  ;;  %v4442_v56 = vrot.slane %v10047_v46, 2 }
 0x765   : > { %v10282_v63 = vsel %vm925_vm4, %v4426_v18, %v4427_v8  ;;  %v10292_v54 = vsel %vm925_vm4, %v4436_v23, %v4437_v59  ;;  %v4434_v8 = vrot.slane %v9985_v6, 2  ;;  %v4444_v18 = vrot.slane %v10049_v31, 2 }
 0x766   : > { %v4298_v36 = vpop.permute.xlu2 %4297  ;;  %11756 = vst [vmem:[#allocation21_spill] sm:$0xff] %v10292_v54  ;;  %v4441_v31 = vrot.slane %v10041_v50, 2 }
 0x767   : > { %4369 = vst.msk [vmem:[#allocation4 + $0x190] sm:$0xff] %vm4343_vm8, %v4298_v36  ;;  %v10313_v6 = vsel %vm925_vm4, %v4442_v56, %v4444_v18 }
 0x768   : > { %11757 = vst [vmem:[#allocation49_spill] sm:$0xff] %v10313_v6 }
 0x76a   : > { %4498 = vrot.lane.b32.xlu0 %v10265_v26, %s6529_s26  ;;  %v10285_v26 = vsel %vm925_vm4, %v4422_v40, %v4424_v0  ;;  %v4294_v36 = vpop.permute.xlu0 %4293  ;;  %v4431_v40 = vrot.slane %v9981_v52, 2  ;;  %v10303_v0 = vsel %vm925_vm4, %v4432_v51, %v4434_v8  ;;  %v4451_v8 = vrot.slane %v10106_v14, 2 }
 0x76b   : > { %4490 = vrot.lane.b32.xlu2 %v10255_v4, %s6529_s26  ;;  %4488 = vrot.lane.b32.xlu1 %v10258_v27, %s6529_s26  ;;  %4367 = vst.msk [vmem:[#allocation4 + $0x170] sm:$0xff] %vm4343_vm8, %v4294_v36  ;;  %v4439_v36 = vrot.slane %v10022_v1, 2 }
 0x76c   : > { %v10306_v23 = vsel %vm925_vm4, %v4431_v40, %v4432_v51  ;;  %v4452_v51 = vrot.slane %v10112_v3, 2  ;;  %v10322_v40 = vsel %vm925_vm4, %v4441_v31, %v4442_v56  ;;  %v4447_v56 = vrot.slane %v10080_v12, 2 }
 0x76d   : > { %v4446_v31 = vrot.slane %v10077_v21, 2 }
 0x76e   : > { %v10332_v18 = vsel %vm925_vm4, %v4451_v8, %v4452_v51 }
 0x76f   : > { %v10345_v8 = vsel %vm925_vm4, %v4446_v31, %v4447_v56 }
 0x772   : > { %4504 = vrot.lane.b32.xlu0 %v10292_v54, %s6529_s26  ;;  %v10325_v54 = vsel %vm925_vm4, %v4437_v59, %v4439_v36  ;;  %v4449_v59 = vrot.slane %v10082_v10, 2  ;;  %v4454_v10 = vrot.slane %v10114_v42, 2 }
 0x773   : > { %4496 = vrot.lane.b32.xlu2 %v10282_v63, %s6529_s26  ;;  %4494 = vrot.lane.b32.xlu1 %v10285_v26, %s6529_s26 }
 0x77a   : > { %4510 = vrot.lane.b32.xlu0 %v10313_v6, %s6529_s26  ;;  %v10342_v6 = vsel %vm925_vm4, %v4447_v56, %v4449_v59  ;;  %v10355_v59 = vsel %vm925_vm4, %v4452_v51, %v4454_v10 }
 0x77b   : > { %4502 = vrot.lane.b32.xlu2 %v10303_v0, %s6529_s26  ;;  %4500 = vrot.lane.b32.xlu1 %v10306_v23, %s6529_s26 }
 0x77e   : > { %v4296_v1 = vpop.permute.xlu1 %4295 }
 0x77f   : > { %4368 = vst.msk [vmem:[#allocation4 + $0x180] sm:$0xff] %vm4343_vm8, %v4296_v1 }
 0x782   : > { %4516 = vrot.lane.b32.xlu0 %v10332_v18, %s6529_s26 }
 0x783   : > { %4508 = vrot.lane.b32.xlu2 %v10322_v40, %s6529_s26  ;;  %4506 = vrot.lane.b32.xlu1 %v10325_v54, %s6529_s26 }
 0x784   : > { %v4304_v36 = vpop.permute.xlu2 %4303 }
 0x785   : > { %4372 = vst.msk [vmem:[#allocation4 + $0x1c0] sm:$0xff] %vm4343_vm8, %v4304_v36 }
 0x78a   : > { %4589 = vrot.lane.b32.xlu0 %v9664_v34, %s6531_s20 }
 0x78b   : > { %4514 = vrot.lane.b32.xlu2 %v10342_v6, %s6529_s26  ;;  %4512 = vrot.lane.b32.xlu1 %v10345_v8, %s6529_s26 }
 0x78d   : > { %v4302_v1 = vpop.permute.xlu1 %4301  ;;  %v4300_v36 = vpop.permute.xlu0 %4299 }
 0x78e   : > { %4371 = vst.msk [vmem:[#allocation4 + $0x1b0] sm:$0xff] %vm4343_vm8, %v4302_v1 }
 0x78f   : > { %4370 = vst.msk [vmem:[#allocation4 + $0x1a0] sm:$0xff] %vm4343_vm8, %v4300_v36 }
 0x792   : > { %4595 = vrot.lane.b32.xlu0 %v9720_v22, %s6531_s20 }
 0x793   : > { %4587 = vrot.lane.b32.xlu2 %v9662_v58, %s6531_s20  ;;  %4518 = vrot.lane.b32.xlu1 %v10355_v59, %s6529_s26  ;;  %s11508_s26 = smov 96  }
 0x795   : > { %v4310_v34 = vpop.permute.xlu2 %4309 }
 0x796   : > { %4375 = vst.msk [vmem:[#allocation4 + $0x1f0] sm:$0xff] %vm4343_vm8, %v4310_v34 }
 0x79a   : > { %4601 = vrot.lane.b32.xlu0 %v9744_v15, %s6531_s20 }
 0x79b   : > { %4593 = vrot.lane.b32.xlu2 %v9686_v32, %s6531_s20  ;;  %4591 = vrot.lane.b32.xlu1 %v9671_v11, %s6531_s20 }
 0x79c   : > { %v4306_v42 = vpop.permute.xlu0 %4305 }
 0x79d   : > { %v4461_v58 = vpop.permute.xlu2 %4460  ;;  %4373 = vst.msk [vmem:[#allocation4 + $0x1d0] sm:$0xff] %vm4343_vm8, %v4306_v42 }
 0x79e   : > { %4555 = vst.msk [vmem:[#allocation4 + $0x20] sm:$0xff] %vm4552_vm10, %v4461_v58 }
 0x7a2   : > { %4607 = vrot.lane.b32.xlu0 %v9814_v57, %s6531_s20 }
 0x7a3   : > { %4599 = vrot.lane.b32.xlu2 %v9746_v2, %s6531_s20  ;;  %4597 = vrot.lane.b32.xlu1 %v9722_v29, %s6531_s20 }
 0x7a4   : > { %v4457_v56 = vpop.permute.xlu0 %4456 }
 0x7a5   : > { %v4467_v51 = vpop.permute.xlu2 %4466  ;;  %4553 = vst.msk [vmem:[#allocation4] sm:$0xff] %vm4552_vm10, %v4457_v56 }
 0x7a6   : > { %4558 = vst.msk [vmem:[#allocation4 + $0x50] sm:$0xff] %vm4552_vm10, %v4467_v51 }
 0x7aa   : > { %4613 = vrot.lane.b32.xlu0 %v9874_v60, %s6531_s20 }
 0x7ab   : > { %4605 = vrot.lane.b32.xlu2 %v9805_v41, %s6531_s20  ;;  %4603 = vrot.lane.b32.xlu1 %v9803_v47, %s6531_s20 }
 0x7ac   : > { %v4463_v1 = vpop.permute.xlu0 %4462 }
 0x7ad   : > { %v4473_v31 = vpop.permute.xlu2 %4472  ;;  %v4308_v10 = vpop.permute.xlu1 %4307  ;;  %4556 = vst.msk [vmem:[#allocation4 + $0x30] sm:$0xff] %vm4552_vm10, %v4463_v1 }
 0x7ae   : > { %4561 = vst.msk [vmem:[#allocation4 + $0x80] sm:$0xff] %vm4552_vm10, %v4473_v31 }
 0x7af   : > { %4374 = vst.msk [vmem:[#allocation4 + $0x1e0] sm:$0xff] %vm4343_vm8, %v4308_v10 }
 0x7b2   : > { %4619 = vrot.lane.b32.xlu0 %v9928_v5, %s6531_s20 }
 0x7b3   : > { %4611 = vrot.lane.b32.xlu2 %v9872_v35, %s6531_s20  ;;  %4609 = vrot.lane.b32.xlu1 %v9831_v44, %s6531_s20 }
 0x7b4   : > { %v4469_v58 = vpop.permute.xlu0 %4468 }
 0x7b5   : > { %v4479_v36 = vpop.permute.xlu2 %4478  ;;  %v4459_v34 = vpop.permute.xlu1 %4458  ;;  %4559 = vst.msk [vmem:[#allocation4 + $0x60] sm:$0xff] %vm4552_vm10, %v4469_v58 }
 0x7b6   : > { %4564 = vst.msk [vmem:[#allocation4 + $0xb0] sm:$0xff] %vm4552_vm10, %v4479_v36 }
 0x7b7   : > { %4554 = vst.msk [vmem:[#allocation4 + $0x10] sm:$0xff] %vm4552_vm10, %v4459_v34 }
 0x7ba   : > { %4625 = vrot.lane.b32.xlu0 %v9960_v61, %s6531_s20 }
 0x7bb   : > { %4617 = vrot.lane.b32.xlu2 %v9898_v20, %s6531_s20  ;;  %4615 = vrot.lane.b32.xlu1 %v9881_v7, %s6531_s20 }
 0x7bc   : > { %v4475_v56 = vpop.permute.xlu0 %4474 }
 0x7bd   : > { %v4485_v42 = vpop.permute.xlu2 %4484  ;;  %v4465_v51 = vpop.permute.xlu1 %4464  ;;  %4562 = vst.msk [vmem:[#allocation4 + $0x90] sm:$0xff] %vm4552_vm10, %v4475_v56 }
 0x7be   : > { %4567 = vst.msk [vmem:[#allocation4 + $0xe0] sm:$0xff] %vm4552_vm10, %v4485_v42 }
 0x7bf   : > { %4557 = vst.msk [vmem:[#allocation4 + $0x40] sm:$0xff] %vm4552_vm10, %v4465_v51 }
 0x7c2   : > { %4631 = vrot.lane.b32.xlu0 %v10015_v48, %s6531_s20 }
 0x7c3   : > { %4623 = vrot.lane.b32.xlu2 %v9957_v55, %s6531_s20  ;;  %4621 = vrot.lane.b32.xlu1 %v9930_v38, %s6531_s20 }
 0x7c4   : > { %v4481_v1 = vpop.permute.xlu0 %4480 }
 0x7c5   : > { %v4491_v31 = vpop.permute.xlu2 %4490  ;;  %v4471_v10 = vpop.permute.xlu1 %4470  ;;  %4565 = vst.msk [vmem:[#allocation4 + $0xc0] sm:$0xff] %vm4552_vm10, %v4481_v1 }
 0x7c6   : > { %4570 = vst.msk [vmem:[#allocation4 + $0x110] sm:$0xff] %vm4552_vm10, %v4491_v31  ;;  %v4082_v31 = vld [vmem:[#allocation3 + $0x188] sm:$0xff] }
 0x7c7   : > { %4560 = vst.msk [vmem:[#allocation4 + $0x70] sm:$0xff] %vm4552_vm10, %v4471_v10 }
 0x7ca   : > { %4637 = vrot.lane.b32.xlu0 %v10047_v46, %s6531_s20 }
 0x7cb   : > { %4629 = vrot.lane.b32.xlu2 %v9983_v19, %s6531_s20  ;;  %4627 = vrot.lane.b32.xlu1 %v9981_v52, %s6531_s20 }
 0x7cc   : > { %v4487_v58 = vpop.permute.xlu0 %4486 }
 0x7cd   : > { %v4497_v36 = vpop.permute.xlu2 %4496  ;;  %v4477_v34 = vpop.permute.xlu1 %4476  ;;  %4568 = vst.msk [vmem:[#allocation4 + $0xf0] sm:$0xff] %vm4552_vm10, %v4487_v58 }
 0x7ce   : > { %4573 = vst.msk [vmem:[#allocation4 + $0x140] sm:$0xff] %vm4552_vm10, %v4497_v36 }
 0x7cf   : > { %4563 = vst.msk [vmem:[#allocation4 + $0xa0] sm:$0xff] %vm4552_vm10, %v4477_v34  ;;  %v4081_v34 = vld [vmem:[#allocation3 + $0x180] sm:$0xff] }
 0x7d2   : > { %4643 = vrot.lane.b32.xlu0 %v10106_v14, %s6531_s20 }
 0x7d3   : > { %4635 = vrot.lane.b32.xlu2 %v10041_v50, %s6531_s20  ;;  %4633 = vrot.lane.b32.xlu1 %v10020_v28, %s6531_s20 }
 0x7d4   : > { %v4493_v56 = vpop.permute.xlu0 %4492 }
 0x7d5   : > { %v4503_v42 = vpop.permute.xlu2 %4502  ;;  %v4483_v51 = vpop.permute.xlu1 %4482  ;;  %4571 = vst.msk [vmem:[#allocation4 + $0x120] sm:$0xff] %vm4552_vm10, %v4493_v56 }
 0x7d6   : > { %4576 = vst.msk [vmem:[#allocation4 + $0x170] sm:$0xff] %vm4552_vm10, %v4503_v42 }
 0x7d7   : > { %4566 = vst.msk [vmem:[#allocation4 + $0xd0] sm:$0xff] %vm4552_vm10, %v4483_v51 }
 0x7da   : > { %4649 = vrot.lane.b32.xlu0 %v4082_v31, %s6531_s20 }
 0x7db   : > { %4641 = vrot.lane.b32.xlu2 %v10080_v12, %s6531_s20  ;;  %4639 = vrot.lane.b32.xlu1 %v10077_v21, %s6531_s20 }
 0x7dc   : > { %v4499_v36 = vpop.permute.xlu0 %4498 }
 0x7dd   : > { %v4509_v10 = vpop.permute.xlu2 %4508  ;;  %v4489_v1 = vpop.permute.xlu1 %4488  ;;  %4574 = vst.msk [vmem:[#allocation4 + $0x150] sm:$0xff] %vm4552_vm10, %v4499_v36 }
 0x7de   : > { %4579 = vst.msk [vmem:[#allocation4 + $0x1a0] sm:$0xff] %vm4552_vm10, %v4509_v10 }
 0x7df   : > { %4569 = vst.msk [vmem:[#allocation4 + $0x100] sm:$0xff] %vm4552_vm10, %v4489_v1 }
 0x7e2   : > { %4856 = vrot.lane.b32.xlu0 %v10151_v53, %s11512_s28 }
 0x7e3   : > { %4645 = vrot.lane.b32.xlu1 %v10112_v3, %s6531_s20  ;;  %4647 = vrot.lane.b32.xlu2 %v4081_v34, %s6531_s20  ;;  %s6169_s20 = scalar_lea.hbm %s11299_s12, %s6620_s25 }
 0x7e4   : > { %v4505_v51 = vpop.permute.xlu0 %4504  ;;  %s6173_s0 = sshll.u32 %s6169_s20, 4  ;;  %s6174_s0 = int_to_ptr.hbm [resolvable:$true] %s6173_s0 }
 0x7e5   : > { %v4515_v58 = vpop.permute.xlu2 %4514  ;;  %v4495_v42 = vpop.permute.xlu1 %4494  ;;  %4577 = vst.msk [vmem:[#allocation4 + $0x180] sm:$0xff] %vm4552_vm10, %v4505_v51  ;;  %s6467_s3 = sshra.s32 %s6174_s0, 4  ;;  %s6468_s3 = int_to_ptr.hbm [resolvable:$true] %s6467_s3 }
 0x7e6   : > { %4582 = vst.msk [vmem:[#allocation4 + $0x1d0] sm:$0xff] %vm4552_vm10, %v4515_v58  ;;  %v11760_v58 = vld [vmem:[#allocation14_spill] sm:$0xff]  ;;  %s6469_s4 = scalar_lea.hbm %s6468_s3, 1  ;;  %p6474_p0 = scmp.lt.s32.totalorder %s6468_s3, %s11299_s12 }
 0x7e7   : > { %4572 = vst.msk [vmem:[#allocation4 + $0x130] sm:$0xff] %vm4552_vm10, %v4495_v42  ;;  %p6470_p11 = scmp.ne.s32.totalorder %s6468_s3, %s6469_s4 }
 0x7e9   : > { %p6471_p12 = pnand %p6470_p11, %p6637_p5 }
 0x7ea   : > { %5288 = vrot.lane.b32.xlu0 %v10170_v30, %s11510_s18 }
 0x7eb   : > { %4722 = vrot.lane.b32.xlu1 %v9677_v62, %s11508_s26  ;;  %4724 = vrot.lane.b32.xlu2 %v9674_v39, %s11508_s26  ;;  %v11759_v39 = vld [vmem:[#allocation15_spill] sm:$0xff]  ;;  %p6472_p13 = pneg %p6471_p12 }
 0x7ec   : > { %v4511_v31 = vpop.permute.xlu0 %4510 }
 0x7ed   : > { %v4588_v53 = vpop.permute.xlu2 %4587  ;;  %v4501_v56 = vpop.permute.xlu1 %4500  ;;  %4580 = vst.msk [vmem:[#allocation4 + $0x1b0] sm:$0xff] %vm4552_vm10, %v4511_v31 }
 0x7ee   : > { %4684 = vst.msk [vmem:[#allocation4] sm:$0xff] %vm4683_vm11, %v4588_v53 }
 0x7ef   : > { %4575 = vst.msk [vmem:[#allocation4 + $0x160] sm:$0xff] %vm4552_vm10, %v4501_v56  ;;  %v11761_v56 = vld [vmem:[#allocation19_spill] sm:$0xff] }
 0x7f2   : > { %5156 = vrot.lane.b32.xlu0 %v11759_v39, %s11758_s15 }
 0x7f3   : > { %5019 = vrot.lane.b32.xlu1 %v9671_v11, %s11514_s29  ;;  %5154 = vrot.lane.b32.xlu2 %v9697_v43, %s11758_s15 }
 0x7f4   : > { %v4517_v1 = vpop.permute.xlu0 %4516 }
 0x7f5   : > { %v4594_v62 = vpop.permute.xlu2 %4593  ;;  %v4507_v10 = vpop.permute.xlu1 %4506  ;;  %4583 = vst.msk [vmem:[#allocation4 + $0x1e0] sm:$0xff] %vm4552_vm10, %v4517_v1 }
 0x7f6   : > { %4687 = vst.msk [vmem:[#allocation4 + $0x30] sm:$0xff] %vm4683_vm11, %v4594_v62 }
 0x7f7   : > { %4578 = vst.msk [vmem:[#allocation4 + $0x190] sm:$0xff] %vm4552_vm10, %v4507_v10 }
 0x7fa   : > { %4860 = vrot.lane.b32.xlu0 %v10170_v30, %s11512_s28 }
 0x7fb   : > { %4858 = vrot.lane.b32.xlu1 %v10136_v24, %s11512_s28  ;;  %5021 = vrot.lane.b32.xlu2 %v9686_v32, %s11514_s29 }
 0x7fc   : > { %v4590_v34 = vpop.permute.xlu0 %4589 }
 0x7fd   : > { %v4600_v11 = vpop.permute.xlu2 %4599  ;;  %v4513_v36 = vpop.permute.xlu1 %4512  ;;  %4685 = vst.msk [vmem:[#allocation4 + $0x10] sm:$0xff] %vm4683_vm11, %v4590_v34 }
 0x7fe   : > { %4690 = vst.msk [vmem:[#allocation4 + $0x60] sm:$0xff] %vm4683_vm11, %v4600_v11 }
 0x7ff   : > { %4581 = vst.msk [vmem:[#allocation4 + $0x1c0] sm:$0xff] %vm4552_vm10, %v4513_v36  ;;  %v5496_v36 = vld [vmem:[%s11292_s5 + $0x78] sm:$0xff] }
 0x800   : > { %5609 = vmatpush.msra.mxu3 %v5496_v36  ;;  %v5504_v36 = vld [vmem:[%s11292_s5 + $0xb8] sm:$0xff] }
 0x802   : > { %5292 = vrot.lane.b32.xlu0 %v10157_v25, %s11510_s18 }
 0x803   : > { %5290 = vrot.lane.b32.xlu1 %v10167_v37, %s11510_s18  ;;  %4726 = vrot.lane.b32.xlu2 %v9697_v43, %s11508_s26 }
 0x804   : > { %v4596_v30 = vpop.permute.xlu0 %4595 }
 0x805   : > { %v4606_v32 = vpop.permute.xlu2 %4605  ;;  %v4519_v24 = vpop.permute.xlu1 %4518  ;;  %4688 = vst.msk [vmem:[#allocation4 + $0x40] sm:$0xff] %vm4683_vm11, %v4596_v30  ;;  %v5492_v30 = vld [vmem:[%s11292_s5 + $0x58] sm:$0xff] }
 0x806   : > { %4693 = vst.msk [vmem:[#allocation4 + $0x90] sm:$0xff] %vm4683_vm11, %v4606_v32 }
 0x807   : > { %4584 = vst.msk [vmem:[#allocation4 + $0x1f0] sm:$0xff] %vm4552_vm10, %v4519_v24  ;;  %v5493_v24 = vld [vmem:[%s11292_s5 + $0x60] sm:$0xff] }
 0x80a   : > { %5025 = vrot.lane.b32.xlu0 %v9722_v29, %s11514_s29 }
 0x80b   : > { %5023 = vrot.lane.b32.xlu1 %v9720_v22, %s11514_s29  ;;  %5158 = vrot.lane.b32.xlu2 %v11760_v58, %s11758_s15 }
 0x80c   : > { %v4602_v51 = vpop.permute.xlu0 %4601 }
 0x80d   : > { %v4612_v43 = vpop.permute.xlu2 %4611  ;;  %v4592_v42 = vpop.permute.xlu1 %4591  ;;  %4691 = vst.msk [vmem:[#allocation4 + $0x70] sm:$0xff] %vm4683_vm11, %v4602_v51 }
 0x80e   : > { %4696 = vst.msk [vmem:[#allocation4 + $0xc0] sm:$0xff] %vm4683_vm11, %v4612_v43  ;;  %v11766_v43 = vld [vmem:[#allocation22_spill] sm:$0xff] }
 0x80f   : > { %4686 = vst.msk [vmem:[#allocation4 + $0x20] sm:$0xff] %vm4683_vm11, %v4592_v42  ;;  %v5490_v42 = vld [vmem:[%s11292_s5 + $0x48] sm:$0xff] }
 0x812   : > { %4730 = vrot.lane.b32.xlu0 %v11760_v58, %s11508_s26  ;;  %v5491_v58 = vld [vmem:[%s11292_s5 + $0x50] sm:$0xff] }
 0x813   : > { %4728 = vrot.lane.b32.xlu1 %v11759_v39, %s11508_s26  ;;  %4862 = vrot.lane.b32.xlu2 %v10167_v37, %s11512_s28  ;;  %v11762_v37 = vld [vmem:[#allocation18_spill] sm:$0xff] }
 0x814   : > { %v4608_v53 = vpop.permute.xlu0 %4607 }
 0x815   : > { %v4618_v22 = vpop.permute.xlu2 %4617  ;;  %v4598_v29 = vpop.permute.xlu1 %4597  ;;  %4694 = vst.msk [vmem:[#allocation4 + $0xa0] sm:$0xff] %vm4683_vm11, %v4608_v53  ;;  %v5488_v53 = vld [vmem:[%s11292_s5 + $0x38] sm:$0xff] }
 0x816   : > { %4699 = vst.msk [vmem:[#allocation4 + $0xf0] sm:$0xff] %vm4683_vm11, %v4618_v22 }
 0x817   : > { %4689 = vst.msk [vmem:[#allocation4 + $0x50] sm:$0xff] %vm4683_vm11, %v4598_v29 }
 0x81a   : > { %5162 = vrot.lane.b32.xlu0 %v11762_v37, %s11758_s15 }
 0x81b   : > { %5160 = vrot.lane.b32.xlu1 %v11761_v56, %s11758_s15  ;;  %5294 = vrot.lane.b32.xlu2 %v10192_v13, %s11510_s18  ;;  %s11767_s18 = smov 120  }
 0x81c   : > { %v4614_v62 = vpop.permute.xlu0 %4613 }
 0x81d   : > { %v4624_v31 = vpop.permute.xlu2 %4623  ;;  %v4604_v39 = vpop.permute.xlu1 %4603  ;;  %4697 = vst.msk [vmem:[#allocation4 + $0xd0] sm:$0xff] %vm4683_vm11, %v4614_v62 }
 0x81e   : > { %4702 = vst.msk [vmem:[#allocation4 + $0x120] sm:$0xff] %vm4683_vm11, %v4624_v31  ;;  %v5486_v31 = vld [vmem:[%s11292_s5 + $0x28] sm:$0xff] }
 0x81f   : > { %4692 = vst.msk [vmem:[#allocation4 + $0x80] sm:$0xff] %vm4683_vm11, %v4604_v39  ;;  %v5506_v39 = vld [vmem:[%s11292_s5 + $0xc8] sm:$0xff] }
 0x822   : > { %4866 = vrot.lane.b32.xlu0 %v10192_v13, %s11512_s28 }
 0x823   : > { %4864 = vrot.lane.b32.xlu1 %v10157_v25, %s11512_s28  ;;  %5027 = vrot.lane.b32.xlu2 %v9746_v2, %s11514_s29  ;;  %v5495_v25 = vld [vmem:[%s11292_s5 + $0x70] sm:$0xff]  ;;  %s11763_s28 = smov 64   ;;  %s11764_s29 = smov 96   ;;  %v5494_v2 = vld [vmem:[%s11292_s5 + $0x68] sm:$0xff] }
 0x824   : > { %v4620_v11 = vpop.permute.xlu0 %4619  ;;  %5610 = vmatpush.msra.mxu3 %v5495_v25  ;;  %v11768_v25 = vld [vmem:[#allocation17_spill] sm:$0xff] }
 0x825   : > { %v4630_v10 = vpop.permute.xlu2 %4629  ;;  %v4610_v1 = vpop.permute.xlu1 %4609  ;;  %4700 = vst.msk [vmem:[#allocation4 + $0x100] sm:$0xff] %vm4683_vm11, %v4620_v11  ;;  %v5484_v11 = vld [vmem:[%s11292_s5 + $0x18] sm:$0xff] }
 0x826   : > { %4705 = vst.msk [vmem:[#allocation4 + $0x150] sm:$0xff] %vm4683_vm11, %v4630_v10  ;;  %5611 = vmatpush.msra.mxu3 %v5494_v2  ;;  %v5483_v2 = vld [vmem:[%s11292_s5 + $0x10] sm:$0xff] }
 0x827   : > { %4695 = vst.msk [vmem:[#allocation4 + $0xb0] sm:$0xff] %vm4683_vm11, %v4610_v1  ;;  %v5505_v1 = vld [vmem:[%s11292_s5 + $0xc0] sm:$0xff] }
 0x828   : > { %5612 = vmatpush.msra.mxu3 %v5493_v24 }
 0x82a   : > { %5298 = vrot.lane.b32.xlu0 %v10178_v16, %s11763_s28  ;;  %5613 = vmatpush.msra.mxu3 %v5492_v30  ;;  %v5482_v30 = vld [vmem:[%s11292_s5 + $0x8] sm:$0xff] }
 0x82b   : > { %5296 = vrot.lane.b32.xlu1 %v10189_v49, %s11763_s28  ;;  %4732 = vrot.lane.b32.xlu2 %v11761_v56, %s11764_s29  ;;  %v5487_v56 = vld [vmem:[%s11292_s5 + $0x30] sm:$0xff] }
 0x82c   : > { %v4626_v32 = vpop.permute.xlu0 %4625  ;;  %5614 = vmatpush.msra.mxu3 %v5491_v58 }
 0x82d   : > { %v4636_v13 = vpop.permute.xlu2 %4635  ;;  %v4616_v34 = vpop.permute.xlu1 %4615  ;;  %4703 = vst.msk [vmem:[#allocation4 + $0x130] sm:$0xff] %vm4683_vm11, %v4626_v32 }
 0x82e   : > { %4708 = vst.msk [vmem:[#allocation4 + $0x180] sm:$0xff] %vm4683_vm11, %v4636_v13  ;;  %5615 = vmatpush.msra.mxu3 %v5490_v42  ;;  %v11769_v13 = vld [vmem:[#allocation25_spill] sm:$0xff]  ;;  %v5481_v42 = vld [vmem:[%s11292_s5] sm:$0xff] }
 0x82f   : > { %4698 = vst.msk [vmem:[#allocation4 + $0xe0] sm:$0xff] %vm4683_vm11, %v4616_v34  ;;  %v5503_v34 = vld [vmem:[%s11292_s5 + $0xb0] sm:$0xff] }
 0x832   : > { %5031 = vrot.lane.b32.xlu0 %v9803_v47, %s11765_s2  ;;  %v5507_v47 = vld [vmem:[%s11292_s5 + $0xd0] sm:$0xff] }
 0x833   : > { %5029 = vrot.lane.b32.xlu1 %v9744_v15, %s11765_s2  ;;  %5164 = vrot.lane.b32.xlu2 %v11766_v43, %s11758_s15  ;;  %v5489_v15 = vld [vmem:[%s11292_s5 + $0x40] sm:$0xff] }
 0x834   : > { %v4632_v29 = vpop.permute.xlu0 %4631  ;;  %5616 = vmatpush.msra.mxu3 %v5489_v15  ;;  %5727 = vmatpush.msra.mxu2 %v5507_v47 }
 0x835   : > { %v4642_v51 = vpop.permute.xlu2 %4641  ;;  %v4622_v22 = vpop.permute.xlu1 %4621  ;;  %4706 = vst.msk [vmem:[#allocation4 + $0x160] sm:$0xff] %vm4683_vm11, %v4632_v29 }
 0x836   : > { %4711 = vst.msk [vmem:[#allocation4 + $0x1b0] sm:$0xff] %vm4683_vm11, %v4642_v51  ;;  %5617 = vmatpush.msra.mxu3 %v5488_v53  ;;  %5728 = vmatpush.msra.mxu2 %v5506_v39  ;;  %v5501_v51 = vld [vmem:[%s11292_s5 + $0xa0] sm:$0xff]  ;;  %v5499_v53 = vld [vmem:[%s11292_s5 + $0x90] sm:$0xff] }
 0x837   : > { %4701 = vst.msk [vmem:[#allocation4 + $0x110] sm:$0xff] %vm4683_vm11, %v4622_v22  ;;  %v5500_v22 = vld [vmem:[%s11292_s5 + $0x98] sm:$0xff]  ;;  %v11770_v39 = vld [vmem:[#allocation20_spill] sm:$0xff] }
 0x838   : > { %5618 = vmatpush.msra.mxu3 %v5487_v56  ;;  %5729 = vmatpush.msra.mxu2 %v5505_v1 }
 0x83a   : > { %4736 = vrot.lane.b32.xlu0 %v11766_v43, %s11764_s29  ;;  %5619 = vmatpush.msra.mxu3 %v5486_v31  ;;  %v5502_v43 = vld [vmem:[%s11292_s5 + $0xa8] sm:$0xff] }
 0x83b   : > { %4734 = vrot.lane.b32.xlu1 %v11762_v37, %s11764_s29  ;;  %4868 = vrot.lane.b32.xlu2 %v10189_v49, %s11767_s18  ;;  %v5485_v49 = vld [vmem:[%s11292_s5 + $0x20] sm:$0xff] }
 0x83c   : > { %v4638_v37 = vpop.permute.xlu0 %4637  ;;  %5620 = vmatpush.msra.mxu3 %v5485_v49  ;;  %5730 = vmatpush.msra.mxu2 %v5504_v36 }
 0x83d   : > { %v4628_v62 = vpop.permute.xlu1 %4627  ;;  %v4648_v10 = vpop.permute.xlu2 %4647  ;;  %4709 = vst.msk [vmem:[#allocation4 + $0x190] sm:$0xff] %vm4683_vm11, %v4638_v37 }
 0x83e   : > { %4704 = vst.msk [vmem:[#allocation4 + $0x140] sm:$0xff] %vm4683_vm11, %v4628_v62  ;;  %5621 = vmatpush.msra.mxu3 %v5484_v11  ;;  %5731 = vmatpush.msra.mxu2 %v5503_v34  ;;  %v11771_v11 = vld [vmem:[#allocation24_spill] sm:$0xff] }
 0x83f   : > { %4714 = vst.msk [vmem:[#allocation4 + $0x1e0] sm:$0xff] %vm4683_vm11, %v4648_v10 }
 0x840   : > { %5622 = vmatpush.msra.mxu3 %v5483_v2  ;;  %5732 = vmatpush.msra.mxu2 %v5502_v43 }
 0x842   : > { %5168 = vrot.lane.b32.xlu0 %v11769_v13, %s11758_s15  ;;  %5623 = vmatpush.msra.mxu3 %v5482_v30 }
 0x843   : > { %5166 = vrot.lane.b32.xlu1 %v11768_v25, %s11758_s15  ;;  %5300 = vrot.lane.b32.xlu2 %v10213_v9, %s11763_s28 }
 0x844   : > { %v4644_v58 = vpop.permute.xlu0 %4643  ;;  %5624 = vmatpush.msra.mxu3 %v5481_v42  ;;  %5733 = vmatpush.msra.mxu2 %v5501_v51 }
 0x845   : > { %v4634_v32 = vpop.permute.xlu1 %4633  ;;  %v4725_v24 = vpop.permute.xlu2 %4724  ;;  %4712 = vst.msk [vmem:[#allocation4 + $0x1c0] sm:$0xff] %vm4683_vm11, %v4644_v58  ;;  %v11773_v58 = vld [vmem:[#allocation51_spill] sm:$0xff] }
 0x846   : > { %4707 = vst.msk [vmem:[#allocation4 + $0x170] sm:$0xff] %vm4683_vm11, %v4634_v32  ;;  %5734 = vmatpush.msra.mxu2 %v5500_v22  ;;  %v11775_v22 = vld [vmem:[#allocation28_spill] sm:$0xff] }
 0x847   : > { %4820 = vst.msk [vmem:[#allocation4 + $0x10] sm:$0xff] %vm4818_vm13, %v4725_v24 }
 0x848   : > { %5735 = vmatpush.msra.mxu2 %v5499_v53 }
 0x84a   : > { %4872 = vrot.lane.b32.xlu0 %v10213_v9, %s11767_s18  ;;  %v5497_v9 = vld [vmem:[%s11292_s5 + $0x80] sm:$0xff] }
 0x84b   : > { %4870 = vrot.lane.b32.xlu1 %v10178_v16, %s11767_s18  ;;  %5033 = vrot.lane.b32.xlu2 %v9805_v41, %s11765_s2  ;;  %v5498_v41 = vld [vmem:[%s11292_s5 + $0x88] sm:$0xff] }
 0x84c   : > { %v4650_v16 = vpop.permute.xlu0 %4649  ;;  %5736 = vmatpush.msra.mxu2 %v5498_v41 }
 0x84d   : > { %v4640_v29 = vpop.permute.xlu1 %4639  ;;  %v5155_v15 = vpop.permute.xlu2 %5154  ;;  %4715 = vst.msk [vmem:[#allocation4 + $0x1f0] sm:$0xff] %vm4683_vm11, %v4650_v16 }
 0x84e   : > { %4710 = vst.msk [vmem:[#allocation4 + $0x1a0] sm:$0xff] %vm4683_vm11, %v4640_v29  ;;  %5737 = vmatpush.msra.mxu2 %v5497_v9 }
 0x852   : > { %5304 = vrot.lane.b32.xlu0 %v10199_v33, %s11763_s28 }
 0x853   : > { %5302 = vrot.lane.b32.xlu1 %v10210_v45, %s11763_s28  ;;  %4738 = vrot.lane.b32.xlu2 %v11768_v25, %s11764_s29 }
 0x854   : > { %v4857_v31 = vpop.permute.xlu0 %4856 }
 0x855   : > { %v4646_v47 = vpop.permute.xlu1 %4645  ;;  %v5022_v56 = vpop.permute.xlu2 %5021  ;;  %4954 = vst.msk [vmem:[#allocation4 + $0x8] sm:$0xff] %vm3616_vm6, %v4857_v31 }
 0x856   : > { %4713 = vst.msk [vmem:[#allocation4 + $0x1d0] sm:$0xff] %vm4683_vm11, %v4646_v47  ;;  %v11776_v47 = vld [vmem:[#allocation26_spill] sm:$0xff] }
 0x85a   : > { %5037 = vrot.lane.b32.xlu0 %v9831_v44, %s11765_s2 }
 0x85b   : > { %5035 = vrot.lane.b32.xlu1 %v9814_v57, %s11765_s2  ;;  %5170 = vrot.lane.b32.xlu2 %v11770_v39, %s11758_s15 }
 0x85c   : > { %v5289_v37 = vpop.permute.xlu0 %5288 }
 0x85d   : > { %v4723_v62 = vpop.permute.xlu1 %4722  ;;  %v4727_v10 = vpop.permute.xlu2 %4726 }
 0x85e   : > { %4819 = vst.msk [vmem:[#allocation4] sm:$0xff] %vm4818_vm13, %v4723_v62 }
 0x85f   : > { %4821 = vst.msk [vmem:[#allocation4 + $0x20] sm:$0xff] %vm4818_vm13, %v4727_v10 }
 0x860   : > { %4953 = vst.msk [vmem:[#allocation4] sm:$0xff] %vm4952_vm14, %v4857_v31 }
 0x862   : > { %4742 = vrot.lane.b32.xlu0 %v11770_v39, %s11764_s29 }
 0x863   : > { %4740 = vrot.lane.b32.xlu1 %v11769_v13, %s11764_s29  ;;  %4874 = vrot.lane.b32.xlu2 %v10210_v45, %s11767_s18  ;;  %v11772_v45 = vld [vmem:[#allocation23_spill] sm:$0xff] }
 0x864   : > { %v5157_v49 = vpop.permute.xlu0 %5156 }
 0x865   : > { %v5020_v57 = vpop.permute.xlu1 %5019  ;;  %v5159_v44 = vpop.permute.xlu2 %5158 }
 0x866   : > { %5116 = vst.msk [vmem:[#allocation4 + $0x8] sm:$0xff] %vm5115_vm12, %v5020_v57 }
 0x867   : > { %5251 = vst.msk [vmem:[#allocation4 + $0x8] sm:$0xff] %vm5250_vm15, %v5155_v15  ;;  %v5417_v1 = vld [vmem:[#allocation4] sm:$0xff] }
 0x868   : > { %5385 = vst.msk [vmem:[#allocation4 + $0x8] sm:$0xff] %vm5384_vm0, %v5289_v37  ;;  %5625 = vmatmul.f32.vlgmr.msra.gmra.mxu3 %v5417_v1  ;;  %v11778_v1 = vld [vmem:[#allocation16_spill] sm:$0xff] }
 0x86a   : > { %5174 = vrot.lane.b32.xlu0 %v11772_v45, %s11758_s15 }
 0x86b   : > { %5172 = vrot.lane.b32.xlu1 %v11771_v11, %s11758_s15  ;;  %5306 = vrot.lane.b32.xlu2 %v10233_v17, %s11763_s28 }
 0x86c   : > { %v4861_v2 = vpop.permute.xlu0 %4860 }
 0x86d   : > { %v4859_v36 = vpop.permute.xlu1 %4858  ;;  %v4863_v25 = vpop.permute.xlu2 %4862  ;;  %4957 = vst.msk [vmem:[#allocation4 + $0x20] sm:$0xff] %vm4952_vm14, %v4861_v2 }
 0x86e   : > { %4955 = vst.msk [vmem:[#allocation4 + $0x10] sm:$0xff] %vm4952_vm14, %v4859_v36 }
 0x86f   : > { %4956 = vst.msk [vmem:[#allocation4 + $0x18] sm:$0xff] %vm3616_vm6, %v4859_v36  ;;  %v5418_v13 = vld [vmem:[#allocation4 + $0x8] sm:$0xff] }
 0x870   : > { %5117 = vst.msk [vmem:[#allocation4 + $0x18] sm:$0xff] %vm5115_vm12, %v5022_v56  ;;  %6303 = vmatmul.msk.f32.vlgmr.msra.gmra.mxu2 %vm5512_vm1, %v5418_v13  ;;  %v11777_v56 = vld [vmem:[#allocation31_spill] sm:$0xff] }
 0x871   : > { %4960 = vst.msk [vmem:[#allocation4 + $0x38] sm:$0xff] %vm3616_vm6, %v4863_v25 }
 0x872   : > { %5252 = vst.msk [vmem:[#allocation4 + $0x18] sm:$0xff] %vm5250_vm15, %v5157_v49  ;;  %4878 = vrot.lane.b32.xlu0 %v10233_v17, %s11767_s18 }
 0x873   : > { %4876 = vrot.lane.b32.xlu1 %v10199_v33, %s11767_s18  ;;  %5039 = vrot.lane.b32.xlu2 %v9872_v35, %s11765_s2  ;;  %4958 = vst.msk [vmem:[#allocation4 + $0x28] sm:$0xff] %vm3616_vm6, %v4861_v2  ;;  %v11774_v33 = vld [vmem:[#allocation53_spill] sm:$0xff] }
 0x874   : > { %v5293_v30 = vpop.permute.xlu0 %5292  ;;  %v5421_v35 = vld [vmem:[#allocation4 + $0x20] sm:$0xff] }
 0x875   : > { %v5291_v34 = vpop.permute.xlu1 %5290  ;;  %v5295_v32 = vpop.permute.xlu2 %5294  ;;  %v5419_v24 = vld [vmem:[#allocation4 + $0x10] sm:$0xff] }
 0x876   : > { %5386 = vst.msk [vmem:[#allocation4 + $0x18] sm:$0xff] %vm5384_vm0, %v5291_v34  ;;  %5628 = vmatmul.f32.gmra.mxu3 %v5419_v24 }
 0x87a   : > { %5310 = vrot.lane.b32.xlu0 %v11774_v33, %s11763_s28 }
 0x87b   : > { %5308 = vrot.lane.b32.xlu1 %v11773_v58, %s11763_s28  ;;  %4744 = vrot.lane.b32.xlu2 %v11771_v11, %s11764_s29 }
 0x87c   : > { %v5026_v51 = vpop.permute.xlu0 %5025 }
 0x87d   : > { %v5024_v43 = vpop.permute.xlu1 %5023  ;;  %v5028_v42 = vpop.permute.xlu2 %5027  ;;  %v5420_v17 = vld [vmem:[#allocation4 + $0x18] sm:$0xff]  ;;  %5119 = vst.msk [vmem:[#allocation4 + $0x38] sm:$0xff] %vm5115_vm12, %v5026_v51 }
 0x87e   : > { %5118 = vst.msk [vmem:[#allocation4 + $0x28] sm:$0xff] %vm5115_vm12, %v5024_v43  ;;  %5631 = vmatmul.f32.gmra.mxu3 %v5421_v35  ;;  %6304 = vmatmul.msk.f32.gmra.mxu2 %vm5512_vm1, %v5420_v17 }
 0x87f   : > { %5253 = vst.msk [vmem:[#allocation4 + $0x28] sm:$0xff] %vm5250_vm15, %v5159_v44 }
 0x880   : > { %5387 = vst.msk [vmem:[#allocation4 + $0x28] sm:$0xff] %vm5384_vm0, %v5293_v30 }
 0x882   : > { %5043 = vrot.lane.b32.xlu0 %v9881_v7, %s11765_s2 }
 0x883   : > { %5041 = vrot.lane.b32.xlu1 %v9874_v60, %s11765_s2  ;;  %5176 = vrot.lane.b32.xlu2 %v11775_v22, %s11758_s15 }
 0x884   : > { %v4731_v53 = vpop.permute.xlu0 %4730 }
 0x885   : > { %v4729_v29 = vpop.permute.xlu1 %4728  ;;  %v4733_v15 = vpop.permute.xlu2 %4732  ;;  %4823 = vst.msk [vmem:[#allocation4 + $0x40] sm:$0xff] %vm4818_vm13, %v4731_v53 }
 0x886   : > { %4822 = vst.msk [vmem:[#allocation4 + $0x30] sm:$0xff] %vm4818_vm13, %v4729_v29 }
 0x887   : > { %4959 = vst.msk [vmem:[#allocation4 + $0x30] sm:$0xff] %vm4952_vm14, %v4863_v25  ;;  %v5422_v16 = vld [vmem:[#allocation4 + $0x28] sm:$0xff] }
 0x888   : > { %4824 = vst.msk [vmem:[#allocation4 + $0x50] sm:$0xff] %vm4818_vm13, %v4733_v15  ;;  %6305 = vmatmul.msk.f32.gmra.mxu2 %vm5512_vm1, %v5422_v16  ;;  %v11779_v25 = vld [vmem:[#allocation29_spill] sm:$0xff]  ;;  %v11782_v15 = vld [vmem:[#allocation44_spill] sm:$0xff] }
 0x88a   : > { %4748 = vrot.lane.b32.xlu0 %v11775_v22, %s11764_s29 }
 0x88b   : > { %4746 = vrot.lane.b32.xlu1 %v11772_v45, %s11764_s29  ;;  %4880 = vrot.lane.b32.xlu2 %v11773_v58, %s11767_s18  ;;  %v11780_v58 = vld [vmem:[#allocation32_spill] sm:$0xff] }
 0x88c   : > { %v5163_v9 = vpop.permute.xlu0 %5162 }
 0x88d   : > { %v5161_v60 = vpop.permute.xlu1 %5160  ;;  %v5165_v7 = vpop.permute.xlu2 %5164 }
 0x88e   : > { %5254 = vst.msk [vmem:[#allocation4 + $0x38] sm:$0xff] %vm5250_vm15, %v5161_v60  ;;  %v5423_v41 = vld [vmem:[#allocation4 + $0x30] sm:$0xff] }
 0x88f   : > { %5388 = vst.msk [vmem:[#allocation4 + $0x38] sm:$0xff] %vm5384_vm0, %v5295_v32  ;;  %5634 = vmatmul.f32.gmra.mxu3 %v5423_v41 }
 0x892   : > { %5180 = vrot.lane.b32.xlu0 %v11777_v56, %s11758_s15 }
 0x893   : > { %5178 = vrot.lane.b32.xlu1 %v11776_v47, %s11758_s15  ;;  %5312 = vrot.lane.b32.xlu2 %v10258_v27, %s11763_s28 }
 0x894   : > { %v4867_v10 = vpop.permute.xlu0 %4866 }
 0x895   : > { %v4865_v31 = vpop.permute.xlu1 %4864  ;;  %v4869_v39 = vpop.permute.xlu2 %4868  ;;  %4963 = vst.msk [vmem:[#allocation4 + $0x50] sm:$0xff] %vm4952_vm14, %v4867_v10 }
 0x896   : > { %4961 = vst.msk [vmem:[#allocation4 + $0x40] sm:$0xff] %vm4952_vm14, %v4865_v31  ;;  %v5424_v62 = vld [vmem:[#allocation4 + $0x38] sm:$0xff] }
 0x897   : > { %4962 = vst.msk [vmem:[#allocation4 + $0x48] sm:$0xff] %vm3616_vm6, %v4865_v31  ;;  %6306 = vmatmul.msk.f32.gmra.mxu2 %vm5512_vm1, %v5424_v62 }
 0x898   : > { %5120 = vst.msk [vmem:[#allocation4 + $0x48] sm:$0xff] %vm5115_vm12, %v5028_v42 }
 0x899   : > { %4966 = vst.msk [vmem:[#allocation4 + $0x68] sm:$0xff] %vm3616_vm6, %v4869_v39 }
 0x89a   : > { %5255 = vst.msk [vmem:[#allocation4 + $0x48] sm:$0xff] %vm5250_vm15, %v5163_v9  ;;  %4884 = vrot.lane.b32.xlu0 %v10258_v27, %s11767_s18 }
 0x89b   : > { %4882 = vrot.lane.b32.xlu1 %v11774_v33, %s11767_s18  ;;  %5045 = vrot.lane.b32.xlu2 %v9898_v20, %s11765_s2  ;;  %4964 = vst.msk [vmem:[#allocation4 + $0x58] sm:$0xff] %vm3616_vm6, %v4867_v10 }
 0x89c   : > { %v5299_v49 = vpop.permute.xlu0 %5298  ;;  %v5427_v20 = vld [vmem:[#allocation4 + $0x50] sm:$0xff] }
 0x89d   : > { %v5297_v37 = vpop.permute.xlu1 %5296  ;;  %v5301_v57 = vpop.permute.xlu2 %5300  ;;  %v5425_v44 = vld [vmem:[#allocation4 + $0x40] sm:$0xff] }
 0x89e   : > { %5389 = vst.msk [vmem:[#allocation4 + $0x48] sm:$0xff] %vm5384_vm0, %v5297_v37  ;;  %5637 = vmatmul.f32.gmra.mxu3 %v5425_v44  ;;  %v11784_v37 = vld [vmem:[#allocation36_spill] sm:$0xff] }
 0x8a2   : > { %5316 = vrot.lane.b32.xlu0 %v11778_v1, %s11763_s28 }
 0x8a3   : > { %5314 = vrot.lane.b32.xlu1 %v10255_v4, %s11763_s28  ;;  %4750 = vrot.lane.b32.xlu2 %v11776_v47, %s11764_s29 }
 0x8a4   : > { %v5032_v36 = vpop.permute.xlu0 %5031 }
 0x8a5   : > { %v5030_v11 = vpop.permute.xlu1 %5029  ;;  %v5034_v45 = vpop.permute.xlu2 %5033  ;;  %v5426_v27 = vld [vmem:[#allocation4 + $0x48] sm:$0xff]  ;;  %5122 = vst.msk [vmem:[#allocation4 + $0x68] sm:$0xff] %vm5115_vm12, %v5032_v36 }
 0x8a6   : > { %5121 = vst.msk [vmem:[#allocation4 + $0x58] sm:$0xff] %vm5115_vm12, %v5030_v11  ;;  %5640 = vmatmul.f32.gmra.mxu3 %v5427_v20  ;;  %6307 = vmatmul.msk.f32.gmra.mxu2 %vm5512_vm1, %v5426_v27  ;;  %v10857_v27 = vld [vmem:[%s11293_s6] ss:$0 sm:$0xff] }
 0x8a7   : > { %5256 = vst.msk [vmem:[#allocation4 + $0x58] sm:$0xff] %vm5250_vm15, %v5165_v7  ;;  %v11783_v7 = vld [vmem:[#allocation8_spill] sm:$0xff] }
 0x8a8   : > { %5390 = vst.msk [vmem:[#allocation4 + $0x58] sm:$0xff] %vm5384_vm0, %v5299_v49 }
 0x8aa   : > { %5049 = vrot.lane.b32.xlu0 %v9930_v38, %s11765_s2 }
 0x8ab   : > { %5047 = vrot.lane.b32.xlu1 %v9928_v5, %s11765_s2  ;;  %5182 = vrot.lane.b32.xlu2 %v11779_v25, %s11758_s15 }
 0x8ac   : > { %v4737_v34 = vpop.permute.xlu0 %4736 }
 0x8ad   : > { %v4735_v2 = vpop.permute.xlu1 %4734  ;;  %v4739_v13 = vpop.permute.xlu2 %4738  ;;  %4826 = vst.msk [vmem:[#allocation4 + $0x70] sm:$0xff] %vm4818_vm13, %v4737_v34  ;;  %v11786_v34 = vld [vmem:[#allocation21_spill] sm:$0xff] }
 0x8ae   : > { %4825 = vst.msk [vmem:[#allocation4 + $0x60] sm:$0xff] %vm4818_vm13, %v4735_v2 }
 0x8af   : > { %4965 = vst.msk [vmem:[#allocation4 + $0x60] sm:$0xff] %vm4952_vm14, %v4869_v39  ;;  %v5428_v32 = vld [vmem:[#allocation4 + $0x58] sm:$0xff] }
 0x8b0   : > { %4827 = vst.msk [vmem:[#allocation4 + $0x80] sm:$0xff] %vm4818_vm13, %v4739_v13  ;;  %6308 = vmatmul.msk.f32.gmra.mxu2 %vm5512_vm1, %v5428_v32 }
 0x8b2   : > { %4754 = vrot.lane.b32.xlu0 %v11779_v25, %s11764_s29 }
 0x8b3   : > { %4752 = vrot.lane.b32.xlu1 %v11777_v56, %s11764_s29  ;;  %4886 = vrot.lane.b32.xlu2 %v10255_v4, %s11767_s18  ;;  %v11781_v4 = vld [vmem:[#allocation34_spill] sm:$0xff]  ;;  %v5868_v56 = vld [vmem:[%s11294_s7 + $0x8] sm:$0xff] }
 0x8b4   : > { %v5169_v30 = vpop.permute.xlu0 %5168  ;;  %5983 = vmatpush.msrb.mxu1 %v5868_v56 }
 0x8b5   : > { %v5167_v5 = vpop.permute.xlu1 %5166  ;;  %v5171_v38 = vpop.permute.xlu2 %5170 }
 0x8b6   : > { %5257 = vst.msk [vmem:[#allocation4 + $0x68] sm:$0xff] %vm5250_vm15, %v5167_v5  ;;  %v5429_v24 = vld [vmem:[#allocation4 + $0x60] sm:$0xff] }
 0x8b7   : > { %5391 = vst.msk [vmem:[#allocation4 + $0x68] sm:$0xff] %vm5384_vm0, %v5301_v57  ;;  %5643 = vmatmul.f32.gmra.mxu3 %v5429_v24 }
 0x8ba   : > { %5186 = vrot.lane.b32.xlu0 %v11781_v4, %s11758_s15 }
 0x8bb   : > { %5184 = vrot.lane.b32.xlu1 %v11780_v58, %s11758_s15  ;;  %5318 = vrot.lane.b32.xlu2 %v10285_v26, %s11763_s28 }
 0x8bc   : > { %v4873_v42 = vpop.permute.xlu0 %4872 }
 0x8bd   : > { %v4871_v35 = vpop.permute.xlu1 %4870  ;;  %v4875_v33 = vpop.permute.xlu2 %4874  ;;  %4969 = vst.msk [vmem:[#allocation4 + $0x80] sm:$0xff] %vm4952_vm14, %v4873_v42 }
 0x8be   : > { %4967 = vst.msk [vmem:[#allocation4 + $0x70] sm:$0xff] %vm4952_vm14, %v4871_v35  ;;  %v5430_v43 = vld [vmem:[#allocation4 + $0x68] sm:$0xff] }
 0x8bf   : > { %4968 = vst.msk [vmem:[#allocation4 + $0x78] sm:$0xff] %vm3616_vm6, %v4871_v35  ;;  %6309 = vmatmul.msk.f32.gmra.mxu2 %vm5512_vm1, %v5430_v43 }
 0x8c0   : > { %5123 = vst.msk [vmem:[#allocation4 + $0x78] sm:$0xff] %vm5115_vm12, %v5034_v45 }
 0x8c1   : > { %4972 = vst.msk [vmem:[#allocation4 + $0x98] sm:$0xff] %vm3616_vm6, %v4875_v33 }
 0x8c2   : > { %5258 = vst.msk [vmem:[#allocation4 + $0x78] sm:$0xff] %vm5250_vm15, %v5169_v30  ;;  %4890 = vrot.lane.b32.xlu0 %v10285_v26, %s11767_s18 }
 0x8c3   : > { %4888 = vrot.lane.b32.xlu1 %v11778_v1, %s11767_s18  ;;  %5051 = vrot.lane.b32.xlu2 %v9957_v55, %s11765_s2  ;;  %4970 = vst.msk [vmem:[#allocation4 + $0x88] sm:$0xff] %vm3616_vm6, %v4873_v42 }
 0x8c4   : > { %v5305_v29 = vpop.permute.xlu0 %5304  ;;  %v5433_v55 = vld [vmem:[#allocation4 + $0x80] sm:$0xff] }
 0x8c5   : > { %v5303_v17 = vpop.permute.xlu1 %5302  ;;  %v5307_v51 = vpop.permute.xlu2 %5306  ;;  %v5431_v22 = vld [vmem:[#allocation4 + $0x70] sm:$0xff] }
 0x8c6   : > { %5392 = vst.msk [vmem:[#allocation4 + $0x78] sm:$0xff] %vm5384_vm0, %v5303_v17  ;;  %5646 = vmatmul.f32.gmra.mxu3 %v5431_v22 }
 0x8ca   : > { %5322 = vrot.lane.b32.xlu0 %v11782_v15, %s11763_s28 }
 0x8cb   : > { %5320 = vrot.lane.b32.xlu1 %v10282_v63, %s11763_s28  ;;  %4756 = vrot.lane.b32.xlu2 %v11780_v58, %s11764_s29  ;;  %v11787_v58 = vld [vmem:[#allocation45_spill] sm:$0xff] }
 0x8cc   : > { %v5038_v60 = vpop.permute.xlu0 %5037 }
 0x8cd   : > { %v5036_v53 = vpop.permute.xlu1 %5035  ;;  %v5040_v16 = vpop.permute.xlu2 %5039  ;;  %v5432_v26 = vld [vmem:[#allocation4 + $0x78] sm:$0xff]  ;;  %5125 = vst.msk [vmem:[#allocation4 + $0x98] sm:$0xff] %vm5115_vm12, %v5038_v60 }
 0x8ce   : > { %5124 = vst.msk [vmem:[#allocation4 + $0x88] sm:$0xff] %vm5115_vm12, %v5036_v53  ;;  %5649 = vmatmul.f32.gmra.mxu3 %v5433_v55  ;;  %6310 = vmatmul.msk.f32.gmra.mxu2 %vm5512_vm1, %v5432_v26 }
 0x8cf   : > { %5259 = vst.msk [vmem:[#allocation4 + $0x88] sm:$0xff] %vm5250_vm15, %v5171_v38 }
 0x8d0   : > { %5393 = vst.msk [vmem:[#allocation4 + $0x88] sm:$0xff] %vm5384_vm0, %v5305_v29 }
 0x8d2   : > { %5055 = vrot.lane.b32.xlu0 %v9981_v52, %s11765_s2  ;;  %v5867_v52 = vld [vmem:[%s11294_s7] sm:$0xff] }
 0x8d3   : > { %5053 = vrot.lane.b32.xlu1 %v9960_v61, %s11765_s2  ;;  %5188 = vrot.lane.b32.xlu2 %v11783_v7, %s11758_s15 }
 0x8d4   : > { %v4743_v47 = vpop.permute.xlu0 %4742  ;;  %5984 = vmatpush.msrb.mxu1 %v5867_v52 }
 0x8d5   : > { %v4741_v41 = vpop.permute.xlu1 %4740  ;;  %v4745_v9 = vpop.permute.xlu2 %4744  ;;  %4829 = vst.msk [vmem:[#allocation4 + $0xa0] sm:$0xff] %vm4818_vm13, %v4743_v47 }
 0x8d6   : > { %4828 = vst.msk [vmem:[#allocation4 + $0x90] sm:$0xff] %vm4818_vm13, %v4741_v41 }
 0x8d7   : > { %4971 = vst.msk [vmem:[#allocation4 + $0x90] sm:$0xff] %vm4952_vm14, %v4875_v33  ;;  %v5434_v31 = vld [vmem:[#allocation4 + $0x88] sm:$0xff] }
 0x8d8   : > { %4830 = vst.msk [vmem:[#allocation4 + $0xb0] sm:$0xff] %vm4818_vm13, %v4745_v9  ;;  %6311 = vmatmul.msk.f32.gmra.mxu2 %vm5512_vm1, %v5434_v31 }
 0x8da   : > { %4760 = vrot.lane.b32.xlu0 %v11783_v7, %s11764_s29  ;;  %v11789_v7 = vld [vmem:[#allocation43_spill] sm:$0xff] }
 0x8db   : > { %4758 = vrot.lane.b32.xlu1 %v11781_v4, %s11764_s29  ;;  %4892 = vrot.lane.b32.xlu2 %v10282_v63, %s11767_s18  ;;  %v11785_v63 = vld [vmem:[#allocation40_spill] sm:$0xff] }
 0x8dc   : > { %v5175_v10 = vpop.permute.xlu0 %5174 }
 0x8dd   : > { %v5173_v61 = vpop.permute.xlu1 %5172  ;;  %v5177_v39 = vpop.permute.xlu2 %5176 }
 0x8de   : > { %5260 = vst.msk [vmem:[#allocation4 + $0x98] sm:$0xff] %vm5250_vm15, %v5173_v61  ;;  %v5435_v62 = vld [vmem:[#allocation4 + $0x90] sm:$0xff] }
 0x8df   : > { %5394 = vst.msk [vmem:[#allocation4 + $0x98] sm:$0xff] %vm5384_vm0, %v5307_v51  ;;  %5652 = vmatmul.f32.gmra.mxu3 %v5435_v62 }
 0x8e2   : > { %5192 = vrot.lane.b32.xlu0 %v11785_v63, %s11758_s15 }
 0x8e3   : > { %5190 = vrot.lane.b32.xlu1 %v11784_v37, %s11758_s15  ;;  %5324 = vrot.lane.b32.xlu2 %v10306_v23, %s11763_s28 }
 0x8e4   : > { %v4879_v20 = vpop.permute.xlu0 %4878 }
 0x8e5   : > { %v4877_v57 = vpop.permute.xlu1 %4876  ;;  %v4881_v44 = vpop.permute.xlu2 %4880  ;;  %4975 = vst.msk [vmem:[#allocation4 + $0xb0] sm:$0xff] %vm4952_vm14, %v4879_v20 }
 0x8e6   : > { %4973 = vst.msk [vmem:[#allocation4 + $0xa0] sm:$0xff] %vm4952_vm14, %v4877_v57  ;;  %v5436_v49 = vld [vmem:[#allocation4 + $0x98] sm:$0xff] }
 0x8e7   : > { %4974 = vst.msk [vmem:[#allocation4 + $0xa8] sm:$0xff] %vm3616_vm6, %v4877_v57  ;;  %6312 = vmatmul.msk.f32.gmra.mxu2 %vm5512_vm1, %v5436_v49 }
 0x8e8   : > { %5126 = vst.msk [vmem:[#allocation4 + $0xa8] sm:$0xff] %vm5115_vm12, %v5040_v16 }
 0x8e9   : > { %4978 = vst.msk [vmem:[#allocation4 + $0xc8] sm:$0xff] %vm3616_vm6, %v4881_v44 }
 0x8ea   : > { %5261 = vst.msk [vmem:[#allocation4 + $0xa8] sm:$0xff] %vm5250_vm15, %v5175_v10  ;;  %4896 = vrot.lane.b32.xlu0 %v10306_v23, %s11767_s18 }
 0x8eb   : > { %4894 = vrot.lane.b32.xlu1 %v11782_v15, %s11767_s18  ;;  %5057 = vrot.lane.b32.xlu2 %v9983_v19, %s11765_s2  ;;  %4976 = vst.msk [vmem:[#allocation4 + $0xb8] sm:$0xff] %vm3616_vm6, %v4879_v20  ;;  %v5626_v19 = vpop.f32.mrf.mxu3 }
 0x8ec   : > { %v5311_v36 = vpop.permute.xlu0 %5310  ;;  %v5627_v25 = vadd.f32 %v10857_v27, %v5626_v19  ;;  %v5439_v2 = vld [vmem:[#allocation4 + $0xb0] sm:$0xff] }
 0x8ed   : > { %v5309_v1 = vpop.permute.xlu1 %5308  ;;  %v5313_v11 = vpop.permute.xlu2 %5312  ;;  %v5437_v45 = vld [vmem:[#allocation4 + $0xa0] sm:$0xff] }
 0x8ee   : > { %5395 = vst.msk [vmem:[#allocation4 + $0xa8] sm:$0xff] %vm5384_vm0, %v5309_v1  ;;  %5655 = vmatmul.f32.gmra.mxu3 %v5437_v45  ;;  %v11791_v45 = vld [vmem:[#allocation41_spill] sm:$0xff] }
 0x8f2   : > { %5328 = vrot.lane.b32.xlu0 %v11786_v34, %s11763_s28 }
 0x8f3   : > { %5326 = vrot.lane.b32.xlu1 %v10303_v0, %s11763_s28  ;;  %4762 = vrot.lane.b32.xlu2 %v11784_v37, %s11764_s29  ;;  %v5739_v23 = vpop.f32.mrf.mxu2 }
 0x8f4   : > { %v5740_v13 = vadd.f32 %v5739_v23, %v5627_v25  ;;  %v5044_v30 = vpop.permute.xlu0 %5043 }
 0x8f5   : > { %v5042_v32 = vpop.permute.xlu1 %5041  ;;  %v5046_v5 = vpop.permute.xlu2 %5045  ;;  %v5438_v38 = vld [vmem:[#allocation4 + $0xa8] sm:$0xff]  ;;  %5128 = vst.msk [vmem:[#allocation4 + $0xc8] sm:$0xff] %vm5115_vm12, %v5044_v30 }
 0x8f6   : > { %v5835_v24 = vmax.f32 %v5740_v13, 0.0  ;;  %5127 = vst.msk [vmem:[#allocation4 + $0xb8] sm:$0xff] %vm5115_vm12, %v5042_v32  ;;  %5658 = vmatmul.f32.gmra.mxu3 %v5439_v2  ;;  %6313 = vmatmul.msk.f32.gmra.mxu2 %vm5512_vm1, %v5438_v38 }
 0x8f7   : > { %5262 = vst.msk [vmem:[#allocation4 + $0xb8] sm:$0xff] %vm5250_vm15, %v5177_v39 }
 0x8f8   : > { %5396 = vst.msk [vmem:[#allocation4 + $0xb8] sm:$0xff] %vm5384_vm0, %v5311_v36  ;;  %6335 = vmatmul.msk.f32.vlgmr.msrb.gmra.mxu1 %vm3616_vm6, %v5835_v24 }
 0x8f9   : > { %v5629_v4 = vpop.f32.mrf.mxu3 }
 0x8fa   : > { %5061 = vrot.lane.b32.xlu0 %v10020_v28, %s11765_s2  ;;  %v5630_v17 = vadd.f32 %v10857_v27, %v5629_v4 }
 0x8fb   : > { %5059 = vrot.lane.b32.xlu1 %v10015_v48, %s11765_s2  ;;  %5194 = vrot.lane.b32.xlu2 %v11787_v58, %s11758_s15 }
 0x8fc   : > { %v4749_v43 = vpop.permute.xlu0 %4748 }
 0x8fd   : > { %v4747_v35 = vpop.permute.xlu1 %4746  ;;  %v4751_v33 = vpop.permute.xlu2 %4750  ;;  %4832 = vst.msk [vmem:[#allocation4 + $0xd0] sm:$0xff] %vm4818_vm13, %v4749_v43 }
 0x8fe   : > { %4831 = vst.msk [vmem:[#allocation4 + $0xc0] sm:$0xff] %vm4818_vm13, %v4747_v35 }
 0x8ff   : > { %4977 = vst.msk [vmem:[#allocation4 + $0xc0] sm:$0xff] %vm4952_vm14, %v4881_v44  ;;  %v5440_v42 = vld [vmem:[#allocation4 + $0xb8] sm:$0xff] }
 0x900   : > { %4833 = vst.msk [vmem:[#allocation4 + $0xe0] sm:$0xff] %vm4818_vm13, %v4751_v33  ;;  %6314 = vmatmul.msk.f32.gmra.mxu2 %vm5512_vm1, %v5440_v42  ;;  %v11793_v33 = vld [vmem:[#allocation50_spill] sm:$0xff] }
 0x901   : > { %v5742_v48 = vpop.f32.mrf.mxu2  ;;  %v5632_v53 = vpop.f32.mrf.mxu3 }
 0x902   : > { %v5743_v51 = vadd.f32 %v5742_v48, %v5630_v17  ;;  %4766 = vrot.lane.b32.xlu0 %v11787_v58, %s11764_s29  ;;  %v5633_v16 = vadd.f32 %v10857_v27, %v5632_v53 }
 0x903   : > { %4764 = vrot.lane.b32.xlu1 %v11785_v63, %s11764_s29  ;;  %4898 = vrot.lane.b32.xlu2 %v10303_v0, %s11767_s18  ;;  %v11788_v0 = vld [vmem:[#allocation38_spill] sm:$0xff] }
 0x904   : > { %v5836_v28 = vmax.f32 %v5743_v51, 0.0  ;;  %v5181_v15 = vpop.permute.xlu0 %5180 }
 0x905   : > { %v5179_v22 = vpop.permute.xlu1 %5178  ;;  %v5183_v29 = vpop.permute.xlu2 %5182 }
 0x906   : > { %5263 = vst.msk [vmem:[#allocation4 + $0xc8] sm:$0xff] %vm5250_vm15, %v5179_v22  ;;  %6336 = vmatmul.msk.f32.gmra.mxu1 %vm3616_vm6, %v5836_v28  ;;  %v5441_v55 = vld [vmem:[#allocation4 + $0xc0] sm:$0xff] }
 0x907   : > { %5397 = vst.msk [vmem:[#allocation4 + $0xc8] sm:$0xff] %vm5384_vm0, %v5313_v11  ;;  %5661 = vmatmul.f32.gmra.mxu3 %v5441_v55 }
 0x90a   : > { %5198 = vrot.lane.b32.xlu0 %v11789_v7, %s11758_s15 }
 0x90b   : > { %5196 = vrot.lane.b32.xlu1 %v11788_v0, %s11758_s15  ;;  %5330 = vrot.lane.b32.xlu2 %v10325_v54, %s11763_s28  ;;  %v5745_v26 = vpop.f32.mrf.mxu2 }
 0x90c   : > { %v5746_v60 = vadd.f32 %v5745_v26, %v5633_v16  ;;  %v4885_v31 = vpop.permute.xlu0 %4884 }
 0x90d   : > { %v4883_v41 = vpop.permute.xlu1 %4882  ;;  %v4887_v9 = vpop.permute.xlu2 %4886  ;;  %4981 = vst.msk [vmem:[#allocation4 + $0xe0] sm:$0xff] %vm4952_vm14, %v4885_v31 }
 0x90e   : > { %v5837_v47 = vmax.f32 %v5746_v60, 0.0  ;;  %4979 = vst.msk [vmem:[#allocation4 + $0xd0] sm:$0xff] %vm4952_vm14, %v4883_v41  ;;  %v5442_v56 = vld [vmem:[#allocation4 + $0xc8] sm:$0xff] }
 0x90f   : > { %4980 = vst.msk [vmem:[#allocation4 + $0xd8] sm:$0xff] %vm3616_vm6, %v4883_v41  ;;  %6315 = vmatmul.msk.f32.gmra.mxu2 %vm5512_vm1, %v5442_v56 }
 0x910   : > { %5129 = vst.msk [vmem:[#allocation4 + $0xd8] sm:$0xff] %vm5115_vm12, %v5046_v5  ;;  %6337 = vmatmul.msk.f32.gmra.mxu1 %vm3616_vm6, %v5837_v47 }
 0x911   : > { %4984 = vst.msk [vmem:[#allocation4 + $0xf8] sm:$0xff] %vm3616_vm6, %v4887_v9 }
 0x912   : > { %5264 = vst.msk [vmem:[#allocation4 + $0xd8] sm:$0xff] %vm5250_vm15, %v5181_v15  ;;  %4902 = vrot.lane.b32.xlu0 %v10325_v54, %s11767_s18  ;;  %v5635_v62 = vpop.f32.mrf.mxu3  ;;  %v11790_v54 = vld [vmem:[#allocation49_spill] sm:$0xff] }
 0x913   : > { %4900 = vrot.lane.b32.xlu1 %v11786_v34, %s11767_s18  ;;  %5063 = vrot.lane.b32.xlu2 %v10041_v50, %s11765_s2  ;;  %4982 = vst.msk [vmem:[#allocation4 + $0xe8] sm:$0xff] %vm3616_vm6, %v4885_v31  ;;  %v5636_v37 = vadd.f32 %v10857_v27, %v5635_v62 }
 0x914   : > { %v5317_v10 = vpop.permute.xlu0 %5316  ;;  %v5445_v50 = vld [vmem:[#allocation4 + $0xe0] sm:$0xff] }
 0x915   : > { %v5315_v52 = vpop.permute.xlu1 %5314  ;;  %v5319_v61 = vpop.permute.xlu2 %5318  ;;  %v5443_v39 = vld [vmem:[#allocation4 + $0xd0] sm:$0xff] }
 0x916   : > { %5398 = vst.msk [vmem:[#allocation4 + $0xd8] sm:$0xff] %vm5384_vm0, %v5315_v52  ;;  %5664 = vmatmul.f32.gmra.mxu3 %v5443_v39 }
 0x91a   : > { %v5748_v63 = vpop.f32.mrf.mxu2  ;;  %5334 = vrot.lane.b32.xlu0 %v11790_v54, %s11763_s28 }
 0x91b   : > { %v5749_v57 = vadd.f32 %v5748_v63, %v5636_v37  ;;  %5332 = vrot.lane.b32.xlu1 %v10322_v40, %s11763_s28  ;;  %4768 = vrot.lane.b32.xlu2 %v11788_v0, %s11764_s29 }
 0x91c   : > { %v5050_v11 = vpop.permute.xlu0 %5049 }
 0x91d   : > { %v5838_v44 = vmax.f32 %v5749_v57, 0.0  ;;  %v5048_v49 = vpop.permute.xlu1 %5047  ;;  %v5052_v20 = vpop.permute.xlu2 %5051  ;;  %v5444_v1 = vld [vmem:[#allocation4 + $0xd8] sm:$0xff]  ;;  %5131 = vst.msk [vmem:[#allocation4 + $0xf8] sm:$0xff] %vm5115_vm12, %v5050_v11 }
 0x91e   : > { %5130 = vst.msk [vmem:[#allocation4 + $0xe8] sm:$0xff] %vm5115_vm12, %v5048_v49  ;;  %5667 = vmatmul.f32.gmra.mxu3 %v5445_v50  ;;  %6316 = vmatmul.msk.f32.gmra.mxu2 %vm5512_vm1, %v5444_v1  ;;  %v11009_v50 = vld [vmem:[#allocation3 + $0x188] sm:$0xff]  ;;  %v11795_v1 = vld [vmem:[#allocation52_spill] sm:$0xff] }
 0x91f   : > { %5265 = vst.msk [vmem:[#allocation4 + $0xe8] sm:$0xff] %vm5250_vm15, %v5183_v29  ;;  %6338 = vmatmul.msk.f32.gmra.mxu1 %vm3616_vm6, %v5838_v44  ;;  %v6451_v44 = vld [vmem:[#allocation3 + $0x180] sm:$0xff] }
 0x920   : > { %5399 = vst.msk [vmem:[#allocation4 + $0xe8] sm:$0xff] %vm5384_vm0, %v5317_v10  ;;  %v4717_v49 = vrot.slane %v6451_v44, 1 }
 0x921   : > { %v5638_v36 = vpop.f32.mrf.mxu3 }
 0x922   : > { %5067 = vrot.lane.b32.xlu0 %v10077_v21, %s11765_s2  ;;  %v5639_v13 = vadd.f32 %v10857_v27, %v5638_v36 }
 0x923   : > { %5065 = vrot.lane.b32.xlu1 %v10047_v46, %s11765_s2  ;;  %5200 = vrot.lane.b32.xlu2 %v11791_v45, %s11758_s15 }
 0x924   : > { %v4755_v23 = vpop.permute.xlu0 %4754 }
 0x925   : > { %v4753_v19 = vpop.permute.xlu1 %4752  ;;  %v4757_v25 = vpop.permute.xlu2 %4756  ;;  %4835 = vst.msk [vmem:[#allocation4 + $0x100] sm:$0xff] %vm4818_vm13, %v4755_v23 }
 0x926   : > { %4834 = vst.msk [vmem:[#allocation4 + $0xf0] sm:$0xff] %vm4818_vm13, %v4753_v19 }
 0x927   : > { %4983 = vst.msk [vmem:[#allocation4 + $0xf0] sm:$0xff] %vm4952_vm14, %v4887_v9  ;;  %v5446_v2 = vld [vmem:[#allocation4 + $0xe8] sm:$0xff] }
 0x928   : > { %4836 = vst.msk [vmem:[#allocation4 + $0x110] sm:$0xff] %vm4818_vm13, %v4757_v25  ;;  %6317 = vmatmul.msk.f32.gmra.mxu2 %vm5512_vm1, %v5446_v2  ;;  %v11794_v9 = vld [vmem:[#allocation48_spill] sm:$0xff] }
 0x929   : > { %v5751_v46 = vpop.f32.mrf.mxu2  ;;  %v5641_v30 = vpop.f32.mrf.mxu3 }
 0x92a   : > { %v5752_v34 = vadd.f32 %v5751_v46, %v5639_v13  ;;  %4772 = vrot.lane.b32.xlu0 %v11791_v45, %s11764_s29  ;;  %v5642_v58 = vadd.f32 %v10857_v27, %v5641_v30  ;;  %v4083_v46 = vld [vmem:[#allocation3 + $0x190] sm:$0x3] }
 0x92b   : > { %4770 = vrot.lane.b32.xlu1 %v11789_v7, %s11764_s29  ;;  %4904 = vrot.lane.b32.xlu2 %v10322_v40, %s11767_s18  ;;  %v11792_v40 = vld [vmem:[#allocation46_spill] sm:$0xff]  ;;  %v4854_v30 = vrot.slane %v4083_v46, 2 }
 0x92c   : > { %v5839_v21 = vmax.f32 %v5752_v34, 0.0  ;;  %v5187_v24 = vpop.permute.xlu0 %5186 }
 0x92d   : > { %v5185_v32 = vpop.permute.xlu1 %5184  ;;  %v5189_v5 = vpop.permute.xlu2 %5188 }
 0x92e   : > { %5266 = vst.msk [vmem:[#allocation4 + $0xf8] sm:$0xff] %vm5250_vm15, %v5185_v32  ;;  %6339 = vmatmul.msk.f32.gmra.mxu1 %vm3616_vm6, %v5839_v21  ;;  %v5447_v38 = vld [vmem:[#allocation4 + $0xf0] sm:$0xff] }
 0x92f   : > { %5400 = vst.msk [vmem:[#allocation4 + $0xf8] sm:$0xff] %vm5384_vm0, %v5319_v61  ;;  %5670 = vmatmul.f32.gmra.mxu3 %v5447_v38  ;;  %v4851_v38 = vrot.slane %v6451_v44, 2 }
 0x932   : > { %5204 = vrot.lane.b32.xlu0 %v11793_v33, %s11758_s15 }
 0x933   : > { %5202 = vrot.lane.b32.xlu1 %v11792_v40, %s11758_s15  ;;  %5336 = vrot.lane.b32.xlu2 %v10345_v8, %s11763_s28  ;;  %v5754_v4 = vpop.f32.mrf.mxu2 }
 0x934   : > { %v5755_v35 = vadd.f32 %v5754_v4, %v5642_v58  ;;  %v4891_v51 = vpop.permute.xlu0 %4890 }
 0x935   : > { %v4889_v43 = vpop.permute.xlu1 %4888  ;;  %v4893_v42 = vpop.permute.xlu2 %4892  ;;  %4987 = vst.msk [vmem:[#allocation4 + $0x110] sm:$0xff] %vm4952_vm14, %v4891_v51 }
 0x936   : > { %v5840_v17 = vmax.f32 %v5755_v35, 0.0  ;;  %4985 = vst.msk [vmem:[#allocation4 + $0x100] sm:$0xff] %vm4952_vm14, %v4889_v43  ;;  %v5448_v48 = vld [vmem:[#allocation4 + $0xf8] sm:$0xff] }
 0x937   : > { %4986 = vst.msk [vmem:[#allocation4 + $0x108] sm:$0xff] %vm3616_vm6, %v4889_v43  ;;  %6318 = vmatmul.msk.f32.gmra.mxu2 %vm5512_vm1, %v5448_v48 }
 0x938   : > { %5132 = vst.msk [vmem:[#allocation4 + $0x108] sm:$0xff] %vm5115_vm12, %v5052_v20  ;;  %6340 = vmatmul.msk.f32.gmra.mxu1 %vm3616_vm6, %v5840_v17 }
 0x939   : > { %4990 = vst.msk [vmem:[#allocation4 + $0x128] sm:$0xff] %vm3616_vm6, %v4893_v42 }
 0x93a   : > { %5267 = vst.msk [vmem:[#allocation4 + $0x108] sm:$0xff] %vm5250_vm15, %v5187_v24  ;;  %4908 = vrot.lane.b32.xlu0 %v10345_v8, %s11767_s18  ;;  %v5644_v55 = vpop.f32.mrf.mxu3 }
 0x93b   : > { %4906 = vrot.lane.b32.xlu1 %v11790_v54, %s11767_s18  ;;  %5069 = vrot.lane.b32.xlu2 %v10080_v12, %s11765_s2  ;;  %4988 = vst.msk [vmem:[#allocation4 + $0x118] sm:$0xff] %vm3616_vm6, %v4891_v51  ;;  %v5645_v53 = vadd.f32 %v10857_v27, %v5644_v55  ;;  %v4718_v54 = vrot.slane %v11009_v50, 1  ;;  %v4720_v51 = vrot.slane %v4083_v46, 1 }
 0x93c   : > { %v5323_v15 = vpop.permute.xlu0 %5322  ;;  %v5451_v12 = vld [vmem:[#allocation4 + $0x110] sm:$0xff] }
 0x93d   : > { %v5321_v28 = vpop.permute.xlu1 %5320  ;;  %v5325_v22 = vpop.permute.xlu2 %5324  ;;  %v5449_v29 = vld [vmem:[#allocation4 + $0x100] sm:$0xff]  ;;  %v11021_v45 = vsel %vm715_vm2, %v4717_v49, %v4718_v54 }
 0x93e   : > { %5401 = vst.msk [vmem:[#allocation4 + $0x108] sm:$0xff] %vm5384_vm0, %v5321_v28  ;;  %5673 = vmatmul.f32.gmra.mxu3 %v5449_v29  ;;  %v4721_v29 = vsel %vm715_vm2, %v4718_v54, %v4720_v51 }
 0x942   : > { %v5757_v16 = vpop.f32.mrf.mxu2  ;;  %5340 = vrot.lane.b32.xlu0 %v10332_v18, %s11763_s28 }
 0x943   : > { %v5758_v0 = vadd.f32 %v5757_v16, %v5645_v53  ;;  %5338 = vrot.lane.b32.xlu1 %v10342_v6, %s11763_s28  ;;  %4774 = vrot.lane.b32.xlu2 %v11792_v40, %s11764_s29 }
 0x944   : > { %v5056_v41 = vpop.permute.xlu0 %5055 }
 0x945   : > { %v5841_v8 = vmax.f32 %v5758_v0, 0.0  ;;  %v5054_v26 = vpop.permute.xlu1 %5053  ;;  %v5058_v60 = vpop.permute.xlu2 %5057  ;;  %v5450_v7 = vld [vmem:[#allocation4 + $0x108] sm:$0xff]  ;;  %5134 = vst.msk [vmem:[#allocation4 + $0x128] sm:$0xff] %vm5115_vm12, %v5056_v41 }
 0x946   : > { %5133 = vst.msk [vmem:[#allocation4 + $0x118] sm:$0xff] %vm5115_vm12, %v5054_v26  ;;  %5676 = vmatmul.f32.gmra.mxu3 %v5451_v12  ;;  %6319 = vmatmul.msk.f32.gmra.mxu2 %vm5512_vm1, %v5450_v7  ;;  %v4085_v26 = vld [vmem:[#allocation3 + $0x1a0] sm:$0xff]  ;;  %v4086_v7 = vld [vmem:[#allocation3 + $0x1a8] sm:$0x3] }
 0x947   : > { %5268 = vst.msk [vmem:[#allocation4 + $0x118] sm:$0xff] %vm5250_vm15, %v5189_v5  ;;  %6341 = vmatmul.msk.f32.gmra.mxu1 %vm3616_vm6, %v5841_v8  ;;  %v4852_v5 = vrot.slane %v11009_v50, 2 }
 0x948   : > { %5402 = vst.msk [vmem:[#allocation4 + $0x118] sm:$0xff] %vm5384_vm0, %v5323_v15 }
 0x949   : > { %v5647_v47 = vpop.f32.mrf.mxu3  ;;  %v4853_v4 = vsel %vm925_vm4, %v4851_v38, %v4852_v5 }
 0x94a   : > { %5073 = vrot.lane.b32.xlu0 %v10112_v3, %s11765_s2  ;;  %v5648_v39 = vadd.f32 %v10857_v27, %v5647_v47 }
 0x94b   : > { %5071 = vrot.lane.b32.xlu1 %v10106_v14, %s11765_s2  ;;  %5206 = vrot.lane.b32.xlu2 %v11794_v9, %s11758_s15 }
 0x94c   : > { %v4761_v52 = vpop.permute.xlu0 %4760 }
 0x94d   : > { %v4759_v56 = vpop.permute.xlu1 %4758  ;;  %v4763_v31 = vpop.permute.xlu2 %4762  ;;  %4838 = vst.msk [vmem:[#allocation4 + $0x130] sm:$0xff] %vm4818_vm13, %v4761_v52 }
 0x94e   : > { %4837 = vst.msk [vmem:[#allocation4 + $0x120] sm:$0xff] %vm4818_vm13, %v4759_v56  ;;  %v5284_v56 = vrot.slane %v4085_v26, 2 }
 0x94f   : > { %4989 = vst.msk [vmem:[#allocation4 + $0x120] sm:$0xff] %vm4952_vm14, %v4893_v42  ;;  %v5452_v61 = vld [vmem:[#allocation4 + $0x118] sm:$0xff] }
 0x950   : > { %4839 = vst.msk [vmem:[#allocation4 + $0x140] sm:$0xff] %vm4818_vm13, %v4763_v31  ;;  %6320 = vmatmul.msk.f32.gmra.mxu2 %vm5512_vm1, %v5452_v61  ;;  %v5150_v31 = vrot.slane %v4085_v26, 1 }
 0x951   : > { %v5760_v14 = vpop.f32.mrf.mxu2 }
 0x952   : > { %v5761_v62 = vadd.f32 %v5760_v14, %v5648_v39  ;;  %4778 = vrot.lane.b32.xlu0 %v11794_v9, %s11764_s29  ;;  %v5152_v39 = vrot.slane %v4086_v7, 1 }
 0x953   : > { %4776 = vrot.lane.b32.xlu1 %v11793_v33, %s11764_s29  ;;  %4910 = vrot.lane.b32.xlu2 %v10342_v6, %s11767_s18  ;;  %v5650_v6 = vpop.f32.mrf.mxu3  ;;  %v11049_v33 = vsel %vm925_vm4, %v4852_v5, %v4854_v30 }
 0x954   : > { %v5842_v3 = vmax.f32 %v5761_v62, 0.0  ;;  %v5193_v57 = vpop.permute.xlu0 %5192  ;;  %v5651_v20 = vadd.f32 %v10857_v27, %v5650_v6 }
 0x955   : > { %v5191_v10 = vpop.permute.xlu1 %5190  ;;  %v11005_v37 = vpop.permute.xlu2 %5194 }
 0x956   : > { %5269 = vst.msk [vmem:[#allocation4 + $0x128] sm:$0xff] %vm5250_vm15, %v5191_v10  ;;  %6342 = vmatmul.msk.f32.gmra.mxu1 %vm3616_vm6, %v5842_v3  ;;  %v5453_v63 = vld [vmem:[#allocation4 + $0x120] sm:$0xff] }
 0x957   : > { %5403 = vst.msk [vmem:[#allocation4 + $0x128] sm:$0xff] %vm5384_vm0, %v5325_v22  ;;  %5679 = vmatmul.f32.gmra.mxu3 %v5453_v63  ;;  %v4084_v22 = vld [vmem:[#allocation3 + $0x198] sm:$0xff]  ;;  %v5153_v63 = vsel %vm715_vm2, %v5150_v31, %v5152_v39 }
 0x958   : > { %v5149_v41 = vrot.slane %v4084_v22, 1  ;;  %v5283_v47 = vrot.slane %v4084_v22, 2 }
 0x95a   : > { %5210 = vrot.lane.b32.xlu0 %v11021_v45, %s11758_s15  ;;  %v5285_v10 = vsel %vm925_vm4, %v5283_v47, %v5284_v56 }
 0x95b   : > { %5208 = vrot.lane.b32.xlu1 %v11795_v1, %s11758_s15  ;;  %5342 = vrot.lane.b32.xlu2 %v10355_v59, %s11763_s28  ;;  %v5763_v11 = vpop.f32.mrf.mxu2 }
 0x95c   : > { %v5764_v36 = vadd.f32 %v5763_v11, %v5651_v20  ;;  %v4897_v13 = vpop.permute.xlu0 %4896  ;;  %v5286_v11 = vrot.slane %v4086_v7, 2 }
 0x95d   : > { %v4895_v19 = vpop.permute.xlu1 %4894  ;;  %v4899_v25 = vpop.permute.xlu2 %4898  ;;  %4993 = vst.msk [vmem:[#allocation4 + $0x140] sm:$0xff] %vm4952_vm14, %v4897_v13 }
 0x95e   : > { %v5843_v23 = vmax.f32 %v5764_v36, 0.0  ;;  %4991 = vst.msk [vmem:[#allocation4 + $0x130] sm:$0xff] %vm4952_vm14, %v4895_v19  ;;  %v5454_v2 = vld [vmem:[#allocation4 + $0x128] sm:$0xff] }
 0x95f   : > { %4992 = vst.msk [vmem:[#allocation4 + $0x138] sm:$0xff] %vm3616_vm6, %v4895_v19  ;;  %6321 = vmatmul.msk.f32.gmra.mxu2 %vm5512_vm1, %v5454_v2  ;;  %v5287_v2 = vsel %vm925_vm4, %v5284_v56, %v5286_v11 }
 0x960   : > { %5135 = vst.msk [vmem:[#allocation4 + $0x138] sm:$0xff] %vm5115_vm12, %v5058_v60  ;;  %6343 = vmatmul.msk.f32.gmra.mxu1 %vm3616_vm6, %v5843_v23 }
 0x961   : > { %4996 = vst.msk [vmem:[#allocation4 + $0x158] sm:$0xff] %vm3616_vm6, %v4899_v25 }
 0x962   : > { %5270 = vst.msk [vmem:[#allocation4 + $0x138] sm:$0xff] %vm5250_vm15, %v5193_v57  ;;  %4914 = vrot.lane.b32.xlu0 %v10355_v59, %s11767_s18  ;;  %v5653_v24 = vpop.f32.mrf.mxu3 }
 0x963   : > { %4912 = vrot.lane.b32.xlu1 %v10332_v18, %s11767_s18  ;;  %5075 = vrot.lane.b32.xlu2 %v6451_v44, %s11765_s2  ;;  %4994 = vst.msk [vmem:[#allocation4 + $0x148] sm:$0xff] %vm3616_vm6, %v4897_v13  ;;  %v5654_v58 = vadd.f32 %v10857_v27, %v5653_v24 }
 0x964   : > { %v5329_v18 = vpop.permute.xlu0 %5328  ;;  %v5457_v35 = vld [vmem:[#allocation4 + $0x140] sm:$0xff] }
 0x965   : > { %v5327_v34 = vpop.permute.xlu1 %5326  ;;  %v11039_v21 = vpop.permute.xlu2 %5330  ;;  %v5455_v32 = vld [vmem:[#allocation4 + $0x130] sm:$0xff] }
 0x966   : > { %5404 = vst.msk [vmem:[#allocation4 + $0x138] sm:$0xff] %vm5384_vm0, %v5327_v34  ;;  %5682 = vmatmul.f32.gmra.mxu3 %v5455_v32 }
 0x96a   : > { %v5766_v40 = vpop.f32.mrf.mxu2  ;;  %5346 = vrot.lane.b32.xlu0 %v11049_v33, %s11763_s28 }
 0x96b   : > { %v5767_v59 = vadd.f32 %v5766_v40, %v5654_v58  ;;  %4780 = vrot.lane.b32.xlu2 %v11795_v1, %s11764_s29  ;;  %5344 = vrot.lane.b32.xlu1 %v4853_v4, %s11763_s28 }
 0x96c   : > { %v5062_v28 = vpop.permute.xlu0 %5061 }
 0x96d   : > { %v5844_v43 = vmax.f32 %v5767_v59, 0.0  ;;  %v5060_v42 = vpop.permute.xlu1 %5059  ;;  %v11053_v17 = vpop.permute.xlu2 %5063  ;;  %v5456_v48 = vld [vmem:[#allocation4 + $0x138] sm:$0xff]  ;;  %5137 = vst.msk [vmem:[#allocation4 + $0x158] sm:$0xff] %vm5115_vm12, %v5062_v28 }
 0x96e   : > { %5136 = vst.msk [vmem:[#allocation4 + $0x148] sm:$0xff] %vm5115_vm12, %v5060_v42  ;;  %5685 = vmatmul.f32.gmra.mxu3 %v5457_v35  ;;  %6322 = vmatmul.msk.f32.gmra.mxu2 %vm5512_vm1, %v5456_v48 }
 0x96f   : > { %5271 = vst.msk [vmem:[#allocation4 + $0x148] sm:$0xff] %vm5250_vm15, %v11005_v37  ;;  %6344 = vmatmul.msk.f32.gmra.mxu1 %vm3616_vm6, %v5844_v43  ;;  %v5151_v37 = vsel %vm715_vm2, %v5149_v41, %v5150_v31 }
 0x970   : > { %5405 = vst.msk [vmem:[#allocation4 + $0x148] sm:$0xff] %vm5384_vm0, %v5329_v18 }
 0x971   : > { %v5656_v55 = vpop.f32.mrf.mxu3 }
 0x972   : > { %5079 = vrot.lane.b32.xlu0 %v4084_v22, %s11765_s2  ;;  %v5657_v12 = vadd.f32 %v10857_v27, %v5656_v55  ;;  %v11126_v55 = vld [vmem:[%s11295_s8] ss:$0 sm:$0xff] }
 0x973   : > { %5212 = vrot.lane.b32.xlu2 %v4721_v29, %s11758_s15  ;;  %5077 = vrot.lane.b32.xlu1 %v11009_v50, %s11765_s2 }
 0x974   : > { %v4767_v16 = vpop.permute.xlu0 %4766 }
 0x975   : > { %v4765_v15 = vpop.permute.xlu1 %4764  ;;  %v4769_v53 = vpop.permute.xlu2 %4768  ;;  %4841 = vst.msk [vmem:[#allocation4 + $0x160] sm:$0xff] %vm4818_vm13, %v4767_v16 }
 0x976   : > { %4840 = vst.msk [vmem:[#allocation4 + $0x150] sm:$0xff] %vm4818_vm13, %v4765_v15 }
 0x977   : > { %4995 = vst.msk [vmem:[#allocation4 + $0x150] sm:$0xff] %vm4952_vm14, %v4899_v25  ;;  %v5458_v0 = vld [vmem:[#allocation4 + $0x148] sm:$0xff] }
 0x978   : > { %4842 = vst.msk [vmem:[#allocation4 + $0x170] sm:$0xff] %vm4818_vm13, %v4769_v53  ;;  %6323 = vmatmul.msk.f32.gmra.mxu2 %vm5512_vm1, %v5458_v0  ;;  %v5986_v53 = vpop.f32.mrf.mxu1 }
 0x979   : > { %v5769_v8 = vpop.f32.mrf.mxu2  ;;  %v5659_v3 = vpop.f32.mrf.mxu3  ;;  %v5987_v7 = vadd.f32 %v11126_v55, %v5986_v53 }
 0x97a   : > { %v5770_v60 = vadd.f32 %v5769_v8, %v5657_v12  ;;  %4784 = vrot.lane.b32.xlu0 %v4721_v29, %s11764_s29  ;;  %v5660_v57 = vadd.f32 %v10857_v27, %v5659_v3 }
 0x97b   : > { %4916 = vrot.lane.b32.xlu2 %v4853_v4, %s11767_s18  ;;  %4782 = vrot.lane.b32.xlu1 %v11021_v45, %s11764_s29 }
 0x97c   : > { %v5845_v9 = vmax.f32 %v5770_v60, 0.0  ;;  %v5199_v62 = vpop.permute.xlu0 %5198 }
 0x97d   : > { %v5197_v52 = vpop.permute.xlu1 %5196  ;;  %v5201_v61 = vpop.permute.xlu2 %5200 }
 0x97e   : > { %5272 = vst.msk [vmem:[#allocation4 + $0x158] sm:$0xff] %vm5250_vm15, %v5197_v52  ;;  %6345 = vmatmul.msk.f32.gmra.mxu1 %vm3616_vm6, %v5845_v9  ;;  %v5459_v14 = vld [vmem:[#allocation4 + $0x150] sm:$0xff] }
 0x97f   : > { %5406 = vst.msk [vmem:[#allocation4 + $0x158] sm:$0xff] %vm5384_vm0, %v11039_v21  ;;  %5688 = vmatmul.f32.gmra.mxu3 %v5459_v14 }
 0x982   : > { %5216 = vrot.lane.b32.xlu0 %v5153_v63, %s11758_s15 }
 0x983   : > { %5348 = vrot.lane.b32.xlu2 %v5285_v10, %s11763_s28  ;;  %5214 = vrot.lane.b32.xlu1 %v5151_v37, %s11758_s15  ;;  %v5772_v50 = vpop.f32.mrf.mxu2  ;;  %v5989_v41 = vpop.f32.mrf.mxu1 }
 0x984   : > { %v5773_v54 = vadd.f32 %v5772_v50, %v5660_v57  ;;  %v4903_v1 = vpop.permute.xlu0 %4902 }
 0x985   : > { %v4901_v44 = vpop.permute.xlu1 %4900  ;;  %v4905_v49 = vpop.permute.xlu2 %4904  ;;  %4999 = vst.msk [vmem:[#allocation4 + $0x170] sm:$0xff] %vm4952_vm14, %v4903_v1 }
 0x986   : > { %v5846_v6 = vmax.f32 %v5773_v54, 0.0  ;;  %4997 = vst.msk [vmem:[#allocation4 + $0x160] sm:$0xff] %vm4952_vm14, %v4901_v44  ;;  %v5460_v20 = vld [vmem:[#allocation4 + $0x158] sm:$0xff] }
 0x987   : > { %4998 = vst.msk [vmem:[#allocation4 + $0x168] sm:$0xff] %vm3616_vm6, %v4901_v44  ;;  %6324 = vmatmul.msk.f32.gmra.mxu2 %vm5512_vm1, %v5460_v20 }
 0x988   : > { %5138 = vst.msk [vmem:[#allocation4 + $0x168] sm:$0xff] %vm5115_vm12, %v11053_v17  ;;  %6346 = vmatmul.msk.f32.gmra.mxu1 %vm3616_vm6, %v5846_v6 }
 0x989   : > { %5002 = vst.msk [vmem:[#allocation4 + $0x188] sm:$0xff] %vm3616_vm6, %v4905_v49 }
 0x98a   : > { %5273 = vst.msk [vmem:[#allocation4 + $0x168] sm:$0xff] %vm5250_vm15, %v5199_v62  ;;  %v5662_v25 = vpop.f32.mrf.mxu3 }
 0x98b   : > { %5081 = vrot.lane.b32.xlu2 %v4085_v26, %s11765_s2  ;;  %4918 = vrot.lane.b32.xlu1 %v11049_v33, %s11767_s18  ;;  %5000 = vst.msk [vmem:[#allocation4 + $0x178] sm:$0xff] %vm3616_vm6, %v4903_v1  ;;  %v5663_v13 = vadd.f32 %v10857_v27, %v5662_v25 }
 0x98c   : > { %v5335_v23 = vpop.permute.xlu0 %5334  ;;  %v5463_v21 = vld [vmem:[#allocation4 + $0x170] sm:$0xff] }
 0x98d   : > { %v5333_v45 = vpop.permute.xlu1 %5332  ;;  %v5337_v36 = vpop.permute.xlu2 %5336  ;;  %v5461_v19 = vld [vmem:[#allocation4 + $0x160] sm:$0xff] }
 0x98e   : > { %5407 = vst.msk [vmem:[#allocation4 + $0x168] sm:$0xff] %vm5384_vm0, %v5333_v45  ;;  %5691 = vmatmul.f32.gmra.mxu3 %v5461_v19  ;;  %v5992_v10 = vpop.f32.mrf.mxu1 }
 0x98f   : > { %v5993_v44 = vadd.f32 %v11126_v55, %v5992_v10 }
 0x992   : > { %v5775_v46 = vpop.f32.mrf.mxu2 }
 0x993   : > { %v5776_v34 = vadd.f32 %v5775_v46, %v5663_v13  ;;  %5350 = vrot.lane.b32.xlu1 %v5287_v2, %s11763_s28  ;;  %s6473_s28 = scalar_lea.hbm %s11299_s12, 2 }
 0x994   : > { %v5068_v18 = vpop.permute.xlu0 %5067  ;;  %p6475_p1 = scmp.lt.s32.totalorder %s6473_s28, %s6469_s4 }
 0x995   : > { %v5847_v32 = vmax.f32 %v5776_v34, 0.0  ;;  %v5066_v5 = vpop.permute.xlu1 %5065  ;;  %v5070_v38 = vpop.permute.xlu2 %5069  ;;  %v5462_v24 = vld [vmem:[#allocation4 + $0x168] sm:$0xff]  ;;  %5140 = vst.msk [vmem:[#allocation4 + $0x188] sm:$0xff] %vm5115_vm12, %v5068_v18 }
 0x996   : > { %5139 = vst.msk [vmem:[#allocation4 + $0x178] sm:$0xff] %vm5115_vm12, %v5066_v5  ;;  %5694 = vmatmul.f32.gmra.mxu3 %v5463_v21  ;;  %6325 = vmatmul.msk.f32.gmra.mxu2 %vm5512_vm1, %v5462_v24  ;;  %p6476_p2 = por %p6475_p1, %p6474_p0 }
 0x997   : > { %5274 = vst.msk [vmem:[#allocation4 + $0x178] sm:$0xff] %vm5250_vm15, %v5201_v61  ;;  %6347 = vmatmul.msk.f32.gmra.mxu1 %vm3616_vm6, %v5847_v32  ;;  %v5990_v61 = vadd.f32 %v11126_v55, %v5989_v41 }
 0x998   : > { %5408 = vst.msk [vmem:[#allocation4 + $0x178] sm:$0xff] %vm5384_vm0, %v5335_v23  ;;  %p6477_p3 = pnand %p6476_p2, %p6472_p13 }
 0x999   : > { %v5665_v30 = vpop.f32.mrf.mxu3 }
 0x99a   : > { %v5666_v35 = vadd.f32 %v10857_v27, %v5665_v30 }
 0x99c   : > { %v4773_v4 = vpop.permute.xlu0 %4772 }
 0x99d   : > { %v4771_v58 = vpop.permute.xlu1 %4770  ;;  %v4775_v40 = vpop.permute.xlu2 %4774  ;;  %4844 = vst.msk [vmem:[#allocation4 + $0x190] sm:$0xff] %vm4818_vm13, %v4773_v4 }
 0x99e   : > { %4843 = vst.msk [vmem:[#allocation4 + $0x180] sm:$0xff] %vm4818_vm13, %v4771_v58 }
 0x99f   : > { %5001 = vst.msk [vmem:[#allocation4 + $0x180] sm:$0xff] %vm4952_vm14, %v4905_v49  ;;  %v5464_v59 = vld [vmem:[#allocation4 + $0x178] sm:$0xff]  ;;  %v5995_v49 = vpop.f32.mrf.mxu1 }
 0x9a0   : > { %4845 = vst.msk [vmem:[#allocation4 + $0x1a0] sm:$0xff] %vm4818_vm13, %v4775_v40  ;;  %6326 = vmatmul.msk.f32.gmra.mxu2 %vm5512_vm1, %v5464_v59  ;;  %v5996_v45 = vadd.f32 %v11126_v55, %v5995_v49 }
 0x9a1   : > { %v5778_v33 = vpop.f32.mrf.mxu2  ;;  %v5668_v22 = vpop.f32.mrf.mxu3 }
 0x9a2   : > { %v5779_v43 = vadd.f32 %v5778_v33, %v5666_v35  ;;  %v5669_v29 = vadd.f32 %v10857_v27, %v5668_v22 }
 0x9a4   : > { %v5848_v42 = vmax.f32 %v5779_v43, 0.0  ;;  %v5205_v28 = vpop.permute.xlu0 %5204 }
 0x9a5   : > { %v5203_v17 = vpop.permute.xlu1 %5202  ;;  %v5207_v48 = vpop.permute.xlu2 %5206 }
 0x9a6   : > { %5275 = vst.msk [vmem:[#allocation4 + $0x188] sm:$0xff] %vm5250_vm15, %v5203_v17  ;;  %6348 = vmatmul.msk.f32.gmra.mxu1 %vm3616_vm6, %v5848_v42  ;;  %v5465_v51 = vld [vmem:[#allocation4 + $0x180] sm:$0xff] }
 0x9a7   : > { %5409 = vst.msk [vmem:[#allocation4 + $0x188] sm:$0xff] %vm5384_vm0, %v5337_v36  ;;  %5697 = vmatmul.f32.gmra.mxu3 %v5465_v51 }
 0x9ab   : > { %v5781_v15 = vpop.f32.mrf.mxu2  ;;  %v5998_v2 = vpop.f32.mrf.mxu1 }
 0x9ac   : > { %v5782_v16 = vadd.f32 %v5781_v15, %v5669_v29  ;;  %v4909_v60 = vpop.permute.xlu0 %4908  ;;  %v5999_v5 = vadd.f32 %v11126_v55, %v5998_v2 }
 0x9ad   : > { %v4907_v0 = vpop.permute.xlu1 %4906  ;;  %v4911_v12 = vpop.permute.xlu2 %4910  ;;  %5005 = vst.msk [vmem:[#allocation4 + $0x1a0] sm:$0xff] %vm4952_vm14, %v4909_v60 }
 0x9ae   : > { %v5849_v8 = vmax.f32 %v5782_v16, 0.0  ;;  %5003 = vst.msk [vmem:[#allocation4 + $0x190] sm:$0xff] %vm4952_vm14, %v4907_v0  ;;  %v5466_v26 = vld [vmem:[#allocation4 + $0x188] sm:$0xff] }
 0x9af   : > { %5004 = vst.msk [vmem:[#allocation4 + $0x198] sm:$0xff] %vm3616_vm6, %v4907_v0  ;;  %6327 = vmatmul.msk.f32.gmra.mxu2 %vm5512_vm1, %v5466_v26 }
 0x9b0   : > { %5141 = vst.msk [vmem:[#allocation4 + $0x198] sm:$0xff] %vm5115_vm12, %v5070_v38  ;;  %6349 = vmatmul.msk.f32.gmra.mxu1 %vm3616_vm6, %v5849_v8 }
 0x9b1   : > { %5008 = vst.msk [vmem:[#allocation4 + $0x1b8] sm:$0xff] %vm3616_vm6, %v4911_v12  ;;  %6082 = vxpose.xlu2.b32.start [1/16] (narrow) %v5987_v7, 8 }
 0x9b2   : > { %5276 = vst.msk [vmem:[#allocation4 + $0x198] sm:$0xff] %vm5250_vm15, %v5205_v28  ;;  %v5671_v31 = vpop.f32.mrf.mxu3 }
 0x9b3   : > { %5006 = vst.msk [vmem:[#allocation4 + $0x1a8] sm:$0xff] %vm3616_vm6, %v4909_v60  ;;  %v5672_v39 = vadd.f32 %v10857_v27, %v5671_v31 }
 0x9b4   : > { %v5341_v52 = vpop.permute.xlu0 %5340  ;;  %v5469_v3 = vld [vmem:[#allocation4 + $0x1a0] sm:$0xff] }
 0x9b5   : > { %v5339_v9 = vpop.permute.xlu1 %5338  ;;  %v5343_v47 = vpop.permute.xlu2 %5342  ;;  %v5467_v56 = vld [vmem:[#allocation4 + $0x190] sm:$0xff] }
 0x9b6   : > { %5410 = vst.msk [vmem:[#allocation4 + $0x198] sm:$0xff] %vm5384_vm0, %v5339_v9  ;;  %5700 = vmatmul.f32.gmra.mxu3 %v5467_v56  ;;  %v6001_v30 = vpop.f32.mrf.mxu1 }
 0x9b7   : > { %v6002_v43 = vadd.f32 %v11126_v55, %v6001_v30 }
 0x9b9   : > { %6083 = vxpose.xlu2.b32.cont [2/16] (narrow) %v5990_v61, 8 }
 0x9ba   : > { %v5784_v14 = vpop.f32.mrf.mxu2 }
 0x9bb   : > { %v5785_v62 = vadd.f32 %v5784_v14, %v5672_v39 }
 0x9bc   : > { %v5074_v54 = vpop.permute.xlu0 %5073 }
 0x9bd   : > { %v5850_v37 = vmax.f32 %v5785_v62, 0.0  ;;  %v5072_v63 = vpop.permute.xlu1 %5071  ;;  %v5076_v57 = vpop.permute.xlu2 %5075  ;;  %v5468_v50 = vld [vmem:[#allocation4 + $0x198] sm:$0xff]  ;;  %5143 = vst.msk [vmem:[#allocation4 + $0x1b8] sm:$0xff] %vm5115_vm12, %v5074_v54 }
 0x9be   : > { %5142 = vst.msk [vmem:[#allocation4 + $0x1a8] sm:$0xff] %vm5115_vm12, %v5072_v63  ;;  %5703 = vmatmul.f32.gmra.mxu3 %v5469_v3  ;;  %6328 = vmatmul.msk.f32.gmra.mxu2 %vm5512_vm1, %v5468_v50 }
 0x9bf   : > { %5277 = vst.msk [vmem:[#allocation4 + $0x1a8] sm:$0xff] %vm5250_vm15, %v5207_v48  ;;  %6350 = vmatmul.msk.f32.gmra.mxu1 %vm3616_vm6, %v5850_v37 }
 0x9c0   : > { %5411 = vst.msk [vmem:[#allocation4 + $0x1a8] sm:$0xff] %vm5384_vm0, %v5341_v52  ;;  %v11186_v52 = vld [vmem:[%s11293_s6] ss:$0 sm:$0xff] }
 0x9c1   : > { %6084 = vxpose.xlu2.b32.cont [3/16] (narrow) %v5993_v44, 8  ;;  %v5674_v6 = vpop.f32.mrf.mxu3 }
 0x9c2   : > { %v5675_v19 = vadd.f32 %v10857_v27, %v5674_v6 }
 0x9c4   : > { %v4779_v11 = vpop.permute.xlu0 %4778  ;;  %v6004_v42 = vpop.f32.mrf.mxu1 }
 0x9c5   : > { %v4777_v20 = vpop.permute.xlu1 %4776  ;;  %v4781_v1 = vpop.permute.xlu2 %4780  ;;  %4847 = vst.msk [vmem:[#allocation4 + $0x1c0] sm:$0xff] %vm4818_vm13, %v4779_v11  ;;  %v6005_v22 = vadd.f32 %v11126_v55, %v6004_v42 }
 0x9c6   : > { %4846 = vst.msk [vmem:[#allocation4 + $0x1b0] sm:$0xff] %vm4818_vm13, %v4777_v20 }
 0x9c7   : > { %5007 = vst.msk [vmem:[#allocation4 + $0x1b0] sm:$0xff] %vm4952_vm14, %v4911_v12  ;;  %v5470_v36 = vld [vmem:[#allocation4 + $0x1a8] sm:$0xff] }
 0x9c8   : > { %4848 = vst.msk [vmem:[#allocation4 + $0x1d0] sm:$0xff] %vm4818_vm13, %v4781_v1  ;;  %6329 = vmatmul.msk.f32.gmra.mxu2 %vm5512_vm1, %v5470_v36 }
 0x9c9   : > { %6085 = vxpose.xlu2.b32.cont [4/16] (narrow) %v5996_v45, 8  ;;  %v5787_v25 = vpop.f32.mrf.mxu2  ;;  %v5677_v38 = vpop.f32.mrf.mxu3 }
 0x9ca   : > { %v5788_v23 = vadd.f32 %v5787_v25, %v5675_v19  ;;  %v5678_v24 = vadd.f32 %v10857_v27, %v5677_v38 }
 0x9cc   : > { %v5851_v13 = vmax.f32 %v5788_v23, 0.0  ;;  %v5211_v32 = vpop.permute.xlu0 %5210 }
 0x9cd   : > { %v5209_v46 = vpop.permute.xlu1 %5208  ;;  %v5213_v34 = vpop.permute.xlu2 %5212 }
 0x9ce   : > { %5278 = vst.msk [vmem:[#allocation4 + $0x1b8] sm:$0xff] %vm5250_vm15, %v5209_v46  ;;  %6351 = vmatmul.msk.f32.gmra.mxu1 %vm3616_vm6, %v5851_v13  ;;  %v5471_v21 = vld [vmem:[#allocation4 + $0x1b0] sm:$0xff] }
 0x9cf   : > { %5412 = vst.msk [vmem:[#allocation4 + $0x1b8] sm:$0xff] %vm5384_vm0, %v5343_v47  ;;  %5706 = vmatmul.f32.gmra.mxu3 %v5471_v21 }
 0x9d1   : > { %6086 = vxpose.xlu2.b32.cont [5/16] (narrow) %v5999_v5, 8 }
 0x9d3   : > { %v5790_v18 = vpop.f32.mrf.mxu2  ;;  %v6007_v0 = vpop.f32.mrf.mxu1 }
 0x9d4   : > { %v5791_v58 = vadd.f32 %v5790_v18, %v5678_v24  ;;  %v4915_v33 = vpop.permute.xlu0 %4914  ;;  %v6008_v7 = vadd.f32 %v11126_v55, %v6007_v0 }
 0x9d5   : > { %v4913_v40 = vpop.permute.xlu1 %4912  ;;  %v4917_v59 = vpop.permute.xlu2 %4916  ;;  %5011 = vst.msk [vmem:[#allocation4 + $0x1d0] sm:$0xff] %vm4952_vm14, %v4915_v33 }
 0x9d6   : > { %v5852_v4 = vmax.f32 %v5791_v58, 0.0  ;;  %5009 = vst.msk [vmem:[#allocation4 + $0x1c0] sm:$0xff] %vm4952_vm14, %v4913_v40  ;;  %v5472_v35 = vld [vmem:[#allocation4 + $0x1b8] sm:$0xff] }
 0x9d7   : > { %5010 = vst.msk [vmem:[#allocation4 + $0x1c8] sm:$0xff] %vm3616_vm6, %v4913_v40  ;;  %6330 = vmatmul.msk.f32.gmra.mxu2 %vm5512_vm1, %v5472_v35 }
 0x9d8   : > { %5144 = vst.msk [vmem:[#allocation4 + $0x1c8] sm:$0xff] %vm5115_vm12, %v5076_v57  ;;  %6352 = vmatmul.msk.f32.gmra.mxu1 %vm3616_vm6, %v5852_v4 }
 0x9d9   : > { %5014 = vst.msk [vmem:[#allocation4 + $0x1e8] sm:$0xff] %vm3616_vm6, %v4917_v59  ;;  %6087 = vxpose.xlu2.b32.cont [6/16] (narrow) %v6002_v43, 8 }
 0x9da   : > { %5279 = vst.msk [vmem:[#allocation4 + $0x1c8] sm:$0xff] %vm5250_vm15, %v5211_v32  ;;  %v5680_v51 = vpop.f32.mrf.mxu3 }
 0x9db   : > { %5012 = vst.msk [vmem:[#allocation4 + $0x1d8] sm:$0xff] %vm3616_vm6, %v4915_v33  ;;  %v5681_v29 = vadd.f32 %v10857_v27, %v5680_v51 }
 0x9dc   : > { %v5347_v28 = vpop.permute.xlu0 %5346  ;;  %v5475_v16 = vld [vmem:[#allocation4 + $0x1d0] sm:$0xff] }
 0x9dd   : > { %v5345_v17 = vpop.permute.xlu1 %5344  ;;  %v5473_v48 = vld [vmem:[#allocation4 + $0x1c0] sm:$0xff]  ;;  %v6010_v27 = vpop.f32.mrf.mxu1 }
 0x9de   : > { %5413 = vst.msk [vmem:[#allocation4 + $0x1c8] sm:$0xff] %vm5384_vm0, %v5345_v17  ;;  %5709 = vmatmul.f32.gmra.mxu3 %v5473_v48  ;;  %v6011_v56 = vadd.f32 %v11126_v55, %v6010_v27  ;;  %v5349_v10 = vpop.permute.xlu2 %5348 }
 0x9e1   : > { %6088 = vxpose.xlu2.b32.cont [7/16] (narrow) %v6005_v22, 8 }
 0x9e2   : > { %v5793_v15 = vpop.f32.mrf.mxu2 }
 0x9e3   : > { %v5794_v53 = vadd.f32 %v5793_v15, %v5681_v29 }
 0x9e4   : > { %v5080_v60 = vpop.permute.xlu0 %5079 }
 0x9e5   : > { %v5853_v12 = vmax.f32 %v5794_v53, 0.0  ;;  %v5078_v8 = vpop.permute.xlu1 %5077  ;;  %v5474_v26 = vld [vmem:[#allocation4 + $0x1c8] sm:$0xff]  ;;  %5146 = vst.msk [vmem:[#allocation4 + $0x1e8] sm:$0xff] %vm5115_vm12, %v5080_v60 }
 0x9e6   : > { %5145 = vst.msk [vmem:[#allocation4 + $0x1d8] sm:$0xff] %vm5115_vm12, %v5078_v8  ;;  %5712 = vmatmul.f32.gmra.mxu3 %v5475_v16  ;;  %6331 = vmatmul.msk.f32.gmra.mxu2 %vm5512_vm1, %v5474_v26  ;;  %v5082_v1 = vpop.permute.xlu2 %5081 }
 0x9e7   : > { %5280 = vst.msk [vmem:[#allocation4 + $0x1d8] sm:$0xff] %vm5250_vm15, %v5213_v34  ;;  %6353 = vmatmul.msk.f32.gmra.mxu1 %vm3616_vm6, %v5853_v12 }
 0x9e8   : > { %5414 = vst.msk [vmem:[#allocation4 + $0x1d8] sm:$0xff] %vm5384_vm0, %v5347_v28 }
 0x9e9   : > { %6089 = vxpose.xlu2.b32.cont [8/16] (narrow) %v6008_v7, 8  ;;  %v5683_v41 = vpop.f32.mrf.mxu3 }
 0x9ea   : > { %v5684_v61 = vadd.f32 %v11186_v52, %v5683_v41 }
 0x9ec   : > { %v4785_v47 = vpop.permute.xlu0 %4784  ;;  %v6013_v62 = vpop.f32.mrf.mxu1 }
 0x9ed   : > { %v4783_v9 = vpop.permute.xlu1 %4782  ;;  %4850 = vst.msk [vmem:[#allocation4 + $0x1f0] sm:$0xff] %vm4818_vm13, %v4785_v47  ;;  %v6014_v57 = vadd.f32 %v11126_v55, %v6013_v62 }
 0x9ee   : > { %4849 = vst.msk [vmem:[#allocation4 + $0x1e0] sm:$0xff] %vm4818_vm13, %v4783_v9 }
 0x9ef   : > { %5013 = vst.msk [vmem:[#allocation4 + $0x1e0] sm:$0xff] %vm4952_vm14, %v4917_v59  ;;  %v5476_v31 = vld [vmem:[#allocation4 + $0x1d8] sm:$0xff] }
 0x9f0   : > { %6332 = vmatmul.msk.f32.gmra.mxu2 %vm5512_vm1, %v5476_v31 }
 0x9f1   : > { %6090 = vxpose.xlu2.b32.cont [9/16] (narrow) %v6011_v56, 8  ;;  %v5796_v39 = vpop.f32.mrf.mxu2  ;;  %v5686_v50 = vpop.f32.mrf.mxu3 }
 0x9f2   : > { %v5797_v14 = vadd.f32 %v5796_v39, %v5684_v61  ;;  %v5687_v54 = vadd.f32 %v11186_v52, %v5686_v50 }
 0x9f4   : > { %v5854_v3 = vmax.f32 %v5797_v14, 0.0  ;;  %v5217_v36 = vpop.permute.xlu0 %5216 }
 0x9f5   : > { %v5215_v37 = vpop.permute.xlu1 %5214 }
 0x9f6   : > { %5281 = vst.msk [vmem:[#allocation4 + $0x1e8] sm:$0xff] %vm5250_vm15, %v5215_v37  ;;  %6354 = vmatmul.msk.f32.gmra.mxu1 %vm3616_vm6, %v5854_v3  ;;  %v5477_v63 = vld [vmem:[#allocation4 + $0x1e0] sm:$0xff] }
 0x9f7   : > { %5415 = vst.msk [vmem:[#allocation4 + $0x1e8] sm:$0xff] %vm5384_vm0, %v5349_v10  ;;  %5715 = vmatmul.f32.gmra.mxu3 %v5477_v63 }
 0x9f9   : > { %6091 = vxpose.xlu2.b32.cont [10/16] (narrow) %v6014_v57, 8 }
 0x9fb   : > { %v5799_v44 = vpop.f32.mrf.mxu2  ;;  %v6016_v6 = vpop.f32.mrf.mxu1 }
 0x9fc   : > { %v5800_v49 = vadd.f32 %v5799_v44, %v5687_v54  ;;  %v6017_v19 = vadd.f32 %v11126_v55, %v6016_v6 }
 0x9fd   : > { %v4919_v20 = vpop.permute.xlu1 %4918 }
 0x9fe   : > { %v5855_v11 = vmax.f32 %v5800_v49, 0.0  ;;  %5015 = vst.msk [vmem:[#allocation4 + $0x1f0] sm:$0xff] %vm4952_vm14, %v4919_v20  ;;  %v5478_v45 = vld [vmem:[#allocation4 + $0x1e8] sm:$0xff] }
 0x9ff   : > { %5016 = vst.msk [vmem:[#allocation4 + $0x1f8] sm:$0xff] %vm3616_vm6, %v4919_v20  ;;  %6333 = vmatmul.msk.f32.gmra.mxu2 %vm5512_vm1, %v5478_v45 }
 0xa00   : > { %6355 = vmatmul.msk.f32.gmra.mxu1 %vm3616_vm6, %v5855_v11  ;;  %5147 = vst.msk [vmem:[#allocation4 + $0x1f8] sm:$0xff] %vm5115_vm12, %v5082_v1 }
 0xa01   : > { %6092 = vxpose.xlu2.b32.cont [11/16] (narrow) %v6017_v19, 8  ;;  %5282 = vst.msk [vmem:[#allocation4 + $0x1f8] sm:$0xff] %vm5250_vm15, %v5217_v36 }
 0xa02   : > { %v5689_v13 = vpop.f32.mrf.mxu3 }
 0xa03   : > { %v5690_v34 = vadd.f32 %v11186_v52, %v5689_v13 }
 0xa05   : > { %v5351_v25 = vpop.permute.xlu1 %5350  ;;  %v6019_v23 = vpop.f32.mrf.mxu1  ;;  %v5479_v2 = vld [vmem:[#allocation4 + $0x1f0] sm:$0xff] }
 0xa06   : > { %5416 = vst.msk [vmem:[#allocation4 + $0x1f8] sm:$0xff] %vm5384_vm0, %v5351_v25  ;;  %v6020_v46 = vadd.f32 %v11126_v55, %v6019_v23  ;;  %5718 = vmatmul.f32.gmra.mxu3 %v5479_v2 }
 0xa09   : > { %6093 = vxpose.xlu2.b32.cont [12/16] (narrow) %v6020_v46, 8 }
 0xa0a   : > { %v5802_v21 = vpop.f32.mrf.mxu2 }
 0xa0b   : > { %v5803_v32 = vadd.f32 %v5802_v21, %v5690_v34 }
 0xa0d   : > { %v5856_v5 = vmax.f32 %v5803_v32, 0.0  ;;  %v5480_v38 = vld [vmem:[#allocation4 + $0x1f8] sm:$0xff] }
 0xa0e   : > { %6334 = vmatmul.msk.f32.gmra.mxu2 %vm5512_vm1, %v5480_v38 }
 0xa0f   : > { %6356 = vmatmul.msk.f32.gmra.mxu1 %vm3616_vm6, %v5856_v5 }
 0xa11   : > { %v5692_v18 = vpop.f32.mrf.mxu3 }
 0xa12   : > { %v5693_v58 = vadd.f32 %v11186_v52, %v5692_v18 }
 0xa14   : > { %v6022_v24 = vpop.f32.mrf.mxu1 }
 0xa15   : > { %v6023_v30 = vadd.f32 %v11126_v55, %v6022_v24 }
 0xa17   : > { %6094 = vxpose.xlu2.b32.cont [13/16] (narrow) %v6023_v30, 8 }
 0xa19   : > { %v5805_v40 = vpop.f32.mrf.mxu2  ;;  %v5695_v35 = vpop.f32.mrf.mxu3 }
 0xa1a   : > { %v5806_v4 = vadd.f32 %v5805_v40, %v5693_v58  ;;  %v5696_v33 = vadd.f32 %v11186_v52, %v5695_v35 }
 0xa1c   : > { %v5857_v59 = vmax.f32 %v5806_v4, 0.0 }
 0xa1e   : > { %6357 = vmatmul.msk.f32.gmra.mxu1 %vm3616_vm6, %v5857_v59 }
 0xa23   : > { %v5808_v43 = vpop.f32.mrf.mxu2  ;;  %v6025_v42 = vpop.f32.mrf.mxu1 }
 0xa24   : > { %v5809_v17 = vadd.f32 %v5808_v43, %v5696_v33  ;;  %v6026_v48 = vadd.f32 %v11126_v55, %v6025_v42 }
 0xa26   : > { %v5858_v51 = vmax.f32 %v5809_v17, 0.0  ;;  %6095 = vxpose.xlu2.b32.cont [14/16] (narrow) %v6026_v48, 8 }
 0xa28   : > { %6358 = vmatmul.msk.f32.gmra.mxu1 %vm3616_vm6, %v5858_v51 }
 0xa2a   : > { %v5698_v22 = vpop.f32.mrf.mxu3 }
 0xa2b   : > { %v5699_v15 = vadd.f32 %v11186_v52, %v5698_v22 }
 0xa2d   : > { %v6028_v28 = vpop.f32.mrf.mxu1 }
 0xa2e   : > { %v6029_v29 = vadd.f32 %v11126_v55, %v6028_v28 }
 0xa30   : > { %6096 = vxpose.xlu2.b32.cont [15/16] (narrow) %v6029_v29, 8 }
 0xa32   : > { %v5811_v53 = vpop.f32.mrf.mxu2 }
 0xa33   : > { %v5812_v16 = vadd.f32 %v5811_v53, %v5699_v15 }
 0xa35   : > { %v5859_v0 = vmax.f32 %v5812_v16, 0.0 }
 0xa37   : > { %6359 = vmatmul.msk.f32.gmra.mxu1 %vm3616_vm6, %v5859_v0 }
 0xa39   : > { %v5701_v8 = vpop.f32.mrf.mxu3 }
 0xa3a   : > { %v5702_v60 = vadd.f32 %v11186_v52, %v5701_v8 }
 0xa3c   : > { %v6031_v12 = vpop.f32.mrf.mxu1 }
 0xa3d   : > { %v6032_v26 = vadd.f32 %v11126_v55, %v6031_v12 }
 0xa3f   : > { %6097 = vxpose.xlu2.b32.end [16/16] (narrow) %v6032_v26, 8 }
 0xa41   : > { %v5814_v7 = vpop.f32.mrf.mxu2  ;;  %v5704_v9 = vpop.f32.mrf.mxu3 }
 0xa42   : > { %v5815_v27 = vadd.f32 %v5814_v7, %v5702_v60  ;;  %v5705_v47 = vadd.f32 %v11186_v52, %v5704_v9 }
 0xa44   : > { %v5860_v41 = vmax.f32 %v5815_v27, 0.0 }
 0xa46   : > { %6360 = vmatmul.msk.f32.gmra.mxu1 %vm3616_vm6, %v5860_v41 }
 0xa4b   : > { %v5817_v56 = vpop.f32.mrf.mxu2  ;;  %v6034_v31 = vpop.f32.mrf.mxu1 }
 0xa4c   : > { %v5818_v61 = vadd.f32 %v5817_v56, %v5705_v47  ;;  %v6035_v39 = vadd.f32 %v11126_v55, %v6034_v31 }
 0xa4e   : > { %v5861_v14 = vmax.f32 %v5818_v61, 0.0  ;;  %6114 = vxpose.xlu0.b32.start [1/16] (narrow) %v6035_v39, 8 }
 0xa50   : > { %6361 = vmatmul.msk.f32.gmra.mxu1 %vm3616_vm6, %v5861_v14 }
 0xa52   : > { %v5707_v3 = vpop.f32.mrf.mxu3 }
 0xa53   : > { %v5708_v37 = vadd.f32 %v11186_v52, %v5707_v3 }
 0xa55   : > { %v6037_v62 = vpop.f32.mrf.mxu1 }
 0xa56   : > { %v6038_v10 = vadd.f32 %v11126_v55, %v6037_v62 }
 0xa58   : > { %6115 = vxpose.xlu0.b32.cont [2/16] (narrow) %v6038_v10, 8 }
 0xa5a   : > { %v5820_v63 = vpop.f32.mrf.mxu2 }
 0xa5b   : > { %v5821_v57 = vadd.f32 %v5820_v63, %v5708_v37 }
 0xa5d   : > { %v5862_v50 = vmax.f32 %v5821_v57, 0.0 }
 0xa5f   : > { %6362 = vmatmul.msk.f32.gmra.mxu1 %vm3616_vm6, %v5862_v50 }
 0xa61   : > { %v5710_v44 = vpop.f32.mrf.mxu3 }
 0xa62   : > { %v5711_v6 = vadd.f32 %v11186_v52, %v5710_v44 }
 0xa64   : > { %v6040_v54 = vpop.f32.mrf.mxu1 }
 0xa65   : > { %v6041_v49 = vadd.f32 %v11126_v55, %v6040_v54 }
 0xa67   : > { %6116 = vxpose.xlu0.b32.cont [3/16] (narrow) %v6041_v49, 8 }
 0xa69   : > { %v5823_v20 = vpop.f32.mrf.mxu2  ;;  %v5713_v45 = vpop.f32.mrf.mxu3 }
 0xa6a   : > { %v5824_v1 = vadd.f32 %v5823_v20, %v5711_v6  ;;  %v5714_v36 = vadd.f32 %v11186_v52, %v5713_v45 }
 0xa6c   : > { %v5863_v11 = vmax.f32 %v5824_v1, 0.0 }
 0xa6e   : > { %6363 = vmatmul.msk.f32.gmra.mxu1 %vm3616_vm6, %v5863_v11 }
 0xa73   : > { %v5826_v19 = vpop.f32.mrf.mxu2  ;;  %v6043_v25 = vpop.f32.mrf.mxu1 }
 0xa74   : > { %v5827_v23 = vadd.f32 %v5826_v19, %v5714_v36  ;;  %v6044_v2 = vadd.f32 %v11126_v55, %v6043_v25 }
 0xa76   : > { %v5864_v13 = vmax.f32 %v5827_v23, 0.0  ;;  %6117 = vxpose.xlu0.b32.cont [4/16] (narrow) %v6044_v2, 8 }
 0xa78   : > { %6364 = vmatmul.msk.f32.gmra.mxu1 %vm3616_vm6, %v5864_v13 }
 0xa7a   : > { %v5716_v34 = vpop.f32.mrf.mxu3 }
 0xa7b   : > { %v5717_v32 = vadd.f32 %v11186_v52, %v5716_v34 }
 0xa7d   : > { %v6046_v46 = vpop.f32.mrf.mxu1 }
 0xa7e   : > { %v6047_v21 = vadd.f32 %v11126_v55, %v6046_v46 }
 0xa80   : > { %6118 = vxpose.xlu0.b32.cont [5/16] (narrow) %v6047_v21, 8 }
 0xa82   : > { %v5829_v5 = vpop.f32.mrf.mxu2 }
 0xa83   : > { %v5830_v38 = vadd.f32 %v5829_v5, %v5717_v32 }
 0xa85   : > { %v5865_v24 = vmax.f32 %v5830_v38, 0.0 }
 0xa87   : > { %6365 = vmatmul.msk.f32.gmra.mxu1 %vm3616_vm6, %v5865_v24 }
 0xa89   : > { %v5719_v30 = vpop.f32.mrf.mxu3 }
 0xa8a   : > { %v5720_v40 = vadd.f32 %v11186_v52, %v5719_v30 }
 0xa8c   : > { %v6049_v18 = vpop.f32.mrf.mxu1 }
 0xa8d   : > { %v6050_v58 = vadd.f32 %v11126_v55, %v6049_v18 }
 0xa8f   : > { %6119 = vxpose.xlu0.b32.cont [6/16] (narrow) %v6050_v58, 8 }
 0xa91   : > { %v5832_v4 = vpop.f32.mrf.mxu2 }
 0xa92   : > { %v5833_v59 = vadd.f32 %v5832_v4, %v5720_v40 }
 0xa94   : > { %v5866_v35 = vmax.f32 %v5833_v59, 0.0 }
 0xa96   : > { %6366 = vmatmul.msk.f32.gmra.mxu1 %vm3616_vm6, %v5866_v35 }
 0xa9b   : > { %v6052_v33 = vpop.f32.mrf.mxu1 }
 0xa9c   : > { %v6053_v43 = vadd.f32 %v11126_v55, %v6052_v33 }
 0xa9e   : > { %6120 = vxpose.xlu0.b32.cont [7/16] (narrow) %v6053_v43, 8 }
 0xaa5   : > { %v6055_v42 = vpop.f32.mrf.mxu1 }
 0xaa6   : > { %v6056_v17 = vadd.f32 %v11126_v55, %v6055_v42 }
 0xaa8   : > { %6121 = vxpose.xlu0.b32.cont [8/16] (narrow) %v6056_v17, 8 }
 0xab4   : > { %v6058_v48 = vpop.f32.mrf.mxu1 }
 0xab5   : > { %v6059_v52 = vadd.f32 %v11126_v55, %v6058_v48 }
 0xab7   : > { %6122 = vxpose.xlu0.b32.cont [9/16] (narrow) %v6059_v52, 8 }
 0xac3   : > { %v6061_v51 = vpop.f32.mrf.mxu1 }
 0xac4   : > { %v6062_v28 = vadd.f32 %v11126_v55, %v6061_v51 }
 0xac6   : > { %6123 = vxpose.xlu0.b32.cont [10/16] (narrow) %v6062_v28, 8 }
 0xac7   : > { %6480 = shalt.err (!%p6477_p3)
}
 0xac8   : > { %6385 = dma.vmem_to_hbm [thread:$0]  (%p6637_p5), %s6172_s9, 16, %s6174_s0, %s6158_s17   ;;  %v6098_v9 = vpop.trf.xlu2  ;;  %vm11797_vm2 = vcmask 1043456  }
 0xac9   : > { %s6370_s25 = sshll.u32 %s6713_s16, 3 }
 0xaca   : > { %s423_s26 = scalar_lea.vmem %s11298_s11, %s6370_s25 }
 0xacd   : > { %v6064_v22 = vpop.f32.mrf.mxu1 }
 0xace   : > { %v6065_v29 = vadd.f32 %v11126_v55, %v6064_v22 }
 0xad0   : > { %6124 = vxpose.xlu0.b32.cont [11/16] (narrow) %v6065_v29, 8 }
 0xadc   : > { %v6067_v15 = vpop.f32.mrf.mxu1 }
 0xadd   : > { %v6068_v53 = vadd.f32 %v11126_v55, %v6067_v15 }
 0xadf   : > { %6125 = vxpose.xlu0.b32.cont [12/16] (narrow) %v6068_v53, 8 }
 0xaeb   : > { %v6070_v16 = vpop.f32.mrf.mxu1 }
 0xaec   : > { %v6071_v0 = vadd.f32 %v11126_v55, %v6070_v16 }
 0xaee   : > { %6126 = vxpose.xlu0.b32.cont [13/16] (narrow) %v6071_v0, 8 }
 0xaf5   : > { %v6073_v12 = vpop.f32.mrf.mxu1 }
 0xaf6   : > { %v6074_v8 = vadd.f32 %v11126_v55, %v6073_v12 }
 0xaf8   : > { %6127 = vxpose.xlu0.b32.cont [14/16] (narrow) %v6074_v8, 8 }
 0xb04   : > { %v6076_v26 = vpop.f32.mrf.mxu1 }
 0xb05   : > { %v6077_v60 = vadd.f32 %v11126_v55, %v6076_v26 }
 0xb07   : > { %6128 = vxpose.xlu0.b32.cont [15/16] (narrow) %v6077_v60, 8 }
 0xb13   : > { %v6079_v7 = vpop.f32.mrf.mxu1 }
 0xb14   : > { %v6080_v27 = vadd.f32 %v11126_v55, %v6079_v7 }
 0xb16   : > { %6129 = vxpose.xlu0.b32.end [16/16] (narrow) %v6080_v27, 8 }
 0xb42   : > { %v6130_v41 = vpop.trf.xlu0 }
 0xb43   : > { %v6148_v47 = vrot.slane %v6130_v41, 4 }
 0xb45   : > { %v6149_v56 = vsel %vm11797_vm2, %v6098_v9, %v6148_v47 }
 0xb46   : > { %6151 = vst [vmem:[%s423_s26] sm:$0x77] %v6149_v56 }
 0xb47 PF: > { %p6391_p4 = scmp.ge.s32.totalorder %s6515_s24, 2  ;;  %s6193_s20 = sand.u32 1, %s6503_s21  }
 0xb48   : > { %s6194_s16 = scalar_lea.sflag [#allocation6], %s6193_s20 }
 0xb49   : > { %p6388_p5 = pnand %p6391_p4, %p6641_p6 }
 0xb4b   : > { %p6389_p7 = pneg %p6388_p5 }
 0xb4d   : > { %6498 = dma.done.wait (%p6389_p7), %s6194_s16, 16  }
 0xb4e   : > { %6500 = vsyncadd (%p6389_p7), %s6194_s16, 4294967280  ;;  %p23_p8 = scmp.ge.s32.totalorder %s6624_s27, 4   ;;  %s11798_s21 = smov %s6507_s22 }
 0xb4f   : > { %s11799_s22 = smov %s6511_s23  ;;  %s11800_s23 = smov %s6635_s30 }
 0xb50   : > { %s11801_s24 = smov %s6624_s27  ;;  %25 = sbr.rel (!%p23_p8) target bundleno = 10 (0xa), region = 122 }
 0xb55   :  { %6199 = vsyncpa [#allocation6], 1 }
 0xb56   :  { %6201 = vsyncpa [#allocation6 + $0x1], 1 }

</bundles_post_ra>
